<compile_context>
chip_gen: v5e
topology: v5e:2x2
jax: 0.10.0
libtpu: 0.0.40
codegen_flags: <defaults>
</compile_context>

<pallas_src>
import numpy as np
import jax
import jax.numpy as jnp
from jax.experimental import pallas as pl
from jax.experimental.pallas import tpu as pltpu

# ---------------- configuration (small synthetic sizes) ----------------
DIM = 16            # channels
DEPTH = 2           # number of Swin blocks (block 0: W-MSA, block 1: SW-MSA)
NUM_HEADS = 2
WINDOW_SIZE = 4
MLP_RATIO = 4.0
B = 2
H = W = 8
EPS = 1e-5

HEAD_DIM = DIM // NUM_HEADS
N = WINDOW_SIZE * WINDOW_SIZE            # tokens per window
HIDDEN = int(DIM * MLP_RATIO)
SCALE = HEAD_DIM ** (-0.5)
SHIFT = WINDOW_SIZE // 2
NWIN = (H // WINDOW_SIZE) * (W // WINDOW_SIZE)   # windows per image
BN = B * NWIN                                    # total windows in the batch
BT = BN * N                                      # total tokens (== B * H * W)

# TODO(synk): padding path (H or W not a multiple of window_size) is not needed for
# this configuration; it would be handled by zero-padding in the JAX wrapper.
assert H % WINDOW_SIZE == 0 and W % WINDOW_SIZE == 0


# ============================ fused Pallas kernel ============================

def _ln(x, g, b):
    mu = jnp.mean(x, axis=-1, keepdims=True)
    var = jnp.mean(jnp.square(x - mu), axis=-1, keepdims=True)
    return (x - mu) * jax.lax.rsqrt(var + EPS) * g + b


def _basic_layer_kernel(x_ref, mask_ref, psh_ref, pun_ref,
                        n1g_ref, n1b_ref, qkvw_ref, qkvb_ref, relb_ref,
                        projw_ref, projb_ref, n2g_ref, n2b_ref,
                        w1_ref, b1_ref, w2_ref, b2_ref, o_ref):
    # x_ref: (BT, C) tokens already laid out in (batch, window, token) order.
    x = x_ref[...].astype(jnp.float32)

    for d in range(DEPTH):                       # static unroll over blocks
        shifted = (d % 2 == 1)

        # ---- LayerNorm 1 (per-token, layout invariant) ----
        xn = _ln(x, n1g_ref[d], n1b_ref[d])

        # ---- cyclic shift + re-window == static permutation -> one MXU matmul ----
        if shifted:
            xn = jnp.dot(psh_ref[...], xn, preferred_element_type=jnp.float32)
            mask_b = jnp.concatenate([mask_ref[...]] * B, axis=0)   # (BN, N, N)

        # ---- fused QKV projection: single (BT, C) x (C, 3C) matmul ----
        qkv = (jnp.dot(xn, qkvw_ref[d], preferred_element_type=jnp.float32)
               + qkvb_ref[d])                                       # (BT, 3C)

        relb = relb_ref[d]                                          # (nH, N, N)
        head_out = []
        for h in range(NUM_HEADS):               # static unroll (2 heads), all windows batched
            q = qkv[:, h * HEAD_DIM:(h + 1) * HEAD_DIM].reshape(BN, N, HEAD_DIM) * SCALE
            k = qkv[:, DIM + h * HEAD_DIM:DIM + (h + 1) * HEAD_DIM].reshape(BN, N, HEAD_DIM)
            v = qkv[:, 2 * DIM + h * HEAD_DIM:2 * DIM + (h + 1) * HEAD_DIM].reshape(BN, N, HEAD_DIM)

            attn = jnp.einsum('bnd,bmd->bnm', q, k,
                              preferred_element_type=jnp.float32)   # (BN, N, N)
            attn = attn + relb[h]
            if shifted:
                attn = attn + mask_b
            attn = attn - jnp.max(attn, axis=-1, keepdims=True)
            attn = jnp.exp(attn)
            attn = attn * pl.reciprocal(jnp.sum(attn, axis=-1, keepdims=True),
                                        approx=True)
            oh = jnp.einsum('bnm,bmd->bnd', attn, v,
                            preferred_element_type=jnp.float32)     # (BN, N, hd)
            head_out.append(oh.reshape(BT, HEAD_DIM))

        # ---- fused output projection (bias added once) ----
        y = jnp.concatenate(head_out, axis=-1)                      # (BT, C)
        y = (jnp.dot(y, projw_ref[d], preferred_element_type=jnp.float32)
             + projb_ref[d])

        # ---- reverse shift + window-reverse (inverse permutation, MXU) ----
        if shifted:
            y = jnp.dot(pun_ref[...], y, preferred_element_type=jnp.float32)

        # ---- residual ----
        x = x + y

        # ---- LayerNorm 2 + MLP + residual ----
        xn2 = _ln(x, n2g_ref[d], n2b_ref[d])
        h1 = (jnp.dot(xn2, w1_ref[d], preferred_element_type=jnp.float32)
              + b1_ref[d])
        # TODO(synk): PyTorch nn.GELU() uses the exact erf form; tanh approximation used here.
        h1 = jax.nn.gelu(h1, approximate=True)
        x = x + (jnp.dot(h1, w2_ref[d], preferred_element_type=jnp.float32)
                 + b2_ref[d])

    o_ref[...] = x.astype(o_ref.dtype)


def _basic_layer_pallas(xw_flat, params):
    def full(a):
        shape = a.shape
        return pl.BlockSpec(shape, lambda i, s=shape: (0,) * len(s))

    inputs = [
        xw_flat,
        params["attn_mask"], params["p_shift"], params["p_unshift"],
        params["norm1_g"], params["norm1_b"],
        params["qkv_w"], params["qkv_b"], params["rel_bias"],
        params["proj_w"], params["proj_b"],
        params["norm2_g"], params["norm2_b"],
        params["mlp_w1"], params["mlp_b1"], params["mlp_w2"], params["mlp_b2"],
    ]
    return pl.pallas_call(
        _basic_layer_kernel,
        out_shape=jax.ShapeDtypeStruct((BT, DIM), xw_flat.dtype),
        grid=(1,),
        in_specs=[full(a) for a in inputs],
        out_specs=pl.BlockSpec((BT, DIM), lambda i: (0, 0)),
        compiler_params=pltpu.CompilerParams(dimension_semantics=("arbitrary",)),
    )(*inputs)


# ==================== one-time JAX glue (window partition / reverse) ====================

def _window_partition_tokens(x):
    # (B, H*W, C) -> (B*nW*N, C), rows ordered (b, window, token-in-window)
    Bb, L, C = x.shape
    ws = WINDOW_SIZE
    return (x.reshape(Bb, H // ws, ws, W // ws, ws, C)
              .transpose(0, 1, 3, 2, 4, 5)
              .reshape(Bb * NWIN * N, C))


def _window_reverse_tokens(xw, Bb):
    ws = WINDOW_SIZE
    return (xw.reshape(Bb, H // ws, W // ws, ws, ws, DIM)
              .transpose(0, 1, 3, 2, 4, 5)
              .reshape(Bb, H * W, DIM))


@jax.jit
def basic_layer_forward(x, params):
    Bb = x.shape[0]
    xw = _window_partition_tokens(x)
    out = _basic_layer_pallas(xw, params)
    # downsample=None in this configuration
    return _window_reverse_tokens(out, Bb)


# ==================== static tables (numpy, trace-time constants) ====================

def _relative_position_index(ws):
    coords = np.stack(np.meshgrid(np.arange(ws), np.arange(ws), indexing="ij"))
    flat = coords.reshape(2, -1)
    rel = flat[:, :, None] - flat[:, None, :]
    rel = rel.transpose(1, 2, 0).copy()
    rel[:, :, 0] += ws - 1
    rel[:, :, 1] += ws - 1
    rel[:, :, 0] *= 2 * ws - 1
    return rel.sum(-1)                                   # (N, N) int


def _create_attn_mask(Hh, Ww, ws, ss):
    Hp = int(np.ceil(Hh / ws)) * ws
    Wp = int(np.ceil(Ww / ws)) * ws
    img_mask = np.zeros((1, Hp, Wp, 1), dtype=np.float32)
    slices = (slice(0, -ws), slice(-ws, -ss), slice(-ss, None))
    cnt = 0
    for hs in slices:
        for wsl in slices:
            img_mask[:, hs, wsl, :] = cnt
            cnt += 1
    mw = (img_mask.reshape(1, Hp // ws, ws, Wp // ws, ws, 1)
          .transpose(0, 1, 3, 2, 4, 5).reshape(-1, ws * ws))
    am = mw[:, None, :] - mw[:, :, None]
    am = np.where(am != 0, -100.0, 0.0).astype(np.float32)
    return jnp.asarray(am)                               # (nW, N, N)


def _shift_permutation(Hh, Ww, ws, s, Bb):
    # Permutation taking tokens in (window, token) layout of the *unshifted* image
    # to the (window, token) layout of the image rolled by (-s, -s); block-diag over batch.
    nWw = Ww // ws
    Nn = ws * ws
    L = Hh * Ww
    u = np.empty((Hh, Ww), dtype=np.int64)
    for hh in range(Hh):
        for ww in range(Ww):
            wi = (hh // ws) * nWw + (ww // ws)
            ni = (hh % ws) * ws + (ww % ws)
            u[hh, ww] = wi * Nn + ni
    perm = np.empty(L, dtype=np.int64)
    for hh in range(Hh):
        for ww in range(Ww):
            perm[u[hh, ww]] = u[(hh + s) % Hh, (ww + s) % Ww]
    P = np.zeros((L, L), np.float32)
    P[np.arange(L), perm] = 1.0
    Pb = np.kron(np.eye(Bb, dtype=np.float32), P)        # (Bb*L, Bb*L)
    return jnp.asarray(Pb), jnp.asarray(Pb.T)


# ============================ deterministic parameter init ============================

def init_params(key):
    rel_index = _relative_position_index(WINDOW_SIZE)
    bkeys = jax.random.split(key, DEPTH)

    def lin(kk, fan_in, shape):
        return jax.random.normal(kk, shape, jnp.float32) * (fan_in ** -0.5)

    per_block = {k: [] for k in
                 ["rel_bias", "qkv_w", "qkv_b", "proj_w", "proj_b",
                  "mlp_w1", "mlp_b1", "mlp_w2", "mlp_b2",
                  "norm1_g", "norm1_b", "norm2_g", "norm2_b"]}

    for i in range(DEPTH):
        k = jax.random.split(bkeys[i], 8)
        table = jax.random.normal(k[0], ((2 * WINDOW_SIZE - 1) ** 2, NUM_HEADS),
                                  jnp.float32) * 0.02
        rel_bias = (table[rel_index.reshape(-1)]
                    .reshape(N, N, NUM_HEADS).transpose(2, 0, 1))   # (nH, N, N)

        per_block["rel_bias"].append(rel_bias)
        per_block["qkv_w"].append(lin(k[1], DIM, (DIM, 3 * DIM)))
        per_block["qkv_b"].append(jax.random.normal(k[2], (1, 3 * DIM), jnp.float32) * 0.01)
        per_block["proj_w"].append(lin(k[3], DIM, (DIM, DIM)))
        per_block["proj_b"].append(jax.random.normal(k[4], (1, DIM), jnp.float32) * 0.01)
        per_block["mlp_w1"].append(lin(k[5], DIM, (DIM, HIDDEN)))
        per_block["mlp_b1"].append(jax.random.normal(k[6], (1, HIDDEN), jnp.float32) * 0.01)
        per_block["mlp_w2"].append(lin(k[7], HIDDEN, (HIDDEN, DIM)))
        per_block["mlp_b2"].append(jnp.zeros((1, DIM), jnp.float32))
        per_block["norm1_g"].append(jnp.ones((1, DIM), jnp.float32))
        per_block["norm1_b"].append(jnp.zeros((1, DIM), jnp.float32))
        per_block["norm2_g"].append(jnp.ones((1, DIM), jnp.float32))
        per_block["norm2_b"].append(jnp.zeros((1, DIM), jnp.float32))

    params = {name: jnp.stack(vals, axis=0) for name, vals in per_block.items()}
    params["attn_mask"] = _create_attn_mask(H, W, WINDOW_SIZE, SHIFT)        # (nW, N, N)
    p_shift, p_unshift = _shift_permutation(H, W, WINDOW_SIZE, SHIFT, B)     # (BT, BT) x2
    params["p_shift"] = p_shift
    params["p_unshift"] = p_unshift
    return params


if __name__ == "__main__":
    key = jax.random.PRNGKey(0)
    kx, kp = jax.random.split(key)
    x = jax.random.normal(kx, (B, H * W, DIM), jnp.float32)
    params = init_params(kp)

    out = basic_layer_forward(x, params)
    out = jax.block_until_ready(out)
    Ho, Wo = H, W                                   # downsample=None
    assert out.shape == (B, H * W, DIM) and (Ho, Wo) == (H, W)
    assert bool(jnp.all(jnp.isfinite(out)))
    print("KERNEL_OK")
</pallas_src>

<mosaic_0001>
module attributes {stable_mosaic.version = 11 : i64} {
  func.func @_basic_layer_kernel(%arg0: i32, %arg1: memref<128x16xf32, #tpu.memory_space<vmem>>, %arg2: memref<4x16x16xf32, #tpu.memory_space<vmem>>, %arg3: memref<128x128xf32, #tpu.memory_space<vmem>>, %arg4: memref<128x128xf32, #tpu.memory_space<vmem>>, %arg5: memref<2x1x16xf32, #tpu.memory_space<vmem>>, %arg6: memref<2x1x16xf32, #tpu.memory_space<vmem>>, %arg7: memref<2x16x48xf32, #tpu.memory_space<vmem>>, %arg8: memref<2x1x48xf32, #tpu.memory_space<vmem>>, %arg9: memref<2x2x16x16xf32, #tpu.memory_space<vmem>>, %arg10: memref<2x16x16xf32, #tpu.memory_space<vmem>>, %arg11: memref<2x1x16xf32, #tpu.memory_space<vmem>>, %arg12: memref<2x1x16xf32, #tpu.memory_space<vmem>>, %arg13: memref<2x1x16xf32, #tpu.memory_space<vmem>>, %arg14: memref<2x16x64xf32, #tpu.memory_space<vmem>>, %arg15: memref<2x1x64xf32, #tpu.memory_space<vmem>>, %arg16: memref<2x64x16xf32, #tpu.memory_space<vmem>>, %arg17: memref<2x1x16xf32, #tpu.memory_space<vmem>>, %arg18: memref<128x16xf32, #tpu.memory_space<vmem>>) attributes {dimension_semantics = [#tpu.dimension_semantics<arbitrary>], iteration_bounds = array<i64: 1>, scalar_prefetch = 0 : i64, scratch_operands = 0 : i64, tpu.core_type = #tpu.core_type<tc>, window_params = [{pipeline_mode = #tpu.pipeline_mode<synchronous>, transform_indices = @transform_0, window_bounds = array<i64: 128, 16>}, {pipeline_mode = #tpu.pipeline_mode<synchronous>, transform_indices = @transform_1, window_bounds = array<i64: 4, 16, 16>}, {pipeline_mode = #tpu.pipeline_mode<synchronous>, transform_indices = @transform_2, window_bounds = array<i64: 128, 128>}, {pipeline_mode = #tpu.pipeline_mode<synchronous>, transform_indices = @transform_3, window_bounds = array<i64: 128, 128>}, {pipeline_mode = #tpu.pipeline_mode<synchronous>, transform_indices = @transform_4, window_bounds = array<i64: 2, 1, 16>}, {pipeline_mode = #tpu.pipeline_mode<synchronous>, transform_indices = @transform_5, window_bounds = array<i64: 2, 1, 16>}, {pipeline_mode = #tpu.pipeline_mode<synchronous>, transform_indices = @transform_6, window_bounds = array<i64: 2, 16, 48>}, {pipeline_mode = #tpu.pipeline_mode<synchronous>, transform_indices = @transform_7, window_bounds = array<i64: 2, 1, 48>}, {pipeline_mode = #tpu.pipeline_mode<synchronous>, transform_indices = @transform_8, window_bounds = array<i64: 2, 2, 16, 16>}, {pipeline_mode = #tpu.pipeline_mode<synchronous>, transform_indices = @transform_9, window_bounds = array<i64: 2, 16, 16>}, {pipeline_mode = #tpu.pipeline_mode<synchronous>, transform_indices = @transform_10, window_bounds = array<i64: 2, 1, 16>}, {pipeline_mode = #tpu.pipeline_mode<synchronous>, transform_indices = @transform_11, window_bounds = array<i64: 2, 1, 16>}, {pipeline_mode = #tpu.pipeline_mode<synchronous>, transform_indices = @transform_12, window_bounds = array<i64: 2, 1, 16>}, {pipeline_mode = #tpu.pipeline_mode<synchronous>, transform_indices = @transform_13, window_bounds = array<i64: 2, 16, 64>}, {pipeline_mode = #tpu.pipeline_mode<synchronous>, transform_indices = @transform_14, window_bounds = array<i64: 2, 1, 64>}, {pipeline_mode = #tpu.pipeline_mode<synchronous>, transform_indices = @transform_15, window_bounds = array<i64: 2, 64, 16>}, {pipeline_mode = #tpu.pipeline_mode<synchronous>, transform_indices = @transform_16, window_bounds = array<i64: 2, 1, 16>}, {pipeline_mode = #tpu.pipeline_mode<synchronous>, transform_indices = @transform_17, window_bounds = array<i64: 128, 16>}]} {
    %c0 = arith.constant 0 : index
    %c0_0 = arith.constant 0 : index
    %0 = vector.load %arg1[%c0, %c0_0] : memref<128x16xf32, #tpu.memory_space<vmem>>, vector<128x16xf32>
    %c0_1 = arith.constant 0 : index
    %c0_2 = arith.constant 0 : index
    %c0_3 = arith.constant 0 : index
    %1 = vector.load %arg5[%c0_1, %c0_2, %c0_3] : memref<2x1x16xf32, #tpu.memory_space<vmem>>, vector<1x1x16xf32>
    %2 = vector.shape_cast %1 : vector<1x1x16xf32> to vector<1x16xf32>
    %c0_4 = arith.constant 0 : index
    %c0_5 = arith.constant 0 : index
    %c0_6 = arith.constant 0 : index
    %3 = vector.load %arg6[%c0_4, %c0_5, %c0_6] : memref<2x1x16xf32, #tpu.memory_space<vmem>>, vector<1x1x16xf32>
    %4 = vector.shape_cast %3 : vector<1x1x16xf32> to vector<1x16xf32>
    %cst = arith.constant dense<0.000000e+00> : vector<128xf32>
    %5 = vector.multi_reduction <add>, %0, %cst [1] : vector<128x16xf32> to vector<128xf32>
    %6 = vector.shape_cast %5 : vector<128xf32> to vector<128x1xf32>
    %cst_7 = arith.constant 1.600000e+01 : f32
    %7 = vector.broadcast %cst_7 : f32 to vector<128x1xf32>
    %8 = arith.divf %6, %7 : vector<128x1xf32>
    %9 = vector.broadcast %8 : vector<128x1xf32> to vector<128x16xf32>
    %10 = arith.subf %0, %9 : vector<128x16xf32>
    %11 = arith.mulf %10, %10 : vector<128x16xf32>
    %cst_8 = arith.constant dense<0.000000e+00> : vector<128xf32>
    %12 = vector.multi_reduction <add>, %11, %cst_8 [1] : vector<128x16xf32> to vector<128xf32>
    %13 = vector.shape_cast %12 : vector<128xf32> to vector<128x1xf32>
    %cst_9 = arith.constant 1.600000e+01 : f32
    %14 = vector.broadcast %cst_9 : f32 to vector<128x1xf32>
    %15 = arith.divf %13, %14 : vector<128x1xf32>
    %16 = vector.broadcast %8 : vector<128x1xf32> to vector<128x16xf32>
    %17 = arith.subf %0, %16 : vector<128x16xf32>
    %cst_10 = arith.constant 9.99999974E-6 : f32
    %18 = vector.broadcast %cst_10 : f32 to vector<128x1xf32>
    %19 = arith.addf %15, %18 : vector<128x1xf32>
    %20 = math.rsqrt %19 : vector<128x1xf32>
    %21 = vector.broadcast %20 : vector<128x1xf32> to vector<128x16xf32>
    %22 = arith.mulf %17, %21 : vector<128x16xf32>
    %23 = vector.broadcast %2 : vector<1x16xf32> to vector<128x16xf32>
    %24 = arith.mulf %22, %23 : vector<128x16xf32>
    %25 = vector.broadcast %4 : vector<1x16xf32> to vector<128x16xf32>
    %26 = arith.addf %24, %25 : vector<128x16xf32>
    %c0_11 = arith.constant 0 : index
    %c0_12 = arith.constant 0 : index
    %c0_13 = arith.constant 0 : index
    %27 = vector.load %arg7[%c0_11, %c0_12, %c0_13] : memref<2x16x48xf32, #tpu.memory_space<vmem>>, vector<1x16x48xf32>
    %28 = vector.shape_cast %27 : vector<1x16x48xf32> to vector<16x48xf32>
    %cst_14 = arith.constant dense<0.000000e+00> : vector<128x48xf32>
    %29 = tpu.matmul %26, %28, %cst_14 {dimension_numbers = #tpu.dot_dimension_numbers<[1], [0], [0], [1], [0, 0, 1, 1], [], []>} : vector<128x16xf32>, vector<16x48xf32>, vector<128x48xf32> -> vector<128x48xf32>
    %c0_15 = arith.constant 0 : index
    %c0_16 = arith.constant 0 : index
    %c0_17 = arith.constant 0 : index
    %30 = vector.load %arg8[%c0_15, %c0_16, %c0_17] : memref<2x1x48xf32, #tpu.memory_space<vmem>>, vector<1x1x48xf32>
    %31 = vector.shape_cast %30 : vector<1x1x48xf32> to vector<1x48xf32>
    %32 = vector.broadcast %31 : vector<1x48xf32> to vector<128x48xf32>
    %33 = arith.addf %29, %32 : vector<128x48xf32>
    %c0_18 = arith.constant 0 : index
    %c0_19 = arith.constant 0 : index
    %c0_20 = arith.constant 0 : index
    %c0_21 = arith.constant 0 : index
    %34 = vector.load %arg9[%c0_18, %c0_19, %c0_20, %c0_21] : memref<2x2x16x16xf32, #tpu.memory_space<vmem>>, vector<1x2x16x16xf32>
    %35 = vector.shape_cast %34 : vector<1x2x16x16xf32> to vector<2x16x16xf32>
    %36 = vector.extract_strided_slice %33 {offsets = [0, 0], sizes = [128, 8], strides = [1, 1]} : vector<128x48xf32> to vector<128x8xf32>
    %37 = vector.shape_cast %36 : vector<128x8xf32> to vector<8x16x8xf32>
    %cst_22 = arith.constant 0.353553385 : f32
    %38 = vector.broadcast %cst_22 : f32 to vector<8x16x8xf32>
    %39 = arith.mulf %37, %38 : vector<8x16x8xf32>
    %40 = vector.extract_strided_slice %33 {offsets = [0, 16], sizes = [128, 8], strides = [1, 1]} : vector<128x48xf32> to vector<128x8xf32>
    %41 = vector.shape_cast %40 : vector<128x8xf32> to vector<8x16x8xf32>
    %42 = vector.extract_strided_slice %33 {offsets = [0, 32], sizes = [128, 8], strides = [1, 1]} : vector<128x48xf32> to vector<128x8xf32>
    %43 = vector.shape_cast %42 : vector<128x8xf32> to vector<8x16x8xf32>
    "tpu.trace_start"() <{level = 10 : i32, message = "bnd,bmd->bnm"}> : () -> ()
    %cst_23 = arith.constant dense<0.000000e+00> : vector<8x16x16xf32>
    %44 = tpu.matmul %39, %41, %cst_23 {dimension_numbers = #tpu.dot_dimension_numbers<[2], [2], [1], [1], [0, 0, 0, 1, 1, 1], [0], [0]>} : vector<8x16x8xf32>, vector<8x16x8xf32>, vector<8x16x16xf32> -> vector<8x16x16xf32>
    "tpu.trace_stop"() : () -> ()
    %45 = vector.extract_strided_slice %35 {offsets = [0, 0, 0], sizes = [1, 16, 16], strides = [1, 1, 1]} : vector<2x16x16xf32> to vector<1x16x16xf32>
    %46 = vector.shape_cast %45 : vector<1x16x16xf32> to vector<16x16xf32>
    %47 = vector.shape_cast %46 : vector<16x16xf32> to vector<1x16x16xf32>
    %48 = vector.broadcast %47 : vector<1x16x16xf32> to vector<8x16x16xf32>
    %49 = arith.addf %44, %48 : vector<8x16x16xf32>
    %cst_24 = arith.constant dense<0xFF800000> : vector<8x16xf32>
    %50 = vector.multi_reduction <maximumf>, %49, %cst_24 [2] : vector<8x16x16xf32> to vector<8x16xf32>
    %51 = vector.shape_cast %50 : vector<8x16xf32> to vector<8x16x1xf32>
    %52 = vector.broadcast %51 : vector<8x16x1xf32> to vector<8x16x16xf32>
    %53 = arith.subf %49, %52 : vector<8x16x16xf32>
    %54 = math.exp %53 : vector<8x16x16xf32>
    %cst_25 = arith.constant dense<0.000000e+00> : vector<8x16xf32>
    %55 = vector.multi_reduction <add>, %54, %cst_25 [2] : vector<8x16x16xf32> to vector<8x16xf32>
    %56 = vector.shape_cast %55 : vector<8x16xf32> to vector<8x16x1xf32>
    %57 = tpu.reciprocal %56 {approx = true} : vector<8x16x1xf32> -> vector<8x16x1xf32>
    %58 = vector.broadcast %57 : vector<8x16x1xf32> to vector<8x16x16xf32>
    %59 = arith.mulf %54, %58 : vector<8x16x16xf32>
    "tpu.trace_start"() <{level = 10 : i32, message = "bnm,bmd->bnd"}> : () -> ()
    %cst_26 = arith.constant dense<0.000000e+00> : vector<8x16x8xf32>
    %60 = tpu.matmul %59, %43, %cst_26 {dimension_numbers = #tpu.dot_dimension_numbers<[2], [1], [1], [2], [0, 0, 0, 1, 1, 2], [0], [0]>} : vector<8x16x16xf32>, vector<8x16x8xf32>, vector<8x16x8xf32> -> vector<8x16x8xf32>
    "tpu.trace_stop"() : () -> ()
    %61 = vector.shape_cast %60 : vector<8x16x8xf32> to vector<128x8xf32>
    %62 = vector.extract_strided_slice %33 {offsets = [0, 8], sizes = [128, 8], strides = [1, 1]} : vector<128x48xf32> to vector<128x8xf32>
    %63 = vector.shape_cast %62 : vector<128x8xf32> to vector<8x16x8xf32>
    %cst_27 = arith.constant 0.353553385 : f32
    %64 = vector.broadcast %cst_27 : f32 to vector<8x16x8xf32>
    %65 = arith.mulf %63, %64 : vector<8x16x8xf32>
    %66 = vector.extract_strided_slice %33 {offsets = [0, 24], sizes = [128, 8], strides = [1, 1]} : vector<128x48xf32> to vector<128x8xf32>
    %67 = vector.shape_cast %66 : vector<128x8xf32> to vector<8x16x8xf32>
    %68 = vector.extract_strided_slice %33 {offsets = [0, 40], sizes = [128, 8], strides = [1, 1]} : vector<128x48xf32> to vector<128x8xf32>
    %69 = vector.shape_cast %68 : vector<128x8xf32> to vector<8x16x8xf32>
    "tpu.trace_start"() <{level = 10 : i32, message = "bnd,bmd->bnm"}> : () -> ()
    %cst_28 = arith.constant dense<0.000000e+00> : vector<8x16x16xf32>
    %70 = tpu.matmul %65, %67, %cst_28 {dimension_numbers = #tpu.dot_dimension_numbers<[2], [2], [1], [1], [0, 0, 0, 1, 1, 1], [0], [0]>} : vector<8x16x8xf32>, vector<8x16x8xf32>, vector<8x16x16xf32> -> vector<8x16x16xf32>
    "tpu.trace_stop"() : () -> ()
    %71 = vector.extract_strided_slice %35 {offsets = [1, 0, 0], sizes = [1, 16, 16], strides = [1, 1, 1]} : vector<2x16x16xf32> to vector<1x16x16xf32>
    %72 = vector.shape_cast %71 : vector<1x16x16xf32> to vector<16x16xf32>
    %73 = vector.shape_cast %72 : vector<16x16xf32> to vector<1x16x16xf32>
    %74 = vector.broadcast %73 : vector<1x16x16xf32> to vector<8x16x16xf32>
    %75 = arith.addf %70, %74 : vector<8x16x16xf32>
    %cst_29 = arith.constant dense<0xFF800000> : vector<8x16xf32>
    %76 = vector.multi_reduction <maximumf>, %75, %cst_29 [2] : vector<8x16x16xf32> to vector<8x16xf32>
    %77 = vector.shape_cast %76 : vector<8x16xf32> to vector<8x16x1xf32>
    %78 = vector.broadcast %77 : vector<8x16x1xf32> to vector<8x16x16xf32>
    %79 = arith.subf %75, %78 : vector<8x16x16xf32>
    %80 = math.exp %79 : vector<8x16x16xf32>
    %cst_30 = arith.constant dense<0.000000e+00> : vector<8x16xf32>
    %81 = vector.multi_reduction <add>, %80, %cst_30 [2] : vector<8x16x16xf32> to vector<8x16xf32>
    %82 = vector.shape_cast %81 : vector<8x16xf32> to vector<8x16x1xf32>
    %83 = tpu.reciprocal %82 {approx = true} : vector<8x16x1xf32> -> vector<8x16x1xf32>
    %84 = vector.broadcast %83 : vector<8x16x1xf32> to vector<8x16x16xf32>
    %85 = arith.mulf %80, %84 : vector<8x16x16xf32>
    "tpu.trace_start"() <{level = 10 : i32, message = "bnm,bmd->bnd"}> : () -> ()
    %cst_31 = arith.constant dense<0.000000e+00> : vector<8x16x8xf32>
    %86 = tpu.matmul %85, %69, %cst_31 {dimension_numbers = #tpu.dot_dimension_numbers<[2], [1], [1], [2], [0, 0, 0, 1, 1, 2], [0], [0]>} : vector<8x16x16xf32>, vector<8x16x8xf32>, vector<8x16x8xf32> -> vector<8x16x8xf32>
    "tpu.trace_stop"() : () -> ()
    %87 = vector.shape_cast %86 : vector<8x16x8xf32> to vector<128x8xf32>
    %88 = tpu.concatenate %61, %87 in 1 : vector<128x8xf32>, vector<128x8xf32> -> vector<128x16xf32>
    %c0_32 = arith.constant 0 : index
    %c0_33 = arith.constant 0 : index
    %c0_34 = arith.constant 0 : index
    %89 = vector.load %arg10[%c0_32, %c0_33, %c0_34] : memref<2x16x16xf32, #tpu.memory_space<vmem>>, vector<1x16x16xf32>
    %90 = vector.shape_cast %89 : vector<1x16x16xf32> to vector<16x16xf32>
    %cst_35 = arith.constant dense<0.000000e+00> : vector<128x16xf32>
    %91 = tpu.matmul %88, %90, %cst_35 {dimension_numbers = #tpu.dot_dimension_numbers<[1], [0], [0], [1], [0, 0, 1, 1], [], []>} : vector<128x16xf32>, vector<16x16xf32>, vector<128x16xf32> -> vector<128x16xf32>
    %c0_36 = arith.constant 0 : index
    %c0_37 = arith.constant 0 : index
    %c0_38 = arith.constant 0 : index
    %92 = vector.load %arg11[%c0_36, %c0_37, %c0_38] : memref<2x1x16xf32, #tpu.memory_space<vmem>>, vector<1x1x16xf32>
    %93 = vector.shape_cast %92 : vector<1x1x16xf32> to vector<1x16xf32>
    %94 = vector.broadcast %93 : vector<1x16xf32> to vector<128x16xf32>
    %95 = arith.addf %91, %94 : vector<128x16xf32>
    %96 = arith.addf %0, %95 : vector<128x16xf32>
    %c0_39 = arith.constant 0 : index
    %c0_40 = arith.constant 0 : index
    %c0_41 = arith.constant 0 : index
    %97 = vector.load %arg12[%c0_39, %c0_40, %c0_41] : memref<2x1x16xf32, #tpu.memory_space<vmem>>, vector<1x1x16xf32>
    %98 = vector.shape_cast %97 : vector<1x1x16xf32> to vector<1x16xf32>
    %c0_42 = arith.constant 0 : index
    %c0_43 = arith.constant 0 : index
    %c0_44 = arith.constant 0 : index
    %99 = vector.load %arg13[%c0_42, %c0_43, %c0_44] : memref<2x1x16xf32, #tpu.memory_space<vmem>>, vector<1x1x16xf32>
    %100 = vector.shape_cast %99 : vector<1x1x16xf32> to vector<1x16xf32>
    %cst_45 = arith.constant dense<0.000000e+00> : vector<128xf32>
    %101 = vector.multi_reduction <add>, %96, %cst_45 [1] : vector<128x16xf32> to vector<128xf32>
    %102 = vector.shape_cast %101 : vector<128xf32> to vector<128x1xf32>
    %cst_46 = arith.constant 1.600000e+01 : f32
    %103 = vector.broadcast %cst_46 : f32 to vector<128x1xf32>
    %104 = arith.divf %102, %103 : vector<128x1xf32>
    %105 = vector.broadcast %104 : vector<128x1xf32> to vector<128x16xf32>
    %106 = arith.subf %96, %105 : vector<128x16xf32>
    %107 = arith.mulf %106, %106 : vector<128x16xf32>
    %cst_47 = arith.constant dense<0.000000e+00> : vector<128xf32>
    %108 = vector.multi_reduction <add>, %107, %cst_47 [1] : vector<128x16xf32> to vector<128xf32>
    %109 = vector.shape_cast %108 : vector<128xf32> to vector<128x1xf32>
    %cst_48 = arith.constant 1.600000e+01 : f32
    %110 = vector.broadcast %cst_48 : f32 to vector<128x1xf32>
    %111 = arith.divf %109, %110 : vector<128x1xf32>
    %112 = vector.broadcast %104 : vector<128x1xf32> to vector<128x16xf32>
    %113 = arith.subf %96, %112 : vector<128x16xf32>
    %cst_49 = arith.constant 9.99999974E-6 : f32
    %114 = vector.broadcast %cst_49 : f32 to vector<128x1xf32>
    %115 = arith.addf %111, %114 : vector<128x1xf32>
    %116 = math.rsqrt %115 : vector<128x1xf32>
    %117 = vector.broadcast %116 : vector<128x1xf32> to vector<128x16xf32>
    %118 = arith.mulf %113, %117 : vector<128x16xf32>
    %119 = vector.broadcast %98 : vector<1x16xf32> to vector<128x16xf32>
    %120 = arith.mulf %118, %119 : vector<128x16xf32>
    %121 = vector.broadcast %100 : vector<1x16xf32> to vector<128x16xf32>
    %122 = arith.addf %120, %121 : vector<128x16xf32>
    %c0_50 = arith.constant 0 : index
    %c0_51 = arith.constant 0 : index
    %c0_52 = arith.constant 0 : index
    %123 = vector.load %arg14[%c0_50, %c0_51, %c0_52] : memref<2x16x64xf32, #tpu.memory_space<vmem>>, vector<1x16x64xf32>
    %124 = vector.shape_cast %123 : vector<1x16x64xf32> to vector<16x64xf32>
    %cst_53 = arith.constant dense<0.000000e+00> : vector<128x64xf32>
    %125 = tpu.matmul %122, %124, %cst_53 {dimension_numbers = #tpu.dot_dimension_numbers<[1], [0], [0], [1], [0, 0, 1, 1], [], []>} : vector<128x16xf32>, vector<16x64xf32>, vector<128x64xf32> -> vector<128x64xf32>
    %c0_54 = arith.constant 0 : index
    %c0_55 = arith.constant 0 : index
    %c0_56 = arith.constant 0 : index
    %126 = vector.load %arg15[%c0_54, %c0_55, %c0_56] : memref<2x1x64xf32, #tpu.memory_space<vmem>>, vector<1x1x64xf32>
    %127 = vector.shape_cast %126 : vector<1x1x64xf32> to vector<1x64xf32>
    %128 = vector.broadcast %127 : vector<1x64xf32> to vector<128x64xf32>
    %129 = arith.addf %125, %128 : vector<128x64xf32>
    %130 = arith.mulf %129, %129 : vector<128x64xf32>
    %131 = arith.mulf %129, %130 : vector<128x64xf32>
    %cst_57 = arith.constant 4.471500e-02 : f32
    %132 = vector.broadcast %cst_57 : f32 to vector<128x64xf32>
    %133 = arith.mulf %132, %131 : vector<128x64xf32>
    %134 = arith.addf %129, %133 : vector<128x64xf32>
    %cst_58 = arith.constant 0.797884583 : f32
    %135 = vector.broadcast %cst_58 : f32 to vector<128x64xf32>
    %136 = arith.mulf %135, %134 : vector<128x64xf32>
    %137 = math.tanh %136 : vector<128x64xf32>
    %cst_59 = arith.constant 1.000000e+00 : f32
    %138 = vector.broadcast %cst_59 : f32 to vector<128x64xf32>
    %139 = arith.addf %138, %137 : vector<128x64xf32>
    %cst_60 = arith.constant 5.000000e-01 : f32
    %140 = vector.broadcast %cst_60 : f32 to vector<128x64xf32>
    %141 = arith.mulf %140, %139 : vector<128x64xf32>
    %142 = arith.mulf %129, %141 : vector<128x64xf32>
    %c0_61 = arith.constant 0 : index
    %c0_62 = arith.constant 0 : index
    %c0_63 = arith.constant 0 : index
    %143 = vector.load %arg16[%c0_61, %c0_62, %c0_63] : memref<2x64x16xf32, #tpu.memory_space<vmem>>, vector<1x64x16xf32>
    %144 = vector.shape_cast %143 : vector<1x64x16xf32> to vector<64x16xf32>
    %cst_64 = arith.constant dense<0.000000e+00> : vector<128x16xf32>
    %145 = tpu.matmul %142, %144, %cst_64 {dimension_numbers = #tpu.dot_dimension_numbers<[1], [0], [0], [1], [0, 0, 1, 1], [], []>} : vector<128x64xf32>, vector<64x16xf32>, vector<128x16xf32> -> vector<128x16xf32>
    %c0_65 = arith.constant 0 : index
    %c0_66 = arith.constant 0 : index
    %c0_67 = arith.constant 0 : index
    %146 = vector.load %arg17[%c0_65, %c0_66, %c0_67] : memref<2x1x16xf32, #tpu.memory_space<vmem>>, vector<1x1x16xf32>
    %147 = vector.shape_cast %146 : vector<1x1x16xf32> to vector<1x16xf32>
    %148 = vector.broadcast %147 : vector<1x16xf32> to vector<128x16xf32>
    %149 = arith.addf %145, %148 : vector<128x16xf32>
    %150 = arith.addf %96, %149 : vector<128x16xf32>
    %c1 = arith.constant 1 : index
    %c0_68 = arith.constant 0 : index
    %c0_69 = arith.constant 0 : index
    %151 = vector.load %arg5[%c1, %c0_68, %c0_69] : memref<2x1x16xf32, #tpu.memory_space<vmem>>, vector<1x1x16xf32>
    %152 = vector.shape_cast %151 : vector<1x1x16xf32> to vector<1x16xf32>
    %c1_70 = arith.constant 1 : index
    %c0_71 = arith.constant 0 : index
    %c0_72 = arith.constant 0 : index
    %153 = vector.load %arg6[%c1_70, %c0_71, %c0_72] : memref<2x1x16xf32, #tpu.memory_space<vmem>>, vector<1x1x16xf32>
    %154 = vector.shape_cast %153 : vector<1x1x16xf32> to vector<1x16xf32>
    %cst_73 = arith.constant dense<0.000000e+00> : vector<128xf32>
    %155 = vector.multi_reduction <add>, %150, %cst_73 [1] : vector<128x16xf32> to vector<128xf32>
    %156 = vector.shape_cast %155 : vector<128xf32> to vector<128x1xf32>
    %cst_74 = arith.constant 1.600000e+01 : f32
    %157 = vector.broadcast %cst_74 : f32 to vector<128x1xf32>
    %158 = arith.divf %156, %157 : vector<128x1xf32>
    %159 = vector.broadcast %158 : vector<128x1xf32> to vector<128x16xf32>
    %160 = arith.subf %150, %159 : vector<128x16xf32>
    %161 = arith.mulf %160, %160 : vector<128x16xf32>
    %cst_75 = arith.constant dense<0.000000e+00> : vector<128xf32>
    %162 = vector.multi_reduction <add>, %161, %cst_75 [1] : vector<128x16xf32> to vector<128xf32>
    %163 = vector.shape_cast %162 : vector<128xf32> to vector<128x1xf32>
    %cst_76 = arith.constant 1.600000e+01 : f32
    %164 = vector.broadcast %cst_76 : f32 to vector<128x1xf32>
    %165 = arith.divf %163, %164 : vector<128x1xf32>
    %166 = vector.broadcast %158 : vector<128x1xf32> to vector<128x16xf32>
    %167 = arith.subf %150, %166 : vector<128x16xf32>
    %cst_77 = arith.constant 9.99999974E-6 : f32
    %168 = vector.broadcast %cst_77 : f32 to vector<128x1xf32>
    %169 = arith.addf %165, %168 : vector<128x1xf32>
    %170 = math.rsqrt %169 : vector<128x1xf32>
    %171 = vector.broadcast %170 : vector<128x1xf32> to vector<128x16xf32>
    %172 = arith.mulf %167, %171 : vector<128x16xf32>
    %173 = vector.broadcast %152 : vector<1x16xf32> to vector<128x16xf32>
    %174 = arith.mulf %172, %173 : vector<128x16xf32>
    %175 = vector.broadcast %154 : vector<1x16xf32> to vector<128x16xf32>
    %176 = arith.addf %174, %175 : vector<128x16xf32>
    %c0_78 = arith.constant 0 : index
    %c0_79 = arith.constant 0 : index
    %177 = vector.load %arg3[%c0_78, %c0_79] : memref<128x128xf32, #tpu.memory_space<vmem>>, vector<128x128xf32>
    %cst_80 = arith.constant dense<0.000000e+00> : vector<128x16xf32>
    %178 = tpu.matmul %177, %176, %cst_80 {dimension_numbers = #tpu.dot_dimension_numbers<[1], [0], [0], [1], [0, 0, 1, 1], [], []>} : vector<128x128xf32>, vector<128x16xf32>, vector<128x16xf32> -> vector<128x16xf32>
    %c0_81 = arith.constant 0 : index
    %c0_82 = arith.constant 0 : index
    %c0_83 = arith.constant 0 : index
    %179 = vector.load %arg2[%c0_81, %c0_82, %c0_83] : memref<4x16x16xf32, #tpu.memory_space<vmem>>, vector<4x16x16xf32>
    %180 = tpu.concatenate %179, %179 in 0 : vector<4x16x16xf32>, vector<4x16x16xf32> -> vector<8x16x16xf32>
    %c1_84 = arith.constant 1 : index
    %c0_85 = arith.constant 0 : index
    %c0_86 = arith.constant 0 : index
    %181 = vector.load %arg7[%c1_84, %c0_85, %c0_86] : memref<2x16x48xf32, #tpu.memory_space<vmem>>, vector<1x16x48xf32>
    %182 = vector.shape_cast %181 : vector<1x16x48xf32> to vector<16x48xf32>
    %cst_87 = arith.constant dense<0.000000e+00> : vector<128x48xf32>
    %183 = tpu.matmul %178, %182, %cst_87 {dimension_numbers = #tpu.dot_dimension_numbers<[1], [0], [0], [1], [0, 0, 1, 1], [], []>} : vector<128x16xf32>, vector<16x48xf32>, vector<128x48xf32> -> vector<128x48xf32>
    %c1_88 = arith.constant 1 : index
    %c0_89 = arith.constant 0 : index
    %c0_90 = arith.constant 0 : index
    %184 = vector.load %arg8[%c1_88, %c0_89, %c0_90] : memref<2x1x48xf32, #tpu.memory_space<vmem>>, vector<1x1x48xf32>
    %185 = vector.shape_cast %184 : vector<1x1x48xf32> to vector<1x48xf32>
    %186 = vector.broadcast %185 : vector<1x48xf32> to vector<128x48xf32>
    %187 = arith.addf %183, %186 : vector<128x48xf32>
    %c1_91 = arith.constant 1 : index
    %c0_92 = arith.constant 0 : index
    %c0_93 = arith.constant 0 : index
    %c0_94 = arith.constant 0 : index
    %188 = vector.load %arg9[%c1_91, %c0_92, %c0_93, %c0_94] : memref<2x2x16x16xf32, #tpu.memory_space<vmem>>, vector<1x2x16x16xf32>
    %189 = vector.shape_cast %188 : vector<1x2x16x16xf32> to vector<2x16x16xf32>
    %190 = vector.extract_strided_slice %187 {offsets = [0, 0], sizes = [128, 8], strides = [1, 1]} : vector<128x48xf32> to vector<128x8xf32>
    %191 = vector.shape_cast %190 : vector<128x8xf32> to vector<8x16x8xf32>
    %cst_95 = arith.constant 0.353553385 : f32
    %192 = vector.broadcast %cst_95 : f32 to vector<8x16x8xf32>
    %193 = arith.mulf %191, %192 : vector<8x16x8xf32>
    %194 = vector.extract_strided_slice %187 {offsets = [0, 16], sizes = [128, 8], strides = [1, 1]} : vector<128x48xf32> to vector<128x8xf32>
    %195 = vector.shape_cast %194 : vector<128x8xf32> to vector<8x16x8xf32>
    %196 = vector.extract_strided_slice %187 {offsets = [0, 32], sizes = [128, 8], strides = [1, 1]} : vector<128x48xf32> to vector<128x8xf32>
    %197 = vector.shape_cast %196 : vector<128x8xf32> to vector<8x16x8xf32>
    "tpu.trace_start"() <{level = 10 : i32, message = "bnd,bmd->bnm"}> : () -> ()
    %cst_96 = arith.constant dense<0.000000e+00> : vector<8x16x16xf32>
    %198 = tpu.matmul %193, %195, %cst_96 {dimension_numbers = #tpu.dot_dimension_numbers<[2], [2], [1], [1], [0, 0, 0, 1, 1, 1], [0], [0]>} : vector<8x16x8xf32>, vector<8x16x8xf32>, vector<8x16x16xf32> -> vector<8x16x16xf32>
    "tpu.trace_stop"() : () -> ()
    %199 = vector.extract_strided_slice %189 {offsets = [0, 0, 0], sizes = [1, 16, 16], strides = [1, 1, 1]} : vector<2x16x16xf32> to vector<1x16x16xf32>
    %200 = vector.shape_cast %199 : vector<1x16x16xf32> to vector<16x16xf32>
    %201 = vector.shape_cast %200 : vector<16x16xf32> to vector<1x16x16xf32>
    %202 = vector.broadcast %201 : vector<1x16x16xf32> to vector<8x16x16xf32>
    %203 = arith.addf %198, %202 : vector<8x16x16xf32>
    %204 = arith.addf %203, %180 : vector<8x16x16xf32>
    %cst_97 = arith.constant dense<0xFF800000> : vector<8x16xf32>
    %205 = vector.multi_reduction <maximumf>, %204, %cst_97 [2] : vector<8x16x16xf32> to vector<8x16xf32>
    %206 = vector.shape_cast %205 : vector<8x16xf32> to vector<8x16x1xf32>
    %207 = vector.broadcast %206 : vector<8x16x1xf32> to vector<8x16x16xf32>
    %208 = arith.subf %204, %207 : vector<8x16x16xf32>
    %209 = math.exp %208 : vector<8x16x16xf32>
    %cst_98 = arith.constant dense<0.000000e+00> : vector<8x16xf32>
    %210 = vector.multi_reduction <add>, %209, %cst_98 [2] : vector<8x16x16xf32> to vector<8x16xf32>
    %211 = vector.shape_cast %210 : vector<8x16xf32> to vector<8x16x1xf32>
    %212 = tpu.reciprocal %211 {approx = true} : vector<8x16x1xf32> -> vector<8x16x1xf32>
    %213 = vector.broadcast %212 : vector<8x16x1xf32> to vector<8x16x16xf32>
    %214 = arith.mulf %209, %213 : vector<8x16x16xf32>
    "tpu.trace_start"() <{level = 10 : i32, message = "bnm,bmd->bnd"}> : () -> ()
    %cst_99 = arith.constant dense<0.000000e+00> : vector<8x16x8xf32>
    %215 = tpu.matmul %214, %197, %cst_99 {dimension_numbers = #tpu.dot_dimension_numbers<[2], [1], [1], [2], [0, 0, 0, 1, 1, 2], [0], [0]>} : vector<8x16x16xf32>, vector<8x16x8xf32>, vector<8x16x8xf32> -> vector<8x16x8xf32>
    "tpu.trace_stop"() : () -> ()
    %216 = vector.shape_cast %215 : vector<8x16x8xf32> to vector<128x8xf32>
    %217 = vector.extract_strided_slice %187 {offsets = [0, 8], sizes = [128, 8], strides = [1, 1]} : vector<128x48xf32> to vector<128x8xf32>
    %218 = vector.shape_cast %217 : vector<128x8xf32> to vector<8x16x8xf32>
    %cst_100 = arith.constant 0.353553385 : f32
    %219 = vector.broadcast %cst_100 : f32 to vector<8x16x8xf32>
    %220 = arith.mulf %218, %219 : vector<8x16x8xf32>
    %221 = vector.extract_strided_slice %187 {offsets = [0, 24], sizes = [128, 8], strides = [1, 1]} : vector<128x48xf32> to vector<128x8xf32>
    %222 = vector.shape_cast %221 : vector<128x8xf32> to vector<8x16x8xf32>
    %223 = vector.extract_strided_slice %187 {offsets = [0, 40], sizes = [128, 8], strides = [1, 1]} : vector<128x48xf32> to vector<128x8xf32>
    %224 = vector.shape_cast %223 : vector<128x8xf32> to vector<8x16x8xf32>
    "tpu.trace_start"() <{level = 10 : i32, message = "bnd,bmd->bnm"}> : () -> ()
    %cst_101 = arith.constant dense<0.000000e+00> : vector<8x16x16xf32>
    %225 = tpu.matmul %220, %222, %cst_101 {dimension_numbers = #tpu.dot_dimension_numbers<[2], [2], [1], [1], [0, 0, 0, 1, 1, 1], [0], [0]>} : vector<8x16x8xf32>, vector<8x16x8xf32>, vector<8x16x16xf32> -> vector<8x16x16xf32>
    "tpu.trace_stop"() : () -> ()
    %226 = vector.extract_strided_slice %189 {offsets = [1, 0, 0], sizes = [1, 16, 16], strides = [1, 1, 1]} : vector<2x16x16xf32> to vector<1x16x16xf32>
    %227 = vector.shape_cast %226 : vector<1x16x16xf32> to vector<16x16xf32>
    %228 = vector.shape_cast %227 : vector<16x16xf32> to vector<1x16x16xf32>
    %229 = vector.broadcast %228 : vector<1x16x16xf32> to vector<8x16x16xf32>
    %230 = arith.addf %225, %229 : vector<8x16x16xf32>
    %231 = arith.addf %230, %180 : vector<8x16x16xf32>
    %cst_102 = arith.constant dense<0xFF800000> : vector<8x16xf32>
    %232 = vector.multi_reduction <maximumf>, %231, %cst_102 [2] : vector<8x16x16xf32> to vector<8x16xf32>
    %233 = vector.shape_cast %232 : vector<8x16xf32> to vector<8x16x1xf32>
    %234 = vector.broadcast %233 : vector<8x16x1xf32> to vector<8x16x16xf32>
    %235 = arith.subf %231, %234 : vector<8x16x16xf32>
    %236 = math.exp %235 : vector<8x16x16xf32>
    %cst_103 = arith.constant dense<0.000000e+00> : vector<8x16xf32>
    %237 = vector.multi_reduction <add>, %236, %cst_103 [2] : vector<8x16x16xf32> to vector<8x16xf32>
    %238 = vector.shape_cast %237 : vector<8x16xf32> to vector<8x16x1xf32>
    %239 = tpu.reciprocal %238 {approx = true} : vector<8x16x1xf32> -> vector<8x16x1xf32>
    %240 = vector.broadcast %239 : vector<8x16x1xf32> to vector<8x16x16xf32>
    %241 = arith.mulf %236, %240 : vector<8x16x16xf32>
    "tpu.trace_start"() <{level = 10 : i32, message = "bnm,bmd->bnd"}> : () -> ()
    %cst_104 = arith.constant dense<0.000000e+00> : vector<8x16x8xf32>
    %242 = tpu.matmul %241, %224, %cst_104 {dimension_numbers = #tpu.dot_dimension_numbers<[2], [1], [1], [2], [0, 0, 0, 1, 1, 2], [0], [0]>} : vector<8x16x16xf32>, vector<8x16x8xf32>, vector<8x16x8xf32> -> vector<8x16x8xf32>
    "tpu.trace_stop"() : () -> ()
    %243 = vector.shape_cast %242 : vector<8x16x8xf32> to vector<128x8xf32>
    %244 = tpu.concatenate %216, %243 in 1 : vector<128x8xf32>, vector<128x8xf32> -> vector<128x16xf32>
    %c1_105 = arith.constant 1 : index
    %c0_106 = arith.constant 0 : index
    %c0_107 = arith.constant 0 : index
    %245 = vector.load %arg10[%c1_105, %c0_106, %c0_107] : memref<2x16x16xf32, #tpu.memory_space<vmem>>, vector<1x16x16xf32>
    %246 = vector.shape_cast %245 : vector<1x16x16xf32> to vector<16x16xf32>
    %cst_108 = arith.constant dense<0.000000e+00> : vector<128x16xf32>
    %247 = tpu.matmul %244, %246, %cst_108 {dimension_numbers = #tpu.dot_dimension_numbers<[1], [0], [0], [1], [0, 0, 1, 1], [], []>} : vector<128x16xf32>, vector<16x16xf32>, vector<128x16xf32> -> vector<128x16xf32>
    %c1_109 = arith.constant 1 : index
    %c0_110 = arith.constant 0 : index
    %c0_111 = arith.constant 0 : index
    %248 = vector.load %arg11[%c1_109, %c0_110, %c0_111] : memref<2x1x16xf32, #tpu.memory_space<vmem>>, vector<1x1x16xf32>
    %249 = vector.shape_cast %248 : vector<1x1x16xf32> to vector<1x16xf32>
    %250 = vector.broadcast %249 : vector<1x16xf32> to vector<128x16xf32>
    %251 = arith.addf %247, %250 : vector<128x16xf32>
    %c0_112 = arith.constant 0 : index
    %c0_113 = arith.constant 0 : index
    %252 = vector.load %arg4[%c0_112, %c0_113] : memref<128x128xf32, #tpu.memory_space<vmem>>, vector<128x128xf32>
    %cst_114 = arith.constant dense<0.000000e+00> : vector<128x16xf32>
    %253 = tpu.matmul %252, %251, %cst_114 {dimension_numbers = #tpu.dot_dimension_numbers<[1], [0], [0], [1], [0, 0, 1, 1], [], []>} : vector<128x128xf32>, vector<128x16xf32>, vector<128x16xf32> -> vector<128x16xf32>
    %254 = arith.addf %150, %253 : vector<128x16xf32>
    %c1_115 = arith.constant 1 : index
    %c0_116 = arith.constant 0 : index
    %c0_117 = arith.constant 0 : index
    %255 = vector.load %arg12[%c1_115, %c0_116, %c0_117] : memref<2x1x16xf32, #tpu.memory_space<vmem>>, vector<1x1x16xf32>
    %256 = vector.shape_cast %255 : vector<1x1x16xf32> to vector<1x16xf32>
    %c1_118 = arith.constant 1 : index
    %c0_119 = arith.constant 0 : index
    %c0_120 = arith.constant 0 : index
    %257 = vector.load %arg13[%c1_118, %c0_119, %c0_120] : memref<2x1x16xf32, #tpu.memory_space<vmem>>, vector<1x1x16xf32>
    %258 = vector.shape_cast %257 : vector<1x1x16xf32> to vector<1x16xf32>
    %cst_121 = arith.constant dense<0.000000e+00> : vector<128xf32>
    %259 = vector.multi_reduction <add>, %254, %cst_121 [1] : vector<128x16xf32> to vector<128xf32>
    %260 = vector.shape_cast %259 : vector<128xf32> to vector<128x1xf32>
    %cst_122 = arith.constant 1.600000e+01 : f32
    %261 = vector.broadcast %cst_122 : f32 to vector<128x1xf32>
    %262 = arith.divf %260, %261 : vector<128x1xf32>
    %263 = vector.broadcast %262 : vector<128x1xf32> to vector<128x16xf32>
    %264 = arith.subf %254, %263 : vector<128x16xf32>
    %265 = arith.mulf %264, %264 : vector<128x16xf32>
    %cst_123 = arith.constant dense<0.000000e+00> : vector<128xf32>
    %266 = vector.multi_reduction <add>, %265, %cst_123 [1] : vector<128x16xf32> to vector<128xf32>
    %267 = vector.shape_cast %266 : vector<128xf32> to vector<128x1xf32>
    %cst_124 = arith.constant 1.600000e+01 : f32
    %268 = vector.broadcast %cst_124 : f32 to vector<128x1xf32>
    %269 = arith.divf %267, %268 : vector<128x1xf32>
    %270 = vector.broadcast %262 : vector<128x1xf32> to vector<128x16xf32>
    %271 = arith.subf %254, %270 : vector<128x16xf32>
    %cst_125 = arith.constant 9.99999974E-6 : f32
    %272 = vector.broadcast %cst_125 : f32 to vector<128x1xf32>
    %273 = arith.addf %269, %272 : vector<128x1xf32>
    %274 = math.rsqrt %273 : vector<128x1xf32>
    %275 = vector.broadcast %274 : vector<128x1xf32> to vector<128x16xf32>
    %276 = arith.mulf %271, %275 : vector<128x16xf32>
    %277 = vector.broadcast %256 : vector<1x16xf32> to vector<128x16xf32>
    %278 = arith.mulf %276, %277 : vector<128x16xf32>
    %279 = vector.broadcast %258 : vector<1x16xf32> to vector<128x16xf32>
    %280 = arith.addf %278, %279 : vector<128x16xf32>
    %c1_126 = arith.constant 1 : index
    %c0_127 = arith.constant 0 : index
    %c0_128 = arith.constant 0 : index
    %281 = vector.load %arg14[%c1_126, %c0_127, %c0_128] : memref<2x16x64xf32, #tpu.memory_space<vmem>>, vector<1x16x64xf32>
    %282 = vector.shape_cast %281 : vector<1x16x64xf32> to vector<16x64xf32>
    %cst_129 = arith.constant dense<0.000000e+00> : vector<128x64xf32>
    %283 = tpu.matmul %280, %282, %cst_129 {dimension_numbers = #tpu.dot_dimension_numbers<[1], [0], [0], [1], [0, 0, 1, 1], [], []>} : vector<128x16xf32>, vector<16x64xf32>, vector<128x64xf32> -> vector<128x64xf32>
    %c1_130 = arith.constant 1 : index
    %c0_131 = arith.constant 0 : index
    %c0_132 = arith.constant 0 : index
    %284 = vector.load %arg15[%c1_130, %c0_131, %c0_132] : memref<2x1x64xf32, #tpu.memory_space<vmem>>, vector<1x1x64xf32>
    %285 = vector.shape_cast %284 : vector<1x1x64xf32> to vector<1x64xf32>
    %286 = vector.broadcast %285 : vector<1x64xf32> to vector<128x64xf32>
    %287 = arith.addf %283, %286 : vector<128x64xf32>
    %288 = arith.mulf %287, %287 : vector<128x64xf32>
    %289 = arith.mulf %287, %288 : vector<128x64xf32>
    %cst_133 = arith.constant 4.471500e-02 : f32
    %290 = vector.broadcast %cst_133 : f32 to vector<128x64xf32>
    %291 = arith.mulf %290, %289 : vector<128x64xf32>
    %292 = arith.addf %287, %291 : vector<128x64xf32>
    %cst_134 = arith.constant 0.797884583 : f32
    %293 = vector.broadcast %cst_134 : f32 to vector<128x64xf32>
    %294 = arith.mulf %293, %292 : vector<128x64xf32>
    %295 = math.tanh %294 : vector<128x64xf32>
    %cst_135 = arith.constant 1.000000e+00 : f32
    %296 = vector.broadcast %cst_135 : f32 to vector<128x64xf32>
    %297 = arith.addf %296, %295 : vector<128x64xf32>
    %cst_136 = arith.constant 5.000000e-01 : f32
    %298 = vector.broadcast %cst_136 : f32 to vector<128x64xf32>
    %299 = arith.mulf %298, %297 : vector<128x64xf32>
    %300 = arith.mulf %287, %299 : vector<128x64xf32>
    %c1_137 = arith.constant 1 : index
    %c0_138 = arith.constant 0 : index
    %c0_139 = arith.constant 0 : index
    %301 = vector.load %arg16[%c1_137, %c0_138, %c0_139] : memref<2x64x16xf32, #tpu.memory_space<vmem>>, vector<1x64x16xf32>
    %302 = vector.shape_cast %301 : vector<1x64x16xf32> to vector<64x16xf32>
    %cst_140 = arith.constant dense<0.000000e+00> : vector<128x16xf32>
    %303 = tpu.matmul %300, %302, %cst_140 {dimension_numbers = #tpu.dot_dimension_numbers<[1], [0], [0], [1], [0, 0, 1, 1], [], []>} : vector<128x64xf32>, vector<64x16xf32>, vector<128x16xf32> -> vector<128x16xf32>
    %c1_141 = arith.constant 1 : index
    %c0_142 = arith.constant 0 : index
    %c0_143 = arith.constant 0 : index
    %304 = vector.load %arg17[%c1_141, %c0_142, %c0_143] : memref<2x1x16xf32, #tpu.memory_space<vmem>>, vector<1x1x16xf32>
    %305 = vector.shape_cast %304 : vector<1x1x16xf32> to vector<1x16xf32>
    %306 = vector.broadcast %305 : vector<1x16xf32> to vector<128x16xf32>
    %307 = arith.addf %303, %306 : vector<128x16xf32>
    %308 = arith.addf %254, %307 : vector<128x16xf32>
    %c0_144 = arith.constant 0 : index
    %c0_145 = arith.constant 0 : index
    %309 = vector.load %arg18[%c0_144, %c0_145] : memref<128x16xf32, #tpu.memory_space<vmem>>, vector<128x16xf32>
    tpu.vector_store %arg18[%c0_144, %c0_145], %308 {strides = array<i32>} : memref<128x16xf32, #tpu.memory_space<vmem>>, vector<128x16xf32>,
    return
  }
  func.func @transform_0(%arg0: i32) -> (i32, i32) {
    %c0_i32 = arith.constant 0 : i32
    %c0_i32_0 = arith.constant 0 : i32
    %c0_i32_1 = arith.constant 0 : i32
    return %c0_i32, %c0_i32_0 : i32, i32
  }
  func.func @transform_1(%arg0: i32) -> (i32, i32, i32) {
    %c0_i32 = arith.constant 0 : i32
    %c0_i32_0 = arith.constant 0 : i32
    %c0_i32_1 = arith.constant 0 : i32
    %c0_i32_2 = arith.constant 0 : i32
    return %c0_i32, %c0_i32_0, %c0_i32_1 : i32, i32, i32
  }
  func.func @transform_2(%arg0: i32) -> (i32, i32) {
    %c0_i32 = arith.constant 0 : i32
    %c0_i32_0 = arith.constant 0 : i32
    %c0_i32_1 = arith.constant 0 : i32
    return %c0_i32, %c0_i32_0 : i32, i32
  }
  func.func @transform_3(%arg0: i32) -> (i32, i32) {
    %c0_i32 = arith.constant 0 : i32
    %c0_i32_0 = arith.constant 0 : i32
    %c0_i32_1 = arith.constant 0 : i32
    return %c0_i32, %c0_i32_0 : i32, i32
  }
  func.func @transform_4(%arg0: i32) -> (i32, i32, i32) {
    %c0_i32 = arith.constant 0 : i32
    %c0_i32_0 = arith.constant 0 : i32
    %c0_i32_1 = arith.constant 0 : i32
    %c0_i32_2 = arith.constant 0 : i32
    return %c0_i32, %c0_i32_0, %c0_i32_1 : i32, i32, i32
  }
  func.func @transform_5(%arg0: i32) -> (i32, i32, i32) {
    %c0_i32 = arith.constant 0 : i32
    %c0_i32_0 = arith.constant 0 : i32
    %c0_i32_1 = arith.constant 0 : i32
    %c0_i32_2 = arith.constant 0 : i32
    return %c0_i32, %c0_i32_0, %c0_i32_1 : i32, i32, i32
  }
  func.func @transform_6(%arg0: i32) -> (i32, i32, i32) {
    %c0_i32 = arith.constant 0 : i32
    %c0_i32_0 = arith.constant 0 : i32
    %c0_i32_1 = arith.constant 0 : i32
    %c0_i32_2 = arith.constant 0 : i32
    return %c0_i32, %c0_i32_0, %c0_i32_1 : i32, i32, i32
  }
  func.func @transform_7(%arg0: i32) -> (i32, i32, i32) {
    %c0_i32 = arith.constant 0 : i32
    %c0_i32_0 = arith.constant 0 : i32
    %c0_i32_1 = arith.constant 0 : i32
    %c0_i32_2 = arith.constant 0 : i32
    return %c0_i32, %c0_i32_0, %c0_i32_1 : i32, i32, i32
  }
  func.func @transform_8(%arg0: i32) -> (i32, i32, i32, i32) {
    %c0_i32 = arith.constant 0 : i32
    %c0_i32_0 = arith.constant 0 : i32
    %c0_i32_1 = arith.constant 0 : i32
    %c0_i32_2 = arith.constant 0 : i32
    %c0_i32_3 = arith.constant 0 : i32
    return %c0_i32, %c0_i32_0, %c0_i32_1, %c0_i32_2 : i32, i32, i32, i32
  }
  func.func @transform_9(%arg0: i32) -> (i32, i32, i32) {
    %c0_i32 = arith.constant 0 : i32
    %c0_i32_0 = arith.constant 0 : i32
    %c0_i32_1 = arith.constant 0 : i32
    %c0_i32_2 = arith.constant 0 : i32
    return %c0_i32, %c0_i32_0, %c0_i32_1 : i32, i32, i32
  }
  func.func @transform_10(%arg0: i32) -> (i32, i32, i32) {
    %c0_i32 = arith.constant 0 : i32
    %c0_i32_0 = arith.constant 0 : i32
    %c0_i32_1 = arith.constant 0 : i32
    %c0_i32_2 = arith.constant 0 : i32
    return %c0_i32, %c0_i32_0, %c0_i32_1 : i32, i32, i32
  }
  func.func @transform_11(%arg0: i32) -> (i32, i32, i32) {
    %c0_i32 = arith.constant 0 : i32
    %c0_i32_0 = arith.constant 0 : i32
    %c0_i32_1 = arith.constant 0 : i32
    %c0_i32_2 = arith.constant 0 : i32
    return %c0_i32, %c0_i32_0, %c0_i32_1 : i32, i32, i32
  }
  func.func @transform_12(%arg0: i32) -> (i32, i32, i32) {
    %c0_i32 = arith.constant 0 : i32
    %c0_i32_0 = arith.constant 0 : i32
    %c0_i32_1 = arith.constant 0 : i32
    %c0_i32_2 = arith.constant 0 : i32
    return %c0_i32, %c0_i32_0, %c0_i32_1 : i32, i32, i32
  }
  func.func @transform_13(%arg0: i32) -> (i32, i32, i32) {
    %c0_i32 = arith.constant 0 : i32
    %c0_i32_0 = arith.constant 0 : i32
    %c0_i32_1 = arith.constant 0 : i32
    %c0_i32_2 = arith.constant 0 : i32
    return %c0_i32, %c0_i32_0, %c0_i32_1 : i32, i32, i32
  }
  func.func @transform_14(%arg0: i32) -> (i32, i32, i32) {
    %c0_i32 = arith.constant 0 : i32
    %c0_i32_0 = arith.constant 0 : i32
    %c0_i32_1 = arith.constant 0 : i32
    %c0_i32_2 = arith.constant 0 : i32
    return %c0_i32, %c0_i32_0, %c0_i32_1 : i32, i32, i32
  }
  func.func @transform_15(%arg0: i32) -> (i32, i32, i32) {
    %c0_i32 = arith.constant 0 : i32
    %c0_i32_0 = arith.constant 0 : i32
    %c0_i32_1 = arith.constant 0 : i32
    %c0_i32_2 = arith.constant 0 : i32
    return %c0_i32, %c0_i32_0, %c0_i32_1 : i32, i32, i32
  }
  func.func @transform_16(%arg0: i32) -> (i32, i32, i32) {
    %c0_i32 = arith.constant 0 : i32
    %c0_i32_0 = arith.constant 0 : i32
    %c0_i32_1 = arith.constant 0 : i32
    %c0_i32_2 = arith.constant 0 : i32
    return %c0_i32, %c0_i32_0, %c0_i32_1 : i32, i32, i32
  }
  func.func @transform_17(%arg0: i32) -> (i32, i32) {
    %c0_i32 = arith.constant 0 : i32
    %c0_i32_0 = arith.constant 0 : i32
    %c0_i32_1 = arith.constant 0 : i32
    return %c0_i32, %c0_i32_0 : i32, i32
  }
}

</mosaic_0001>

<bundles_post_ra>
// kernel: basic_layer_forward.1
= control target key start
LH: loop header
LB: loop body
LE: loop exit
PB: predicated region body
PF: predicated region fallthrough
CT: control target
= control target key end

     0   :  { %vm74_vm0 = vcmask 130048   ;;  %v7474_v14 = vmov 16.0   ;;  %s7475_s25 = smov 112   ;;  %s7476_s27 = smov 96   ;;  %s11303_s0 = inlined_call_operand.vmem [shape: f32[128,16], index: 0, kind: input, shape index: {}]   ;;  %s11304_s4 = inlined_call_operand.vmem [shape: f32[2,1,16], index: 4, kind: input, shape index: {}]   ;;  %s11305_s5 = inlined_call_operand.vmem [shape: f32[2,1,16], index: 5, kind: input, shape index: {}]   ;;  %s11306_s6 = inlined_call_operand.vmem [shape: f32[2,16,48], index: 6, kind: input, shape index: {}]   ;;  %s11307_s7 = inlined_call_operand.vmem [shape: f32[2,1,48], index: 7, kind: input, shape index: {}]   ;;  %s11308_s8 = inlined_call_operand.vmem [shape: f32[2,2,16,16], index: 8, kind: input, shape index: {}]   ;;  %s11309_s9 = inlined_call_operand.vmem [shape: f32[2,16,16], index: 9, kind: input, shape index: {}]   ;;  %s11310_s10 = inlined_call_operand.vmem [shape: f32[2,1,16], index: 10, kind: input, shape index: {}]   ;;  %s11311_s11 = inlined_call_operand.vmem [shape: f32[2,1,16], index: 11, kind: input, shape index: {}]   ;;  %s11312_s12 = inlined_call_operand.vmem [shape: f32[2,1,16], index: 12, kind: input, shape index: {}]   ;;  %s11313_s13 = inlined_call_operand.vmem [shape: f32[2,16,64], index: 13, kind: input, shape index: {}]   ;;  %s11314_s14 = inlined_call_operand.vmem [shape: f32[2,1,64], index: 14, kind: input, shape index: {}]   ;;  %s11315_s15 = inlined_call_operand.vmem [shape: f32[2,64,16], index: 15, kind: input, shape index: {}]   ;;  %s11316_s16 = inlined_call_operand.vmem [shape: f32[2,1,16], index: 16, kind: input, shape index: {}]   ;;  %s11317_s2 = inlined_call_operand.vmem [shape: f32[128,128], index: 2, kind: input, shape index: {}]   ;;  %s11318_s1 = inlined_call_operand.vmem [shape: f32[4,16,16], index: 1, kind: input, shape index: {}]   ;;  %s11319_s3 = inlined_call_operand.vmem [shape: f32[128,128], index: 3, kind: input, shape index: {}]   ;;  %s11320_s17 = inlined_call_operand.vmem [shape: f32[128,16], index: 17, kind: output, shape index: {}]  }
   0x1   :  { %11360 = sst [smem:[#allocation31_spill]] %s11303_s0  ;;  %7006 = vrcp.f32 %v7474_v14  ;;  %s7477_s28 = smov 120  }
   0x2   :  { %11361 = sst [smem:[#allocation32_spill]] %s11304_s4  ;;  %s7478_s30 = smov 104  }
   0x3   :  { %s11362_s26 = sld [smem:[#allocation31_spill]]  ;;  %s7479_s24 = smov 88  }
   0x4   :  { %s11364_s19 = sld [smem:[#allocation32_spill]]  ;;  %s7480_s29 = smov 8  }
   0x7   :  { %v7007_v15 = vpop.eup %7006 }
   0x8   :  { %v124_v16 = vmul.f32 16.0, %v7007_v15  ;;  %vm128_vm1 = vweird.f32 %v7007_v15 }
   0x9   :  { %v58_v0 = vld [vmem:[%s11362_s26 + $0x10] sm:$0xff]  ;;  %v56_v1 = vld [vmem:[%s11362_s26] sm:$0xff]  ;;  %v57_v6 = vld [vmem:[%s11362_s26 + $0x8] sm:$0xff] }
   0xa   :  { %v7580_v2 = vld [vmem:[%s11362_s26 + $0x20] sm:$0xff]  ;;  %v81_v3 = vsel %vm74_vm0, %v58_v0, 0.0  ;;  %v75_v4 = vsel %vm74_vm0, %v56_v1, 0.0  ;;  %v59_v7 = vld [vmem:[%s11362_s26 + $0x18] sm:$0xff]  ;;  %v61_v8 = vld [vmem:[%s11362_s26 + $0x28] sm:$0xff]  ;;  %v78_v9 = vsel %vm74_vm0, %v57_v6, 0.0 }
   0xb   :  { %v87_v5 = vsel %vm74_vm0, %v7580_v2, 0.0  ;;  %82 = vadd.xlane.f32.xlu1 %v81_v3  ;;  %76 = vadd.xlane.f32.xlu0 %v75_v4  ;;  %v84_v10 = vsel %vm74_vm0, %v59_v7, 0.0  ;;  %v90_v11 = vsel %vm74_vm0, %v61_v8, 0.0  ;;  %v62_v12 = vld [vmem:[%s11362_s26 + $0x30] sm:$0xff]  ;;  %v125_v17 = vsub.f32 1.0, %v124_v16  ;;  %v7620_v36 = vld [vmem:[%s11362_s26 + $0x48] sm:$0xff] }
   0xc   :  { %88 = vadd.xlane.f32.xlu2 %v87_v5  ;;  %v93_v13 = vsel %vm74_vm0, %v62_v12, 0.0  ;;  %v7627_v39 = vld [vmem:[%s11362_s26 + $0x38] sm:$0xff]  ;;  %v102_v41 = vsel %vm74_vm0, %v7620_v36, 0.0  ;;  %v7650_v50 = vld [vmem:[%s11362_s26 + $0x40] sm:$0xff]  ;;  %v7663_v57 = vld [vmem:[%s11362_s26 + $0x50] sm:$0xff] }
   0xd   :  { %v126_v18 = vmul.f32 %v7007_v15, %v125_v17  ;;  %v96_v44 = vsel %vm74_vm0, %v7627_v39, 0.0  ;;  %v99_v54 = vsel %vm74_vm0, %v7650_v50, 0.0  ;;  %v7670_v59 = vld [vmem:[%s11362_s26 + $0x60] sm:$0xff]  ;;  %v105_v61 = vsel %vm74_vm0, %v7663_v57, 0.0  ;;  %v7692_v4 = vld [vmem:[%s11362_s26 + $0x68] sm:$0xff] }
   0xe   :  { %v111_v62 = vsel %vm74_vm0, %v7670_v59, 0.0  ;;  %v114_v5 = vsel %vm74_vm0, %v7692_v4, 0.0 }
   0xf   :  { %v127_v19 = vadd.f32 %v7007_v15, %v126_v18 }
  0x11   :  { %v7602_v20 = vsel %vm128_vm1, %v7007_v15, %v127_v19 }
  0x12   :  { %11363 = vst [vmem:[#allocation2_spill] sm:$0xff] %v7602_v20 }
  0x13   :  { %79 = vadd.xlane.f32.xlu0 %v78_v9  ;;  %85 = vadd.xlane.f32.xlu1 %v84_v10 }
  0x14   :  { %91 = vadd.xlane.f32.xlu2 %v90_v11 }
  0x1b   :  { %94 = vadd.xlane.f32.xlu1 %v93_v13 }
  0x7e   :  { %v83_v21 = vpop.xlane.xlu1 %82  ;;  %v77_v22 = vpop.xlane.xlu0 %76 }
  0x7f   :  { %v132_v23 = vmul.f32 %v7602_v20, %v83_v21  ;;  %v130_v24 = vmul.f32 %v7602_v20, %v77_v22  ;;  %v89_v25 = vpop.xlane.xlu2 %88 }
  0x80   :  { %v134_v49 = vmul.f32 %v7602_v20, %v89_v25 }
  0x81   :  { %v7606_v26 = vsub.f32 %v58_v0, %v132_v23  ;;  %v7608_v27 = vsub.f32 %v56_v1, %v130_v24  ;;  %v7684_v1 = vld [vmem:[%s11362_s26 + $0x58] sm:$0xff] }
  0x82   :  { %v7655_v53 = vsub.f32 %v7580_v2, %v134_v49  ;;  %v108_v3 = vsel %vm74_vm0, %v7684_v1, 0.0 }
  0x83   :  { %v164_v28 = vmul.f32 %v7606_v26, %v7606_v26  ;;  %v162_v29 = vmul.f32 %v7608_v27, %v7608_v27 }
  0x84   :  { %v166_v58 = vmul.f32 %v7655_v53, %v7655_v53 }
  0x85   :  { %v184_v30 = vsel %vm74_vm0, %v164_v28, 0.0  ;;  %v178_v31 = vsel %vm74_vm0, %v162_v29, 0.0 }
  0x86   :  { %185 = vadd.xlane.f32.xlu1 %v184_v30  ;;  %179 = vadd.xlane.f32.xlu0 %v178_v31  ;;  %v80_v32 = vpop.xlane.xlu0 %79  ;;  %v86_v33 = vpop.xlane.xlu1 %85  ;;  %v190_v63 = vsel %vm74_vm0, %v166_v58, 0.0 }
  0x87   :  { %v131_v34 = vmul.f32 %v7602_v20, %v80_v32  ;;  %v92_v35 = vpop.xlane.xlu2 %91  ;;  %v133_v37 = vmul.f32 %v7602_v20, %v86_v33 }
  0x88   :  { %v135_v38 = vmul.f32 %v7602_v20, %v92_v35 }
  0x89   :  { %v7629_v40 = vsub.f32 %v57_v6, %v131_v34  ;;  %v7635_v43 = vsub.f32 %v59_v7, %v133_v37  ;;  %v473_v6 = vld [vmem:[%s11306_s6 + $0x8] sm:$0xff]  ;;  %v472_v7 = vld [vmem:[%s11306_s6] sm:$0xff] }
  0x8a   :  { %v7633_v42 = vsub.f32 %v61_v8, %v135_v38  ;;  %540 = vmatpush.msra.mxu0 %v473_v6 }
  0x8b   :  { %v163_v45 = vmul.f32 %v7629_v40, %v7629_v40  ;;  %v165_v48 = vmul.f32 %v7635_v43, %v7635_v43 }
  0x8c   :  { %v167_v47 = vmul.f32 %v7633_v42, %v7633_v42  ;;  %541 = vmatpush.msra.mxu0 %v472_v7 }
  0x8d   :  { %v181_v46 = vsel %vm74_vm0, %v163_v45, 0.0  ;;  %v187_v52 = vsel %vm74_vm0, %v165_v48, 0.0 }
  0x8e   :  { %103 = vadd.xlane.f32.xlu1 %v102_v41  ;;  %97 = vadd.xlane.f32.xlu0 %v96_v44  ;;  %v193_v51 = vsel %vm74_vm0, %v167_v47, 0.0  ;;  %v95_v55 = vpop.xlane.xlu1 %94  ;;  %v7734_v44 = vld [vmem:[%s11362_s26 + $0x70] sm:$0xff] }
  0x8f   :  { %182 = vadd.xlane.f32.xlu2 %v181_v46  ;;  %v136_v56 = vmul.f32 %v7602_v20, %v95_v55 }
  0x91   :  { %v7672_v60 = vsub.f32 %v62_v12, %v136_v56 }
  0x93   :  { %v168_v0 = vmul.f32 %v7672_v60, %v7672_v60 }
  0x95   :  { %v196_v2 = vsel %vm74_vm0, %v168_v0, 0.0 }
  0x96   :  { %194 = vadd.xlane.f32.xlu1 %v193_v51  ;;  %188 = vadd.xlane.f32.xlu0 %v187_v52  ;;  %v117_v52 = vsel %vm74_vm0, %v7734_v44, 0.0 }
  0x97   :  { %100 = vadd.xlane.f32.xlu2 %v99_v54 }
  0x9e   :  { %106 = vadd.xlane.f32.xlu0 %v105_v61  ;;  %112 = vadd.xlane.f32.xlu1 %v111_v62  ;;  %v7752_v61 = vld [vmem:[%s11364_s19] ss:$0 sm:$0xff] }
  0x9f   :  { %191 = vadd.xlane.f32.xlu2 %v190_v63 }
  0xa6   :  { %197 = vadd.xlane.f32.xlu0 %v196_v2 }
  0xa7   :  { %109 = vadd.xlane.f32.xlu2 %v108_v3 }
  0xae   :  { %115 = vadd.xlane.f32.xlu0 %v114_v5  ;;  %v7761_v5 = vld [vmem:[%s11305_s5] ss:$0 sm:$0xff] }
  0xf9   :  { %v186_v8 = vpop.xlane.xlu1 %185  ;;  %v180_v9 = vpop.xlane.xlu0 %179 }
  0xfa   :  { %v228_v10 = vmul.f32 %v186_v8, %v7602_v20  ;;  %v226_v11 = vmul.f32 %v180_v9, %v7602_v20 }
  0xfc   :  { %v7704_v12 = vadd.f32 1e-05, %v228_v10  ;;  %v242_v13 = vadd.f32 1e-05, %v226_v11 }
  0xfe   :  { %7008 = vrsqrt.f32 %v7704_v12  ;;  %vm264_vm3 = vweird.f32 %v242_v13  ;;  %vm284_vm5 = vweird.f32 %v7704_v12 }
  0xff   :  { %7010 = vrsqrt.f32 %v242_v13 }
 0x101   :  { %v104_v14 = vpop.xlane.xlu1 %103  ;;  %v98_v15 = vpop.xlane.xlu0 %97 }
 0x102   :  { %v139_v16 = vmul.f32 %v7602_v20, %v104_v14  ;;  %v183_v17 = vpop.xlane.xlu2 %182  ;;  %v137_v18 = vmul.f32 %v7602_v20, %v98_v15 }
 0x103   :  { %v227_v19 = vmul.f32 %v183_v17, %v7602_v20 }
 0x104   :  { %v7710_v21 = vpop.eup %7008  ;;  %v7713_v22 = vsub.f32 %v7620_v36, %v139_v16  ;;  %v7716_v23 = vsub.f32 %v7627_v39, %v137_v18  ;;  %v7776_v16 = vld [vmem:[%s11362_s26 + $0x78] sm:$0xff] }
 0x105   :  { %v7011_v24 = vpop.eup %7010  ;;  %v7718_v25 = vadd.f32 1e-05, %v227_v19  ;;  %v279_v28 = vmul.f32 %v7710_v21, %v7704_v12  ;;  %vm285_vm6 = vweird.f32 %v7710_v21  ;;  %v120_v12 = vsel %vm74_vm0, %v7776_v16, 0.0 }
 0x106   :  { %v259_v29 = vmul.f32 %v7011_v24, %v242_v13  ;;  %v171_v30 = vmul.f32 %v7713_v22, %v7713_v22  ;;  %v169_v31 = vmul.f32 %v7716_v23, %v7716_v23  ;;  %vm265_vm2 = vweird.f32 %v7011_v24  ;;  %vm7789_vm9 = vmor %vm284_vm5, %vm285_vm6 }
 0x107   :  { %7012 = vrsqrt.f32 %v7718_v25  ;;  %v280_v37 = vmul.f32 %v7710_v21, %v279_v28  ;;  %vm266_vm4 = vmor %vm264_vm3, %vm265_vm2  ;;  %vm274_vm8 = vweird.f32 %v7718_v25 }
 0x108   :  { %v260_v32 = vmul.f32 %v7011_v24, %v259_v29  ;;  %v205_v33 = vsel %vm74_vm0, %v171_v30, 0.0  ;;  %v199_v34 = vsel %vm74_vm0, %v169_v31, 0.0 }
 0x109   :  { %v195_v35 = vpop.xlane.xlu1 %194  ;;  %206 = vadd.xlane.f32.xlu0 %v205_v33  ;;  %200 = vadd.xlane.f32.xlu2 %v199_v34  ;;  %v189_v36 = vpop.xlane.xlu0 %188  ;;  %v281_v54 = vmul.f32 0.5, %v280_v37 }
 0x10a   :  { %v261_v38 = vmul.f32 0.5, %v260_v32  ;;  %v101_v39 = vpop.xlane.xlu2 %100  ;;  %v229_v41 = vmul.f32 %v189_v36, %v7602_v20  ;;  %v231_v47 = vmul.f32 %v195_v35, %v7602_v20 }
 0x10b   :  { %v138_v45 = vmul.f32 %v7602_v20, %v101_v39  ;;  %v282_v7 = vsub.f32 1.5, %v281_v54 }
 0x10c   :  { %v262_v46 = vsub.f32 1.5, %v261_v38  ;;  %v7738_v48 = vadd.f32 1e-05, %v229_v41  ;;  %v7754_v62 = vadd.f32 1e-05, %v231_v47 }
 0x10d   :  { %v7013_v49 = vpop.eup %7012  ;;  %v7741_v51 = vsub.f32 %v7650_v50, %v138_v45 }
 0x10e   :  { %v263_v55 = vmul.f32 %v7011_v24, %v262_v46  ;;  %v269_v56 = vmul.f32 %v7013_v49, %v7718_v25  ;;  %7014 = vrsqrt.f32 %v7738_v48  ;;  %vm275_vm7 = vweird.f32 %v7013_v49 }
 0x10f   :  { %v170_v58 = vmul.f32 %v7741_v51, %v7741_v51  ;;  %7016 = vrsqrt.f32 %v7754_v62  ;;  %vm276_vm10 = vmor %vm274_vm8, %vm275_vm7  ;;  %vm294_vm11 = vweird.f32 %v7738_v48  ;;  %vm314_vm2 = vweird.f32 %v7754_v62 }
 0x110   :  { %v270_v50 = vmul.f32 %v7013_v49, %v269_v56  ;;  %v267_v63 = vsel %vm266_vm4, %v7011_v24, %v263_v55  ;;  %v283_v24 = vmul.f32 %v7710_v21, %v282_v7 }
 0x111   :  { %v202_v0 = vsel %vm74_vm0, %v170_v58, 0.0  ;;  %118 = vadd.xlane.f32.xlu2 %v117_v52  ;;  %v107_v2 = vpop.xlane.xlu0 %106  ;;  %v418_v3 = vmul.f32 %v267_v63, %v7608_v27  ;;  %v113_v6 = vpop.xlane.xlu1 %112 }
 0x112   :  { %v271_v8 = vmul.f32 0.5, %v270_v50  ;;  %203 = vadd.xlane.f32.xlu1 %v202_v0  ;;  %v192_v9 = vpop.xlane.xlu2 %191  ;;  %v140_v10 = vmul.f32 %v7602_v20, %v107_v2  ;;  %v142_v13 = vmul.f32 %v7602_v20, %v113_v6  ;;  %v287_v39 = vsel %vm7789_vm9, %v7710_v21, %v283_v24 }
 0x113   :  { %v230_v11 = vmul.f32 %v192_v9, %v7602_v20  ;;  %v437_v27 = vmul.f32 %v7752_v61, %v418_v3  ;;  %v420_v55 = vmul.f32 %v287_v39, %v7606_v26 }
 0x114   :  { %v272_v14 = vsub.f32 1.5, %v271_v8  ;;  %v7771_v15 = vsub.f32 %v7663_v57, %v140_v10  ;;  %v7778_v17 = vpop.eup %7014  ;;  %v7800_v30 = vsub.f32 %v7670_v59, %v142_v13 }
 0x115   :  { %v7781_v18 = vadd.f32 1e-05, %v230_v11  ;;  %v456_v19 = vadd.f32 %v7761_v5, %v437_v27  ;;  %v289_v29 = vmul.f32 %v7778_v17, %v7738_v48  ;;  %v7807_v36 = vpop.eup %7016  ;;  %vm295_vm12 = vweird.f32 %v7778_v17 }
 0x116   :  { %v273_v28 = vmul.f32 %v7013_v49, %v272_v14  ;;  %v172_v25 = vmul.f32 %v7771_v15, %v7771_v15  ;;  %v174_v46 = vmul.f32 %v7800_v30, %v7800_v30  ;;  %v309_v52 = vmul.f32 %v7807_v36, %v7754_v62  ;;  %vm296_vm13 = vmor %vm294_vm11, %vm295_vm12 }
 0x117   :  { %7018 = vrsqrt.f32 %v7781_v18  ;;  %6473 = vmatmul.msk.f32.vlgmr.msra.gmra.mxu0 %vm74_vm0, %v456_v19  ;;  %v290_v31 = vmul.f32 %v7778_v17, %v289_v29  ;;  %v439_v3 = vmul.f32 %v7752_v61, %v420_v55  ;;  %vm304_vm14 = vweird.f32 %v7781_v18 }
 0x118   :  { %v208_v32 = vsel %vm74_vm0, %v172_v25, 0.0  ;;  %v277_v33 = vsel %vm276_vm10, %v7013_v49, %v273_v28  ;;  %v214_v50 = vsel %vm74_vm0, %v174_v46, 0.0  ;;  %v310_v0 = vmul.f32 %v7807_v36, %v309_v52 }
 0x119   :  { %209 = vadd.xlane.f32.xlu2 %v208_v32  ;;  %v198_v34 = vpop.xlane.xlu0 %197  ;;  %v419_v35 = vmul.f32 %v277_v33, %v7629_v40  ;;  %v291_v37 = vmul.f32 0.5, %v290_v31  ;;  %v458_v48 = vadd.f32 %v7761_v5, %v439_v3  ;;  %vm315_vm3 = vweird.f32 %v7807_v36 }
 0x11a   :  { %121 = vadd.xlane.f32.xlu1 %v120_v12  ;;  %v110_v38 = vpop.xlane.xlu2 %109  ;;  %v232_v59 = vmul.f32 %v198_v34, %v7602_v20  ;;  %v311_v27 = vmul.f32 0.5, %v310_v0  ;;  %vm316_vm4 = vmor %vm314_vm2, %vm315_vm3 }
 0x11b   :  { %v141_v41 = vmul.f32 %v7602_v20, %v110_v38  ;;  %v438_v45 = vmul.f32 %v7752_v61, %v419_v35  ;;  %v292_v47 = vsub.f32 1.5, %v291_v37 }
 0x11c   :  { %v248_v40 = vadd.f32 1e-05, %v232_v59  ;;  %v312_v57 = vsub.f32 1.5, %v311_v27 }
 0x11d   :  { %v7019_v49 = vpop.eup %7018  ;;  %v7821_v54 = vsub.f32 %v7684_v1, %v141_v41  ;;  %v457_v21 = vadd.f32 %v7761_v5, %v438_v45  ;;  %v293_v56 = vmul.f32 %v7778_v17, %v292_v47 }
 0x11e   :  { %v299_v58 = vmul.f32 %v7019_v49, %v7781_v18  ;;  %7020 = vrsqrt.f32 %v248_v40  ;;  %vm305_vm15 = vweird.f32 %v7019_v49  ;;  %v313_v25 = vmul.f32 %v7807_v36, %v312_v57 }
 0x11f   :  { %6474 = vmatmul.msk.f32.gmra.mxu0 %vm74_vm0, %v457_v21  ;;  %v173_v63 = vmul.f32 %v7821_v54, %v7821_v54  ;;  %v297_v8 = vsel %vm296_vm13, %v7778_v17, %v293_v56  ;;  %vm306_vm1 = vmor %vm304_vm14, %vm305_vm15  ;;  %vm324_vm5 = vweird.f32 %v248_v40 }
 0x120   :  { %v300_v1 = vmul.f32 %v7019_v49, %v299_v58  ;;  %v421_v13 = vmul.f32 %v297_v8, %v7635_v43  ;;  %v317_v33 = vsel %vm316_vm4, %v7807_v36, %v313_v25 }
 0x121   :  { %v211_v26 = vsel %vm74_vm0, %v173_v63, 0.0  ;;  %v116_v2 = vpop.xlane.xlu0 %115  ;;  %v423_v34 = vmul.f32 %v317_v33, %v7633_v42 }
 0x122   :  { %v301_v6 = vmul.f32 0.5, %v300_v1  ;;  %215 = vadd.xlane.f32.xlu1 %v214_v50  ;;  %212 = vadd.xlane.f32.xlu0 %v211_v26  ;;  %v143_v7 = vmul.f32 %v7602_v20, %v116_v2 }
 0x124   :  { %v7021_v9 = vpop.eup %7020  ;;  %v302_v10 = vsub.f32 1.5, %v301_v6  ;;  %v7840_v11 = vsub.f32 %v7692_v4, %v143_v7  ;;  %v440_v4 = vmul.f32 %v7752_v61, %v421_v13 }
 0x125   :  { %v319_v19 = vmul.f32 %v7021_v9, %v248_v40  ;;  %vm325_vm6 = vweird.f32 %v7021_v9 }
 0x126   :  { %v303_v14 = vmul.f32 %v7019_v49, %v302_v10  ;;  %v175_v24 = vmul.f32 %v7840_v11, %v7840_v11  ;;  %v459_v43 = vadd.f32 %v7761_v5, %v440_v4  ;;  %vm326_vm7 = vmor %vm324_vm5, %vm325_vm6 }
 0x127   :  { %6475 = vmatmul.msk.f32.gmra.mxu0 %vm74_vm0, %v458_v48  ;;  %v320_v18 = vmul.f32 %v7021_v9, %v319_v19 }
 0x128   :  { %v217_v17 = vsel %vm74_vm0, %v175_v24, 0.0  ;;  %v307_v28 = vsel %vm306_vm1, %v7019_v49, %v303_v14 }
 0x129   :  { %218 = vadd.xlane.f32.xlu2 %v217_v17  ;;  %v422_v29 = vmul.f32 %v307_v28, %v7655_v53  ;;  %v321_v12 = vmul.f32 0.5, %v320_v18  ;;  %v442_v53 = vmul.f32 %v7752_v61, %v423_v34 }
 0x12b   :  { %v441_v31 = vmul.f32 %v7752_v61, %v422_v29  ;;  %v322_v32 = vsub.f32 1.5, %v321_v12  ;;  %v461_v38 = vadd.f32 %v7761_v5, %v442_v53 }
 0x12d   :  { %v460_v62 = vadd.f32 %v7761_v5, %v441_v31  ;;  %v323_v35 = vmul.f32 %v7021_v9, %v322_v32 }
 0x12f   :  { %6476 = vmatmul.msk.f32.gmra.mxu0 %vm74_vm0, %v459_v43  ;;  %v327_v37 = vsel %vm326_vm7, %v7021_v9, %v323_v35 }
 0x130   :  { %v424_v59 = vmul.f32 %v327_v37, %v7672_v60 }
 0x132   :  { %v443_v36 = vmul.f32 %v7752_v61, %v424_v59 }
 0x134   :  { %v462_v39 = vadd.f32 %v7761_v5, %v443_v36 }
 0x137   :  { %6477 = vmatmul.msk.f32.gmra.mxu0 %vm74_vm0, %v460_v62 }
 0x13f   :  { %6478 = vmatmul.msk.f32.gmra.mxu0 %vm74_vm0, %v461_v38 }
 0x147   :  { %6479 = vmatmul.msk.f32.gmra.mxu0 %vm74_vm0, %v462_v39 }
 0x17c   :  { %v201_v42 = vpop.xlane.xlu2 %200  ;;  %v207_v41 = vpop.xlane.xlu0 %206 }
 0x17d   :  { %v233_v45 = vmul.f32 %v201_v42, %v7602_v20  ;;  %v235_v46 = vmul.f32 %v207_v41, %v7602_v20 }
 0x17f   :  { %v249_v47 = vadd.f32 1e-05, %v233_v45  ;;  %v251_v40 = vadd.f32 1e-05, %v235_v46  ;;  %v7914_v45 = vld [vmem:[%s11307_s7] ss:$0 sm:$0xff] }
 0x181   :  { %7022 = vrsqrt.f32 %v249_v47  ;;  %vm334_vm9 = vweird.f32 %v249_v47  ;;  %vm354_vm11 = vweird.f32 %v251_v40 }
 0x182   :  { %7024 = vrsqrt.f32 %v251_v40 }
 0x184   :  { %v119_v49 = vpop.xlane.xlu2 %118 }
 0x185   :  { %v204_v60 = vpop.xlane.xlu1 %203  ;;  %v144_v52 = vmul.f32 %v7602_v20, %v119_v49 }
 0x186   :  { %v234_v21 = vmul.f32 %v204_v60, %v7602_v20 }
 0x187   :  { %v7023_v55 = vpop.eup %7022  ;;  %v7873_v56 = vsub.f32 %v7734_v44, %v144_v52 }
 0x188   :  { %v7875_v58 = vpop.eup %7024  ;;  %v329_v50 = vmul.f32 %v7023_v55, %v249_v47  ;;  %v250_v63 = vadd.f32 1e-05, %v234_v21  ;;  %vm335_vm8 = vweird.f32 %v7023_v55 }
 0x189   :  { %v349_v1 = vmul.f32 %v7875_v58, %v251_v40  ;;  %v176_v0 = vmul.f32 %v7873_v56, %v7873_v56  ;;  %vm336_vm10 = vmor %vm334_vm9, %vm335_vm8  ;;  %vm355_vm12 = vweird.f32 %v7875_v58 }
 0x18a   :  { %v330_v26 = vmul.f32 %v7023_v55, %v329_v50  ;;  %7026 = vrsqrt.f32 %v250_v63  ;;  %vm7905_vm14 = vmor %vm354_vm11, %vm355_vm12  ;;  %vm344_vm15 = vweird.f32 %v250_v63 }
 0x18b   :  { %v220_v2 = vsel %vm74_vm0, %v176_v0, 0.0  ;;  %v350_v7 = vmul.f32 %v7875_v58, %v349_v1 }
 0x18c   :  { %v331_v3 = vmul.f32 0.5, %v330_v26  ;;  %221 = vadd.xlane.f32.xlu0 %v220_v2  ;;  %v210_v6 = vpop.xlane.xlu2 %209 }
 0x18d   :  { %v122_v44 = vpop.xlane.xlu1 %121  ;;  %v236_v8 = vmul.f32 %v210_v6, %v7602_v20  ;;  %v351_v19 = vmul.f32 0.5, %v350_v7 }
 0x18e   :  { %v332_v9 = vsub.f32 1.5, %v331_v3  ;;  %v145_v10 = vmul.f32 %v7602_v20, %v122_v44 }
 0x18f   :  { %v7884_v27 = vadd.f32 1e-05, %v236_v8  ;;  %v352_v29 = vsub.f32 1.5, %v351_v19 }
 0x190   :  { %v7027_v48 = vpop.eup %7026  ;;  %v333_v13 = vmul.f32 %v7023_v55, %v332_v9  ;;  %v7887_v14 = vsub.f32 %v7776_v16, %v145_v10 }
 0x191   :  { %v339_v24 = vmul.f32 %v7027_v48, %v250_v63  ;;  %7028 = vrsqrt.f32 %v7884_v27  ;;  %vm345_vm13 = vweird.f32 %v7027_v48  ;;  %v353_v38 = vmul.f32 %v7875_v58, %v352_v29 }
 0x192   :  { %v177_v17 = vmul.f32 %v7887_v14, %v7887_v14  ;;  %v337_v4 = vsel %vm336_vm10, %v7023_v55, %v333_v13  ;;  %vm346_vm1 = vmor %vm344_vm15, %vm345_vm13  ;;  %vm364_vm2 = vweird.f32 %v7884_v27 }
 0x193   :  { %v340_v57 = vmul.f32 %v7027_v48, %v339_v24  ;;  %v425_v18 = vmul.f32 %v337_v4, %v7716_v23  ;;  %v357_v60 = vsel %vm7905_vm14, %v7875_v58, %v353_v38  ;;  %vm617_vm14 = vcmask 64512  }
 0x194   :  { %v7893_v28 = vpop.f32.mrf.mxu0  ;;  %v223_v43 = vsel %vm74_vm0, %v177_v17, 0.0  ;;  %v427_v1 = vmul.f32 %v357_v60, %v7713_v22 }
 0x195   :  { %v341_v25 = vmul.f32 0.5, %v340_v57  ;;  %224 = vadd.xlane.f32.xlu1 %v223_v43  ;;  %v216_v16 = vpop.xlane.xlu1 %215  ;;  %v213_v12 = vpop.xlane.xlu0 %212  ;;  %v444_v31 = vmul.f32 %v7752_v61, %v425_v18 }
 0x196   :  { %v238_v32 = vmul.f32 %v216_v16, %v7602_v20  ;;  %v237_v33 = vmul.f32 %v213_v12, %v7602_v20  ;;  %v446_v7 = vmul.f32 %v7752_v61, %v427_v1 }
 0x197   :  { %v7029_v62 = vpop.eup %7028  ;;  %v342_v23 = vsub.f32 1.5, %v341_v25  ;;  %v463_v34 = vadd.f32 %v7761_v5, %v444_v31 }
 0x198   :  { %v359_v35 = vmul.f32 %v7029_v62, %v7884_v27  ;;  %v7902_v53 = vadd.f32 1e-05, %v238_v32  ;;  %v253_v37 = vadd.f32 1e-05, %v237_v33  ;;  %vm365_vm3 = vweird.f32 %v7029_v62 }
 0x199   :  { %v343_v36 = vmul.f32 %v7027_v48, %v342_v23  ;;  %6480 = vmatmul.msk.f32.gmra.mxu0 %vm74_vm0, %v463_v34  ;;  %vm366_vm4 = vmor %vm364_vm2, %vm365_vm3  ;;  %v465_v27 = vadd.f32 %v7761_v5, %v446_v7 }
 0x19a   :  { %v360_v39 = vmul.f32 %v7029_v62, %v359_v35  ;;  %7030 = vrsqrt.f32 %v7902_v53  ;;  %vm374_vm5 = vweird.f32 %v253_v37  ;;  %vm384_vm8 = vweird.f32 %v7902_v53 }
 0x19b   :  { %7032 = vrsqrt.f32 %v253_v37  ;;  %v347_v42 = vsel %vm346_vm1, %v7027_v48, %v343_v36 }
 0x19c   :  { %v361_v41 = vmul.f32 0.5, %v360_v39  ;;  %v546_v46 = vpop.f32.mrf.mxu0  ;;  %v219_v47 = vpop.xlane.xlu2 %218  ;;  %v426_v40 = vmul.f32 %v347_v42, %v7741_v51  ;;  %v7964_v39 = vadd.f32 %v7914_v45, %v7893_v28 }
 0x19d   :  { %v239_v49 = vmul.f32 %v219_v47, %v7602_v20  ;;  %v7922_v21 = vadd.f32 %v7914_v45, %v546_v46 }
 0x19e   :  { %v362_v52 = vsub.f32 1.5, %v361_v41  ;;  %v445_v55 = vmul.f32 %v7752_v61, %v426_v40 }
 0x19f   :  { %v255_v50 = vadd.f32 1e-05, %v239_v49 }
 0x1a0   :  { %v7031_v63 = vpop.eup %7030  ;;  %615 = vrot.lane.b32.xlu0 %v7922_v21, %s7475_s25  ;;  %v464_v51 = vadd.f32 %v7761_v5, %v445_v55  ;;  %v363_v58 = vmul.f32 %v7029_v62, %v362_v52 }
 0x1a1   :  { %v7033_v0 = vpop.eup %7032  ;;  %v379_v26 = vmul.f32 %v7031_v63, %v7902_v53  ;;  %7034 = vrsqrt.f32 %v255_v50  ;;  %vm385_vm9 = vweird.f32 %v7031_v63  ;;  %vm394_vm11 = vweird.f32 %v255_v50 }
 0x1a2   :  { %v369_v2 = vmul.f32 %v7033_v0, %v253_v37  ;;  %6481 = vmatmul.msk.f32.gmra.mxu0 %vm74_vm0, %v464_v51  ;;  %v367_v8 = vsel %vm366_vm4, %v7029_v62, %v363_v58  ;;  %vm375_vm6 = vweird.f32 %v7033_v0  ;;  %vm386_vm10 = vmor %vm384_vm8, %vm385_vm9 }
 0x1a3   :  { %v380_v44 = vmul.f32 %v7031_v63, %v379_v26  ;;  %v428_v48 = vmul.f32 %v367_v8, %v7771_v15  ;;  %vm376_vm7 = vmor %vm374_vm5, %vm375_vm6 }
 0x1a4   :  { %v370_v3 = vmul.f32 %v7033_v0, %v369_v2  ;;  %v7932_v6 = vpop.f32.mrf.mxu0 }
 0x1a5   :  { %v381_v13 = vmul.f32 0.5, %v380_v44  ;;  %v447_v4 = vmul.f32 %v7752_v61, %v428_v48 }
 0x1a6   :  { %v371_v9 = vmul.f32 0.5, %v370_v3 }
 0x1a7   :  { %v7035_v10 = vpop.eup %7034  ;;  %v382_v57 = vsub.f32 1.5, %v381_v13  ;;  %v466_v29 = vadd.f32 %v7761_v5, %v447_v4 }
 0x1a8   :  { %v372_v22 = vsub.f32 1.5, %v371_v9  ;;  %v389_v19 = vmul.f32 %v7035_v10, %v255_v50  ;;  %vm395_vm12 = vweird.f32 %v7035_v10 }
 0x1a9   :  { %v383_v25 = vmul.f32 %v7031_v63, %v382_v57  ;;  %vm396_vm13 = vmor %vm394_vm11, %vm395_vm12 }
 0x1aa   :  { %v373_v24 = vmul.f32 %v7033_v0, %v372_v22  ;;  %6482 = vmatmul.msk.f32.gmra.mxu0 %vm74_vm0, %v465_v27  ;;  %v390_v18 = vmul.f32 %v7035_v10, %v389_v19 }
 0x1ab   :  { %v387_v62 = vsel %vm386_vm10, %v7031_v63, %v383_v25 }
 0x1ac   :  { %v552_v17 = vpop.f32.mrf.mxu0  ;;  %v377_v43 = vsel %vm376_vm7, %v7033_v0, %v373_v24  ;;  %v391_v16 = vmul.f32 0.5, %v390_v18  ;;  %v430_v23 = vmul.f32 %v387_v62, %v7800_v30 }
 0x1ad   :  { %v429_v15 = vmul.f32 %v377_v43, %v7821_v54  ;;  %v7971_v41 = vadd.f32 %v7914_v45, %v552_v17  ;;  %v595_v43 = vmul.f32 0.35355338, %v7964_v39 }
 0x1ae   :  { %v392_v32 = vsub.f32 1.5, %v391_v16  ;;  %v449_v53 = vmul.f32 %v7752_v61, %v430_v23  ;;  %v8035_v23 = vadd.f32 %v7914_v45, %v7932_v6  ;;  %v8056_v6 = vpack.i.bf16 %v7964_v39, %v7922_v21 }
 0x1af   :  { %v448_v31 = vmul.f32 %v7752_v61, %v429_v15 }
 0x1b0   :  { %v393_v34 = vmul.f32 %v7035_v10, %v392_v32  ;;  %v468_v59 = vadd.f32 %v7761_v5, %v449_v53 }
 0x1b1   :  { %v467_v54 = vadd.f32 %v7761_v5, %v448_v31 }
 0x1b2   :  { %6483 = vmatmul.msk.f32.gmra.mxu0 %vm74_vm0, %v466_v29  ;;  %v397_v38 = vsel %vm396_vm13, %v7035_v10, %v393_v34 }
 0x1b3   :  { %v431_v36 = vmul.f32 %v397_v38, %v7840_v11 }
 0x1b4   :  { %v555_v12 = vpop.f32.mrf.mxu0 }
 0x1b5   :  { %v7945_v33 = vadd.f32 %v7914_v45, %v555_v12  ;;  %v450_v30 = vmul.f32 %v7752_v61, %v431_v36 }
 0x1b7   :  { %692 = vrot.lane.b32.xlu1 %v7945_v33, %s7475_s25  ;;  %v469_v42 = vadd.f32 %v7761_v5, %v450_v30 }
 0x1ba   :  { %6484 = vmatmul.msk.f32.gmra.mxu0 %vm74_vm0, %v467_v54 }
 0x1bc   :  { %v558_v35 = vpop.f32.mrf.mxu0 }
 0x1bd   :  { %v7954_v37 = vadd.f32 %v7914_v45, %v558_v35 }
 0x1bf   :  { %694 = vrot.lane.b32.xlu2 %v7954_v37, %s7475_s25  ;;  %v8019_v12 = vmul.f32 0.35355338, %v7954_v37 }
 0x1c2   :  { %6485 = vmatmul.msk.f32.gmra.mxu0 %vm74_vm0, %v468_v59 }
 0x1c4   :  { %v561_v50 = vpop.f32.mrf.mxu0 }
 0x1c5   :  { %v8024_v32 = vadd.f32 %v7914_v45, %v561_v50 }
 0x1c7   :  { %613 = vrot.lane.b32.xlu2 %v7964_v39, %s7475_s25 }
 0x1ca   :  { %6486 = vmatmul.msk.f32.gmra.mxu0 %vm74_vm0, %v469_v42 }
 0x1cf   :  { %655 = vrot.lane.b32.xlu2 %v7971_v41, %s7475_s25 }
 0x1ff   :  { %v222_v11 = vpop.xlane.xlu0 %221 }
 0x200   :  { %v240_v46 = vmul.f32 %v222_v11, %v7602_v20 }
 0x202   :  { %v256_v47 = vadd.f32 1e-05, %v240_v46 }
 0x204   :  { %7036 = vrsqrt.f32 %v256_v47  ;;  %vm404_vm15 = vweird.f32 %v256_v47 }
 0x208   :  { %v225_v28 = vpop.xlane.xlu1 %224 }
 0x209   :  { %v241_v40 = vmul.f32 %v225_v28, %v7602_v20 }
 0x20a   :  { %v7037_v49 = vpop.eup %7036 }
 0x20b   :  { %v399_v60 = vmul.f32 %v7037_v49, %v256_v47  ;;  %v257_v52 = vadd.f32 1e-05, %v241_v40  ;;  %vm405_vm1 = vweird.f32 %v7037_v49  ;;  %v8079_v47 = vpack.i.bf16 %v7945_v33, %v7954_v37  ;;  %v8091_v40 = vld [vmem:[%s11308_s8 + $0x8] sm:$0xff] }
 0x20c   :  { %vm406_vm2 = vmor %vm404_vm15, %vm405_vm1 }
 0x20d   :  { %v400_v55 = vmul.f32 %v7037_v49, %v399_v60  ;;  %7038 = vrsqrt.f32 %v257_v52  ;;  %vm414_vm3 = vweird.f32 %v257_v52  ;;  %11370 = vst [vmem:[#allocation4_spill] sm:$0xff] %v8079_v47 }
 0x20f   :  { %v401_v63 = vmul.f32 0.5, %v400_v55 }
 0x211   :  { %v402_v51 = vsub.f32 1.5, %v401_v63  ;;  %v8107_v63 = vld [vmem:[%s11308_s8] sm:$0xff] }
 0x212   :  { %v616_v1 = vpop.permute.xlu0 %615 }
 0x213   :  { %v7039_v0 = vpop.eup %7038  ;;  %v403_v58 = vmul.f32 %v7037_v49, %v402_v51  ;;  %6489 = vmatpush.xpose.msk.msra.mxu1 %vm617_vm14, %v616_v1 }
 0x214   :  { %v409_v26 = vmul.f32 %v7039_v0, %v257_v52  ;;  %vm415_vm4 = vweird.f32 %v7039_v0 }
 0x215   :  { %v407_v2 = vsel %vm406_vm2, %v7037_v49, %v403_v58  ;;  %vm416_vm5 = vmor %vm414_vm3, %vm415_vm4 }
 0x216   :  { %v410_v3 = vmul.f32 %v7039_v0, %v409_v26  ;;  %v564_v7 = vpop.f32.mrf.mxu0  ;;  %v432_v44 = vmul.f32 %v407_v2, %v7873_v56 }
 0x217   :  { %v7980_v8 = vadd.f32 %v7914_v45, %v564_v7  ;;  %v8128_v7 = vmul.f32 0.35355338, %v8035_v23 }
 0x218   :  { %v411_v9 = vmul.f32 0.5, %v410_v3  ;;  %v451_v10 = vmul.f32 %v7752_v61, %v432_v44  ;;  %v8132_v44 = vmul.f32 0.35355338, %v7971_v41 }
 0x219   :  { %v695_v22 = vpop.permute.xlu2 %694  ;;  %733 = vrot.lane.b32.xlu2 %v7980_v8, %s7475_s25  ;;  %v6845_v36 = vpack.i.bf16 %v7980_v8, %v7971_v41 }
 0x21a   :  { %v412_v27 = vsub.f32 1.5, %v411_v9  ;;  %6497 = vmatpush.xpose.msk.msra.mxu3 %vm617_vm14, %v695_v22  ;;  %v470_v48 = vadd.f32 %v7761_v5, %v451_v10 }
 0x21c   :  { %v413_v13 = vmul.f32 %v7039_v0, %v412_v27  ;;  %6487 = vmatmul.msk.f32.gmra.mxu0 %vm74_vm0, %v470_v48  ;;  %v8152_v27 = vmul.f32 0.35355338, %v8024_v32 }
 0x21e   :  { %v417_v56 = vsel %vm416_vm5, %v7039_v0, %v413_v13 }
 0x21f   :  { %v567_v19 = vpop.f32.mrf.mxu0  ;;  %v433_v24 = vmul.f32 %v417_v56, %v7887_v14 }
 0x220   :  { %v7990_v17 = vadd.f32 %v7914_v45, %v567_v19  ;;  %v8164_v19 = vmul.f32 0.35355338, %v7980_v8 }
 0x221   :  { %v614_v4 = vpop.permute.xlu2 %613  ;;  %v452_v57 = vmul.f32 %v7752_v61, %v433_v24  ;;  %v8004_v61 = vmul.f32 0.35355338, %v7922_v21 }
 0x222   :  { %770 = vrot.lane.b32.xlu2 %v7990_v17, %s7475_s25  ;;  %6490 = vmatpush.xpose.msk.msra.mxu1 %vm617_vm14, %v614_v4  ;;  %v8158_v13 = vmul.f32 0.35355338, %v7990_v17 }
 0x223   :  { %v471_v18 = vadd.f32 %v7761_v5, %v452_v57  ;;  %v8007_v5 = vmul.f32 0.35355338, %v7945_v33 }
 0x225   :  { %6488 = vmatmul.msk.f32.gmra.mxu0 %vm74_vm0, %v471_v18  ;;  %6491 = vmatmul.msk.f32.vlgmr.msra.gmra.mxu1 %vm617_vm14, %v595_v43 }
 0x227   :  { %v570_v14 = vpop.f32.mrf.mxu0 }
 0x228   :  { %v8040_v35 = vadd.f32 %v7914_v45, %v570_v14 }
 0x229   :  { %v693_v29 = vpop.permute.xlu1 %692  ;;  %v656_v15 = vpop.permute.xlu2 %655 }
 0x22a   :  { %6493 = vmatpush.xpose.msk.msrb.mxu1 %vm617_vm14, %v656_v15  ;;  %6819 = vmatpush.xpose.msk.msra.mxu2 %vm617_vm14, %v656_v15  ;;  %v8169_v24 = vmul.f32 0.35355338, %v8040_v35 }
 0x22b   :  { %6498 = vmatpush.xpose.msk.msra.mxu3 %vm617_vm14, %v693_v29 }
 0x22d   :  { %6492 = vmatmul.msk.f32.gmra.mxu1 %vm617_vm14, %v8004_v61 }
 0x22e   :  { %6499 = vmatmul.msk.f32.vlgmr.msra.gmra.mxu3 %vm617_vm14, %v8007_v5 }
 0x22f   :  { %v573_v25 = vpop.f32.mrf.mxu0 }
 0x230   :  { %v8014_v16 = vadd.f32 %v7914_v45, %v573_v25 }
 0x232   :  { %809 = vrot.lane.b32.xlu1 %v8014_v16, %s7475_s25 }
 0x236   :  { %6500 = vmatmul.msk.f32.gmra.mxu3 %vm617_vm14, %v8019_v12 }
 0x237   :  { %v576_v31 = vpop.f32.mrf.mxu0 }
 0x238   :  { %v8027_v62 = vadd.f32 %v7914_v45, %v576_v31 }
 0x23a   :  { %731 = vrot.lane.b32.xlu1 %v8024_v32, %s7475_s25  ;;  %811 = vrot.lane.b32.xlu0 %v8027_v62, %s7475_s25  ;;  %v8062_v59 = vpack.i.bf16 %v8014_v16, %v8027_v62 }
 0x23c   :  { %11369 = vst [vmem:[#allocation3_spill] sm:$0xff] %v8062_v59 }
 0x23f   :  { %v579_v54 = vpop.f32.mrf.mxu0 }
 0x240   :  { %v8050_v38 = vadd.f32 %v7914_v45, %v579_v54 }
 0x242   :  { %653 = vrot.lane.b32.xlu0 %v8035_v23, %s7475_s25  ;;  %v6860_v0 = vpack.i.bf16 %v8050_v38, %v7990_v17  ;;  %v8174_v18 = vmul.f32 0.35355338, %v8050_v38 }
 0x247   :  { %v582_v34 = vpop.f32.mrf.mxu0 }
 0x248   :  { %v8043_v53 = vadd.f32 %v7914_v45, %v582_v34 }
 0x24a   :  { %850 = vrot.lane.b32.xlu1 %v8043_v53, %s7475_s25  ;;  %772 = vrot.lane.b32.xlu0 %v8040_v35, %s7475_s25  ;;  %v6855_v9 = vpack.i.bf16 %v8043_v53, %v8040_v35  ;;  %v8179_v29 = vmul.f32 0.35355338, %v8043_v53 }
 0x252   :  { %848 = vrot.lane.b32.xlu0 %v8050_v38, %s7475_s25 }
 0x25a   :  { %6836 = vrot.lane.b32.xlu0 %v8056_v6, %s7476_s27 }
 0x262   :  { %6841 = vrot.lane.b32.xlu0 %v8062_v59, %s7476_s27 }
 0x26a   :  { %6846 = vrot.lane.b32.xlu0 %v6845_v36, %s7476_s27 }
 0x272   :  { %1380 = vrot.lane.b32.xlu0 %v595_v43, %s7477_s28 }
 0x273   :  { %v734_v3 = vpop.permute.xlu2 %733 }
 0x27c   :  { %v771_v48 = vpop.permute.xlu2 %770 }
 0x299   :  { %v585_v30 = vpop.f32.mrf.mxu0 }
 0x29a   :  { %v8071_v42 = vadd.f32 %v7914_v45, %v585_v30 }
 0x29c   :  { %887 = vrot.lane.b32.xlu1 %v8071_v42, %s7475_s25 }
 0x2a2   :  { %v588_v11 = vpop.f32.mrf.mxu0  ;;  %v8075_v46 = vpop.f32.mrf.mxu1 }
 0x2a3   :  { %v8082_v28 = vadd.f32 %v7914_v45, %v588_v11  ;;  %v6850_v45 = vpack.i.bf16 %v8024_v32, %v8035_v23  ;;  %v8185_v31 = vadd.f32 %v8075_v46, %v8107_v63 }
 0x2a4   :  { %6831 = vrot.lane.b32.xlu1 %v8079_v47, %s7476_s27  ;;  %v810_v49 = vpop.permute.xlu1 %809 }
 0x2a5   :  { %889 = vrot.lane.b32.xlu2 %v8082_v28, %s7475_s25  ;;  %v924_v54 = vsel %vm74_vm0, %v8185_v31, -inf }
 0x2aa   :  { %v648_v60 = vpop.f32.mrf.mxu1 }
 0x2ab   :  { %v8094_v52 = vadd.f32 %v648_v60, %v8091_v40  ;;  %v8192_v60 = vmul.f32 0.35355338, %v8071_v42 }
 0x2ac   :  { %v812_v55 = vpop.permute.xlu0 %811  ;;  %1386 = vrot.lane.b32.xlu1 %v7922_v21, %s7478_s30  ;;  %v8114_v21 = vmul.f32 0.35355338, %v8014_v16  ;;  %v732_v58 = vpop.permute.xlu1 %731 }
 0x2ad   :  { %6851 = vrot.lane.b32.xlu2 %v6850_v45, %s7476_s27  ;;  %6509 = vmatpush.xpose.msk.msrb.mxu3 %vm617_vm14, %v812_v55  ;;  %v927_v50 = vsel %vm74_vm0, %v8094_v52, -inf  ;;  %v8197_v55 = vmul.f32 0.35355338, %v8082_v28 }
 0x2ae   :  { %928 = vmax.xlane.f32.xlu0 %v927_v50 }
 0x2b1   :  { %v723_v51 = vpop.f32.mrf.mxu3  ;;  %6510 = vmatpush.xpose.msk.msrb.mxu3 %vm617_vm14, %v810_v49 }
 0x2b2   :  { %v8111_v1 = vadd.f32 %v723_v51, %v8107_v63 }
 0x2b4   :  { %6511 = vmatmul.msk.f32.vlgmr.msrb.gmra.mxu3 %vm617_vm14, %v8114_v21  ;;  %v654_v26 = vpop.permute.xlu0 %653  ;;  %1384 = vrot.lane.b32.xlu1 %v7964_v39, %s7478_s30  ;;  %v936_v2 = vsel %vm74_vm0, %v8111_v1, -inf  ;;  %v8139_v39 = vmul.f32 0.35355338, %v8027_v62 }
 0x2b5   :  { %6861 = vrot.lane.b32.xlu2 %v6860_v0, %s7476_s27  ;;  %6494 = vmatpush.xpose.msk.msrb.mxu1 %vm617_vm14, %v654_v26 }
 0x2b6   :  { %6820 = vmatpush.xpose.msk.msra.mxu2 %vm617_vm14, %v654_v26  ;;  %937 = vmax.xlane.f32.xlu0 %v936_v2 }
 0x2b8   :  { %6495 = vmatmul.msk.f32.vlgmr.msrb.gmra.mxu1 %vm617_vm14, %v8128_v7 }
 0x2b9   :  { %6501 = vmatpush.xpose.msk.msra.mxu1 %vm617_vm14, %v734_v3  ;;  %6496 = vmatmul.msk.f32.vlgmr.msra.gmra.mxu2 %vm617_vm14, %v8132_v44 }
 0x2bc   :  { %v851_v10 = vpop.permute.xlu1 %850  ;;  %6512 = vmatmul.msk.f32.gmra.mxu3 %vm617_vm14, %v8139_v39  ;;  %v773_v22 = vpop.permute.xlu0 %772  ;;  %6856 = vrot.lane.b32.xlu1 %v6855_v9, %s7476_s27 }
 0x2bd   :  { %6502 = vmatpush.xpose.msk.msra.mxu1 %vm617_vm14, %v732_v58  ;;  %1382 = vrot.lane.b32.xlu2 %v8004_v61, %s7477_s28 }
 0x2be   :  { %6505 = vmatpush.xpose.msk.msrb.mxu2 %vm617_vm14, %v773_v22 }
 0x2c0   :  { %6503 = vmatmul.msk.f32.vlgmr.msra.gmra.mxu1 %vm617_vm14, %v8152_v27 }
 0x2c1   :  { %6513 = vmatpush.xpose.msk.msrb.mxu1 %vm617_vm14, %v851_v10 }
 0x2c2   :  { %6506 = vmatpush.xpose.msk.msrb.mxu2 %vm617_vm14, %v771_v48 }
 0x2c4   :  { %v849_v56 = vpop.permute.xlu0 %848 }
 0x2c5   :  { %6507 = vmatmul.msk.f32.vlgmr.msrb.gmra.mxu2 %vm617_vm14, %v8158_v13  ;;  %6514 = vmatpush.xpose.msk.msrb.mxu1 %vm617_vm14, %v849_v56 }
 0x2c8   :  { %6504 = vmatmul.msk.f32.gmra.mxu1 %vm617_vm14, %v8164_v19 }
 0x2cc   :  { %v6837_v4 = vpop.permute.xlu0 %6836 }
 0x2cd   :  { %6508 = vmatmul.msk.f32.gmra.mxu2 %vm617_vm14, %v8169_v24  ;;  %v6838_v57 = vunpack.i.l.bf16 %v6837_v4  ;;  %v6839_v43 = vunpack.i.h.bf16 %v6837_v4 }
 0x2cf   :  { %1126 = vmatpush.msra.mxu3 %v6838_v57 }
 0x2d0   :  { %6515 = vmatmul.msk.f32.vlgmr.msrb.gmra.mxu1 %vm617_vm14, %v8174_v18 }
 0x2d1   :  { %1127 = vmatpush.msra.mxu3 %v6839_v43 }
 0x2d4   :  { %v6842_v14 = vpop.permute.xlu0 %6841 }
 0x2d5   :  { %v6843_v51 = vunpack.i.l.bf16 %v6842_v14  ;;  %v6844_v0 = vunpack.i.h.bf16 %v6842_v14 }
 0x2d8   :  { %6516 = vmatmul.msk.f32.gmra.mxu1 %vm617_vm14, %v8179_v29 }
 0x2dc   :  { %v6847_v15 = vpop.permute.xlu0 %6846 }
 0x2dd   :  { %v6849_v61 = vunpack.i.h.bf16 %v6847_v15  ;;  %v6848_v25 = vunpack.i.l.bf16 %v6847_v15 }
 0x2df   :  { %1161 = vmatpush.msra.mxu1 %v6848_v25  ;;  %1231 = vmatpush.msrb.mxu3 %v6849_v61  ;;  %v726_v25 = vpop.f32.mrf.mxu3 }
 0x2e6   :  { %925 = vmax.xlane.f32.xlu2 %v924_v54  ;;  %v8227_v54 = vadd.f32 %v726_v25, %v8091_v40 }
 0x2ff   :  { %v890_v34 = vpop.permute.xlu2 %889 }
 0x300   :  { %6517 = vmatpush.xpose.msk.msra.mxu2 %vm617_vm14, %v890_v34 }
 0x307   :  { %v6852_v36 = vpop.permute.xlu2 %6851 }
 0x308   :  { %v6854_v30 = vunpack.i.h.bf16 %v6852_v36  ;;  %v6853_v11 = vunpack.i.l.bf16 %v6852_v36 }
 0x30a   :  { %1162 = vmatpush.msra.mxu1 %v6853_v11  ;;  %1232 = vmatpush.msrb.mxu3 %v6854_v30 }
 0x30e   :  { %v888_v49 = vpop.permute.xlu1 %887 }
 0x30f   :  { %6518 = vmatpush.xpose.msk.msra.mxu2 %vm617_vm14, %v888_v49  ;;  %v8205_v2 = vpop.permute.xlu2 %6861 }
 0x310   :  { %v6863_v10 = vunpack.i.l.bf16 %v8205_v2 }
 0x312   :  { %6519 = vmatmul.msk.f32.vlgmr.msra.gmra.mxu2 %vm617_vm14, %v8192_v60 }
 0x316   :  { %v6832_v46 = vpop.permute.xlu1 %6831 }
 0x317   :  { %v6833_v45 = vunpack.i.l.bf16 %v6832_v46  ;;  %v6834_v50 = vunpack.i.h.bf16 %v6832_v46  ;;  %v939_v46 = vsel %vm74_vm0, %v8227_v54, -inf }
 0x319   :  { %1196 = vmatpush.msrb.mxu2 %v6833_v45 }
 0x31a   :  { %6520 = vmatmul.msk.f32.gmra.mxu2 %vm617_vm14, %v8197_v55 }
 0x31b   :  { %1197 = vmatpush.msrb.mxu2 %v6834_v50 }
 0x31d   :  { %1301 = vmatpush.msra.mxu2 %v6843_v51 }
 0x31e   :  { %v8201_v58 = vpop.permute.xlu1 %1386 }
 0x31f   :  { %1302 = vmatpush.msra.mxu2 %v6844_v0 }
 0x326   :  { %v8203_v26 = vpop.permute.xlu1 %1384 }
 0x32e   :  { %v8207_v3 = vpop.permute.xlu1 %6856 }
 0x32f   :  { %v6858_v9 = vunpack.i.l.bf16 %v8207_v3 }
 0x331   :  { %1266 = vmatpush.msrb.mxu1 %v6858_v9 }
 0x333   :  { %1267 = vmatpush.msrb.mxu1 %v6863_v10 }
 0x335   :  { %v684_v22 = vpop.f32.mrf.mxu1 }
 0x336   :  { %v8212_v48 = vadd.f32 %v684_v22, %v8107_v63 }
 0x337   :  { %v840_v45 = vpop.f32.mrf.mxu3 }
 0x338   :  { %v930_v56 = vsel %vm74_vm0, %v8212_v48, -inf  ;;  %v8242_v0 = vadd.f32 %v840_v45, %v8107_v63  ;;  %v8268_v45 = vpop.permute.xlu0 %1380 }
 0x339   :  { %931 = vmax.xlane.f32.xlu1 %v930_v56 }
 0x33c   :  { %v687_v4 = vpop.f32.mrf.mxu2 }
 0x33d   :  { %v8217_v57 = vadd.f32 %v687_v4, %v8091_v40  ;;  %v762_v43 = vpop.f32.mrf.mxu1 }
 0x33e   :  { %v8220_v14 = vadd.f32 %v762_v43, %v8107_v63  ;;  %v954_v43 = vsel %vm74_vm0, %v8242_v0, -inf }
 0x33f   :  { %v933_v61 = vsel %vm74_vm0, %v8217_v57, -inf }
 0x340   :  { %v942_v15 = vsel %vm74_vm0, %v8220_v14, -inf }
 0x341   :  { %943 = vmax.xlane.f32.xlu0 %v942_v15  ;;  %934 = vmax.xlane.f32.xlu1 %v933_v61  ;;  %v843_v15 = vpop.f32.mrf.mxu3 }
 0x342   :  { %v8257_v61 = vadd.f32 %v843_v15, %v8091_v40  ;;  %v929_v15 = vpop.xlane.xlu0 %928 }
 0x344   :  { %v957_v25 = vsel %vm74_vm0, %v8257_v61, -inf }
 0x345   :  { %v765_v34 = vpop.f32.mrf.mxu1 }
 0x346   :  { %v8230_v36 = vadd.f32 %v765_v34, %v8091_v40 }
 0x348   :  { %v801_v30 = vpop.f32.mrf.mxu2  ;;  %v945_v49 = vsel %vm74_vm0, %v8230_v36, -inf }
 0x349   :  { %v8233_v11 = vadd.f32 %v801_v30, %v8107_v63  ;;  %946 = vmax.xlane.f32.xlu0 %v945_v49  ;;  %940 = vmax.xlane.f32.xlu1 %v939_v46  ;;  %v8266_v46 = vpop.permute.xlu2 %1382 }
 0x34b   :  { %v948_v50 = vsel %vm74_vm0, %v8233_v11, -inf }
 0x34c   :  { %949 = vmax.xlane.f32.xlu2 %v948_v50 }
 0x34d   :  { %v879_v51 = vpop.f32.mrf.mxu1 }
 0x34e   :  { %v8245_v9 = vadd.f32 %v879_v51, %v8107_v63 }
 0x350   :  { %v804_v10 = vpop.f32.mrf.mxu2  ;;  %v960_v56 = vsel %vm74_vm0, %v8245_v9, -inf }
 0x351   :  { %v8248_v22 = vadd.f32 %v804_v10, %v8091_v40  ;;  %961 = vmax.xlane.f32.xlu1 %v960_v56 }
 0x353   :  { %v951_v4 = vsel %vm74_vm0, %v8248_v22, -inf }
 0x354   :  { %952 = vmax.xlane.f32.xlu0 %v951_v4  ;;  %955 = vmax.xlane.f32.xlu2 %v954_v43 }
 0x355   :  { %v882_v34 = vpop.f32.mrf.mxu1 }
 0x356   :  { %v8262_v30 = vadd.f32 %v882_v34, %v8091_v40 }
 0x358   :  { %v963_v49 = vsel %vm74_vm0, %v8262_v30, -inf }
 0x359   :  { %v926_v50 = vpop.xlane.xlu2 %925 }
 0x35a   :  { %v972_v56 = vsub.f32 %v8185_v31, %v926_v50  ;;  %v938_v50 = vpop.xlane.xlu0 %937 }
 0x35c   :  { %958 = vmax.xlane.f32.xlu2 %v957_v25  ;;  %v988_v43 = vmul.f32 1.442695, %v972_v56 }
 0x35e   :  { %7040 = vpow2.f32 %v988_v43 }
 0x364   :  { %964 = vmax.xlane.f32.xlu2 %v963_v49  ;;  %v973_v49 = vsub.f32 %v8094_v52, %v929_v15  ;;  %v976_v52 = vsub.f32 %v8111_v1, %v938_v50 }
 0x366   :  { %v996_v15 = vmul.f32 1.442695, %v976_v52 }
 0x395   :  { %v918_v51 = vpop.f32.mrf.mxu2 }
 0x396   :  { %v8271_v10 = vadd.f32 %v918_v51, %v8107_v63  ;;  %v990_v63 = vmul.f32 1.442695, %v973_v49  ;;  %v8282_v51 = vpop.eup %7040 }
 0x397   :  { %v1020_v31 = vsel %vm74_vm0, %v8282_v51, 0.0 }
 0x398   :  { %v966_v4 = vsel %vm74_vm0, %v8271_v10, -inf  ;;  %7042 = vpow2.f32 %v990_v63 }
 0x399   :  { %967 = vmax.xlane.f32.xlu0 %v966_v4 }
 0x39d   :  { %v921_v25 = vpop.f32.mrf.mxu2 }
 0x39e   :  { %v8277_v34 = vadd.f32 %v921_v25, %v8091_v40  ;;  %v8286_v4 = vpop.eup %7042 }
 0x3a0   :  { %v969_v20 = vsel %vm74_vm0, %v8277_v34, -inf }
 0x3a1   :  { %970 = vmax.xlane.f32.xlu2 %v969_v20  ;;  %v1023_v20 = vsel %vm74_vm0, %v8286_v4, 0.0 }
 0x3a9   :  { %1021 = vadd.xlane.f32.xlu2 %v1020_v31 }
 0x3ac   :  { %v932_v56 = vpop.xlane.xlu1 %931 }
 0x3ad   :  { %v974_v40 = vsub.f32 %v8212_v48, %v932_v56 }
 0x3af   :  { %v992_v43 = vmul.f32 1.442695, %v974_v40 }
 0x3b1   :  { %7044 = vpow2.f32 %v992_v43  ;;  %1024 = vadd.xlane.f32.xlu2 %v1023_v20 }
 0x3b2   :  { %7046 = vpow2.f32 %v996_v15 }
 0x3b4   :  { %v935_v25 = vpop.xlane.xlu1 %934  ;;  %v944_v49 = vpop.xlane.xlu0 %943 }
 0x3b5   :  { %v975_v63 = vsub.f32 %v8217_v57, %v935_v25  ;;  %v978_v47 = vsub.f32 %v8220_v14, %v944_v49 }
 0x3b7   :  { %v8293_v31 = vpop.eup %7044  ;;  %v994_v59 = vmul.f32 1.442695, %v975_v63  ;;  %v1000_v48 = vmul.f32 1.442695, %v978_v47 }
 0x3b8   :  { %v1026_v1 = vsel %vm74_vm0, %v8293_v31, 0.0  ;;  %v8298_v40 = vpop.eup %7046 }
 0x3b9   :  { %7048 = vpow2.f32 %v994_v59  ;;  %1027 = vadd.xlane.f32.xlu1 %v1026_v1  ;;  %v1032_v47 = vsel %vm74_vm0, %v8298_v40, 0.0 }
 0x3ba   :  { %7050 = vpow2.f32 %v1000_v48 }
 0x3bc   :  { %v941_v50 = vpop.xlane.xlu1 %940  ;;  %v947_v56 = vpop.xlane.xlu0 %946 }
 0x3bd   :  { %v977_v52 = vsub.f32 %v8227_v54, %v941_v50  ;;  %v979_v57 = vsub.f32 %v8230_v36, %v947_v56 }
 0x3bf   :  { %v950_v43 = vpop.xlane.xlu2 %949  ;;  %v8302_v20 = vpop.eup %7048  ;;  %v998_v15 = vmul.f32 1.442695, %v977_v52  ;;  %v1002_v25 = vmul.f32 1.442695, %v979_v57 }
 0x3c0   :  { %v980_v14 = vsub.f32 %v8233_v11, %v950_v43  ;;  %v1029_v59 = vsel %vm74_vm0, %v8302_v20, 0.0  ;;  %v8309_v49 = vpop.eup %7050 }
 0x3c1   :  { %7052 = vpow2.f32 %v998_v15  ;;  %1030 = vadd.xlane.f32.xlu2 %v1029_v59  ;;  %1033 = vadd.xlane.f32.xlu1 %v1032_v47  ;;  %v1038_v56 = vsel %vm74_vm0, %v8309_v49, 0.0 }
 0x3c2   :  { %v1004_v54 = vmul.f32 1.442695, %v980_v14  ;;  %7054 = vpow2.f32 %v1002_v25 }
 0x3c4   :  { %7056 = vpow2.f32 %v1004_v54 }
 0x3c7   :  { %v956_v36 = vpop.xlane.xlu2 %955  ;;  %v953_v63 = vpop.xlane.xlu0 %952 }
 0x3c8   :  { %v8311_v1 = vpop.eup %7052  ;;  %v982_v11 = vsub.f32 %v8242_v0, %v956_v36  ;;  %v981_v48 = vsub.f32 %v8248_v22, %v953_v63 }
 0x3c9   :  { %v1035_v50 = vsel %vm74_vm0, %v8311_v1, 0.0  ;;  %1039 = vadd.xlane.f32.xlu2 %v1038_v56  ;;  %v8319_v43 = vpop.eup %7054 }
 0x3ca   :  { %v1006_v52 = vmul.f32 1.442695, %v981_v48  ;;  %1036 = vadd.xlane.f32.xlu0 %v1035_v50  ;;  %v1008_v57 = vmul.f32 1.442695, %v982_v11  ;;  %v8321_v15 = vpop.eup %7056  ;;  %v1041_v59 = vsel %vm74_vm0, %v8319_v43, 0.0  ;;  %v8344_v48 = vpack.i.bf16 %v8071_v42, %v8082_v28 }
 0x3cb   :  { %v1044_v22 = vsel %vm74_vm0, %v8321_v15, 0.0 }
 0x3cc   :  { %7058 = vpow2.f32 %v1006_v52 }
 0x3cd   :  { %7060 = vpow2.f32 %v1008_v57 }
 0x3cf   :  { %v959_v14 = vpop.xlane.xlu2 %958 }
 0x3d0   :  { %v983_v0 = vsub.f32 %v8257_v61, %v959_v14 }
 0x3d1   :  { %1045 = vadd.xlane.f32.xlu2 %v1044_v22 }
 0x3d2   :  { %1042 = vadd.xlane.f32.xlu0 %v1041_v59  ;;  %v8328_v47 = vpop.eup %7058  ;;  %v1010_v25 = vmul.f32 1.442695, %v983_v0 }
 0x3d3   :  { %v1047_v54 = vsel %vm74_vm0, %v8328_v47, 0.0  ;;  %v8332_v36 = vpop.eup %7060 }
 0x3d4   :  { %1048 = vadd.xlane.f32.xlu1 %v1047_v54  ;;  %7062 = vpow2.f32 %v1010_v25  ;;  %v1050_v61 = vsel %vm74_vm0, %v8332_v36, 0.0 }
 0x3d7   :  { %v965_v50 = vpop.xlane.xlu2 %964 }
 0x3d8   :  { %v985_v0 = vsub.f32 %v8262_v30, %v965_v50  ;;  %v6864_v50 = vunpack.i.h.bf16 %v8205_v2 }
 0x3d9   :  { %1051 = vadd.xlane.f32.xlu2 %v1050_v61 }
 0x3da   :  { %v8336_v63 = vpop.eup %7062  ;;  %v1014_v59 = vmul.f32 1.442695, %v985_v0 }
 0x3db   :  { %v1053_v11 = vsel %vm74_vm0, %v8336_v63, 0.0 }
 0x3e1   :  { %1054 = vadd.xlane.f32.xlu2 %v1053_v11 }
 0x3e6   :  { %1423 = vrot.lane.b32.xlu0 %v8035_v23, %s7478_s30 }
 0x3ed   :  { %6866 = vrot.lane.b32.xlu1 %v8344_v48, %s7476_s27 }
 0x3ee   :  { %1419 = vrot.lane.b32.xlu0 %v8128_v7, %s7477_s28  ;;  %v962_v7 = vpop.xlane.xlu1 %961 }
 0x3ef   :  { %v984_v56 = vsub.f32 %v8245_v9, %v962_v7 }
 0x3f1   :  { %v1012_v57 = vmul.f32 1.442695, %v984_v56 }
 0x3f5   :  { %1421 = vrot.lane.b32.xlu1 %v8132_v44, %s7477_s28 }
 0x3f6   :  { %1464 = vrot.lane.b32.xlu0 %v7954_v37, %s7478_s30 }
 0x3f9   :  { %1425 = vrot.lane.b32.xlu2 %v7971_v41, %s7478_s30 }
 0x3fd   :  { %1462 = vrot.lane.b32.xlu1 %v7945_v33, %s7478_s30 }
 0x3fe   :  { %1458 = vrot.lane.b32.xlu0 %v8007_v5, %s7477_s28 }
 0x405   :  { %1503 = vrot.lane.b32.xlu1 %v7980_v8, %s7478_s30 }
 0x40c   :  { %v968_v14 = vpop.xlane.xlu0 %967 }
 0x40d   :  { %v986_v33 = vsub.f32 %v8271_v10, %v968_v14  ;;  %v6859_v10 = vunpack.i.h.bf16 %v8207_v3 }
 0x40f   :  { %v1016_v25 = vmul.f32 1.442695, %v986_v33 }
 0x414   :  { %v971_v44 = vpop.xlane.xlu2 %970 }
 0x415   :  { %v987_v52 = vsub.f32 %v8277_v34, %v971_v44 }
 0x417   :  { %v1018_v37 = vmul.f32 1.442695, %v987_v52 }
 0x419   :  { %7064 = vpow2.f32 %v1018_v37 }
 0x41a   :  { %7066 = vpow2.f32 %v1012_v57 }
 0x41c   :  { %v1022_v5 = vpop.xlane.xlu2 %1021 }
 0x41d   :  { %7068 = vrcp.f32 %v1022_v5 }
 0x41e   :  { %7070 = vpow2.f32 %v1014_v59 }
 0x41f   :  { %v8366_v22 = vpop.eup %7064  ;;  %7072 = vpow2.f32 %v1016_v25 }
 0x420   :  { %v1065_v9 = vsel %vm74_vm0, %v8366_v22, 0.0  ;;  %v8370_v54 = vpop.eup %7066 }
 0x421   :  { %v1056_v11 = vsel %vm74_vm0, %v8370_v54, 0.0 }
 0x422   :  { %1066 = vadd.xlane.f32.xlu2 %v1065_v9 }
 0x423   :  { %v7069_v34 = vpop.eup %7068 }
 0x424   :  { %v1084_v30 = vmul.f32 %v7069_v34, %v8282_v51  ;;  %v1025_v61 = vpop.xlane.xlu2 %1024  ;;  %v8378_v7 = vpop.eup %7070 }
 0x425   :  { %7074 = vrcp.f32 %v1025_v61  ;;  %v8380_v56 = vpop.eup %7072  ;;  %v1059_v37 = vsel %vm74_vm0, %v8378_v7, 0.0 }
 0x426   :  { %6521 = vmatmul.msk.f32.vlgmr.msra.gmra.mxu3 %vm74_vm0, %v1084_v30  ;;  %v1062_v3 = vsel %vm74_vm0, %v8380_v56, 0.0 }
 0x427   :  { %1336 = vmatpush.msra.mxu3 %v6859_v10 }
 0x428   :  { %1057 = vadd.xlane.f32.xlu0 %v1056_v11 }
 0x429   :  { %1337 = vmatpush.msra.mxu3 %v6864_v50 }
 0x42b   :  { %v7075_v44 = vpop.eup %7074 }
 0x42c   :  { %v1028_v51 = vpop.xlane.xlu1 %1027  ;;  %v1085_v52 = vmul.f32 %v7075_v44, %v8286_v4 }
 0x42d   :  { %7076 = vrcp.f32 %v1028_v51 }
 0x42e   :  { %6522 = vmatmul.msk.f32.gmra.mxu3 %vm74_vm0, %v1085_v52 }
 0x42f   :  { %1063 = vadd.xlane.f32.xlu1 %v1062_v3 }
 0x430   :  { %1060 = vadd.xlane.f32.xlu0 %v1059_v37 }
 0x433   :  { %v7077_v2 = vpop.eup %7076 }
 0x434   :  { %v1086_v57 = vmul.f32 %v7077_v2, %v8293_v31  ;;  %v1031_v14 = vpop.xlane.xlu2 %1030  ;;  %v1034_v0 = vpop.xlane.xlu1 %1033 }
 0x435   :  { %7078 = vrcp.f32 %v1031_v14 }
 0x436   :  { %7080 = vrcp.f32 %v1034_v0  ;;  %6523 = vmatmul.msk.f32.vlgmr.msra.gmra.mxu1 %vm74_vm0, %v1086_v57 }
 0x43a   :  { %1501 = vrot.lane.b32.xlu2 %v8024_v32, %s7478_s30 }
 0x43b   :  { %v7079_v4 = vpop.eup %7078 }
 0x43c   :  { %v7081_v33 = vpop.eup %7080  ;;  %v1040_v5 = vpop.xlane.xlu2 %1039  ;;  %v1087_v25 = vmul.f32 %v7079_v4, %v8302_v20 }
 0x43d   :  { %v1037_v59 = vpop.xlane.xlu0 %1036  ;;  %v1088_v9 = vmul.f32 %v7081_v33, %v8298_v40  ;;  %7082 = vrcp.f32 %v1040_v5 }
 0x43e   :  { %7084 = vrcp.f32 %v1037_v59  ;;  %6524 = vmatmul.msk.f32.gmra.mxu1 %vm74_vm0, %v1087_v25 }
 0x43f   :  { %6525 = vmatmul.msk.f32.vlgmr.msrb.gmra.mxu2 %vm74_vm0, %v1088_v9 }
 0x440   :  { %6537 = vmatpush.xpose.msk.msrb.mxu2 %vm617_vm14, %v8201_v58 }
 0x442   :  { %1538 = vrot.lane.b32.xlu2 %v8169_v24, %s7477_s28 }
 0x443   :  { %v7083_v31 = vpop.eup %7082 }
 0x444   :  { %1460 = vrot.lane.b32.xlu0 %v8019_v12, %s7477_s28  ;;  %v7085_v34 = vpop.eup %7084  ;;  %v1090_v20 = vmul.f32 %v7083_v31, %v8309_v49  ;;  %6538 = vmatpush.xpose.msk.msrb.mxu2 %vm617_vm14, %v8203_v26  ;;  %v1046_v40 = vpop.xlane.xlu2 %1045 }
 0x445   :  { %v1043_v30 = vpop.xlane.xlu0 %1042  ;;  %7086 = vrcp.f32 %v1046_v40  ;;  %v1089_v61 = vmul.f32 %v7085_v34, %v8311_v1 }
 0x446   :  { %7088 = vrcp.f32 %v1043_v30  ;;  %6527 = vmatmul.msk.f32.vlgmr.msrb.gmra.mxu3 %vm74_vm0, %v1090_v20 }
 0x447   :  { %6526 = vmatmul.msk.f32.gmra.mxu2 %vm74_vm0, %v1089_v61  ;;  %v1049_v24 = vpop.xlane.xlu1 %1048 }
 0x448   :  { %1497 = vrot.lane.b32.xlu1 %v8152_v27, %s7477_s28  ;;  %7090 = vrcp.f32 %v1049_v24 }
 0x44a   :  { %1620 = vrot.lane.b32.xlu2 %v8043_v53, %s7478_s30 }
 0x44b   :  { %v7087_v12 = vpop.eup %7086 }
 0x44c   :  { %1499 = vrot.lane.b32.xlu0 %v8164_v19, %s7477_s28  ;;  %v7089_v58 = vpop.eup %7088  ;;  %v1092_v26 = vmul.f32 %v7087_v12, %v8321_v15  ;;  %v1052_v49 = vpop.xlane.xlu2 %1051 }
 0x44d   :  { %7092 = vrcp.f32 %v1052_v49  ;;  %v1091_v1 = vmul.f32 %v7089_v58, %v8319_v43  ;;  %v8501_v49 = vld [vmem:[%s11308_s8 + $0x10] sm:$0xff] }
 0x44e   :  { %6529 = vmatmul.msk.f32.vlgmr.msrb.gmra.mxu1 %vm74_vm0, %v1092_v26  ;;  %v7091_v27 = vpop.eup %7090 }
 0x44f   :  { %6528 = vmatmul.msk.f32.gmra.mxu3 %vm74_vm0, %v1091_v1  ;;  %v1093_v43 = vmul.f32 %v7091_v27, %v8328_v47 }
 0x450   :  { %1542 = vrot.lane.b32.xlu1 %v8040_v35, %s7478_s30 }
 0x452   :  { %1614 = vrot.lane.b32.xlu2 %v8174_v18, %s7477_s28 }
 0x453   :  { %v7093_v10 = vpop.eup %7092 }
 0x454   :  { %1540 = vrot.lane.b32.xlu0 %v7990_v17, %s7478_s30  ;;  %v1094_v19 = vmul.f32 %v7093_v10, %v8332_v36  ;;  %v1055_v15 = vpop.xlane.xlu2 %1054 }
 0x455   :  { %7094 = vrcp.f32 %v1055_v15  ;;  %v8509_v15 = vld [vmem:[%s11308_s8 + $0x18] sm:$0xff] }
 0x456   :  { %6530 = vmatmul.msk.f32.gmra.mxu1 %vm74_vm0, %v1093_v43  ;;  %6531 = vmatmul.msk.f32.vlgmr.msra.gmra.mxu2 %vm74_vm0, %v1094_v19 }
 0x458   :  { %v1424_v11 = vpop.permute.xlu0 %1423  ;;  %1536 = vrot.lane.b32.xlu1 %v8158_v13, %s7477_s28 }
 0x45a   :  { %1659 = vrot.lane.b32.xlu2 %v8082_v28, %s7478_s30 }
 0x45b   :  { %v7095_v18 = vpop.eup %7094 }
 0x45c   :  { %1581 = vrot.lane.b32.xlu0 %v8027_v62, %s7478_s30  ;;  %v1426_v36 = vpop.permute.xlu2 %1425  ;;  %v1095_v50 = vmul.f32 %v7095_v18, %v8336_v63 }
 0x45d   :  { %6541 = vmatpush.xpose.msk.msrb.mxu3 %vm617_vm14, %v1426_v36 }
 0x45e   :  { %6532 = vmatmul.msk.f32.gmra.mxu2 %vm74_vm0, %v1095_v50 }
 0x45f   :  { %v6867_v47 = vpop.permute.xlu1 %6866 }
 0x460   :  { %v1420_v44 = vpop.permute.xlu0 %1419  ;;  %v6868_v51 = vunpack.i.l.bf16 %v6867_v47  ;;  %1579 = vrot.lane.b32.xlu1 %v8014_v16, %s7478_s30  ;;  %v6869_v28 = vunpack.i.h.bf16 %v6867_v47 }
 0x461   :  { %6542 = vmatpush.xpose.msk.msrb.mxu3 %vm617_vm14, %v1424_v11 }
 0x462   :  { %1371 = vmatpush.msra.mxu1 %v6868_v51  ;;  %1655 = vrot.lane.b32.xlu2 %v8197_v55, %s7477_s28 }
 0x464   :  { %1575 = vrot.lane.b32.xlu0 %v8114_v21, %s7477_s28  ;;  %1372 = vmatpush.msra.mxu1 %v6869_v28 }
 0x466   :  { %6539 = vmatmul.msk.f32.vlgmr.msrb.gmra.mxu2 %vm617_vm14, %v8268_v45 }
 0x467   :  { %v1422_v62 = vpop.permute.xlu1 %1421 }
 0x468   :  { %v1465_v13 = vpop.permute.xlu0 %1464  ;;  %1618 = vrot.lane.b32.xlu1 %v8050_v38, %s7478_s30 }
 0x469   :  { %6545 = vmatpush.xpose.msk.msrb.mxu1 %vm617_vm14, %v1465_v13 }
 0x46c   :  { %1577 = vrot.lane.b32.xlu0 %v8139_v39, %s7477_s28 }
 0x46e   :  { %6540 = vmatmul.msk.f32.gmra.mxu2 %vm617_vm14, %v8266_v46 }
 0x46f   :  { %v1463_v16 = vpop.permute.xlu1 %1462 }
 0x470   :  { %1616 = vrot.lane.b32.xlu1 %v8179_v29, %s7477_s28  ;;  %6546 = vmatpush.xpose.msk.msrb.mxu1 %vm617_vm14, %v1463_v16  ;;  %v1459_v55 = vpop.permute.xlu0 %1458 }
 0x474   :  { %1657 = vrot.lane.b32.xlu0 %v8071_v42, %s7478_s30 }
 0x477   :  { %v1504_v21 = vpop.permute.xlu1 %1503 }
 0x478   :  { %1653 = vrot.lane.b32.xlu1 %v8192_v60, %s7477_s28  ;;  %6549 = vmatpush.xpose.msk.msra.mxu2 %vm617_vm14, %v1504_v21 }
 0x495   :  { %v1067_v39 = vpop.xlane.xlu2 %1066 }
 0x49b   :  { %v1058_v45 = vpop.xlane.xlu0 %1057 }
 0x49c   :  { %7096 = vrcp.f32 %v1058_v45 }
 0x49d   :  { %v1502_v46 = vpop.permute.xlu2 %1501 }
 0x49e   :  { %6550 = vmatpush.xpose.msk.msra.mxu2 %vm617_vm14, %v1502_v46 }
 0x4a2   :  { %v7097_v63 = vpop.eup %7096  ;;  %v1064_v52 = vpop.xlane.xlu1 %1063 }
 0x4a3   :  { %v1096_v29 = vmul.f32 %v7097_v63, %v8370_v54  ;;  %v1061_v3 = vpop.xlane.xlu0 %1060  ;;  %7098 = vrcp.f32 %v1064_v52 }
 0x4a4   :  { %7100 = vrcp.f32 %v1061_v3 }
 0x4a5   :  { %6533 = vmatmul.msk.f32.vlgmr.msra.gmra.mxu3 %vm74_vm0, %v1096_v29  ;;  %v1539_v42 = vpop.permute.xlu2 %1538  ;;  %7102 = vrcp.f32 %v1067_v39 }
 0x4a9   :  { %v7099_v60 = vpop.eup %7098  ;;  %v8517_v50 = vpop.f32.mrf.mxu3 }
 0x4aa   :  { %v7101_v37 = vpop.eup %7100  ;;  %v1098_v2 = vmul.f32 %v7099_v60, %v8380_v56 }
 0x4ab   :  { %v1097_v57 = vmul.f32 %v7101_v37, %v8378_v7  ;;  %v7103_v54 = vpop.eup %7102 }
 0x4ac   :  { %6535 = vmatmul.msk.f32.vlgmr.msra.gmra.mxu1 %vm74_vm0, %v1098_v2  ;;  %v1099_v0 = vmul.f32 %v7103_v54, %v8366_v22 }
 0x4ad   :  { %6534 = vmatmul.msk.f32.gmra.mxu3 %vm74_vm0, %v1097_v57  ;;  %v1621_v14 = vpop.permute.xlu2 %1620 }
 0x4ae   :  { %6561 = vmatpush.xpose.msk.msrb.mxu2 %vm617_vm14, %v1621_v14 }
 0x4b1   :  { %v8519_v47 = vpop.f32.mrf.mxu3 }
 0x4b4   :  { %6536 = vmatmul.msk.f32.gmra.mxu1 %vm74_vm0, %v1099_v0 }
 0x4b5   :  { %6543 = vmatmul.msk.f32.vlgmr.msrb.gmra.mxu3 %vm617_vm14, %v1420_v44  ;;  %v1615_v7 = vpop.permute.xlu2 %1614  ;;  %v8521_v44 = vpop.f32.mrf.mxu1 }
 0x4b6   :  { %v1461_v4 = vpop.permute.xlu0 %1460 }
 0x4ba   :  { %v1498_v33 = vpop.permute.xlu1 %1497 }
 0x4bb   :  { %6551 = vmatmul.msk.f32.vlgmr.msra.gmra.mxu2 %vm617_vm14, %v1498_v33 }
 0x4bc   :  { %6547 = vmatmul.msk.f32.vlgmr.msrb.gmra.mxu1 %vm617_vm14, %v1459_v55 }
 0x4bd   :  { %6544 = vmatmul.msk.f32.gmra.mxu3 %vm617_vm14, %v1422_v62  ;;  %v1660_v59 = vpop.permute.xlu2 %1659  ;;  %v8525_v28 = vpop.f32.mrf.mxu1 }
 0x4be   :  { %v1500_v56 = vpop.permute.xlu0 %1499 }
 0x4c2   :  { %v1543_v5 = vpop.permute.xlu1 %1542  ;;  %v8478_v25 = vpop.f32.mrf.mxu2 }
 0x4c3   :  { %6552 = vmatmul.msk.f32.gmra.mxu2 %vm617_vm14, %v1500_v56  ;;  %6553 = vmatpush.xpose.msk.msra.mxu3 %vm617_vm14, %v1543_v5 }
 0x4c4   :  { %6548 = vmatmul.msk.f32.gmra.mxu1 %vm617_vm14, %v1461_v4 }
 0x4c5   :  { %v1656_v11 = vpop.permute.xlu2 %1655 }
 0x4c6   :  { %v1541_v22 = vpop.permute.xlu0 %1540 }
 0x4c7   :  { %6554 = vmatpush.xpose.msk.msra.mxu3 %vm617_vm14, %v1541_v22 }
 0x4c9   :  { %v8523_v51 = vpop.f32.mrf.mxu3 }
 0x4ca   :  { %v1537_v9 = vpop.permute.xlu1 %1536  ;;  %v8484_v34 = vpop.f32.mrf.mxu2 }
 0x4cb   :  { %6565 = vmatpush.xpose.msk.msrb.mxu3 %vm617_vm14, %v1660_v59  ;;  %v8529_v13 = vpop.f32.mrf.mxu1 }
 0x4cc   :  { %6555 = vmatmul.msk.f32.vlgmr.msra.gmra.mxu3 %vm617_vm14, %v1537_v9 }
 0x4ce   :  { %v1582_v31 = vpop.permute.xlu0 %1581 }
 0x4cf   :  { %6557 = vmatpush.xpose.msk.msra.mxu1 %vm617_vm14, %v1582_v31 }
 0x4d2   :  { %v1580_v20 = vpop.permute.xlu1 %1579  ;;  %v8527_v62 = vpop.f32.mrf.mxu3 }
 0x4d3   :  { %6558 = vmatpush.xpose.msk.msra.mxu1 %vm617_vm14, %v1580_v20  ;;  %v8533_v21 = vpop.f32.mrf.mxu1  ;;  %v6875_v20 = vpack.i.bf16 %v8035_v23, %v7971_v41 }
 0x4d4   :  { %6556 = vmatmul.msk.f32.gmra.mxu3 %vm617_vm14, %v1539_v42 }
 0x4d6   :  { %v1576_v40 = vpop.permute.xlu0 %1575 }
 0x4d7   :  { %6559 = vmatmul.msk.f32.vlgmr.msra.gmra.mxu1 %vm617_vm14, %v1576_v40 }
 0x4d9   :  { %v8489_v30 = vpop.f32.mrf.mxu2 }
 0x4da   :  { %v1619_v61 = vpop.permute.xlu1 %1618 }
 0x4db   :  { %6562 = vmatpush.xpose.msk.msrb.mxu2 %vm617_vm14, %v1619_v61 }
 0x4de   :  { %v1578_v24 = vpop.permute.xlu0 %1577  ;;  %6563 = vmatmul.msk.f32.vlgmr.msrb.gmra.mxu2 %vm617_vm14, %v1615_v7 }
 0x4df   :  { %6560 = vmatmul.msk.f32.gmra.mxu1 %vm617_vm14, %v1578_v24 }
 0x4e1   :  { %v8494_v12 = vpop.f32.mrf.mxu2 }
 0x4e2   :  { %v1617_v58 = vpop.permute.xlu1 %1616 }
 0x4e6   :  { %v1658_v26 = vpop.permute.xlu0 %1657  ;;  %6564 = vmatmul.msk.f32.gmra.mxu2 %vm617_vm14, %v1617_v58 }
 0x4e7   :  { %6566 = vmatpush.xpose.msk.msrb.mxu3 %vm617_vm14, %v1658_v26 }
 0x4e9   :  { %v1413_v1 = vpop.f32.mrf.mxu2 }
 0x4ea   :  { %v1654_v27 = vpop.permute.xlu1 %1653  ;;  %v1414_v10 = vadd.f32 %v1413_v1, %v8501_v49 }
 0x4eb   :  { %6567 = vmatmul.msk.f32.vlgmr.msrb.gmra.mxu3 %vm617_vm14, %v1654_v27 }
 0x4ec   :  { %v1692_v19 = vsel %vm74_vm0, %v1414_v10, -inf }
 0x4ed   :  { %1693 = vmax.xlane.f32.xlu0 %v1692_v19 }
 0x4f1   :  { %v1416_v43 = vpop.f32.mrf.mxu2 }
 0x4f2   :  { %v8512_v18 = vadd.f32 %v1416_v43, %v8509_v15 }
 0x4f3   :  { %6568 = vmatmul.msk.f32.gmra.mxu3 %vm617_vm14, %v1656_v11 }
 0x4f4   :  { %v1695_v36 = vsel %vm74_vm0, %v8512_v18, -inf }
 0x4f5   :  { %1696 = vmax.xlane.f32.xlu1 %v1695_v36 }
 0x528   :  { %v8531_v16 = vpop.f32.mrf.mxu3 }
 0x529   :  { %v8537_v39 = vpop.f32.mrf.mxu1 }
 0x530   :  { %v8535_v55 = vpop.f32.mrf.mxu3 }
 0x531   :  { %v8544_v29 = vpop.f32.mrf.mxu1 }
 0x538   :  { %v1452_v45 = vpop.f32.mrf.mxu3 }
 0x539   :  { %v8540_v46 = vadd.f32 %v1452_v45, %v8501_v49  ;;  %v1491_v14 = vpop.f32.mrf.mxu1 }
 0x53a   :  { %v8562_v4 = vadd.f32 %v1491_v14, %v8501_v49 }
 0x53b   :  { %v1698_v63 = vsel %vm74_vm0, %v8540_v46, -inf }
 0x53c   :  { %1699 = vmax.xlane.f32.xlu2 %v1698_v63  ;;  %v1704_v56 = vsel %vm74_vm0, %v8562_v4, -inf }
 0x53e   :  { %v1530_v52 = vpop.f32.mrf.mxu2 }
 0x53f   :  { %v8547_v3 = vadd.f32 %v1530_v52, %v8501_v49 }
 0x540   :  { %v1455_v60 = vpop.f32.mrf.mxu3 }
 0x541   :  { %v1710_v42 = vsel %vm74_vm0, %v8547_v3, -inf  ;;  %v8552_v37 = vadd.f32 %v1455_v60, %v8509_v15  ;;  %v1494_v22 = vpop.f32.mrf.mxu1 }
 0x542   :  { %1711 = vmax.xlane.f32.xlu0 %v1710_v42  ;;  %v8572_v59 = vadd.f32 %v1494_v22, %v8509_v15 }
 0x543   :  { %v1701_v0 = vsel %vm74_vm0, %v8552_v37, -inf }
 0x544   :  { %v1707_v9 = vsel %vm74_vm0, %v8572_v59, -inf }
 0x546   :  { %v1533_v2 = vpop.f32.mrf.mxu2 }
 0x547   :  { %v8555_v57 = vadd.f32 %v1533_v2, %v8509_v15 }
 0x549   :  { %v1713_v54 = vsel %vm74_vm0, %v8555_v57, -inf }
 0x54a   :  { %1714 = vmax.xlane.f32.xlu1 %v1713_v54  ;;  %1702 = vmax.xlane.f32.xlu0 %v1701_v0 }
 0x54f   :  { %v1569_v33 = vpop.f32.mrf.mxu3 }
 0x550   :  { %v8565_v7 = vadd.f32 %v1569_v33, %v8501_v49 }
 0x552   :  { %v1716_v5 = vsel %vm74_vm0, %v8565_v7, -inf  ;;  %1705 = vmax.xlane.f32.xlu1 %v1704_v56 }
 0x553   :  { %1717 = vmax.xlane.f32.xlu2 %v1716_v5 }
 0x554   :  { %v1608_v42 = vpop.f32.mrf.mxu1 }
 0x555   :  { %v8606_v60 = vadd.f32 %v1608_v42, %v8501_v49 }
 0x557   :  { %v1572_v31 = vpop.f32.mrf.mxu3  ;;  %v1722_v2 = vsel %vm74_vm0, %v8606_v60, -inf }
 0x558   :  { %v8579_v40 = vadd.f32 %v1572_v31, %v8509_v15 }
 0x55a   :  { %v1719_v58 = vsel %vm74_vm0, %v8579_v40, -inf }
 0x55b   :  { %1708 = vmax.xlane.f32.xlu2 %v1707_v9 }
 0x55e   :  { %6876 = vrot.lane.b32.xlu0 %v6875_v20, %s7479_s24 }
 0x560   :  { %v1694_v61 = vpop.xlane.xlu0 %1693 }
 0x561   :  { %v1740_v24 = vsub.f32 %v1414_v10, %v1694_v61  ;;  %v1647_v27 = vpop.f32.mrf.mxu2 }
 0x562   :  { %v8591_v23 = vadd.f32 %v1647_v27, %v8501_v49 }
 0x563   :  { %1720 = vmax.xlane.f32.xlu2 %v1719_v58  ;;  %v1756_v26 = vmul.f32 1.442695, %v1740_v24 }
 0x564   :  { %v1728_v19 = vsel %vm74_vm0, %v8591_v23, -inf }
 0x565   :  { %7104 = vpow2.f32 %v1756_v26 }
 0x568   :  { %v1697_v10 = vpop.xlane.xlu1 %1696 }
 0x569   :  { %v1650_v43 = vpop.f32.mrf.mxu2  ;;  %v1741_v11 = vsub.f32 %v8512_v18, %v1697_v10  ;;  %v6885_v18 = vpack.i.bf16 %v8024_v32, %v7980_v8 }
 0x56a   :  { %v8597_v36 = vadd.f32 %v1650_v43, %v8509_v15 }
 0x56b   :  { %v8584_v1 = vpop.eup %7104  ;;  %6871 = vrot.lane.b32.xlu1 %v8056_v6, %s7479_s24  ;;  %v1758_v45 = vmul.f32 1.442695, %v1741_v11 }
 0x56c   :  { %v1788_v41 = vsel %vm74_vm0, %v8584_v1, 0.0  ;;  %v1731_v6 = vsel %vm74_vm0, %v8597_v36, -inf }
 0x56d   :  { %1789 = vadd.xlane.f32.xlu2 %v1788_v41  ;;  %7106 = vpow2.f32 %v1758_v45 }
 0x56e   :  { %v1686_v43 = vpop.f32.mrf.mxu3 }
 0x573   :  { %v8601_v63 = vpop.eup %7106 }
 0x574   :  { %v1791_v52 = vsel %vm74_vm0, %v8601_v63, 0.0 }
 0x575   :  { %1729 = vmax.xlane.f32.xlu2 %v1728_v19 }
 0x57d   :  { %1732 = vmax.xlane.f32.xlu2 %v1731_v6 }
 0x588   :  { %1792 = vadd.xlane.f32.xlu0 %v1791_v52 }
 0x595   :  { %1723 = vmax.xlane.f32.xlu1 %v1722_v2  ;;  %6886 = vrot.lane.b32.xlu2 %v6885_v18, %s7479_s24  ;;  %v11371_v2 = vld [vmem:[#allocation4_spill] sm:$0xff] }
 0x5af   :  { %v1700_v14 = vpop.xlane.xlu2 %1699 }
 0x5b0   :  { %v1742_v54 = vsub.f32 %v8540_v46, %v1700_v14 }
 0x5b2   :  { %v1760_v0 = vmul.f32 1.442695, %v1742_v54 }
 0x5b4   :  { %7108 = vpow2.f32 %v1760_v0 }
 0x5b5   :  { %v1712_v33 = vpop.xlane.xlu0 %1711 }
 0x5b6   :  { %v1746_v56 = vsub.f32 %v8547_v3, %v1712_v33 }
 0x5b8   :  { %v1768_v5 = vmul.f32 1.442695, %v1746_v56 }
 0x5ba   :  { %v8615_v22 = vpop.eup %7108  ;;  %7110 = vpow2.f32 %v1768_v5 }
 0x5bb   :  { %v1794_v8 = vsel %vm74_vm0, %v8615_v22, 0.0 }
 0x5bc   :  { %1795 = vadd.xlane.f32.xlu0 %v1794_v8 }
 0x5bd   :  { %v1715_v32 = vpop.xlane.xlu1 %1714  ;;  %v1703_v9 = vpop.xlane.xlu0 %1702 }
 0x5be   :  { %v1747_v31 = vsub.f32 %v8555_v57, %v1715_v32  ;;  %v1743_v20 = vsub.f32 %v8552_v37, %v1703_v9 }
 0x5c0   :  { %v8621_v46 = vpop.eup %7110  ;;  %v1770_v61 = vmul.f32 1.442695, %v1747_v31  ;;  %v1762_v24 = vmul.f32 1.442695, %v1743_v20 }
 0x5c1   :  { %v1806_v3 = vsel %vm74_vm0, %v8621_v46, 0.0 }
 0x5c2   :  { %7112 = vpow2.f32 %v1770_v61  ;;  %1807 = vadd.xlane.f32.xlu2 %v1806_v3 }
 0x5c3   :  { %7114 = vpow2.f32 %v1762_v24 }
 0x5c5   :  { %v1706_v58 = vpop.xlane.xlu1 %1705 }
 0x5c6   :  { %v1718_v26 = vpop.xlane.xlu2 %1717  ;;  %v1744_v27 = vsub.f32 %v8562_v4, %v1706_v58  ;;  %v8636_v4 = vadd.f32 %v1686_v43, %v8501_v49 }
 0x5c7   :  { %v1748_v57 = vsub.f32 %v8565_v7, %v1718_v26  ;;  %v6890_v26 = vpack.i.bf16 %v7990_v17, %v8040_v35 }
 0x5c8   :  { %v8626_v41 = vpop.eup %7112  ;;  %v1764_v10 = vmul.f32 1.442695, %v1744_v27  ;;  %v1734_v54 = vsel %vm74_vm0, %v8636_v4, -inf  ;;  %v1611_v27 = vpop.f32.mrf.mxu1 }
 0x5c9   :  { %v8629_v37 = vpop.eup %7114  ;;  %v1809_v19 = vsel %vm74_vm0, %v8626_v41, 0.0  ;;  %v1772_v45 = vmul.f32 1.442695, %v1748_v57 }
 0x5ca   :  { %7116 = vpow2.f32 %v1764_v10  ;;  %1810 = vadd.xlane.f32.xlu1 %v1809_v19  ;;  %v1797_v11 = vsel %vm74_vm0, %v8629_v37, 0.0  ;;  %v8663_v10 = vadd.f32 %v1611_v27, %v8509_v15 }
 0x5cb   :  { %1798 = vadd.xlane.f32.xlu2 %v1797_v11  ;;  %7118 = vpow2.f32 %v1772_v45  ;;  %v1689_v11 = vpop.f32.mrf.mxu3 }
 0x5ce   :  { %v1709_v6 = vpop.xlane.xlu2 %1708 }
 0x5cf   :  { %v1745_v52 = vsub.f32 %v8572_v59, %v1709_v6  ;;  %v11372_v6 = vld [vmem:[#allocation3_spill] sm:$0xff] }
 0x5d0   :  { %v8639_v7 = vpop.eup %7116  ;;  %v6877_v18 = vpop.permute.xlu0 %6876  ;;  %6881 = vrot.lane.b32.xlu0 %v11371_v2, %s7479_s24 }
 0x5d1   :  { %v1766_v42 = vmul.f32 1.442695, %v1745_v52  ;;  %v6878_v14 = vunpack.i.l.bf16 %v6877_v18  ;;  %v1800_v0 = vsel %vm74_vm0, %v8639_v7, 0.0  ;;  %v6879_v49 = vunpack.i.h.bf16 %v6877_v18  ;;  %v8647_v59 = vpop.eup %7118 }
 0x5d2   :  { %1735 = vmax.xlane.f32.xlu1 %v1734_v54  ;;  %v1812_v5 = vsel %vm74_vm0, %v8647_v59, 0.0  ;;  %v8671_v52 = vadd.f32 %v1689_v11, %v8509_v15 }
 0x5d3   :  { %7120 = vpow2.f32 %v1766_v42  ;;  %1801 = vadd.xlane.f32.xlu2 %v1800_v0  ;;  %1929 = vmatpush.msrb.mxu1 %v6878_v14  ;;  %v6900_v42 = vpack.i.bf16 %v8050_v38, %v8043_v53 }
 0x5d5   :  { %1930 = vmatpush.msrb.mxu1 %v6879_v49 }
 0x5d6   :  { %v1721_v56 = vpop.xlane.xlu2 %1720 }
 0x5d7   :  { %v1749_v57 = vsub.f32 %v8579_v40, %v1721_v56  ;;  %v1737_v40 = vsel %vm74_vm0, %v8671_v52, -inf }
 0x5d9   :  { %v8649_v33 = vpop.eup %7120  ;;  %v1774_v35 = vmul.f32 1.442695, %v1749_v57 }
 0x5da   :  { %v1803_v8 = vsel %vm74_vm0, %v8649_v33, 0.0  ;;  %1813 = vadd.xlane.f32.xlu1 %v1812_v5 }
 0x5db   :  { %1804 = vadd.xlane.f32.xlu2 %v1803_v8 }
 0x5dd   :  { %v6872_v32 = vpop.permute.xlu1 %6871 }
 0x5de   :  { %v6873_v9 = vunpack.i.l.bf16 %v6872_v32  ;;  %v6874_v20 = vunpack.i.h.bf16 %v6872_v32 }
 0x5e0   :  { %1894 = vmatpush.msrb.mxu0 %v6873_v9  ;;  %6821 = vmatpush.msra.mxu3 %v6873_v9  ;;  %v1790_v31 = vpop.xlane.xlu2 %1789 }
 0x5e1   :  { %7122 = vrcp.f32 %v1790_v31 }
 0x5e2   :  { %1895 = vmatpush.msrb.mxu0 %v6874_v20  ;;  %6822 = vmatpush.msra.mxu3 %v6874_v20 }
 0x5e7   :  { %v7123_v61 = vpop.eup %7122 }
 0x5e8   :  { %v1730_v24 = vpop.xlane.xlu2 %1729  ;;  %v1852_v3 = vmul.f32 %v7123_v61, %v8584_v1  ;;  %v1725_v1 = vsel %vm74_vm0, %v8663_v10, -inf }
 0x5e9   :  { %v1752_v49 = vsub.f32 %v8591_v23, %v1730_v24 }
 0x5ea   :  { %6569 = vmatmul.msk.f32.vlgmr.msrb.gmra.mxu0 %vm74_vm0, %v1852_v3 }
 0x5eb   :  { %v1780_v38 = vmul.f32 1.442695, %v1752_v49 }
 0x5f0   :  { %v8657_v58 = vpop.xlane.xlu2 %1732 }
 0x5f3   :  { %6891 = vrot.lane.b32.xlu2 %v6890_v26, %s7479_s24 }
 0x5f8   :  { %v6887_v19 = vpop.permute.xlu2 %6886 }
 0x5f9   :  { %v6888_v43 = vunpack.i.l.bf16 %v6887_v19  ;;  %v6889_v45 = vunpack.i.h.bf16 %v6887_v19 }
 0x5fa   :  { %1726 = vmax.xlane.f32.xlu0 %v1725_v1 }
 0x5fb   :  { %6896 = vrot.lane.b32.xlu2 %v11372_v6, %s7479_s24  ;;  %v1793_v17 = vpop.xlane.xlu0 %1792  ;;  %1999 = vmatpush.msrb.mxu3 %v6888_v43 }
 0x5fc   :  { %7124 = vrcp.f32 %v1793_v17 }
 0x5fd   :  { %2000 = vmatpush.msrb.mxu3 %v6889_v45  ;;  %7126 = vpow2.f32 %v1774_v35 }
 0x602   :  { %v7125_v18 = vpop.eup %7124  ;;  %1738 = vmax.xlane.f32.xlu0 %v1737_v40 }
 0x603   :  { %v1853_v2 = vmul.f32 %v7125_v18, %v8601_v63  ;;  %6901 = vrot.lane.b32.xlu2 %v6900_v42, %s7479_s24  ;;  %v8680_v14 = vpop.eup %7126 }
 0x604   :  { %v1815_v0 = vsel %vm74_vm0, %v8680_v14, 0.0 }
 0x605   :  { %6570 = vmatmul.msk.f32.vlgmr.msra.gmra.mxu3 %vm74_vm0, %v1853_v2 }
 0x608   :  { %v1724_v15 = vpop.xlane.xlu1 %1723 }
 0x609   :  { %v1750_v54 = vsub.f32 %v8606_v60, %v1724_v15 }
 0x60a   :  { %1816 = vadd.xlane.f32.xlu0 %v1815_v0 }
 0x60b   :  { %v1776_v53 = vmul.f32 1.442695, %v1750_v54  ;;  %6906 = vrot.lane.b32.xlu2 %v8344_v48, %s7479_s24 }
 0x60d   :  { %7128 = vpow2.f32 %v1776_v53 }
 0x60e   :  { %7130 = vpow2.f32 %v1780_v38 }
 0x613   :  { %v8688_v63 = vpop.eup %7128 }
 0x614   :  { %v1818_v56 = vsel %vm74_vm0, %v8688_v63, 0.0  ;;  %v8692_v60 = vpop.eup %7130 }
 0x615   :  { %1819 = vadd.xlane.f32.xlu1 %v1818_v56  ;;  %v1824_v5 = vsel %vm74_vm0, %v8692_v60, 0.0 }
 0x61d   :  { %1825 = vadd.xlane.f32.xlu1 %v1824_v5 }
 0x62f   :  { %v1796_v23 = vpop.xlane.xlu0 %1795 }
 0x630   :  { %7132 = vrcp.f32 %v1796_v23 }
 0x635   :  { %v1808_v8 = vpop.xlane.xlu2 %1807 }
 0x636   :  { %v7133_v32 = vpop.eup %7132  ;;  %7134 = vrcp.f32 %v1808_v8 }
 0x637   :  { %v1854_v48 = vmul.f32 %v7133_v32, %v8615_v22  ;;  %v1753_v32 = vsub.f32 %v8597_v36, %v8657_v58 }
 0x639   :  { %6571 = vmatmul.msk.f32.vlgmr.msrb.gmra.mxu1 %vm74_vm0, %v1854_v48 }
 0x63c   :  { %v7135_v9 = vpop.eup %7134 }
 0x63d   :  { %v1858_v31 = vmul.f32 %v7135_v9, %v8621_v46  ;;  %v1811_v20 = vpop.xlane.xlu1 %1810 }
 0x63e   :  { %7136 = vrcp.f32 %v1811_v20  ;;  %v1799_v61 = vpop.xlane.xlu2 %1798 }
 0x63f   :  { %7138 = vrcp.f32 %v1799_v61  ;;  %6575 = vmatmul.msk.f32.vlgmr.msrb.gmra.mxu3 %vm74_vm0, %v1858_v31  ;;  %v1782_v31 = vmul.f32 1.442695, %v1753_v32 }
 0x642   :  { %v6882_v24 = vpop.permute.xlu0 %6881 }
 0x643   :  { %v6883_v3 = vunpack.i.l.bf16 %v6882_v24  ;;  %v6884_v57 = vunpack.i.h.bf16 %v6882_v24 }
 0x644   :  { %v7137_v26 = vpop.eup %7136 }
 0x645   :  { %v7139_v27 = vpop.eup %7138  ;;  %v1736_v19 = vpop.xlane.xlu1 %1735  ;;  %1964 = vmatpush.msra.mxu2 %v6883_v3  ;;  %v1859_v22 = vmul.f32 %v7137_v26, %v8626_v41 }
 0x646   :  { %v1754_v43 = vsub.f32 %v8636_v4, %v1736_v19  ;;  %v1802_v1 = vpop.xlane.xlu2 %1801  ;;  %v1855_v46 = vmul.f32 %v7139_v27, %v8629_v37 }
 0x647   :  { %7140 = vrcp.f32 %v1802_v1  ;;  %1965 = vmatpush.msra.mxu2 %v6884_v57  ;;  %6576 = vmatmul.msk.f32.gmra.mxu3 %vm74_vm0, %v1859_v22 }
 0x648   :  { %v1784_v11 = vmul.f32 1.442695, %v1754_v43  ;;  %6572 = vmatmul.msk.f32.gmra.mxu1 %vm74_vm0, %v1855_v46 }
 0x64a   :  { %7142 = vpow2.f32 %v1784_v11 }
 0x64d   :  { %v7141_v45 = vpop.eup %7140  ;;  %v1814_v17 = vpop.xlane.xlu1 %1813 }
 0x64e   :  { %v1856_v6 = vmul.f32 %v7141_v45, %v8639_v7  ;;  %v1805_v35 = vpop.xlane.xlu2 %1804 }
 0x64f   :  { %7144 = vrcp.f32 %v1805_v35 }
 0x650   :  { %v8706_v41 = vpop.eup %7142  ;;  %6573 = vmatmul.msk.f32.vlgmr.msra.gmra.mxu2 %vm74_vm0, %v1856_v6  ;;  %7146 = vrcp.f32 %v1814_v17  ;;  %v2229_v17 = vld [vmem:[%s11309_s9 + $0x8] sm:$0xff] }
 0x651   :  { %v1830_v37 = vsel %vm74_vm0, %v8706_v41, 0.0 }
 0x652   :  { %1831 = vadd.xlane.f32.xlu1 %v1830_v37 }
 0x655   :  { %v7145_v4 = vpop.eup %7144 }
 0x656   :  { %v6892_v40 = vpop.permute.xlu2 %6891  ;;  %v1857_v42 = vmul.f32 %v7145_v4, %v8649_v33  ;;  %v7147_v18 = vpop.eup %7146 }
 0x657   :  { %v6893_v2 = vunpack.i.l.bf16 %v6892_v40  ;;  %v6894_v7 = vunpack.i.h.bf16 %v6892_v40  ;;  %v1860_v15 = vmul.f32 %v7147_v18, %v8647_v59 }
 0x658   :  { %6574 = vmatmul.msk.f32.gmra.mxu2 %vm74_vm0, %v1857_v42 }
 0x659   :  { %2034 = vmatpush.msra.mxu0 %v6893_v2 }
 0x65b   :  { %2035 = vmatpush.msra.mxu0 %v6894_v7 }
 0x65c   :  { %6577 = vmatmul.msk.f32.vlgmr.msra.gmra.mxu0 %vm74_vm0, %v1860_v15 }
 0x65d   :  { %2296 = vmatpush.msrb.mxu0 %v2229_v17 }
 0x65e   :  { %v6897_v54 = vpop.permute.xlu2 %6896 }
 0x65f   :  { %v6898_v0 = vunpack.i.l.bf16 %v6897_v54  ;;  %v6899_v49 = vunpack.i.h.bf16 %v6897_v54 }
 0x661   :  { %2069 = vmatpush.msra.mxu1 %v6898_v0 }
 0x663   :  { %2070 = vmatpush.msra.mxu1 %v6899_v49 }
 0x666   :  { %v6902_v53 = vpop.permute.xlu2 %6901 }
 0x667   :  { %v6903_v38 = vunpack.i.l.bf16 %v6902_v53  ;;  %v6904_v56 = vunpack.i.h.bf16 %v6902_v53  ;;  %v1897_v33 = vpop.f32.mrf.mxu0 }
 0x669   :  { %2104 = vmatpush.msrb.mxu2 %v6903_v38 }
 0x66b   :  { %2105 = vmatpush.msrb.mxu2 %v6904_v56  ;;  %2164 = vrot.lane.b32.xlu1 %v1897_v33, %s7480_s29 }
 0x66d   :  { %v1727_v5 = vpop.xlane.xlu0 %1726 }
 0x66e   :  { %v1751_v59 = vsub.f32 %v8663_v10, %v1727_v5  ;;  %v6907_v23 = vpop.permute.xlu2 %6906 }
 0x66f   :  { %v6908_v8 = vunpack.i.l.bf16 %v6907_v23  ;;  %v6909_v9 = vunpack.i.h.bf16 %v6907_v23 }
 0x670   :  { %v1778_v48 = vmul.f32 1.442695, %v1751_v59 }
 0x671   :  { %2139 = vmatpush.msra.mxu3 %v6908_v8 }
 0x672   :  { %7148 = vpow2.f32 %v1778_v48 }
 0x673   :  { %2140 = vmatpush.msra.mxu3 %v6909_v9  ;;  %7150 = vpow2.f32 %v1782_v31 }
 0x675   :  { %v1739_v20 = vpop.xlane.xlu0 %1738 }
 0x676   :  { %v1755_v24 = vsub.f32 %v8671_v52, %v1739_v20 }
 0x678   :  { %v8719_v61 = vpop.eup %7148  ;;  %v1786_v3 = vmul.f32 1.442695, %v1755_v24 }
 0x679   :  { %v1821_v10 = vsel %vm74_vm0, %v8719_v61, 0.0  ;;  %v8724_v27 = vpop.eup %7150 }
 0x67a   :  { %1822 = vadd.xlane.f32.xlu0 %v1821_v10  ;;  %v1827_v36 = vsel %vm74_vm0, %v8724_v27, 0.0 }
 0x67d   :  { %v1817_v26 = vpop.xlane.xlu0 %1816 }
 0x67e   :  { %7152 = vrcp.f32 %v1817_v26 }
 0x67f   :  { %7154 = vpow2.f32 %v1786_v3 }
 0x682   :  { %1828 = vadd.xlane.f32.xlu0 %v1827_v36 }
 0x684   :  { %v7153_v58 = vpop.eup %7152 }
 0x685   :  { %v1861_v57 = vmul.f32 %v7153_v58, %v8680_v14  ;;  %v7155_v19 = vpop.eup %7154 }
 0x686   :  { %v1833_v43 = vsel %vm74_vm0, %v7155_v19, 0.0 }
 0x687   :  { %6578 = vmatmul.msk.f32.gmra.mxu0 %vm74_vm0, %v1861_v57 }
 0x688   :  { %v1900_v52 = vpop.f32.mrf.mxu3  ;;  %v1820_v22 = vpop.xlane.xlu1 %1819 }
 0x689   :  { %7156 = vrcp.f32 %v1820_v22  ;;  %2166 = vrot.lane.b32.xlu2 %v1900_v52, %s7480_s29 }
 0x68a   :  { %1834 = vadd.xlane.f32.xlu0 %v1833_v43 }
 0x68f   :  { %v7157_v1 = vpop.eup %7156 }
 0x690   :  { %v1862_v46 = vmul.f32 %v7157_v1, %v8688_v63  ;;  %v1826_v11 = vpop.xlane.xlu1 %1825  ;;  %v2228_v63 = vld [vmem:[%s11309_s9] sm:$0xff] }
 0x691   :  { %7158 = vrcp.f32 %v1826_v11  ;;  %2297 = vmatpush.msrb.mxu0 %v2228_v63 }
 0x692   :  { %6579 = vmatmul.msk.f32.vlgmr.msra.gmra.mxu1 %vm74_vm0, %v1862_v46 }
 0x697   :  { %v7159_v45 = vpop.eup %7158 }
 0x698   :  { %v1864_v14 = vmul.f32 %v7159_v45, %v8692_v60 }
 0x69a   :  { %6581 = vmatmul.msk.f32.vlgmr.msrb.gmra.mxu2 %vm74_vm0, %v1864_v14  ;;  %v7457_v14 = vld [vmem:[%s11362_s26] sm:$0xff] }
 0x6b6   :  { %v1932_v6 = vpop.f32.mrf.mxu1 }
 0x6b7   :  { %2168 = vrot.lane.b32.xlu0 %v1932_v6, %s7480_s29 }
 0x6c2   :  { %v2002_v35 = vpop.f32.mrf.mxu3 }
 0x6c3   :  { %2176 = vrot.lane.b32.xlu0 %v2002_v35, %s7480_s29 }
 0x6c5   :  { %v1935_v37 = vpop.f32.mrf.mxu1  ;;  %v1832_v60 = vpop.xlane.xlu1 %1831 }
 0x6c6   :  { %7160 = vrcp.f32 %v1832_v60  ;;  %2170 = vrot.lane.b32.xlu2 %v1935_v37, %s7480_s29  ;;  %v7458_v37 = vld [vmem:[%s11362_s26 + $0x10] sm:$0xff] }
 0x6ca   :  { %v2005_v18 = vpop.f32.mrf.mxu3 }
 0x6cc   :  { %v7161_v4 = vpop.eup %7160 }
 0x6cd   :  { %v1866_v40 = vmul.f32 %v7161_v4, %v8706_v41 }
 0x6cf   :  { %6583 = vmatmul.msk.f32.vlgmr.msra.gmra.mxu3 %vm74_vm0, %v1866_v40 }
 0x6d3   :  { %v1967_v42 = vpop.f32.mrf.mxu2 }
 0x6d4   :  { %2172 = vrot.lane.b32.xlu2 %v1967_v42, %s7480_s29  ;;  %v7459_v42 = vld [vmem:[%s11362_s26 + $0x18] sm:$0xff] }
 0x6d9   :  { %v2037_v54 = vpop.f32.mrf.mxu0 }
 0x6db   :  { %v1970_v2 = vpop.f32.mrf.mxu2 }
 0x6dc   :  { %2174 = vrot.lane.b32.xlu1 %v1970_v2, %s7480_s29  ;;  %2178 = vrot.lane.b32.xlu2 %v2005_v18, %s7480_s29 }
 0x6dd   :  { %v2165_v7 = vpop.permute.xlu1 %2164 }
 0x6de   :  { %v2212_v15 = vsel %vm617_vm14, %v8517_v50, %v2165_v7 }
 0x6df   :  { %6585 = vmatmul.msk.f32.vlgmr.msrb.gmra.mxu0 %vm74_vm0, %v2212_v15 }
 0x6e3   :  { %v2167_v0 = vpop.permute.xlu2 %2166 }
 0x6e4   :  { %2180 = vrot.lane.b32.xlu1 %v2037_v54, %s7480_s29  ;;  %v2213_v41 = vsel %vm617_vm14, %v8519_v47, %v2167_v0  ;;  %v7460_v0 = vld [vmem:[%s11362_s26 + $0x20] sm:$0xff] }
 0x6e7   :  { %6586 = vmatmul.msk.f32.gmra.mxu0 %vm74_vm0, %v2213_v41 }
 0x6ed   :  { %v1823_v49 = vpop.xlane.xlu0 %1822 }
 0x6ee   :  { %7162 = vrcp.f32 %v1823_v49 }
 0x6f4   :  { %v7163_v53 = vpop.eup %7162 }
 0x6f5   :  { %v1829_v38 = vpop.xlane.xlu0 %1828  ;;  %v1863_v56 = vmul.f32 %v7163_v53, %v8719_v61 }
 0x6f6   :  { %7164 = vrcp.f32 %v1829_v38 }
 0x6f7   :  { %6580 = vmatmul.msk.f32.gmra.mxu1 %vm74_vm0, %v1863_v56  ;;  %v7461_v56 = vld [vmem:[%s11362_s26 + $0x28] sm:$0xff] }
 0x6fc   :  { %v7165_v50 = vpop.eup %7164 }
 0x6fd   :  { %v1835_v33 = vpop.xlane.xlu0 %1834  ;;  %v1865_v5 = vmul.f32 %v7165_v50, %v8724_v27 }
 0x6fe   :  { %7166 = vrcp.f32 %v1835_v33 }
 0x6ff   :  { %6582 = vmatmul.msk.f32.gmra.mxu2 %vm74_vm0, %v1865_v5 }
 0x704   :  { %v7167_v59 = vpop.eup %7166  ;;  %v2040_v47 = vpop.f32.mrf.mxu0 }
 0x705   :  { %2182 = vrot.lane.b32.xlu0 %v2040_v47, %s7480_s29  ;;  %v1867_v23 = vmul.f32 %v7167_v59, %v7155_v19  ;;  %v7462_v47 = vld [vmem:[%s11362_s26 + $0x30] sm:$0xff] }
 0x707   :  { %6584 = vmatmul.msk.f32.gmra.mxu3 %vm74_vm0, %v1867_v23 }
 0x70f   :  { %v2072_v8 = vpop.f32.mrf.mxu1 }
 0x710   :  { %2184 = vrot.lane.b32.xlu2 %v2072_v8, %s7480_s29 }
 0x71d   :  { %v2107_v32 = vpop.f32.mrf.mxu2 }
 0x71e   :  { %2188 = vrot.lane.b32.xlu0 %v2107_v32, %s7480_s29 }
 0x720   :  { %v2171_v31 = vpop.permute.xlu2 %2170 }
 0x721   :  { %v2215_v20 = vsel %vm617_vm14, %v8525_v28, %v2171_v31 }
 0x729   :  { %v2169_v48 = vpop.permute.xlu0 %2168 }
 0x72a   :  { %v2214_v9 = vsel %vm617_vm14, %v8521_v44, %v2169_v48 }
 0x72b   :  { %6587 = vmatmul.msk.f32.gmra.mxu0 %vm74_vm0, %v2214_v9 }
 0x72e   :  { %v2173_v61 = vpop.permute.xlu2 %2172 }
 0x72f   :  { %v2216_v24 = vsel %vm617_vm14, %v8478_v25, %v2173_v61 }
 0x733   :  { %6588 = vmatmul.msk.f32.gmra.mxu0 %vm74_vm0, %v2215_v20 }
 0x735   :  { %v2177_v44 = vpop.permute.xlu0 %2176 }
 0x736   :  { %v2218_v26 = vsel %vm617_vm14, %v8523_v51, %v2177_v44  ;;  %v2179_v28 = vpop.permute.xlu2 %2178 }
 0x737   :  { %v2219_v27 = vsel %vm617_vm14, %v8527_v62, %v2179_v28 }
 0x73b   :  { %6589 = vmatmul.msk.f32.gmra.mxu0 %vm74_vm0, %v2216_v24 }
 0x74e   :  { %v2175_v10 = vpop.permute.xlu1 %2174 }
 0x74f   :  { %v2217_v3 = vsel %vm617_vm14, %v8484_v34, %v2175_v10 }
 0x750   :  { %6590 = vmatmul.msk.f32.gmra.mxu0 %vm74_vm0, %v2217_v3 }
 0x752   :  { %v2142_v57 = vpop.f32.mrf.mxu3 }
 0x756   :  { %v2181_v25 = vpop.permute.xlu1 %2180 }
 0x757   :  { %v2220_v36 = vsel %vm617_vm14, %v8529_v13, %v2181_v25 }
 0x758   :  { %6591 = vmatmul.msk.f32.gmra.mxu0 %vm74_vm0, %v2218_v26  ;;  %v11373_v26 = vld [vmem:[#allocation2_spill] sm:$0xff] }
 0x75c   :  { %v2299_v22 = vpop.f32.mrf.mxu0 }
 0x760   :  { %6592 = vmatmul.msk.f32.gmra.mxu0 %vm74_vm0, %v2219_v27 }
 0x764   :  { %v2302_v43 = vpop.f32.mrf.mxu0 }
 0x768   :  { %6593 = vmatmul.msk.f32.gmra.mxu0 %vm74_vm0, %v2220_v36 }
 0x76a   :  { %v2185_v19 = vpop.permute.xlu2 %2184 }
 0x76b   :  { %v2222_v62 = vsel %vm617_vm14, %v8489_v30, %v2185_v19  ;;  %v7456_v30 = vld [vmem:[%s11362_s26 + $0x8] sm:$0xff] }
 0x774   :  { %v2075_v34 = vpop.f32.mrf.mxu1 }
 0x775   :  { %2186 = vrot.lane.b32.xlu1 %v2075_v34, %s7480_s29 }
 0x777   :  { %v2183_v58 = vpop.permute.xlu0 %2182 }
 0x778   :  { %v2221_v51 = vsel %vm617_vm14, %v8533_v21, %v2183_v58  ;;  %v8799_v21 = vld [vmem:[%s11310_s10] ss:$0 sm:$0xff] }
 0x779   :  { %6594 = vmatmul.msk.f32.gmra.mxu0 %vm74_vm0, %v2221_v51  ;;  %v2303_v1 = vadd.f32 %v8799_v21, %v2302_v43  ;;  %v2300_v11 = vadd.f32 %v8799_v21, %v2299_v22 }
 0x77b   :  { %v8805_v46 = vadd.f32 %v7456_v30, %v2303_v1  ;;  %v8813_v6 = vadd.f32 %v7457_v14, %v2300_v11  ;;  %v7464_v11 = vld [vmem:[%s11362_s26 + $0x38] sm:$0xff] }
 0x77d   :  { %2192 = vrot.lane.b32.xlu1 %v2142_v57, %s7480_s29  ;;  %v2368_v45 = vsel %vm74_vm0, %v8805_v46, 0.0  ;;  %v2365_v63 = vsel %vm74_vm0, %v8813_v6, 0.0  ;;  %v7463_v57 = vld [vmem:[%s11362_s26 + $0x40] sm:$0xff] }
 0x781   :  { %6595 = vmatmul.msk.f32.gmra.mxu0 %vm74_vm0, %v2222_v62 }
 0x782   :  { %v2110_v13 = vpop.f32.mrf.mxu2 }
 0x783   :  { %2190 = vrot.lane.b32.xlu2 %v2110_v13, %s7480_s29 }
 0x78a   :  { %v2145_v52 = vpop.f32.mrf.mxu3 }
 0x78b   :  { %2194 = vrot.lane.b32.xlu0 %v2145_v52, %s7480_s29 }
 0x790   :  { %v2189_v9 = vpop.permute.xlu0 %2188 }
 0x791   :  { %v2224_v31 = vsel %vm617_vm14, %v8531_v16, %v2189_v9 }
 0x7a7   :  { %2369 = vadd.xlane.f32.xlu1 %v2368_v45 }
 0x7a8   :  { %v2305_v17 = vpop.f32.mrf.mxu0 }
 0x7a9   :  { %v2306_v35 = vadd.f32 %v8799_v21, %v2305_v17 }
 0x7ab   :  { %v8821_v60 = vadd.f32 %v7458_v37, %v2306_v35 }
 0x7ac   :  { %2366 = vadd.xlane.f32.xlu2 %v2365_v63 }
 0x7ad   :  { %v2371_v2 = vsel %vm74_vm0, %v8821_v60, 0.0 }
 0x7b0   :  { %v2308_v4 = vpop.f32.mrf.mxu0 }
 0x7b1   :  { %v2309_v40 = vadd.f32 %v8799_v21, %v2308_v4 }
 0x7b3   :  { %v8827_v18 = vadd.f32 %v7459_v42, %v2309_v40 }
 0x7b5   :  { %2372 = vadd.xlane.f32.xlu0 %v2371_v2  ;;  %v2374_v7 = vsel %vm74_vm0, %v8827_v18, 0.0 }
 0x7b6   :  { %2375 = vadd.xlane.f32.xlu2 %v2374_v7 }
 0x7b8   :  { %v2311_v15 = vpop.f32.mrf.mxu0 }
 0x7b9   :  { %v2312_v54 = vadd.f32 %v8799_v21, %v2311_v15  ;;  %v7465_v15 = vld [vmem:[%s11362_s26 + $0x48] sm:$0xff] }
 0x7bb   :  { %v8837_v41 = vadd.f32 %v7460_v0, %v2312_v54 }
 0x7bd   :  { %v2377_v49 = vsel %vm74_vm0, %v8837_v41, 0.0 }
 0x7be   :  { %2378 = vadd.xlane.f32.xlu1 %v2377_v49 }
 0x7cd   :  { %v2314_v53 = vpop.f32.mrf.mxu0 }
 0x7ce   :  { %v2315_v38 = vadd.f32 %v8799_v21, %v2314_v53 }
 0x7d0   :  { %v8845_v50 = vadd.f32 %v7461_v56, %v2315_v38 }
 0x7d2   :  { %v2380_v33 = vsel %vm74_vm0, %v8845_v50, 0.0 }
 0x7d3   :  { %2381 = vadd.xlane.f32.xlu0 %v2380_v33 }
 0x7d5   :  { %v2317_v5 = vpop.f32.mrf.mxu0 }
 0x7d6   :  { %v2318_v59 = vadd.f32 %v8799_v21, %v2317_v5 }
 0x7d8   :  { %v8853_v23 = vadd.f32 %v7462_v47, %v2318_v59  ;;  %v7466_v59 = vld [vmem:[%s11362_s26 + $0x50] sm:$0xff] }
 0x7da   :  { %v2383_v8 = vsel %vm74_vm0, %v8853_v23, 0.0 }
 0x7db   :  { %2384 = vadd.xlane.f32.xlu1 %v2383_v8 }
 0x7dd   :  { %v2191_v20 = vpop.permute.xlu2 %2190  ;;  %v2320_v16 = vpop.f32.mrf.mxu0 }
 0x7de   :  { %v2225_v61 = vsel %vm617_vm14, %v8535_v55, %v2191_v20  ;;  %v2321_v62 = vadd.f32 %v8799_v21, %v2320_v16 }
 0x7e0   :  { %v8899_v45 = vadd.f32 %v7464_v11, %v2321_v62 }
 0x7e2   :  { %v2386_v37 = vsel %vm74_vm0, %v8899_v45, 0.0 }
 0x7e5   :  { %v2323_v27 = vpop.f32.mrf.mxu0 }
 0x7e6   :  { %v2324_v34 = vadd.f32 %v8799_v21, %v2323_v27 }
 0x7e7   :  { %v2187_v32 = vpop.permute.xlu1 %2186 }
 0x7e8   :  { %v2223_v48 = vsel %vm617_vm14, %v8494_v12, %v2187_v32  ;;  %v8889_v19 = vadd.f32 %v7463_v57, %v2324_v34  ;;  %v7468_v34 = vld [vmem:[%s11362_s26 + $0x60] sm:$0xff] }
 0x7e9   :  { %6596 = vmatmul.msk.f32.gmra.mxu0 %vm74_vm0, %v2223_v48 }
 0x7ea   :  { %v2389_v30 = vsel %vm74_vm0, %v8889_v19, 0.0 }
 0x7ef   :  { %v2193_v24 = vpop.permute.xlu1 %2192 }
 0x7f0   :  { %v2226_v10 = vsel %vm617_vm14, %v8537_v39, %v2193_v24 }
 0x7f1   :  { %6597 = vmatmul.msk.f32.gmra.mxu0 %vm74_vm0, %v2224_v31 }
 0x7f6   :  { %v2326_v22 = vpop.f32.mrf.mxu0 }
 0x7f7   :  { %v2327_v4 = vadd.f32 %v8799_v21, %v2326_v22 }
 0x7f9   :  { %6598 = vmatmul.msk.f32.gmra.mxu0 %vm74_vm0, %v2225_v61  ;;  %v8920_v54 = vadd.f32 %v7465_v15, %v2327_v4 }
 0x7fb   :  { %v2392_v33 = vsel %vm74_vm0, %v8920_v54, 0.0 }
 0x7fd   :  { %v2195_v12 = vpop.permute.xlu0 %2194 }
 0x7fe   :  { %v2227_v3 = vsel %vm617_vm14, %v8544_v29, %v2195_v12  ;;  %v2329_v0 = vpop.f32.mrf.mxu0 }
 0x7ff   :  { %v2330_v53 = vadd.f32 %v8799_v21, %v2329_v0 }
 0x801   :  { %6599 = vmatmul.msk.f32.gmra.mxu0 %vm74_vm0, %v2226_v10  ;;  %v8935_v47 = vadd.f32 %v7466_v59, %v2330_v53 }
 0x803   :  { %v2395_v8 = vsel %vm74_vm0, %v8935_v47, 0.0 }
 0x809   :  { %6600 = vmatmul.msk.f32.gmra.mxu0 %vm74_vm0, %v2227_v3 }
 0x81a   :  { %v2370_v44 = vpop.xlane.xlu1 %2369 }
 0x81b   :  { %v2414_v28 = vmul.f32 %v2370_v44, %v11373_v26 }
 0x81d   :  { %v8874_v55 = vsub.f32 %v8805_v46, %v2414_v28  ;;  %v7467_v28 = vld [vmem:[%s11362_s26 + $0x58] sm:$0xff] }
 0x81f   :  { %v2367_v25 = vpop.xlane.xlu2 %2366  ;;  %v2446_v39 = vmul.f32 %v8874_v55, %v8874_v55 }
 0x820   :  { %v2413_v36 = vmul.f32 %v2367_v25, %v11373_v26 }
 0x821   :  { %v2464_v29 = vsel %vm74_vm0, %v2446_v39, 0.0 }
 0x822   :  { %v8882_v58 = vsub.f32 %v8813_v6, %v2413_v36  ;;  %2465 = vadd.xlane.f32.xlu0 %v2464_v29 }
 0x824   :  { %v2445_v51 = vmul.f32 %v8882_v58, %v8882_v58 }
 0x826   :  { %v2461_v13 = vsel %vm74_vm0, %v2445_v51, 0.0 }
 0x827   :  { %2462 = vadd.xlane.f32.xlu2 %v2461_v13  ;;  %v7469_v13 = vld [vmem:[%s11362_s26 + $0x68] sm:$0xff] }
 0x828   :  { %v2373_v52 = vpop.xlane.xlu0 %2372 }
 0x829   :  { %v2415_v43 = vmul.f32 %v2373_v52, %v11373_v26  ;;  %v2376_v1 = vpop.xlane.xlu2 %2375 }
 0x82a   :  { %v2416_v14 = vmul.f32 %v2376_v1, %v11373_v26  ;;  %2390 = vadd.xlane.f32.xlu0 %v2389_v30  ;;  %v2756_v1 = vld [vmem:[%s11313_s13 + $0x8] sm:$0xff] }
 0x82b   :  { %v8903_v17 = vsub.f32 %v8821_v60, %v2415_v43  ;;  %2823 = vmatpush.msrb.mxu1 %v2756_v1 }
 0x82c   :  { %v8908_v35 = vsub.f32 %v8827_v18, %v2416_v14  ;;  %v2755_v14 = vld [vmem:[%s11313_s13] sm:$0xff] }
 0x82d   :  { %v2447_v63 = vmul.f32 %v8903_v17, %v8903_v17  ;;  %2824 = vmatpush.msrb.mxu1 %v2755_v14 }
 0x82e   :  { %v2448_v7 = vmul.f32 %v8908_v35, %v8908_v35 }
 0x82f   :  { %2387 = vadd.xlane.f32.xlu2 %v2386_v37  ;;  %v2467_v40 = vsel %vm74_vm0, %v2447_v63, 0.0 }
 0x830   :  { %2468 = vadd.xlane.f32.xlu1 %v2467_v40  ;;  %v2470_v38 = vsel %vm74_vm0, %v2448_v7, 0.0 }
 0x831   :  { %v2379_v42 = vpop.xlane.xlu1 %2378 }
 0x832   :  { %v2417_v2 = vmul.f32 %v2379_v42, %v11373_v26 }
 0x834   :  { %v8923_v49 = vsub.f32 %v8837_v41, %v2417_v2 }
 0x836   :  { %v2449_v56 = vmul.f32 %v8923_v49, %v8923_v49 }
 0x837   :  { %2471 = vadd.xlane.f32.xlu2 %v2470_v38 }
 0x838   :  { %2393 = vadd.xlane.f32.xlu1 %v2392_v33  ;;  %v2473_v5 = vsel %vm74_vm0, %v2449_v56, 0.0 }
 0x839   :  { %2474 = vadd.xlane.f32.xlu0 %v2473_v5 }
 0x83f   :  { %2396 = vadd.xlane.f32.xlu2 %v2395_v8 }
 0x846   :  { %v2382_v32 = vpop.xlane.xlu0 %2381 }
 0x847   :  { %v2418_v48 = vmul.f32 %v2382_v32, %v11373_v26 }
 0x849   :  { %v8941_v9 = vsub.f32 %v8845_v50, %v2418_v48 }
 0x84b   :  { %v2450_v31 = vmul.f32 %v8941_v9, %v8941_v9 }
 0x84d   :  { %v2476_v20 = vsel %vm74_vm0, %v2450_v31, 0.0 }
 0x84e   :  { %v2385_v61 = vpop.xlane.xlu1 %2384  ;;  %2477 = vadd.xlane.f32.xlu1 %v2476_v20 }
 0x84f   :  { %v2419_v24 = vmul.f32 %v2385_v61, %v11373_v26 }
 0x851   :  { %v8948_v10 = vsub.f32 %v8853_v23, %v2419_v24 }
 0x853   :  { %v2451_v12 = vmul.f32 %v8948_v10, %v8948_v10 }
 0x855   :  { %v2479_v3 = vsel %vm74_vm0, %v2451_v12, 0.0 }
 0x856   :  { %2480 = vadd.xlane.f32.xlu2 %v2479_v3 }
 0x866   :  { %v2332_v16 = vpop.f32.mrf.mxu0 }
 0x867   :  { %v2333_v44 = vadd.f32 %v8799_v21, %v2332_v16  ;;  %v7470_v16 = vld [vmem:[%s11362_s26 + $0x78] sm:$0xff] }
 0x869   :  { %v8957_v27 = vadd.f32 %v7467_v28, %v2333_v44 }
 0x86b   :  { %v2398_v25 = vsel %vm74_vm0, %v8957_v27, 0.0 }
 0x86c   :  { %2399 = vadd.xlane.f32.xlu0 %v2398_v25 }
 0x86e   :  { %v2335_v39 = vpop.f32.mrf.mxu0 }
 0x86f   :  { %v2336_v36 = vadd.f32 %v8799_v21, %v2335_v39 }
 0x871   :  { %v8965_v29 = vadd.f32 %v7468_v34, %v2336_v36 }
 0x873   :  { %v2401_v51 = vsel %vm74_vm0, %v8965_v29, 0.0 }
 0x874   :  { %2402 = vadd.xlane.f32.xlu1 %v2401_v51 }
 0x876   :  { %v2338_v57 = vpop.f32.mrf.mxu0 }
 0x877   :  { %v2339_v62 = vadd.f32 %v8799_v21, %v2338_v57 }
 0x879   :  { %v8973_v52 = vadd.f32 %v7469_v13, %v2339_v62 }
 0x87b   :  { %v2404_v22 = vsel %vm74_vm0, %v8973_v52, 0.0 }
 0x87c   :  { %2405 = vadd.xlane.f32.xlu2 %v2404_v22 }
 0x87e   :  { %v2341_v11 = vpop.f32.mrf.mxu0 }
 0x87f   :  { %v2342_v25 = vadd.f32 %v8799_v21, %v2341_v11 }
 0x886   :  { %v2344_v0 = vpop.f32.mrf.mxu0 }
 0x887   :  { %v2345_v8 = vadd.f32 %v8799_v21, %v2344_v0  ;;  %v7471_v21 = vld [vmem:[%s11362_s26 + $0x70] sm:$0xff] }
 0x889   :  { %v9013_v44 = vadd.f32 %v7470_v16, %v2345_v8 }
 0x88b   :  { %v2410_v1 = vsel %vm74_vm0, %v9013_v44, 0.0 }
 0x895   :  { %v2466_v43 = vpop.xlane.xlu0 %2465 }
 0x896   :  { %v2510_v30 = vmul.f32 %v2466_v43, %v11373_v26 }
 0x898   :  { %v8984_v63 = vadd.f32 1e-05, %v2510_v30  ;;  %v9025_v30 = vadd.f32 %v7471_v21, %v2342_v25 }
 0x89a   :  { %7168 = vrsqrt.f32 %v8984_v63  ;;  %v2463_v37 = vpop.xlane.xlu2 %2462  ;;  %vm2557_vm10 = vweird.f32 %v8984_v63 }
 0x89b   :  { %v2509_v4 = vmul.f32 %v2463_v37, %v11373_v26 }
 0x89d   :  { %v2525_v40 = vadd.f32 1e-05, %v2509_v4  ;;  %v2391_v42 = vpop.xlane.xlu0 %2390 }
 0x89e   :  { %v2421_v2 = vmul.f32 %v2391_v42, %v11373_v26 }
 0x89f   :  { %7170 = vrsqrt.f32 %v2525_v40  ;;  %vm2547_vm7 = vweird.f32 %v2525_v40 }
 0x8a0   :  { %v8989_v7 = vpop.eup %7168  ;;  %v8992_v15 = vsub.f32 %v8889_v19, %v2421_v2 }
 0x8a1   :  { %v2552_v53 = vmul.f32 %v8989_v7, %v8984_v63  ;;  %vm2558_vm8 = vweird.f32 %v8989_v7  ;;  %v2407_v63 = vsel %vm74_vm0, %v9025_v30, 0.0 }
 0x8a2   :  { %v2388_v38 = vpop.xlane.xlu2 %2387  ;;  %v2453_v56 = vmul.f32 %v8992_v15, %v8992_v15  ;;  %vm9038_vm11 = vmor %vm2557_vm10, %vm2558_vm8 }
 0x8a3   :  { %v2553_v33 = vmul.f32 %v8989_v7, %v2552_v53  ;;  %v2420_v5 = vmul.f32 %v2388_v38, %v11373_v26  ;;  %v2469_v59 = vpop.xlane.xlu1 %2468 }
 0x8a4   :  { %v2511_v32 = vmul.f32 %v2469_v59, %v11373_v26  ;;  %v2485_v48 = vsel %vm74_vm0, %v2453_v56, 0.0 }
 0x8a5   :  { %v7171_v31 = vpop.eup %7170  ;;  %v9004_v20 = vsub.f32 %v8899_v45, %v2420_v5  ;;  %2486 = vadd.xlane.f32.xlu1 %v2485_v48  ;;  %v2554_v61 = vmul.f32 0.5, %v2553_v33  ;;  %v9045_v33 = vld [vmem:[%s11311_s11] ss:$0 sm:$0xff] }
 0x8a6   :  { %v2542_v24 = vmul.f32 %v7171_v31, %v2525_v40  ;;  %v9006_v12 = vadd.f32 1e-05, %v2511_v32  ;;  %vm2548_vm6 = vweird.f32 %v7171_v31 }
 0x8a7   :  { %v2452_v3 = vmul.f32 %v9004_v20, %v9004_v20  ;;  %v2555_v36 = vsub.f32 1.5, %v2554_v61  ;;  %vm2549_vm9 = vmor %vm2547_vm7, %vm2548_vm6 }
 0x8a8   :  { %v2543_v28 = vmul.f32 %v7171_v31, %v2542_v24  ;;  %7172 = vrsqrt.f32 %v9006_v12  ;;  %vm2567_vm13 = vweird.f32 %v9006_v12 }
 0x8a9   :  { %v2482_v39 = vsel %vm74_vm0, %v2452_v3, 0.0  ;;  %v2556_v4 = vmul.f32 %v8989_v7, %v2555_v36 }
 0x8aa   :  { %v2544_v34 = vmul.f32 0.5, %v2543_v28  ;;  %v2472_v51 = vpop.xlane.xlu2 %2471  ;;  %2483 = vadd.xlane.f32.xlu0 %v2482_v39 }
 0x8ab   :  { %v2512_v57 = vmul.f32 %v2472_v51, %v11373_v26  ;;  %v2394_v62 = vpop.xlane.xlu1 %2393  ;;  %v2560_v48 = vsel %vm9038_vm11, %v8989_v7, %v2556_v4 }
 0x8ac   :  { %v2545_v13 = vsub.f32 1.5, %v2544_v34  ;;  %v2422_v22 = vmul.f32 %v2394_v62, %v11373_v26  ;;  %v2475_v43 = vpop.xlane.xlu0 %2474  ;;  %v2702_v7 = vmul.f32 %v2560_v48, %v8874_v55 }
 0x8ad   :  { %v2528_v11 = vadd.f32 1e-05, %v2512_v57  ;;  %v2513_v14 = vmul.f32 %v2475_v43, %v11373_v26  ;;  %2411 = vadd.xlane.f32.xlu1 %v2410_v1 }
 0x8ae   :  { %v7173_v37 = vpop.eup %7172  ;;  %v2546_v42 = vmul.f32 %v7171_v31, %v2545_v13  ;;  %v9031_v2 = vsub.f32 %v8920_v54, %v2422_v22  ;;  %v2721_v22 = vmul.f32 %v9045_v33, %v2702_v7 }
 0x8af   :  { %v2562_v0 = vmul.f32 %v7173_v37, %v9006_v12  ;;  %7174 = vrsqrt.f32 %v2528_v11  ;;  %v2529_v53 = vadd.f32 1e-05, %v2513_v14  ;;  %vm2568_vm12 = vweird.f32 %v7173_v37 }
 0x8b0   :  { %v2550_v40 = vsel %vm2549_vm9, %v7171_v31, %v2546_v42  ;;  %v2454_v38 = vmul.f32 %v9031_v2, %v9031_v2  ;;  %vm2569_vm15 = vmor %vm2567_vm13, %vm2568_vm12  ;;  %vm2577_vm2 = vweird.f32 %v2528_v11 }
 0x8b1   :  { %v2701_v5 = vmul.f32 %v2550_v40, %v8882_v58  ;;  %v2563_v59 = vmul.f32 %v7173_v37, %v2562_v0  ;;  %7176 = vrsqrt.f32 %v2529_v53  ;;  %v9059_v58 = vld [vmem:[%s11312_s12] ss:$0 sm:$0xff]  ;;  %vm2587_vm5 = vweird.f32 %v2529_v53 }
 0x8b2   :  { %v2397_v8 = vpop.xlane.xlu2 %2396  ;;  %2408 = vadd.xlane.f32.xlu0 %v2407_v63  ;;  %v2488_v32 = vsel %vm74_vm0, %v2454_v38, 0.0  ;;  %v2740_v14 = vadd.f32 %v9059_v58, %v2721_v22 }
 0x8b3   :  { %v2720_v31 = vmul.f32 %v9045_v33, %v2701_v5  ;;  %v2564_v61 = vmul.f32 0.5, %v2563_v59  ;;  %v2423_v24 = vmul.f32 %v2397_v8, %v11373_v26  ;;  %2489 = vadd.xlane.f32.xlu2 %v2488_v32 }
 0x8b5   :  { %v7175_v3 = vpop.eup %7174  ;;  %v2565_v16 = vsub.f32 1.5, %v2564_v61  ;;  %v9062_v28 = vsub.f32 %v8935_v47, %v2423_v24  ;;  %v2739_v25 = vadd.f32 %v9059_v58, %v2720_v31 }
 0x8b6   :  { %v2572_v39 = vmul.f32 %v7175_v3, %v2528_v11  ;;  %vm2578_vm1 = vweird.f32 %v7175_v3 }
 0x8b7   :  { %v2566_v36 = vmul.f32 %v7173_v37, %v2565_v16  ;;  %6601 = vmatmul.msk.f32.vlgmr.msrb.gmra.mxu1 %vm74_vm0, %v2739_v25  ;;  %v2455_v34 = vmul.f32 %v9062_v28, %v9062_v28  ;;  %v7177_v51 = vpop.eup %7176  ;;  %vm2579_vm3 = vmor %vm2577_vm2, %vm2578_vm1 }
 0x8b8   :  { %v2573_v57 = vmul.f32 %v7175_v3, %v2572_v39  ;;  %v2582_v62 = vmul.f32 %v7177_v51, %v2529_v53  ;;  %vm2588_vm4 = vweird.f32 %v7177_v51 }
 0x8b9   :  { %v2491_v13 = vsel %vm74_vm0, %v2455_v34, 0.0  ;;  %v2570_v55 = vsel %vm2569_vm15, %v7173_v37, %v2566_v36  ;;  %vm2589_vm6 = vmor %vm2587_vm5, %vm2588_vm4 }
 0x8ba   :  { %v2574_v43 = vmul.f32 0.5, %v2573_v57  ;;  %2492 = vadd.xlane.f32.xlu0 %v2491_v13  ;;  %v2583_v1 = vmul.f32 %v7177_v51, %v2582_v62  ;;  %v2703_v4 = vmul.f32 %v2570_v55, %v8903_v17 }
 0x8bc   :  { %v2575_v21 = vsub.f32 1.5, %v2574_v43  ;;  %v2584_v0 = vmul.f32 0.5, %v2583_v1  ;;  %v2722_v40 = vmul.f32 %v9045_v33, %v2703_v4 }
 0x8be   :  { %v2576_v42 = vmul.f32 %v7175_v3, %v2575_v21  ;;  %v2585_v56 = vsub.f32 1.5, %v2584_v0  ;;  %v2741_v63 = vadd.f32 %v9059_v58, %v2722_v40 }
 0x8bf   :  { %6602 = vmatmul.msk.f32.gmra.mxu1 %vm74_vm0, %v2740_v14 }
 0x8c0   :  { %v2580_v38 = vsel %vm2579_vm3, %v7175_v3, %v2576_v42  ;;  %v2586_v17 = vmul.f32 %v7177_v51, %v2585_v56 }
 0x8c1   :  { %v2478_v12 = vpop.xlane.xlu1 %2477  ;;  %v2704_v59 = vmul.f32 %v2580_v38, %v8908_v35 }
 0x8c2   :  { %v2514_v37 = vmul.f32 %v2478_v12, %v11373_v26  ;;  %v2590_v32 = vsel %vm2589_vm6, %v7177_v51, %v2586_v17 }
 0x8c3   :  { %v2723_v8 = vmul.f32 %v9045_v33, %v2704_v59  ;;  %v2705_v24 = vmul.f32 %v2590_v32, %v8923_v49 }
 0x8c4   :  { %v2530_v5 = vadd.f32 1e-05, %v2514_v37 }
 0x8c5   :  { %v2742_v3 = vadd.f32 %v9059_v58, %v2723_v8  ;;  %v2724_v53 = vmul.f32 %v9045_v33, %v2705_v24 }
 0x8c6   :  { %7178 = vrsqrt.f32 %v2530_v5  ;;  %vm2597_vm8 = vweird.f32 %v2530_v5 }
 0x8c7   :  { %6603 = vmatmul.msk.f32.gmra.mxu1 %vm74_vm0, %v2741_v63  ;;  %v2743_v51 = vadd.f32 %v9059_v58, %v2724_v53 }
 0x8c9   :  { %v2481_v11 = vpop.xlane.xlu2 %2480 }
 0x8ca   :  { %v2515_v48 = vmul.f32 %v2481_v11, %v11373_v26 }
 0x8cc   :  { %v7179_v31 = vpop.eup %7178  ;;  %v2531_v61 = vadd.f32 1e-05, %v2515_v48 }
 0x8cd   :  { %v2592_v35 = vmul.f32 %v7179_v31, %v2530_v5  ;;  %vm2598_vm7 = vweird.f32 %v7179_v31 }
 0x8ce   :  { %7180 = vrsqrt.f32 %v2531_v61  ;;  %vm2599_vm9 = vmor %vm2597_vm8, %vm2598_vm7  ;;  %vm2607_vm11 = vweird.f32 %v2531_v61 }
 0x8cf   :  { %v2593_v16 = vmul.f32 %v7179_v31, %v2592_v35  ;;  %6604 = vmatmul.msk.f32.gmra.mxu1 %vm74_vm0, %v2742_v3 }
 0x8d1   :  { %v2594_v25 = vmul.f32 0.5, %v2593_v16 }
 0x8d3   :  { %v2595_v7 = vsub.f32 1.5, %v2594_v25  ;;  %v3025_v25 = vld [vmem:[%s11315_s15 + $0x38] sm:$0xff] }
 0x8d4   :  { %v7181_v39 = vpop.eup %7180  ;;  %3087 = vmatpush.msra.mxu2 %v3025_v25  ;;  %v9172_v25 = vld [vmem:[%s11314_s14] ss:$0 sm:$0xff] }
 0x8d5   :  { %v2596_v36 = vmul.f32 %v7179_v31, %v2595_v7  ;;  %v2602_v34 = vmul.f32 %v7181_v39, %v2531_v61  ;;  %vm2608_vm10 = vweird.f32 %v7181_v39  ;;  %v3024_v7 = vld [vmem:[%s11315_s15 + $0x30] sm:$0xff] }
 0x8d6   :  { %vm2609_vm12 = vmor %vm2607_vm11, %vm2608_vm10  ;;  %3088 = vmatpush.msra.mxu2 %v3024_v7  ;;  %vm3030_vm11 = vcmask 523264  }
 0x8d7   :  { %v2600_v49 = vsel %vm2599_vm9, %v7179_v31, %v2596_v36  ;;  %v2603_v57 = vmul.f32 %v7181_v39, %v2602_v34  ;;  %6605 = vmatmul.msk.f32.gmra.mxu1 %vm74_vm0, %v2743_v51  ;;  %v3023_v51 = vld [vmem:[%s11315_s15 + $0x28] sm:$0xff] }
 0x8d8   :  { %v2706_v62 = vmul.f32 %v2600_v49, %v8941_v9  ;;  %3089 = vmatpush.msra.mxu2 %v3023_v51 }
 0x8d9   :  { %v2604_v13 = vmul.f32 0.5, %v2603_v57 }
 0x8da   :  { %v2725_v22 = vmul.f32 %v9045_v33, %v2706_v62 }
 0x8db   :  { %v2605_v43 = vsub.f32 1.5, %v2604_v13 }
 0x8dc   :  { %v2744_v1 = vadd.f32 %v9059_v58, %v2725_v22 }
 0x8dd   :  { %v2606_v55 = vmul.f32 %v7181_v39, %v2605_v43  ;;  %v3022_v43 = vld [vmem:[%s11315_s15 + $0x20] sm:$0xff] }
 0x8de   :  { %3090 = vmatpush.msra.mxu2 %v3022_v43 }
 0x8df   :  { %v2610_v21 = vsel %vm2609_vm12, %v7181_v39, %v2606_v55  ;;  %6606 = vmatmul.msk.f32.gmra.mxu1 %vm74_vm0, %v2744_v1  ;;  %v2400_v14 = vpop.xlane.xlu0 %2399 }
 0x8e0   :  { %v2707_v4 = vmul.f32 %v2610_v21, %v8948_v10  ;;  %v2424_v42 = vmul.f32 %v2400_v14, %v11373_v26 }
 0x8e2   :  { %v9095_v9 = vsub.f32 %v8957_v27, %v2424_v42  ;;  %v2726_v0 = vmul.f32 %v9045_v33, %v2707_v4  ;;  %v3021_v4 = vld [vmem:[%s11315_s15 + $0x18] sm:$0xff] }
 0x8e3   :  { %3091 = vmatpush.msra.mxu2 %v3021_v4 }
 0x8e4   :  { %v2456_v12 = vmul.f32 %v9095_v9, %v9095_v9  ;;  %v2745_v40 = vadd.f32 %v9059_v58, %v2726_v0 }
 0x8e6   :  { %v2494_v38 = vsel %vm74_vm0, %v2456_v12, 0.0 }
 0x8e7   :  { %v2403_v56 = vpop.xlane.xlu1 %2402  ;;  %6607 = vmatmul.msk.f32.gmra.mxu1 %vm74_vm0, %v2745_v40  ;;  %2495 = vadd.xlane.f32.xlu2 %v2494_v38  ;;  %v3020_v38 = vld [vmem:[%s11315_s15 + $0x10] sm:$0xff] }
 0x8e8   :  { %v2425_v10 = vmul.f32 %v2403_v56, %v11373_v26  ;;  %3092 = vmatpush.msra.mxu2 %v3020_v38 }
 0x8ea   :  { %v9105_v37 = vsub.f32 %v8965_v29, %v2425_v10 }
 0x8ec   :  { %v2457_v5 = vmul.f32 %v9105_v37, %v9105_v37 }
 0x8ee   :  { %v2497_v59 = vsel %vm74_vm0, %v2457_v5, 0.0  ;;  %v3019_v5 = vld [vmem:[%s11315_s15 + $0x8] sm:$0xff] }
 0x8ef   :  { %v2406_v63 = vpop.xlane.xlu2 %2405  ;;  %2498 = vadd.xlane.f32.xlu1 %v2497_v59  ;;  %3093 = vmatpush.msra.mxu2 %v3019_v5 }
 0x8f0   :  { %v2426_v17 = vmul.f32 %v2406_v63, %v11373_v26 }
 0x8f2   :  { %v9112_v11 = vsub.f32 %v8973_v52, %v2426_v17 }
 0x8f4   :  { %v2458_v8 = vmul.f32 %v9112_v11, %v9112_v11 }
 0x8f6   :  { %v2500_v32 = vsel %vm74_vm0, %v2458_v8, 0.0 }
 0x8f7   :  { %2501 = vadd.xlane.f32.xlu0 %v2500_v32  ;;  %v3018_v32 = vld [vmem:[%s11315_s15] sm:$0xff] }
 0x8f8   :  { %3094 = vmatpush.msra.mxu2 %v3018_v32 }
 0x918   :  { %v2487_v48 = vpop.xlane.xlu1 %2486 }
 0x919   :  { %v2517_v31 = vmul.f32 %v2487_v48, %v11373_v26 }
 0x91b   :  { %v9118_v61 = vadd.f32 1e-05, %v2517_v31 }
 0x91d   :  { %7182 = vrsqrt.f32 %v9118_v61  ;;  %v2484_v24 = vpop.xlane.xlu0 %2483  ;;  %vm2627_vm3 = vweird.f32 %v9118_v61 }
 0x91e   :  { %v2516_v35 = vmul.f32 %v2484_v24, %v11373_v26 }
 0x920   :  { %v2532_v3 = vadd.f32 1e-05, %v2516_v35  ;;  %v2412_v16 = vpop.xlane.xlu1 %2411 }
 0x921   :  { %v2428_v53 = vmul.f32 %v2412_v16, %v11373_v26 }
 0x922   :  { %7184 = vrsqrt.f32 %v2532_v3  ;;  %vm2617_vm1 = vweird.f32 %v2532_v3 }
 0x923   :  { %v9129_v39 = vpop.eup %7182  ;;  %v9132_v36 = vsub.f32 %v9013_v44, %v2428_v53 }
 0x924   :  { %v2622_v34 = vmul.f32 %v9129_v39, %v9118_v61  ;;  %vm2628_vm15 = vweird.f32 %v9129_v39 }
 0x925   :  { %v2409_v49 = vpop.xlane.xlu0 %2408  ;;  %v2460_v57 = vmul.f32 %v9132_v36, %v9132_v36  ;;  %vm2629_vm4 = vmor %vm2627_vm3, %vm2628_vm15 }
 0x926   :  { %v2623_v62 = vmul.f32 %v9129_v39, %v2622_v34  ;;  %v2427_v13 = vmul.f32 %v2409_v49, %v11373_v26  ;;  %v2490_v22 = vpop.xlane.xlu2 %2489 }
 0x927   :  { %v2518_v55 = vmul.f32 %v2490_v22, %v11373_v26  ;;  %v2506_v1 = vsel %vm74_vm0, %v2460_v57, 0.0 }
 0x928   :  { %v7185_v21 = vpop.eup %7184  ;;  %v9149_v14 = vsub.f32 %v9025_v30, %v2427_v13  ;;  %2507 = vadd.xlane.f32.xlu1 %v2506_v1  ;;  %v2624_v42 = vmul.f32 0.5, %v2623_v62 }
 0x929   :  { %v2612_v0 = vmul.f32 %v7185_v21, %v2532_v3  ;;  %v2534_v12 = vadd.f32 1e-05, %v2518_v55  ;;  %vm2618_vm13 = vweird.f32 %v7185_v21 }
 0x92a   :  { %v2459_v40 = vmul.f32 %v9149_v14, %v9149_v14  ;;  %v2625_v59 = vsub.f32 1.5, %v2624_v42  ;;  %vm2619_vm2 = vmor %vm2617_vm1, %vm2618_vm13 }
 0x92b   :  { %v2613_v56 = vmul.f32 %v7185_v21, %v2612_v0  ;;  %7186 = vrsqrt.f32 %v2534_v12  ;;  %vm2637_vm6 = vweird.f32 %v2534_v12 }
 0x92c   :  { %v2503_v10 = vsel %vm74_vm0, %v2459_v40, 0.0  ;;  %v2626_v35 = vmul.f32 %v9129_v39, %v2625_v59 }
 0x92d   :  { %v2614_v63 = vmul.f32 0.5, %v2613_v56  ;;  %2504 = vadd.xlane.f32.xlu2 %v2503_v10  ;;  %v2493_v17 = vpop.xlane.xlu0 %2492 }
 0x92e   :  { %v2519_v8 = vmul.f32 %v2493_v17, %v11373_v26  ;;  %v2630_v57 = vsel %vm2629_vm4, %v9129_v39, %v2626_v35 }
 0x92f   :  { %v2615_v48 = vsub.f32 1.5, %v2614_v63  ;;  %v2709_v55 = vmul.f32 %v2630_v57, %v8992_v15 }
 0x930   :  { %v2535_v31 = vadd.f32 1e-05, %v2519_v8 }
 0x931   :  { %v7187_v24 = vpop.eup %7186  ;;  %v2616_v16 = vmul.f32 %v7185_v21, %v2615_v48  ;;  %v2728_v40 = vmul.f32 %v9045_v33, %v2709_v55 }
 0x932   :  { %v2632_v53 = vmul.f32 %v7187_v24, %v2534_v12  ;;  %7188 = vrsqrt.f32 %v2535_v31  ;;  %vm2638_vm5 = vweird.f32 %v7187_v24  ;;  %vm2647_vm9 = vweird.f32 %v2535_v31 }
 0x933   :  { %v2620_v7 = vsel %vm2619_vm2, %v7185_v21, %v2616_v16  ;;  %vm2639_vm7 = vmor %vm2637_vm6, %vm2638_vm5  ;;  %v2747_v8 = vadd.f32 %v9059_v58, %v2728_v40 }
 0x934   :  { %v2708_v34 = vmul.f32 %v2620_v7, %v9004_v20  ;;  %v2633_v51 = vmul.f32 %v7187_v24, %v2632_v53  ;;  %v2826_v49 = vpop.f32.mrf.mxu1 }
 0x935   :  { %v2827_v3 = vadd.f32 %v9172_v25, %v2826_v49 }
 0x936   :  { %v2634_v62 = vmul.f32 0.5, %v2633_v51  ;;  %v2727_v13 = vmul.f32 %v9045_v33, %v2708_v34 }
 0x937   :  { %v2874_v22 = vmul.f32 %v2827_v3, %v2827_v3 }
 0x938   :  { %v7189_v43 = vpop.eup %7188  ;;  %v2635_v1 = vsub.f32 1.5, %v2634_v62  ;;  %v2746_v61 = vadd.f32 %v9059_v58, %v2727_v13 }
 0x939   :  { %v2642_v21 = vmul.f32 %v7189_v43, %v2535_v31  ;;  %v2890_v4 = vmul.f32 %v2874_v22, %v2827_v3  ;;  %vm2648_vm8 = vweird.f32 %v7189_v43 }
 0x93a   :  { %v2636_v20 = vmul.f32 %v7187_v24, %v2635_v1  ;;  %6608 = vmatmul.msk.f32.gmra.mxu1 %vm74_vm0, %v2746_v61  ;;  %vm2649_vm10 = vmor %vm2647_vm9, %vm2648_vm8 }
 0x93b   :  { %v2643_v39 = vmul.f32 %v7189_v43, %v2642_v21  ;;  %v2906_v42 = vmul.f32 0.044715, %v2890_v4 }
 0x93c   :  { %v2829_v0 = vpop.f32.mrf.mxu1  ;;  %v2640_v38 = vsel %vm2639_vm7, %v7187_v24, %v2636_v20 }
 0x93d   :  { %v2644_v56 = vmul.f32 0.5, %v2643_v39  ;;  %v2922_v10 = vadd.f32 %v2906_v42, %v2827_v3  ;;  %v2830_v15 = vadd.f32 %v9172_v25, %v2829_v0  ;;  %v2710_v17 = vmul.f32 %v2640_v38, %v9031_v2 }
 0x93f   :  { %v2645_v5 = vsub.f32 1.5, %v2644_v56  ;;  %v2938_v59 = vmul.f32 0.7978846, %v2922_v10  ;;  %v2875_v63 = vmul.f32 %v2830_v15, %v2830_v15  ;;  %v2729_v35 = vmul.f32 %v9045_v33, %v2710_v17 }
 0x941   :  { %v2646_v32 = vmul.f32 %v7189_v43, %v2645_v5  ;;  %7190 = vtanh.f32 %v2938_v59  ;;  %v2891_v12 = vmul.f32 %v2875_v63, %v2830_v15  ;;  %v2748_v62 = vadd.f32 %v9059_v58, %v2729_v35 }
 0x942   :  { %6609 = vmatmul.msk.f32.gmra.mxu1 %vm74_vm0, %v2747_v8 }
 0x943   :  { %v2907_v48 = vmul.f32 0.044715, %v2891_v12  ;;  %v2650_v16 = vsel %vm2649_vm10, %v7189_v43, %v2646_v32 }
 0x944   :  { %v2832_v24 = vpop.f32.mrf.mxu1  ;;  %v2711_v49 = vmul.f32 %v2650_v16, %v9062_v28 }
 0x945   :  { %v2833_v53 = vadd.f32 %v9172_v25, %v2832_v24  ;;  %v2923_v7 = vadd.f32 %v2907_v48, %v2830_v15 }
 0x946   :  { %v2730_v1 = vmul.f32 %v9045_v33, %v2711_v49 }
 0x947   :  { %v7191_v34 = vpop.eup %7190  ;;  %v2876_v2 = vmul.f32 %v2833_v53, %v2833_v53  ;;  %v2939_v51 = vmul.f32 0.7978846, %v2923_v7 }
 0x948   :  { %v2970_v57 = vadd.f32 1.0, %v7191_v34  ;;  %v2749_v39 = vadd.f32 %v9059_v58, %v2730_v1 }
 0x949   :  { %v2892_v13 = vmul.f32 %v2876_v2, %v2833_v53  ;;  %7192 = vtanh.f32 %v2939_v51 }
 0x94a   :  { %v2986_v31 = vmul.f32 0.5, %v2970_v57  ;;  %6610 = vmatmul.msk.f32.gmra.mxu1 %vm74_vm0, %v2748_v62 }
 0x94b   :  { %v2908_v22 = vmul.f32 0.044715, %v2892_v13 }
 0x94c   :  { %v3002_v55 = vmul.f32 %v2986_v31, %v2827_v3  ;;  %v2835_v43 = vpop.f32.mrf.mxu1 }
 0x94d   :  { %v2836_v61 = vadd.f32 %v9172_v25, %v2835_v43  ;;  %v2924_v21 = vadd.f32 %v2908_v22, %v2833_v53 }
 0x94e   :  { %6617 = vmatmul.msk.f32.vlgmr.msra.gmra.mxu2 %vm3030_vm11, %v3002_v55 }
 0x94f   :  { %v7193_v28 = vpop.eup %7192  ;;  %v2877_v4 = vmul.f32 %v2836_v61, %v2836_v61  ;;  %v2940_v20 = vmul.f32 0.7978846, %v2924_v21 }
 0x950   :  { %v2971_v42 = vadd.f32 1.0, %v7193_v28 }
 0x951   :  { %v2893_v0 = vmul.f32 %v2877_v4, %v2836_v61  ;;  %7194 = vtanh.f32 %v2940_v20 }
 0x952   :  { %6611 = vmatmul.msk.f32.gmra.mxu1 %vm74_vm0, %v2749_v39  ;;  %v2987_v40 = vmul.f32 0.5, %v2971_v42 }
 0x953   :  { %v2909_v3 = vmul.f32 0.044715, %v2893_v0 }
 0x954   :  { %v2838_v38 = vpop.f32.mrf.mxu1  ;;  %v3003_v56 = vmul.f32 %v2987_v40, %v2830_v15 }
 0x955   :  { %v2839_v10 = vadd.f32 %v9172_v25, %v2838_v38  ;;  %v2925_v5 = vadd.f32 %v2909_v3, %v2836_v61 }
 0x956   :  { %6618 = vmatmul.msk.f32.gmra.mxu2 %vm3030_vm11, %v3003_v56 }
 0x957   :  { %v7195_v59 = vpop.eup %7194  ;;  %v2878_v63 = vmul.f32 %v2839_v10, %v2839_v10  ;;  %v2941_v17 = vmul.f32 0.7978846, %v2925_v5 }
 0x958   :  { %v2972_v8 = vadd.f32 1.0, %v7195_v59 }
 0x959   :  { %v2894_v32 = vmul.f32 %v2878_v63, %v2839_v10  ;;  %7196 = vtanh.f32 %v2941_v17 }
 0x95a   :  { %v2496_v12 = vpop.xlane.xlu2 %2495  ;;  %v2988_v48 = vmul.f32 0.5, %v2972_v8 }
 0x95b   :  { %v2910_v24 = vmul.f32 0.044715, %v2894_v32  ;;  %v2520_v35 = vmul.f32 %v2496_v12, %v11373_v26 }
 0x95c   :  { %v2841_v16 = vpop.f32.mrf.mxu1  ;;  %v3004_v7 = vmul.f32 %v2988_v48, %v2833_v53 }
 0x95d   :  { %v2536_v34 = vadd.f32 1e-05, %v2520_v35  ;;  %v2842_v15 = vadd.f32 %v9172_v25, %v2841_v16  ;;  %v2926_v2 = vadd.f32 %v2910_v24, %v2839_v10 }
 0x95e   :  { %6619 = vmatmul.msk.f32.gmra.mxu2 %vm3030_vm11, %v3004_v7 }
 0x95f   :  { %v7197_v51 = vpop.eup %7196  ;;  %7198 = vrsqrt.f32 %v2536_v34  ;;  %v2879_v49 = vmul.f32 %v2842_v15, %v2842_v15  ;;  %v2942_v57 = vmul.f32 0.7978846, %v2926_v2  ;;  %vm2657_vm13 = vweird.f32 %v2536_v34 }
 0x960   :  { %v2973_v62 = vadd.f32 1.0, %v7197_v51 }
 0x961   :  { %v2895_v13 = vmul.f32 %v2879_v49, %v2842_v15  ;;  %7200 = vtanh.f32 %v2942_v57 }
 0x962   :  { %v2499_v31 = vpop.xlane.xlu1 %2498  ;;  %v2989_v22 = vmul.f32 0.5, %v2973_v62 }
 0x963   :  { %v2911_v55 = vmul.f32 0.044715, %v2895_v13  ;;  %v2521_v43 = vmul.f32 %v2499_v31, %v11373_v26 }
 0x964   :  { %v2844_v1 = vpop.f32.mrf.mxu1  ;;  %v3005_v53 = vmul.f32 %v2989_v22, %v2836_v61 }
 0x965   :  { %v7199_v21 = vpop.eup %7198  ;;  %v2927_v28 = vadd.f32 %v2911_v55, %v2842_v15  ;;  %v2537_v4 = vadd.f32 1e-05, %v2521_v43  ;;  %v2845_v20 = vadd.f32 %v9172_v25, %v2844_v1 }
 0x966   :  { %v2652_v39 = vmul.f32 %v7199_v21, %v2536_v34  ;;  %6620 = vmatmul.msk.f32.gmra.mxu2 %vm3030_vm11, %v3005_v53  ;;  %vm2658_vm12 = vweird.f32 %v7199_v21 }
 0x967   :  { %v7201_v42 = vpop.eup %7200  ;;  %v2943_v0 = vmul.f32 0.7978846, %v2927_v28  ;;  %7202 = vrsqrt.f32 %v2537_v4  ;;  %v2880_v40 = vmul.f32 %v2845_v20, %v2845_v20  ;;  %vm2659_vm15 = vmor %vm2657_vm13, %vm2658_vm12  ;;  %vm2667_vm2 = vweird.f32 %v2537_v4 }
 0x968   :  { %v2653_v3 = vmul.f32 %v7199_v21, %v2652_v39  ;;  %v2974_v38 = vadd.f32 1.0, %v7201_v42 }
 0x969   :  { %7204 = vtanh.f32 %v2943_v0  ;;  %v2896_v56 = vmul.f32 %v2880_v40, %v2845_v20 }
 0x96a   :  { %v2654_v5 = vmul.f32 0.5, %v2653_v3  ;;  %v2502_v59 = vpop.xlane.xlu0 %2501  ;;  %v2990_v63 = vmul.f32 0.5, %v2974_v38 }
 0x96b   :  { %v2912_v61 = vmul.f32 0.044715, %v2896_v56  ;;  %v2522_v17 = vmul.f32 %v2502_v59, %v11373_v26 }
 0x96c   :  { %v2655_v8 = vsub.f32 1.5, %v2654_v5  ;;  %v3006_v32 = vmul.f32 %v2990_v63, %v2839_v10 }
 0x96d   :  { %v7203_v12 = vpop.eup %7202  ;;  %v2928_v48 = vadd.f32 %v2912_v61, %v2845_v20  ;;  %v2538_v24 = vadd.f32 1e-05, %v2522_v17 }
 0x96e   :  { %v2656_v35 = vmul.f32 %v7199_v21, %v2655_v8  ;;  %v2662_v16 = vmul.f32 %v7203_v12, %v2537_v4  ;;  %6621 = vmatmul.msk.f32.gmra.mxu2 %vm3030_vm11, %v3006_v32  ;;  %vm2668_vm1 = vweird.f32 %v7203_v12 }
 0x96f   :  { %v7205_v7 = vpop.eup %7204  ;;  %v2944_v2 = vmul.f32 0.7978846, %v2928_v48  ;;  %7206 = vrsqrt.f32 %v2538_v24  ;;  %vm2669_vm3 = vmor %vm2667_vm2, %vm2668_vm1  ;;  %vm2677_vm5 = vweird.f32 %v2538_v24 }
 0x970   :  { %v2660_v51 = vsel %vm2659_vm15, %v7199_v21, %v2656_v35  ;;  %v2663_v49 = vmul.f32 %v7203_v12, %v2662_v16  ;;  %v2975_v57 = vadd.f32 1.0, %v7205_v7 }
 0x971   :  { %v2712_v62 = vmul.f32 %v2660_v51, %v9095_v9  ;;  %7208 = vtanh.f32 %v2944_v2 }
 0x972   :  { %v2664_v13 = vmul.f32 0.5, %v2663_v49  ;;  %v2991_v10 = vmul.f32 0.5, %v2975_v57 }
 0x973   :  { %v2731_v31 = vmul.f32 %v9045_v33, %v2712_v62 }
 0x974   :  { %v2665_v22 = vsub.f32 1.5, %v2664_v13  ;;  %v3007_v34 = vmul.f32 %v2991_v10, %v2842_v15 }
 0x975   :  { %v7207_v55 = vpop.eup %7206  ;;  %v2750_v43 = vadd.f32 %v9059_v58, %v2731_v31 }
 0x976   :  { %v2666_v1 = vmul.f32 %v7203_v12, %v2665_v22  ;;  %v2672_v53 = vmul.f32 %v7207_v55, %v2538_v24  ;;  %6622 = vmatmul.msk.f32.gmra.mxu2 %vm3030_vm11, %v3007_v34  ;;  %vm2678_vm4 = vweird.f32 %v7207_v55 }
 0x977   :  { %v7209_v21 = vpop.eup %7208  ;;  %6612 = vmatmul.msk.f32.gmra.mxu1 %vm74_vm0, %v2750_v43  ;;  %vm2679_vm6 = vmor %vm2677_vm5, %vm2678_vm4 }
 0x978   :  { %v2670_v9 = vsel %vm2669_vm3, %v7203_v12, %v2666_v1  ;;  %v2673_v28 = vmul.f32 %v7207_v55, %v2672_v53  ;;  %v2976_v39 = vadd.f32 1.0, %v7209_v21 }
 0x979   :  { %v2713_v42 = vmul.f32 %v2670_v9, %v9105_v37 }
 0x97a   :  { %v2674_v0 = vmul.f32 0.5, %v2673_v28  ;;  %v2992_v40 = vmul.f32 0.5, %v2976_v39 }
 0x97b   :  { %v2732_v15 = vmul.f32 %v9045_v33, %v2713_v42 }
 0x97c   :  { %v2675_v3 = vsub.f32 1.5, %v2674_v0  ;;  %v3008_v38 = vmul.f32 %v2992_v40, %v2845_v20 }
 0x97d   :  { %v2751_v4 = vadd.f32 %v9059_v58, %v2732_v15 }
 0x97e   :  { %v2676_v56 = vmul.f32 %v7207_v55, %v2675_v3  ;;  %6623 = vmatmul.msk.f32.gmra.mxu2 %vm3030_vm11, %v3008_v38 }
 0x97f   :  { %6613 = vmatmul.msk.f32.gmra.mxu1 %vm74_vm0, %v2751_v4 }
 0x980   :  { %v2680_v5 = vsel %vm2679_vm6, %v7207_v55, %v2676_v56 }
 0x981   :  { %v2714_v59 = vmul.f32 %v2680_v5, %v9112_v11 }
 0x983   :  { %v2733_v37 = vmul.f32 %v9045_v33, %v2714_v59 }
 0x985   :  { %v2752_v63 = vadd.f32 %v9059_v58, %v2733_v37 }
 0x987   :  { %6614 = vmatmul.msk.f32.gmra.mxu1 %vm74_vm0, %v2752_v63 }
 0x99b   :  { %v2508_v61 = vpop.xlane.xlu1 %2507 }
 0x99c   :  { %v2524_v20 = vmul.f32 %v2508_v61, %v11373_v26 }
 0x99e   :  { %v2540_v17 = vadd.f32 1e-05, %v2524_v20 }
 0x9a0   :  { %7210 = vrsqrt.f32 %v2540_v17  ;;  %v2505_v8 = vpop.xlane.xlu2 %2504  ;;  %vm2697_vm12 = vweird.f32 %v2540_v17 }
 0x9a1   :  { %v2523_v32 = vmul.f32 %v2505_v8, %v11373_v26 }
 0x9a3   :  { %v2539_v12 = vadd.f32 1e-05, %v2523_v32 }
 0x9a5   :  { %7212 = vrsqrt.f32 %v2539_v12  ;;  %vm2687_vm9 = vweird.f32 %v2539_v12 }
 0x9a6   :  { %v7211_v48 = vpop.eup %7210 }
 0x9a7   :  { %v2692_v24 = vmul.f32 %v7211_v48, %v2540_v17  ;;  %vm2698_vm8 = vweird.f32 %v7211_v48 }
 0x9a8   :  { %vm2699_vm13 = vmor %vm2697_vm12, %vm2698_vm8 }
 0x9a9   :  { %v2693_v35 = vmul.f32 %v7211_v48, %v2692_v24 }
 0x9ab   :  { %v7213_v11 = vpop.eup %7212  ;;  %v2694_v16 = vmul.f32 0.5, %v2693_v35 }
 0x9ac   :  { %v2682_v7 = vmul.f32 %v7213_v11, %v2539_v12  ;;  %vm2688_vm7 = vweird.f32 %v7213_v11 }
 0x9ad   :  { %v2695_v51 = vsub.f32 1.5, %v2694_v16  ;;  %vm2689_vm10 = vmor %vm2687_vm9, %vm2688_vm7 }
 0x9ae   :  { %v2683_v2 = vmul.f32 %v7213_v11, %v2682_v7 }
 0x9af   :  { %v2696_v62 = vmul.f32 %v7211_v48, %v2695_v51 }
 0x9b0   :  { %v2684_v49 = vmul.f32 0.5, %v2683_v2 }
 0x9b1   :  { %v2700_v34 = vsel %vm2699_vm13, %v7211_v48, %v2696_v62 }
 0x9b2   :  { %v2685_v57 = vsub.f32 1.5, %v2684_v49  ;;  %v2716_v53 = vmul.f32 %v2700_v34, %v9132_v36 }
 0x9b4   :  { %v2686_v13 = vmul.f32 %v7213_v11, %v2685_v57  ;;  %v2735_v42 = vmul.f32 %v9045_v33, %v2716_v53 }
 0x9b6   :  { %v2690_v10 = vsel %vm2689_vm10, %v7213_v11, %v2686_v13  ;;  %v2754_v3 = vadd.f32 %v9059_v58, %v2735_v42 }
 0x9b7   :  { %v2715_v31 = vmul.f32 %v2690_v10, %v9149_v14  ;;  %v2847_v22 = vpop.f32.mrf.mxu1 }
 0x9b8   :  { %v2848_v55 = vadd.f32 %v9172_v25, %v2847_v22 }
 0x9b9   :  { %v2734_v43 = vmul.f32 %v9045_v33, %v2715_v31 }
 0x9ba   :  { %v2881_v1 = vmul.f32 %v2848_v55, %v2848_v55 }
 0x9bb   :  { %v2753_v21 = vadd.f32 %v9059_v58, %v2734_v43 }
 0x9bc   :  { %v2897_v9 = vmul.f32 %v2881_v1, %v2848_v55 }
 0x9bd   :  { %6615 = vmatmul.msk.f32.gmra.mxu1 %vm74_vm0, %v2753_v21 }
 0x9be   :  { %v2913_v28 = vmul.f32 0.044715, %v2897_v9 }
 0x9bf   :  { %v2850_v39 = vpop.f32.mrf.mxu1 }
 0x9c0   :  { %v2929_v0 = vadd.f32 %v2913_v28, %v2848_v55  ;;  %v2851_v14 = vadd.f32 %v9172_v25, %v2850_v39 }
 0x9c2   :  { %v2945_v40 = vmul.f32 0.7978846, %v2929_v0  ;;  %v2882_v15 = vmul.f32 %v2851_v14, %v2851_v14 }
 0x9c4   :  { %7214 = vtanh.f32 %v2945_v40  ;;  %v2898_v38 = vmul.f32 %v2882_v15, %v2851_v14 }
 0x9c5   :  { %6616 = vmatmul.msk.f32.gmra.mxu1 %vm74_vm0, %v2754_v3 }
 0x9c6   :  { %v2914_v36 = vmul.f32 0.044715, %v2898_v38 }
 0x9c7   :  { %v2853_v4 = vpop.f32.mrf.mxu1 }
 0x9c8   :  { %v2930_v56 = vadd.f32 %v2914_v36, %v2851_v14  ;;  %v2854_v5 = vadd.f32 %v9172_v25, %v2853_v4 }
 0x9ca   :  { %v7215_v59 = vpop.eup %7214  ;;  %v2946_v37 = vmul.f32 0.7978846, %v2930_v56  ;;  %v2883_v63 = vmul.f32 %v2854_v5, %v2854_v5 }
 0x9cb   :  { %v2977_v33 = vadd.f32 1.0, %v7215_v59 }
 0x9cc   :  { %7216 = vtanh.f32 %v2946_v37  ;;  %v2899_v61 = vmul.f32 %v2883_v63, %v2854_v5 }
 0x9cd   :  { %v2993_v20 = vmul.f32 0.5, %v2977_v33 }
 0x9ce   :  { %v2915_v17 = vmul.f32 0.044715, %v2899_v61 }
 0x9cf   :  { %v2856_v8 = vpop.f32.mrf.mxu1  ;;  %v3009_v32 = vmul.f32 %v2993_v20, %v2848_v55 }
 0x9d0   :  { %v2931_v58 = vadd.f32 %v2915_v17, %v2854_v5  ;;  %v2857_v12 = vadd.f32 %v9172_v25, %v2856_v8 }
 0x9d1   :  { %6624 = vmatmul.msk.f32.gmra.mxu2 %vm3030_vm11, %v3009_v32 }
 0x9d2   :  { %v7217_v48 = vpop.eup %7216  ;;  %v2947_v24 = vmul.f32 0.7978846, %v2931_v58  ;;  %v2884_v35 = vmul.f32 %v2857_v12, %v2857_v12  ;;  %v9243_v58 = vpop.f32.mrf.mxu2 }
 0x9d3   :  { %v2978_v11 = vadd.f32 1.0, %v7217_v48 }
 0x9d4   :  { %7218 = vtanh.f32 %v2947_v24  ;;  %v2900_v16 = vmul.f32 %v2884_v35, %v2857_v12 }
 0x9d5   :  { %v2994_v7 = vmul.f32 0.5, %v2978_v11 }
 0x9d6   :  { %v2916_v2 = vmul.f32 0.044715, %v2900_v16 }
 0x9d7   :  { %v3010_v51 = vmul.f32 %v2994_v7, %v2851_v14 }
 0x9d8   :  { %v2932_v49 = vadd.f32 %v2916_v2, %v2857_v12 }
 0x9d9   :  { %6625 = vmatmul.msk.f32.gmra.mxu2 %vm3030_vm11, %v3010_v51 }
 0x9da   :  { %v7219_v57 = vpop.eup %7218  ;;  %v2948_v62 = vmul.f32 0.7978846, %v2932_v49  ;;  %v9246_v16 = vpop.f32.mrf.mxu2 }
 0x9db   :  { %v2979_v13 = vadd.f32 1.0, %v7219_v57 }
 0x9dc   :  { %7220 = vtanh.f32 %v2948_v62 }
 0x9dd   :  { %v2995_v10 = vmul.f32 0.5, %v2979_v13 }
 0x9df   :  { %v3011_v31 = vmul.f32 %v2995_v10, %v2854_v5 }
 0x9e1   :  { %6626 = vmatmul.msk.f32.gmra.mxu2 %vm3030_vm11, %v3011_v31 }
 0x9e2   :  { %v7221_v22 = vpop.eup %7220  ;;  %v9249_v51 = vpop.f32.mrf.mxu2 }
 0x9e3   :  { %v2980_v34 = vadd.f32 1.0, %v7221_v22 }
 0x9e5   :  { %v2996_v55 = vmul.f32 0.5, %v2980_v34 }
 0x9e7   :  { %v3012_v43 = vmul.f32 %v2996_v55, %v2857_v12 }
 0x9e9   :  { %6627 = vmatmul.msk.f32.gmra.mxu2 %vm3030_vm11, %v3012_v43 }
 0x9ea   :  { %v9251_v49 = vpop.f32.mrf.mxu2 }
 0x9f2   :  { %v3108_v57 = vpop.f32.mrf.mxu2 }
 0x9f4   :  { %v2859_v1 = vpop.f32.mrf.mxu1 }
 0x9f5   :  { %v2860_v53 = vadd.f32 %v9172_v25, %v2859_v1 }
 0x9f7   :  { %v2885_v21 = vmul.f32 %v2860_v53, %v2860_v53 }
 0x9f9   :  { %v2901_v9 = vmul.f32 %v2885_v21, %v2860_v53 }
 0x9fa   :  { %v9254_v34 = vpop.f32.mrf.mxu2 }
 0x9fb   :  { %v2917_v28 = vmul.f32 0.044715, %v2901_v9 }
 0x9fc   :  { %v2862_v39 = vpop.f32.mrf.mxu1 }
 0x9fd   :  { %v2933_v42 = vadd.f32 %v2917_v28, %v2860_v53  ;;  %v2863_v0 = vadd.f32 %v9172_v25, %v2862_v39 }
 0x9ff   :  { %v2949_v14 = vmul.f32 0.7978846, %v2933_v42  ;;  %v2886_v40 = vmul.f32 %v2863_v0, %v2863_v0 }
 0xa01   :  { %7222 = vtanh.f32 %v2949_v14  ;;  %v2902_v15 = vmul.f32 %v2886_v40, %v2863_v0 }
 0xa02   :  { %v9257_v42 = vpop.f32.mrf.mxu2 }
 0xa03   :  { %v2918_v3 = vmul.f32 0.044715, %v2902_v15 }
 0xa04   :  { %v2865_v38 = vpop.f32.mrf.mxu1 }
 0xa05   :  { %v2934_v36 = vadd.f32 %v2918_v3, %v2863_v0  ;;  %v2866_v4 = vadd.f32 %v9172_v25, %v2865_v38 }
 0xa07   :  { %v7223_v56 = vpop.eup %7222  ;;  %v2950_v5 = vmul.f32 0.7978846, %v2934_v36  ;;  %v2887_v59 = vmul.f32 %v2866_v4, %v2866_v4 }
 0xa08   :  { %v2981_v37 = vadd.f32 1.0, %v7223_v56 }
 0xa09   :  { %7224 = vtanh.f32 %v2950_v5  ;;  %v2903_v63 = vmul.f32 %v2887_v59, %v2866_v4 }
 0xa0a   :  { %v2997_v33 = vmul.f32 0.5, %v2981_v37  ;;  %v9264_v37 = vld [vmem:[%s11316_s16] ss:$0 sm:$0xff] }
 0xa0b   :  { %v2919_v61 = vmul.f32 0.044715, %v2903_v63 }
 0xa0c   :  { %v3013_v20 = vmul.f32 %v2997_v33, %v2860_v53 }
 0xa0d   :  { %v2935_v17 = vadd.f32 %v2919_v61, %v2866_v4 }
 0xa0e   :  { %6628 = vmatmul.msk.f32.gmra.mxu2 %vm3030_vm11, %v3013_v20 }
 0xa0f   :  { %v7225_v8 = vpop.eup %7224  ;;  %v2951_v32 = vmul.f32 0.7978846, %v2935_v17 }
 0xa10   :  { %v2982_v12 = vadd.f32 1.0, %v7225_v8 }
 0xa11   :  { %7226 = vtanh.f32 %v2951_v32 }
 0xa12   :  { %v2998_v48 = vmul.f32 0.5, %v2982_v12 }
 0xa14   :  { %v3014_v24 = vmul.f32 %v2998_v48, %v2863_v0 }
 0xa16   :  { %6629 = vmatmul.msk.f32.gmra.mxu2 %vm3030_vm11, %v3014_v24 }
 0xa17   :  { %v7227_v35 = vpop.eup %7226 }
 0xa18   :  { %v2983_v11 = vadd.f32 1.0, %v7227_v35 }
 0xa1a   :  { %v2999_v7 = vmul.f32 0.5, %v2983_v11 }
 0xa1c   :  { %v3015_v2 = vmul.f32 %v2999_v7, %v2866_v4 }
 0xa1e   :  { %6630 = vmatmul.msk.f32.gmra.mxu2 %vm3030_vm11, %v3015_v2 }
 0xa3a   :  { %v2868_v62 = vpop.f32.mrf.mxu1 }
 0xa3b   :  { %v2869_v13 = vadd.f32 %v9172_v25, %v2868_v62 }
 0xa3d   :  { %v2888_v10 = vmul.f32 %v2869_v13, %v2869_v13 }
 0xa3f   :  { %v2904_v31 = vmul.f32 %v2888_v10, %v2869_v13 }
 0xa41   :  { %v2920_v22 = vmul.f32 0.044715, %v2904_v31 }
 0xa42   :  { %v2871_v55 = vpop.f32.mrf.mxu1 }
 0xa43   :  { %v2936_v43 = vadd.f32 %v2920_v22, %v2869_v13  ;;  %v2872_v1 = vadd.f32 %v9172_v25, %v2871_v55 }
 0xa45   :  { %v2952_v53 = vmul.f32 0.7978846, %v2936_v43  ;;  %v2889_v21 = vmul.f32 %v2872_v1, %v2872_v1 }
 0xa47   :  { %7228 = vtanh.f32 %v2952_v53  ;;  %v2905_v9 = vmul.f32 %v2889_v21, %v2872_v1 }
 0xa49   :  { %v2921_v28 = vmul.f32 0.044715, %v2905_v9 }
 0xa4b   :  { %v2937_v39 = vadd.f32 %v2921_v28, %v2872_v1  ;;  %v3112_v28 = vadd.f32 %v9264_v37, %v9254_v34  ;;  %v3115_v34 = vadd.f32 %v9264_v37, %v9257_v42 }
 0xa4d   :  { %v7229_v0 = vpop.eup %7228  ;;  %v2953_v14 = vmul.f32 0.7978846, %v2937_v39 }
 0xa4e   :  { %v2984_v40 = vadd.f32 1.0, %v7229_v0 }
 0xa4f   :  { %7230 = vtanh.f32 %v2953_v14 }
 0xa50   :  { %v3000_v15 = vmul.f32 0.5, %v2984_v40 }
 0xa52   :  { %v3016_v3 = vmul.f32 %v3000_v15, %v2869_v13 }
 0xa54   :  { %v3117_v38 = vpop.f32.mrf.mxu2  ;;  %6631 = vmatmul.msk.f32.gmra.mxu2 %vm3030_vm11, %v3016_v3 }
 0xa55   :  { %v7231_v36 = vpop.eup %7230  ;;  %v3118_v2 = vadd.f32 %v9264_v37, %v3117_v38 }
 0xa56   :  { %v2985_v4 = vadd.f32 1.0, %v7231_v36 }
 0xa57   :  { %v9292_v13 = vadd.f32 %v3118_v2, %v8899_v45 }
 0xa58   :  { %v3001_v25 = vmul.f32 0.5, %v2985_v4 }
 0xa59   :  { %11380 = vst [vmem:[#allocation7_spill] sm:$0xff] %v9292_v13  ;;  %v3185_v10 = vsel %vm74_vm0, %v9292_v13, 0.0 }
 0xa5a   :  { %v3017_v56 = vmul.f32 %v3001_v25, %v2872_v1 }
 0xa5c   :  { %v3120_v5 = vpop.f32.mrf.mxu2  ;;  %6632 = vmatmul.msk.f32.gmra.mxu2 %vm3030_vm11, %v3017_v56 }
 0xa5d   :  { %v3121_v1 = vadd.f32 %v9264_v37, %v3120_v5 }
 0xa64   :  { %v3123_v59 = vpop.f32.mrf.mxu2 }
 0xa6c   :  { %v3126_v63 = vpop.f32.mrf.mxu2 }
 0xa6d   :  { %v3127_v33 = vadd.f32 %v9264_v37, %v3126_v63 }
 0xa6f   :  { %v9268_v61 = vadd.f32 %v3127_v33, %v8935_v47 }
 0xa71   :  { %11376 = vst [vmem:[#allocation4_spill] sm:$0xff] %v9268_v61  ;;  %v3194_v20 = vsel %vm74_vm0, %v9268_v61, 0.0 }
 0xa72   :  { %3195 = vadd.xlane.f32.xlu1 %v3194_v20 }
 0xa91   :  { %v3129_v17 = vpop.f32.mrf.mxu2 }
 0xa92   :  { %v3130_v8 = vadd.f32 %v9264_v37, %v3129_v17 }
 0xa94   :  { %v9274_v32 = vadd.f32 %v3130_v8, %v8957_v27 }
 0xa96   :  { %11377 = vst [vmem:[#allocation3_spill] sm:$0xff] %v9274_v32  ;;  %v3197_v12 = vsel %vm74_vm0, %v9274_v32, 0.0 }
 0xa97   :  { %3198 = vadd.xlane.f32.xlu2 %v3197_v12 }
 0xa99   :  { %v3132_v48 = vpop.f32.mrf.mxu2 }
 0xa9a   :  { %v3133_v24 = vadd.f32 %v9264_v37, %v3132_v48 }
 0xa9c   :  { %v9280_v47 = vadd.f32 %v3133_v24, %v8965_v29  ;;  %v3109_v29 = vadd.f32 %v9264_v37, %v3108_v57 }
 0xa9e   :  { %11378 = vst [vmem:[#allocation5_spill] sm:$0xff] %v9280_v47  ;;  %v3200_v35 = vsel %vm74_vm0, %v9280_v47, 0.0  ;;  %v9298_v31 = vadd.f32 %v3109_v29, %v8837_v41 }
 0xa9f   :  { %3201 = vadd.xlane.f32.xlu0 %v3200_v35 }
 0xaa0   :  { %11381 = vst [vmem:[#allocation8_spill] sm:$0xff] %v9298_v31  ;;  %v3176_v22 = vsel %vm74_vm0, %v9298_v31, 0.0 }
 0xaa1   :  { %v3135_v11 = vpop.f32.mrf.mxu2 }
 0xaa2   :  { %v3136_v7 = vadd.f32 %v9264_v37, %v3135_v11 }
 0xaa4   :  { %v9286_v27 = vadd.f32 %v3136_v7, %v8973_v52  ;;  %v3100_v52 = vadd.f32 %v9264_v37, %v9246_v16 }
 0xaa6   :  { %11379 = vst [vmem:[#allocation6_spill] sm:$0xff] %v9286_v27  ;;  %v3203_v62 = vsel %vm74_vm0, %v9286_v27, 0.0  ;;  %v9305_v55 = vadd.f32 %v3100_v52, %v8805_v46  ;;  %v9317_v46 = vadd.f32 %v3121_v1, %v8889_v19  ;;  %v9331_v19 = vadd.f32 %v3112_v28, %v8845_v50 }
 0xaa7   :  { %3204 = vadd.xlane.f32.xlu1 %v3203_v62 }
 0xaa8   :  { %11382 = vst [vmem:[#allocation9_spill] sm:$0xff] %v9305_v55  ;;  %v3167_v45 = vsel %vm74_vm0, %v9305_v55, 0.0  ;;  %v3188_v0 = vsel %vm74_vm0, %v9317_v46, 0.0  ;;  %v3179_v15 = vsel %vm74_vm0, %v9331_v19, 0.0 }
 0xaa9   :  { %11384 = vst [vmem:[#allocation11_spill] sm:$0xff] %v9317_v46 }
 0xaaa   :  { %11386 = vst [vmem:[#allocation13_spill] sm:$0xff] %v9331_v19 }
 0xaaf   :  { %3186 = vadd.xlane.f32.xlu1 %v3185_v10 }
 0xab7   :  { %3177 = vadd.xlane.f32.xlu1 %v3176_v22 }
 0xabf   :  { %3168 = vadd.xlane.f32.xlu1 %v3167_v45 }
 0xad7   :  { %v3138_v57 = vpop.f32.mrf.mxu2 }
 0xad8   :  { %v3139_v43 = vadd.f32 %v9264_v37, %v3138_v57 }
 0xada   :  { %v9311_v41 = vadd.f32 %v3139_v43, %v9025_v30  ;;  %v3124_v30 = vadd.f32 %v9264_v37, %v3123_v59 }
 0xadc   :  { %11383 = vst [vmem:[#allocation10_spill] sm:$0xff] %v9311_v41  ;;  %v3206_v16 = vsel %vm74_vm0, %v9311_v41, 0.0  ;;  %v9334_v14 = vadd.f32 %v3124_v30, %v8920_v54  ;;  %v9348_v54 = vadd.f32 %v3115_v34, %v8853_v23 }
 0xadd   :  { %3207 = vadd.xlane.f32.xlu2 %v3206_v16 }
 0xade   :  { %11387 = vst [vmem:[#allocation14_spill] sm:$0xff] %v9334_v14  ;;  %v3191_v40 = vsel %vm74_vm0, %v9334_v14, 0.0  ;;  %v3182_v42 = vsel %vm74_vm0, %v9348_v54, 0.0 }
 0xadf   :  { %v3141_v53 = vpop.f32.mrf.mxu2  ;;  %11389 = vst [vmem:[#allocation16_spill] sm:$0xff] %v9348_v54 }
 0xae0   :  { %v3142_v21 = vadd.f32 %v9264_v37, %v3141_v53 }
 0xae2   :  { %v9321_v9 = vadd.f32 %v3142_v21, %v9013_v44  ;;  %v3103_v44 = vadd.f32 %v9264_v37, %v9249_v51  ;;  %v3106_v51 = vadd.f32 %v9264_v37, %v9251_v49 }
 0xae4   :  { %11385 = vst [vmem:[#allocation12_spill] sm:$0xff] %v9321_v9  ;;  %v3209_v39 = vsel %vm74_vm0, %v9321_v9, 0.0  ;;  %v9345_v50 = vadd.f32 %v3103_v44, %v8821_v60  ;;  %v9357_v38 = vadd.f32 %v3106_v51, %v8827_v18  ;;  %v3097_v60 = vadd.f32 %v9264_v37, %v9243_v58 }
 0xae5   :  { %3210 = vadd.xlane.f32.xlu0 %v3209_v39  ;;  %3189 = vadd.xlane.f32.xlu2 %v3188_v0  ;;  %v3196_v36 = vpop.xlane.xlu1 %3195 }
 0xae6   :  { %11388 = vst [vmem:[#allocation15_spill] sm:$0xff] %v9345_v50  ;;  %v3170_v3 = vsel %vm74_vm0, %v9345_v50, 0.0  ;;  %v3173_v23 = vsel %vm74_vm0, %v9357_v38, 0.0  ;;  %v9364_v49 = vadd.f32 %v3097_v60, %v8813_v6  ;;  %v3222_v4 = vmul.f32 %v3196_v36, %v11373_v26 }
 0xae7   :  { %11390 = vst [vmem:[#allocation17_spill] sm:$0xff] %v9357_v38 }
 0xae8   :  { %11391 = vst [vmem:[#allocation18_spill] sm:$0xff] %v9364_v49  ;;  %v9368_v25 = vsub.f32 %v9268_v61, %v3222_v4  ;;  %v3164_v18 = vsel %vm74_vm0, %v9364_v49, 0.0 }
 0xaea   :  { %v3254_v58 = vmul.f32 %v9368_v25, %v9368_v25 }
 0xaec   :  { %v3290_v59 = vsel %vm74_vm0, %v3254_v58, 0.0 }
 0xaed   :  { %3192 = vadd.xlane.f32.xlu0 %v3191_v40  ;;  %3180 = vadd.xlane.f32.xlu2 %v3179_v15 }
 0xaf5   :  { %3183 = vadd.xlane.f32.xlu0 %v3182_v42  ;;  %3171 = vadd.xlane.f32.xlu2 %v3170_v3 }
 0xafd   :  { %3174 = vadd.xlane.f32.xlu0 %v3173_v23 }
 0xb05   :  { %3165 = vadd.xlane.f32.xlu0 %v3164_v18 }
 0xb0a   :  { %v3199_v56 = vpop.xlane.xlu2 %3198 }
 0xb0b   :  { %v3223_v5 = vmul.f32 %v3199_v56, %v11373_v26 }
 0xb0d   :  { %v9377_v6 = vsub.f32 %v9274_v32, %v3223_v5  ;;  %3291 = vadd.xlane.f32.xlu0 %v3290_v59 }
 0xb0f   :  { %v3255_v37 = vmul.f32 %v9377_v6, %v9377_v6 }
 0xb11   :  { %v3293_v63 = vsel %vm74_vm0, %v3255_v37, 0.0 }
 0xb12   :  { %3294 = vadd.xlane.f32.xlu1 %v3293_v63  ;;  %v3202_v33 = vpop.xlane.xlu0 %3201 }
 0xb13   :  { %v3224_v20 = vmul.f32 %v3202_v33, %v11373_v26 }
 0xb15   :  { %v9384_v17 = vsub.f32 %v9280_v47, %v3224_v20 }
 0xb17   :  { %v3256_v8 = vmul.f32 %v9384_v17, %v9384_v17 }
 0xb19   :  { %v3296_v12 = vsel %vm74_vm0, %v3256_v8, 0.0 }
 0xb1a   :  { %v3205_v48 = vpop.xlane.xlu1 %3204  ;;  %3297 = vadd.xlane.f32.xlu2 %v3296_v12 }
 0xb1b   :  { %v3225_v24 = vmul.f32 %v3205_v48, %v11373_v26 }
 0xb1d   :  { %v9391_v35 = vsub.f32 %v9286_v27, %v3225_v24 }
 0xb1f   :  { %v3257_v11 = vmul.f32 %v9391_v35, %v9391_v35 }
 0xb21   :  { %v3299_v7 = vsel %vm74_vm0, %v3257_v11, 0.0 }
 0xb22   :  { %3300 = vadd.xlane.f32.xlu0 %v3299_v7  ;;  %v3187_v2 = vpop.xlane.xlu1 %3186 }
 0xb23   :  { %v3219_v62 = vmul.f32 %v3187_v2, %v11373_v26 }
 0xb25   :  { %v9398_v29 = vsub.f32 %v9292_v13, %v3219_v62 }
 0xb27   :  { %v3251_v10 = vmul.f32 %v9398_v29, %v9398_v29 }
 0xb29   :  { %v3281_v52 = vsel %vm74_vm0, %v3251_v10, 0.0 }
 0xb2a   :  { %3282 = vadd.xlane.f32.xlu0 %v3281_v52  ;;  %v3178_v22 = vpop.xlane.xlu1 %3177 }
 0xb2b   :  { %v3216_v45 = vmul.f32 %v3178_v22, %v11373_v26 }
 0xb2d   :  { %v9405_v57 = vsub.f32 %v9298_v31, %v3216_v45 }
 0xb2f   :  { %v3248_v43 = vmul.f32 %v9405_v57, %v9405_v57 }
 0xb31   :  { %v3272_v1 = vsel %vm74_vm0, %v3248_v43, 0.0 }
 0xb32   :  { %3273 = vadd.xlane.f32.xlu0 %v3272_v1  ;;  %v3169_v16 = vpop.xlane.xlu1 %3168 }
 0xb33   :  { %v3213_v53 = vmul.f32 %v3169_v16, %v11373_v26 }
 0xb35   :  { %v9412_v21 = vsub.f32 %v9305_v55, %v3213_v53 }
 0xb37   :  { %v3245_v28 = vmul.f32 %v9412_v21, %v9412_v21 }
 0xb39   :  { %v3263_v30 = vsel %vm74_vm0, %v3245_v28, 0.0 }
 0xb3a   :  { %3264 = vadd.xlane.f32.xlu0 %v3263_v30 }
 0xb50   :  { %v3208_v39 = vpop.xlane.xlu2 %3207 }
 0xb51   :  { %v3226_v0 = vmul.f32 %v3208_v39, %v11373_v26 }
 0xb53   :  { %v9419_v44 = vsub.f32 %v9311_v41, %v3226_v0 }
 0xb55   :  { %v3258_v34 = vmul.f32 %v9419_v44, %v9419_v44 }
 0xb57   :  { %v3302_v40 = vsel %vm74_vm0, %v3258_v34, 0.0 }
 0xb58   :  { %v3190_v15 = vpop.xlane.xlu2 %3189  ;;  %3303 = vadd.xlane.f32.xlu1 %v3302_v40  ;;  %v3211_v51 = vpop.xlane.xlu0 %3210 }
 0xb59   :  { %v3220_v42 = vmul.f32 %v3190_v15, %v11373_v26  ;;  %v3227_v3 = vmul.f32 %v3211_v51, %v11373_v26 }
 0xb5b   :  { %v9427_v60 = vsub.f32 %v9317_v46, %v3220_v42  ;;  %v9430_v23 = vsub.f32 %v9321_v9, %v3227_v3 }
 0xb5d   :  { %v3252_v36 = vmul.f32 %v9427_v60, %v9427_v60  ;;  %v3259_v4 = vmul.f32 %v9430_v23, %v9430_v23 }
 0xb5f   :  { %v3284_v18 = vsel %vm74_vm0, %v3252_v36, 0.0  ;;  %v3305_v58 = vsel %vm74_vm0, %v3259_v4, 0.0 }
 0xb60   :  { %v3181_v56 = vpop.xlane.xlu2 %3180  ;;  %3285 = vadd.xlane.f32.xlu1 %v3284_v18  ;;  %3306 = vadd.xlane.f32.xlu2 %v3305_v58  ;;  %v3193_v5 = vpop.xlane.xlu0 %3192 }
 0xb61   :  { %v3217_v59 = vmul.f32 %v3181_v56, %v11373_v26  ;;  %v3221_v37 = vmul.f32 %v3193_v5, %v11373_v26 }
 0xb63   :  { %v9441_v63 = vsub.f32 %v9331_v19, %v3217_v59  ;;  %v9444_v33 = vsub.f32 %v9334_v14, %v3221_v37 }
 0xb65   :  { %v3249_v20 = vmul.f32 %v9441_v63, %v9441_v63  ;;  %v3253_v8 = vmul.f32 %v9444_v33, %v9444_v33 }
 0xb67   :  { %v3275_v12 = vsel %vm74_vm0, %v3249_v20, 0.0  ;;  %v3287_v48 = vsel %vm74_vm0, %v3253_v8, 0.0 }
 0xb68   :  { %v3172_v24 = vpop.xlane.xlu2 %3171  ;;  %3276 = vadd.xlane.f32.xlu1 %v3275_v12  ;;  %3288 = vadd.xlane.f32.xlu2 %v3287_v48  ;;  %v3184_v11 = vpop.xlane.xlu0 %3183 }
 0xb69   :  { %v3214_v7 = vmul.f32 %v3172_v24, %v11373_v26  ;;  %v3218_v2 = vmul.f32 %v3184_v11, %v11373_v26 }
 0xb6b   :  { %v9455_v62 = vsub.f32 %v9345_v50, %v3214_v7  ;;  %v9458_v10 = vsub.f32 %v9348_v54, %v3218_v2 }
 0xb6d   :  { %v3246_v52 = vmul.f32 %v9455_v62, %v9455_v62  ;;  %v3250_v22 = vmul.f32 %v9458_v10, %v9458_v10 }
 0xb6f   :  { %v3266_v45 = vsel %vm74_vm0, %v3246_v52, 0.0  ;;  %v3278_v43 = vsel %vm74_vm0, %v3250_v22, 0.0 }
 0xb70   :  { %3267 = vadd.xlane.f32.xlu1 %v3266_v45  ;;  %3279 = vadd.xlane.f32.xlu2 %v3278_v43  ;;  %v3175_v1 = vpop.xlane.xlu0 %3174 }
 0xb71   :  { %v3215_v16 = vmul.f32 %v3175_v1, %v11373_v26 }
 0xb73   :  { %v9468_v53 = vsub.f32 %v9357_v38, %v3215_v16 }
 0xb75   :  { %v3247_v28 = vmul.f32 %v9468_v53, %v9468_v53 }
 0xb77   :  { %v3269_v30 = vsel %vm74_vm0, %v3247_v28, 0.0 }
 0xb78   :  { %3270 = vadd.xlane.f32.xlu2 %v3269_v30  ;;  %v3166_v39 = vpop.xlane.xlu0 %3165 }
 0xb79   :  { %v3212_v0 = vmul.f32 %v3166_v39, %v11373_v26 }
 0xb7b   :  { %v9475_v34 = vsub.f32 %v9364_v49, %v3212_v0 }
 0xb7d   :  { %v3244_v40 = vmul.f32 %v9475_v34, %v9475_v34 }
 0xb7f   :  { %v3260_v15 = vsel %vm74_vm0, %v3244_v40, 0.0 }
 0xb80   :  { %3261 = vadd.xlane.f32.xlu2 %v3260_v15  ;;  %v3292_v51 = vpop.xlane.xlu0 %3291 }
 0xb81   :  { %v3318_v36 = vmul.f32 %v3292_v51, %v11373_v26 }
 0xb83   :  { %v3334_v5 = vadd.f32 1e-05, %v3318_v36 }
 0xb85   :  { %v3295_v42 = vpop.xlane.xlu1 %3294  ;;  %vm3446_vm4 = vweird.f32 %v3334_v5 }
 0xb86   :  { %v3319_v3 = vmul.f32 %v3295_v42, %v11373_v26 }
 0xb88   :  { %v3335_v58 = vadd.f32 1e-05, %v3319_v3 }
 0xb8a   :  { %7232 = vrsqrt.f32 %v3335_v58  ;;  %vm3456_vm2 = vweird.f32 %v3335_v58 }
 0xb8b   :  { %7234 = vrsqrt.f32 %v3334_v5 }
 0xb8d   :  { %v3298_v4 = vpop.xlane.xlu2 %3297 }
 0xb8e   :  { %v3320_v56 = vmul.f32 %v3298_v4, %v11373_v26 }
 0xb90   :  { %v9483_v59 = vadd.f32 1e-05, %v3320_v56  ;;  %v9487_v8 = vpop.eup %7232 }
 0xb91   :  { %v9489_v12 = vpop.eup %7234  ;;  %v3451_v24 = vmul.f32 %v9487_v8, %v3335_v58  ;;  %vm3457_vm15 = vweird.f32 %v9487_v8 }
 0xb92   :  { %7236 = vrsqrt.f32 %v9483_v59  ;;  %v3441_v7 = vmul.f32 %v9489_v12, %v3334_v5  ;;  %vm3447_vm1 = vweird.f32 %v9489_v12  ;;  %vm9533_vm3 = vmor %vm3456_vm2, %vm3457_vm15  ;;  %vm3466_vm7 = vweird.f32 %v9483_v59 }
 0xb93   :  { %v3452_v2 = vmul.f32 %v9487_v8, %v3451_v24  ;;  %vm9548_vm5 = vmor %vm3446_vm4, %vm3447_vm1 }
 0xb94   :  { %v3442_v22 = vmul.f32 %v9489_v12, %v3441_v7 }
 0xb95   :  { %v3301_v18 = vpop.xlane.xlu0 %3300  ;;  %v3453_v16 = vmul.f32 0.5, %v3452_v2 }
 0xb96   :  { %v3321_v37 = vmul.f32 %v3301_v18, %v11373_v26  ;;  %v3443_v0 = vmul.f32 0.5, %v3442_v22 }
 0xb97   :  { %v3454_v51 = vsub.f32 1.5, %v3453_v16 }
 0xb98   :  { %v9491_v48 = vadd.f32 1e-05, %v3321_v37  ;;  %v9494_v11 = vpop.eup %7236  ;;  %v3444_v36 = vsub.f32 1.5, %v3443_v0 }
 0xb99   :  { %v3461_v52 = vmul.f32 %v9494_v11, %v9483_v59  ;;  %v3455_v37 = vmul.f32 %v9487_v8, %v3454_v51  ;;  %vm3467_vm6 = vweird.f32 %v9494_v11 }
 0xb9a   :  { %7238 = vrsqrt.f32 %v9491_v48  ;;  %vm9573_vm8 = vmor %vm3466_vm7, %vm3467_vm6  ;;  %vm3476_vm12 = vweird.f32 %v9491_v48 }
 0xb9b   :  { %v3462_v39 = vmul.f32 %v9494_v11, %v3461_v52 }
 0xb9d   :  { %v3283_v20 = vpop.xlane.xlu0 %3282  ;;  %v3463_v3 = vmul.f32 0.5, %v3462_v39 }
 0xb9e   :  { %v3315_v45 = vmul.f32 %v3283_v20, %v11373_v26 }
 0xb9f   :  { %v3464_v52 = vsub.f32 1.5, %v3463_v3 }
 0xba0   :  { %v9504_v30 = vpop.eup %7238  ;;  %v9507_v40 = vadd.f32 1e-05, %v3315_v45  ;;  %v3445_v45 = vmul.f32 %v9489_v12, %v3444_v36 }
 0xba1   :  { %v3471_v42 = vmul.f32 %v9504_v30, %v9491_v48  ;;  %vm3477_vm9 = vweird.f32 %v9504_v30 }
 0xba2   :  { %v3449_v5 = vsel %vm9548_vm5, %v9489_v12, %v3445_v45  ;;  %v9571_v12 = vld [vmem:[%s11364_s19 + $0x1] ss:$0 sm:$0xff]  ;;  %vm9609_vm13 = vmor %vm3476_vm12, %vm3477_vm9 }
 0xba3   :  { %v3472_v20 = vmul.f32 %v9504_v30, %v3471_v42  ;;  %v3459_v42 = vsel %vm9533_vm3, %v9487_v8, %v3455_v37  ;;  %vm3416_vm3 = vweird.f32 %v9507_v40 }
 0xba5   :  { %v3274_v43 = vpop.xlane.xlu0 %3273  ;;  %v3473_v51 = vmul.f32 0.5, %v3472_v20 }
 0xba6   :  { %v3312_v4 = vmul.f32 %v3274_v43, %v11373_v26 }
 0xba8   :  { %v9525_v43 = vadd.f32 1e-05, %v3312_v4  ;;  %v3465_v4 = vmul.f32 %v9494_v11, %v3464_v52 }
 0xbad   :  { %v3265_v24 = vpop.xlane.xlu0 %3264 }
 0xbae   :  { %v3309_v39 = vmul.f32 %v3265_v24, %v11373_v26  ;;  %v3511_v24 = vmul.f32 %v3459_v42, %v9377_v6 }
 0xbcb   :  { %v3304_v1 = vpop.xlane.xlu1 %3303 }
 0xbcc   :  { %v3322_v28 = vmul.f32 %v3304_v1, %v11373_v26 }
 0xbce   :  { %v9509_v15 = vadd.f32 1e-05, %v3322_v28 }
 0xbd0   :  { %7240 = vrsqrt.f32 %v9509_v15  ;;  %vm3486_vm15 = vweird.f32 %v9509_v15 }
 0xbd1   :  { %7242 = vrsqrt.f32 %v9507_v40 }
 0xbd3   :  { %v3286_v18 = vpop.xlane.xlu1 %3285  ;;  %v3307_v56 = vpop.xlane.xlu2 %3306 }
 0xbd4   :  { %v3316_v7 = vmul.f32 %v3286_v18, %v11373_v26  ;;  %v3323_v2 = vmul.f32 %v3307_v56, %v11373_v26  ;;  %v9562_v18 = vadd.f32 1e-05, %v3309_v39 }
 0xbd6   :  { %v9522_v22 = vpop.eup %7240  ;;  %v9527_v1 = vadd.f32 1e-05, %v3316_v7  ;;  %v9529_v16 = vadd.f32 1e-05, %v3323_v2  ;;  %v3474_v7 = vsub.f32 1.5, %v3473_v51  ;;  %v3510_v51 = vmul.f32 %v3449_v5, %v9368_v25 }
 0xbd7   :  { %v3481_v58 = vmul.f32 %v9522_v22, %v9509_v15  ;;  %v9540_v0 = vpop.eup %7242  ;;  %vm3487_vm10 = vweird.f32 %v9522_v22 }
 0xbd8   :  { %7244 = vrsqrt.f32 %v9527_v1  ;;  %v3411_v8 = vmul.f32 %v9540_v0, %v9507_v40  ;;  %v9617_v45 = vmul.f32 %v9571_v12, %v3510_v51  ;;  %vm9619_vm1 = vmor %vm3486_vm15, %vm3487_vm10  ;;  %vm3496_vm4 = vweird.f32 %v9529_v16 }
 0xbd9   :  { %v3482_v36 = vmul.f32 %v9522_v22, %v3481_v58  ;;  %7246 = vrsqrt.f32 %v9529_v16  ;;  %v3469_v58 = vsel %vm9573_vm8, %v9494_v11, %v3465_v4  ;;  %vm3417_vm6 = vweird.f32 %v9540_v0 }
 0xbda   :  { %7248 = vrsqrt.f32 %v9525_v43  ;;  %v3412_v3 = vmul.f32 %v9540_v0, %v3411_v8  ;;  %v3512_v4 = vmul.f32 %v3469_v58, %v9384_v17  ;;  %vm9685_vm9 = vmor %vm3416_vm3, %vm3417_vm6  ;;  %vm3426_vm10 = vweird.f32 %v9527_v1 }
 0xbdb   :  { %v3483_v56 = vmul.f32 0.5, %v3482_v36  ;;  %v3277_v37 = vpop.xlane.xlu1 %3276  ;;  %v3289_v20 = vpop.xlane.xlu2 %3288  ;;  %7250 = vrsqrt.f32 %v9562_v18 }
 0xbdc   :  { %v3313_v2 = vmul.f32 %v3277_v37, %v11373_v26  ;;  %v3317_v52 = vmul.f32 %v3289_v20, %v11373_v26  ;;  %v3475_v20 = vmul.f32 %v9504_v30, %v3474_v7  ;;  %v3531_v51 = vmul.f32 %v9571_v12, %v3512_v4 }
 0xbdd   :  { %v3484_v28 = vsub.f32 1.5, %v3483_v56  ;;  %v3530_v56 = vmul.f32 %v9571_v12, %v3511_v24  ;;  %v9607_v24 = vld [vmem:[%s11305_s5 + $0x1] ss:$0 sm:$0xff] }
 0xbde   :  { %v9577_v39 = vpop.eup %7244  ;;  %v9579_v6 = vadd.f32 1e-05, %v3313_v2  ;;  %v9581_v59 = vadd.f32 1e-05, %v3317_v52  ;;  %v3413_v2 = vmul.f32 0.5, %v3412_v3  ;;  %v3479_v3 = vsel %vm9609_vm13, %v9504_v30, %v3475_v20 }
 0xbdf   :  { %v7247_v42 = vpop.eup %7246  ;;  %v3421_v36 = vmul.f32 %v9577_v39, %v9527_v1  ;;  %v3485_v25 = vmul.f32 %v9522_v22, %v3484_v28  ;;  %v9635_v41 = vadd.f32 %v9607_v24, %v3530_v56  ;;  %v3513_v56 = vmul.f32 %v3479_v3, %v9391_v35 }
 0xbe0   :  { %v9592_v37 = vpop.eup %7248  ;;  %v3491_v11 = vmul.f32 %v7247_v42, %v9529_v16  ;;  %7252 = vrsqrt.f32 %v9579_v6  ;;  %vm3497_vm2 = vweird.f32 %v7247_v42  ;;  %v3414_v27 = vsub.f32 1.5, %v3413_v2 }
 0xbe1   :  { %7254 = vrsqrt.f32 %v9581_v59  ;;  %v3422_v5 = vmul.f32 %v9577_v39, %v3421_v36  ;;  %v3381_v52 = vmul.f32 %v9592_v37, %v9525_v43  ;;  %v9628_v9 = vpop.eup %7250  ;;  %v3489_v15 = vsel %vm9619_vm1, %v9522_v22, %v3485_v25  ;;  %vm3498_vm5 = vmor %vm3496_vm4, %vm3497_vm2 }
 0xbe2   :  { %v3492_v8 = vmul.f32 %v7247_v42, %v3491_v11  ;;  %v3351_v28 = vmul.f32 %v9628_v9, %v9562_v18  ;;  %vm3427_vm7 = vweird.f32 %v9577_v39  ;;  %vm3436_vm12 = vweird.f32 %v9581_v59 }
 0xbe3   :  { %v3268_v17 = vpop.xlane.xlu1 %3267  ;;  %v3280_v48 = vpop.xlane.xlu2 %3279  ;;  %v3382_v22 = vmul.f32 %v9592_v37, %v3381_v52  ;;  %v3514_v52 = vmul.f32 %v3489_v15, %v9419_v44  ;;  %vm9694_vm13 = vmor %vm3426_vm10, %vm3427_vm7  ;;  %vm3387_vm1 = vweird.f32 %v9592_v37  ;;  %vm3396_vm3 = vweird.f32 %v9579_v6 }
 0xbe4   :  { %v3493_v58 = vmul.f32 0.5, %v3492_v8  ;;  %v3310_v36 = vmul.f32 %v3268_v17, %v11373_v26  ;;  %v3314_v11 = vmul.f32 %v3280_v48, %v11373_v26  ;;  %v3423_v17 = vmul.f32 0.5, %v3422_v5 }
 0xbe5   :  { %v3383_v47 = vmul.f32 0.5, %v3382_v22 }
 0xbe6   :  { %v9637_v8 = vpop.eup %7252  ;;  %v3494_v48 = vsub.f32 1.5, %v3493_v58  ;;  %v9640_v7 = vadd.f32 1e-05, %v3310_v36  ;;  %v9642_v30 = vadd.f32 1e-05, %v3314_v11  ;;  %v3424_v35 = vsub.f32 1.5, %v3423_v17 }
 0xbe7   :  { %v9644_v20 = vpop.eup %7254  ;;  %v3391_v25 = vmul.f32 %v9637_v8, %v9579_v6  ;;  %v9662_v36 = vadd.f32 %v9607_v24, %v3531_v51  ;;  %v3415_v11 = vmul.f32 %v9540_v0, %v3414_v27  ;;  %v3533_v27 = vmul.f32 %v9571_v12, %v3514_v52 }
 0xbe8   :  { %v3495_v4 = vmul.f32 %v7247_v42, %v3494_v48  ;;  %v3431_v5 = vmul.f32 %v9644_v20, %v9581_v59  ;;  %7256 = vrsqrt.f32 %v9640_v7  ;;  %vm3437_vm8 = vweird.f32 %v9644_v20 }
 0xbe9   :  { %v3392_v2 = vmul.f32 %v9637_v8, %v3391_v25  ;;  %7258 = vrsqrt.f32 %v9642_v30  ;;  %v3532_v25 = vmul.f32 %v9571_v12, %v3513_v56  ;;  %v3384_v1 = vsub.f32 1.5, %v3383_v47  ;;  %vm3438_vm15 = vmor %vm3436_vm12, %vm3437_vm8 }
 0xbea   :  { %v3499_v58 = vsel %vm3498_vm5, %v7247_v42, %v3495_v4  ;;  %v3432_v16 = vmul.f32 %v9644_v20, %v3431_v5  ;;  %v3352_v42 = vmul.f32 %v9628_v9, %v3351_v28  ;;  %v3419_v47 = vsel %vm9685_vm9, %v9540_v0, %v3415_v11 }
 0xbeb   :  { %v3515_v3 = vmul.f32 %v3499_v58, %v9430_v23  ;;  %v3271_v48 = vpop.xlane.xlu2 %3270  ;;  %v3393_v32 = vmul.f32 0.5, %v3392_v2  ;;  %v3425_v23 = vmul.f32 %v9577_v39, %v3424_v35  ;;  %v3552_v35 = vadd.f32 %v9607_v24, %v3533_v27 }
 0xbec   :  { %v3433_v61 = vmul.f32 0.5, %v3432_v16  ;;  %v3311_v44 = vmul.f32 %v3271_v48, %v11373_v26  ;;  %v3551_v58 = vadd.f32 %v9607_v24, %v3532_v25  ;;  %v3353_v48 = vmul.f32 0.5, %v3352_v42 }
 0xbed   :  { %v3534_v15 = vmul.f32 %v9571_v12, %v3515_v3  ;;  %v3394_v2 = vsub.f32 1.5, %v3393_v32  ;;  %v3429_v3 = vsel %vm9694_vm13, %v9577_v39, %v3425_v23  ;;  %vm3397_vm2 = vweird.f32 %v9637_v8 }
 0xbee   :  { %v9673_v51 = vpop.eup %7256  ;;  %v3434_v17 = vsub.f32 1.5, %v3433_v61  ;;  %v9677_v22 = vadd.f32 1e-05, %v3311_v44  ;;  %v3385_v39 = vmul.f32 %v9592_v37, %v3384_v1  ;;  %v3508_v0 = vmul.f32 %v3429_v3, %v9427_v60  ;;  %vm9728_vm6 = vmor %vm3396_vm3, %vm3397_vm2 }
 0xbef   :  { %v9679_v56 = vpop.eup %7258  ;;  %v3361_v61 = vmul.f32 %v9673_v51, %v9640_v7  ;;  %v3553_v5 = vadd.f32 %v9607_v24, %v3534_v15  ;;  %v3395_v27 = vmul.f32 %v9637_v8, %v3394_v2  ;;  %v3507_v11 = vmul.f32 %v3419_v47, %v9398_v29 }
 0xbf0   :  { %v3435_v40 = vmul.f32 %v9644_v20, %v3434_v17  ;;  %v3401_v52 = vmul.f32 %v9679_v56, %v9642_v30  ;;  %7260 = vrsqrt.f32 %v9677_v22  ;;  %vm3407_vm4 = vweird.f32 %v9679_v56 }
 0xbf1   :  { %v3362_v59 = vmul.f32 %v9673_v51, %v3361_v61  ;;  %3570 = vmatpush.msrb.mxu3 %v3553_v5  ;;  %vm3386_vm5 = vweird.f32 %v9525_v43  ;;  %v3354_v61 = vsub.f32 1.5, %v3353_v48  ;;  %vm3406_vm8 = vweird.f32 %v9642_v30 }
 0xbf2   :  { %v3402_v16 = vmul.f32 %v9679_v56, %v3401_v52  ;;  %v3439_v32 = vsel %vm3438_vm15, %v9644_v20, %v3435_v40  ;;  %vm9737_vm7 = vmor %vm3386_vm5, %vm3387_vm1  ;;  %v3399_v28 = vsel %vm9728_vm6, %v9637_v8, %v3395_v27  ;;  %v3548_v2 = vadd.f32 %v9607_v24, %v9617_v45 }
 0xbf3   :  { %v3363_v44 = vmul.f32 0.5, %v3362_v59  ;;  %3571 = vmatpush.msrb.mxu3 %v3552_v35  ;;  %v3262_v15 = vpop.xlane.xlu2 %3261  ;;  %v3509_v25 = vmul.f32 %v3439_v32, %v9444_v33  ;;  %vm3408_vm9 = vmor %vm3406_vm8, %vm3407_vm4  ;;  %v3527_v40 = vmul.f32 %v9571_v12, %v3508_v0  ;;  %v3389_v52 = vsel %vm9737_vm7, %v9592_v37, %v3385_v39 }
 0xbf4   :  { %v3403_v20 = vmul.f32 0.5, %v3402_v16  ;;  %v3308_v17 = vmul.f32 %v3262_v15, %v11373_v26  ;;  %vm3367_vm10 = vweird.f32 %v9673_v51  ;;  %v3526_v1 = vmul.f32 %v9571_v12, %v3507_v11 }
 0xbf5   :  { %3572 = vmatpush.msrb.mxu3 %v3551_v58  ;;  %v3364_v23 = vsub.f32 1.5, %v3363_v44  ;;  %v3528_v29 = vmul.f32 %v9571_v12, %v3509_v25  ;;  %v3505_v35 = vmul.f32 %v3399_v28, %v9441_v63  ;;  %v3355_v58 = vmul.f32 %v9628_v9, %v3354_v61  ;;  %v3559_v28 = vld [vmem:[%s11317_s2 + $0x28] sm:$0xff] }
 0xbf6   :  { %v7261_v42 = vpop.eup %7260  ;;  %v3404_v4 = vsub.f32 1.5, %v3403_v20  ;;  %v9723_v33 = vadd.f32 1e-05, %v3308_v17  ;;  %vm3357_vm12 = vweird.f32 %v9628_v9  ;;  %vm3366_vm13 = vweird.f32 %v9640_v7 }
 0xbf7   :  { %v3371_v60 = vmul.f32 %v7261_v42, %v9677_v22  ;;  %3573 = vmatpush.msrb.mxu3 %v9662_v36  ;;  %v3365_v30 = vmul.f32 %v9673_v51, %v3364_v23  ;;  %v3504_v37 = vmul.f32 %v3389_v52, %v9405_v57  ;;  %vm9765_vm15 = vmor %vm3366_vm13, %vm3367_vm10  ;;  %vm3377_vm1 = vweird.f32 %v7261_v42  ;;  %v3563_v52 = vld [vmem:[%s11317_s2 + $0x48] sm:$0xff] }
 0xbf8   :  { %v3405_v43 = vmul.f32 %v9679_v56, %v3404_v4  ;;  %7262 = vrsqrt.f32 %v9723_v33  ;;  %v3546_v32 = vadd.f32 %v9607_v24, %v3527_v40  ;;  %vm3356_vm2 = vweird.f32 %v9562_v18  ;;  %v3562_v40 = vld [vmem:[%s11317_s2 + $0x40] sm:$0xff] }
 0xbf9   :  { %v3372_v36 = vmul.f32 %v7261_v42, %v3371_v60  ;;  %3574 = vmatpush.msrb.mxu3 %v9635_v41  ;;  %v3547_v41 = vadd.f32 %v9607_v24, %v3528_v29  ;;  %v3545_v3 = vadd.f32 %v9607_v24, %v3526_v1  ;;  %v3369_v57 = vsel %vm9765_vm15, %v9673_v51, %v3365_v30  ;;  %vm9776_vm3 = vmor %vm3356_vm2, %vm3357_vm12  ;;  %v3564_v30 = vld [vmem:[%s11317_s2 + $0x50] sm:$0xff]  ;;  %v3565_v1 = vld [vmem:[%s11317_s2 + $0x58] sm:$0xff] }
 0xbfa   :  { %v3409_v8 = vsel %vm3408_vm9, %v9679_v56, %v3405_v43  ;;  %vm3376_vm4 = vweird.f32 %v9677_v22  ;;  %v3524_v44 = vmul.f32 %v9571_v12, %v3505_v35  ;;  %v3523_v18 = vmul.f32 %v9571_v12, %v3504_v37  ;;  %v3555_v43 = vld [vmem:[%s11317_s2 + $0x8] sm:$0xff]  ;;  %v3568_v35 = vld [vmem:[%s11317_s2 + $0x70] sm:$0xff] }
 0xbfb   :  { %v3373_v59 = vmul.f32 0.5, %v3372_v36  ;;  %3575 = vmatpush.msrb.mxu3 %v3548_v2  ;;  %v3506_v45 = vmul.f32 %v3409_v8, %v9458_v10  ;;  %vm3378_vm5 = vmor %vm3376_vm4, %vm3377_vm1  ;;  %v3359_v15 = vsel %vm9776_vm3, %v9628_v9, %v3355_v58  ;;  %v3502_v20 = vmul.f32 %v3369_v57, %v9455_v62  ;;  %v3560_v36 = vld [vmem:[%s11317_s2 + $0x30] sm:$0xff]  ;;  %v3561_v2 = vld [vmem:[%s11317_s2 + $0x38] sm:$0xff] }
 0xbfc   :  { %v3543_v39 = vadd.f32 %v9607_v24, %v3524_v44  ;;  %v3501_v0 = vmul.f32 %v3359_v15, %v9412_v21  ;;  %v3542_v9 = vadd.f32 %v9607_v24, %v3523_v18  ;;  %vm3346_vm7 = vweird.f32 %v9723_v33  ;;  %v6636_v8 = vld [vmem:[%s11306_s6 + $0x18] sm:$0xff] }
 0xbfd   :  { %v3374_v56 = vsub.f32 1.5, %v3373_v59  ;;  %3576 = vmatpush.msrb.mxu3 %v3547_v41  ;;  %v3525_v10 = vmul.f32 %v9571_v12, %v3506_v45  ;;  %v3521_v4 = vmul.f32 %v9571_v12, %v3502_v20  ;;  %3713 = vmatpush.msra.mxu0 %v6636_v8  ;;  %v3566_v59 = vld [vmem:[%s11317_s2 + $0x60] sm:$0xff]  ;;  %v6635_v41 = vld [vmem:[%s11306_s6 + $0x10] sm:$0xff]  ;;  %v3567_v45 = vld [vmem:[%s11317_s2 + $0x68] sm:$0xff] }
 0xbfe   :  { %v7263_v63 = vpop.eup %7262  ;;  %v3569_v58 = vld [vmem:[%s11317_s2 + $0x78] sm:$0xff] }
 0xbff   :  { %v3375_v47 = vmul.f32 %v7261_v42, %v3374_v56  ;;  %v3341_v48 = vmul.f32 %v7263_v63, %v9723_v33  ;;  %3577 = vmatpush.msrb.mxu3 %v3546_v32  ;;  %v3544_v25 = vadd.f32 %v9607_v24, %v3525_v10  ;;  %vm3347_vm6 = vweird.f32 %v7263_v63  ;;  %v3554_v33 = vld [vmem:[%s11317_s2] sm:$0xff]  ;;  %3714 = vmatpush.msra.mxu0 %v6635_v41 }
 0xc00   :  { %vm3348_vm8 = vmor %vm3346_vm7, %vm3347_vm6  ;;  %v3540_v21 = vadd.f32 %v9607_v24, %v3521_v4 }
 0xc01   :  { %v3342_v51 = vmul.f32 %v7263_v63, %v3341_v48  ;;  %3578 = vmatpush.msrb.mxu3 %v3545_v3  ;;  %v3379_v27 = vsel %vm3378_vm5, %v7261_v42, %v3375_v47 }
 0xc02   :  { %v3503_v22 = vmul.f32 %v3379_v27, %v9468_v53  ;;  %v3520_v53 = vmul.f32 %v9571_v12, %v3501_v0  ;;  %v7000_v27 = vld [vmem:[%s11307_s7 + $0x1] ss:$0 sm:$0xff] }
 0xc03   :  { %v3343_v17 = vmul.f32 0.5, %v3342_v51  ;;  %3579 = vmatpush.msrb.mxu3 %v3544_v25 }
 0xc04   :  { %v3522_v11 = vmul.f32 %v9571_v12, %v3503_v22  ;;  %v3539_v60 = vadd.f32 %v9607_v24, %v3520_v53 }
 0xc05   :  { %v3344_v23 = vsub.f32 1.5, %v3343_v17  ;;  %3580 = vmatpush.msrb.mxu3 %v3543_v39 }
 0xc06   :  { %v3541_v42 = vadd.f32 %v9607_v24, %v3522_v11 }
 0xc07   :  { %v3345_v62 = vmul.f32 %v7263_v63, %v3344_v23  ;;  %3581 = vmatpush.msrb.mxu3 %v3542_v9 }
 0xc09   :  { %3582 = vmatpush.msrb.mxu3 %v3541_v42  ;;  %v3349_v61 = vsel %vm3348_vm8, %v7263_v63, %v3345_v62 }
 0xc0a   :  { %v3500_v5 = vmul.f32 %v3349_v61, %v9475_v34  ;;  %v3556_v34 = vld [vmem:[%s11317_s2 + $0x10] sm:$0xff] }
 0xc0b   :  { %3583 = vmatpush.msrb.mxu3 %v3540_v21 }
 0xc0c   :  { %v3519_v29 = vmul.f32 %v9571_v12, %v3500_v5  ;;  %v3557_v12 = vld [vmem:[%s11317_s2 + $0x18] sm:$0xff] }
 0xc0d   :  { %3584 = vmatpush.msrb.mxu3 %v3539_v60 }
 0xc0e   :  { %v3538_v6 = vadd.f32 %v9607_v24, %v3519_v29  ;;  %v3558_v24 = vld [vmem:[%s11317_s2 + $0x20] sm:$0xff] }
 0xc10   :  { %3585 = vmatpush.msrb.mxu3 %v3538_v6 }
 0xc11   :  { %3586 = vmatmul.f32.vlgmr.msrb.gmra.mxu3 %v3554_v33 }
 0xc19   :  { %3589 = vmatmul.f32.gmra.mxu3 %v3555_v43 }
 0xc21   :  { %3592 = vmatmul.f32.gmra.mxu3 %v3556_v34 }
 0xc29   :  { %3595 = vmatmul.f32.gmra.mxu3 %v3557_v12 }
 0xc31   :  { %3598 = vmatmul.f32.gmra.mxu3 %v3558_v24 }
 0xc39   :  { %3601 = vmatmul.f32.gmra.mxu3 %v3559_v28 }
 0xc41   :  { %3604 = vmatmul.f32.gmra.mxu3 %v3560_v36 }
 0xc49   :  { %3607 = vmatmul.f32.gmra.mxu3 %v3561_v2 }
 0xc51   :  { %3610 = vmatmul.f32.gmra.mxu3 %v3562_v40 }
 0xc59   :  { %3613 = vmatmul.f32.gmra.mxu3 %v3563_v52 }
 0xc61   :  { %3616 = vmatmul.f32.gmra.mxu3 %v3564_v30 }
 0xc69   :  { %3619 = vmatmul.f32.gmra.mxu3 %v3565_v1 }
 0xc71   :  { %3622 = vmatmul.f32.gmra.mxu3 %v3566_v59 }
 0xc79   :  { %3625 = vmatmul.f32.gmra.mxu3 %v3567_v45 }
 0xc81   :  { %3628 = vmatmul.f32.gmra.mxu3 %v3568_v35 }
 0xc89   :  { %3631 = vmatmul.f32.gmra.mxu3 %v3569_v58 }
 0xc94   :  { %v3587_v37 = vpop.f32.mrf.mxu3 }
 0xc95   :  { %6638 = vmatmul.msk.f32.vlgmr.msra.gmra.mxu0 %vm74_vm0, %v3587_v37 }
 0xc9c   :  { %v3590_v16 = vpop.f32.mrf.mxu3 }
 0xc9d   :  { %6639 = vmatmul.msk.f32.gmra.mxu0 %vm74_vm0, %v3590_v16 }
 0xca4   :  { %v3593_v56 = vpop.f32.mrf.mxu3 }
 0xca5   :  { %6640 = vmatmul.msk.f32.gmra.mxu0 %vm74_vm0, %v3593_v56 }
 0xcac   :  { %v3596_v32 = vpop.f32.mrf.mxu3 }
 0xcad   :  { %6641 = vmatmul.msk.f32.gmra.mxu0 %vm74_vm0, %v3596_v32 }
 0xcb4   :  { %v3599_v10 = vpop.f32.mrf.mxu3 }
 0xcb5   :  { %6642 = vmatmul.msk.f32.gmra.mxu0 %vm74_vm0, %v3599_v10 }
 0xcbc   :  { %v3602_v63 = vpop.f32.mrf.mxu3 }
 0xcbd   :  { %6643 = vmatmul.msk.f32.gmra.mxu0 %vm74_vm0, %v3602_v63 }
 0xcc4   :  { %v3605_v3 = vpop.f32.mrf.mxu3 }
 0xcc5   :  { %6644 = vmatmul.msk.f32.gmra.mxu0 %vm74_vm0, %v3605_v3 }
 0xccc   :  { %v3608_v57 = vpop.f32.mrf.mxu3 }
 0xccd   :  { %6645 = vmatmul.msk.f32.gmra.mxu0 %vm74_vm0, %v3608_v57 }
 0xcd4   :  { %v3611_v7 = vpop.f32.mrf.mxu3 }
 0xcd5   :  { %6646 = vmatmul.msk.f32.gmra.mxu0 %vm74_vm0, %v3611_v7 }
 0xcdc   :  { %v3614_v47 = vpop.f32.mrf.mxu3 }
 0xcdd   :  { %6647 = vmatmul.msk.f32.gmra.mxu0 %vm74_vm0, %v3614_v47 }
 0xce4   :  { %v3617_v48 = vpop.f32.mrf.mxu3 }
 0xce5   :  { %6648 = vmatmul.msk.f32.gmra.mxu0 %vm74_vm0, %v3617_v48 }
 0xcec   :  { %v3620_v44 = vpop.f32.mrf.mxu3 }
 0xced   :  { %6649 = vmatmul.msk.f32.gmra.mxu0 %vm74_vm0, %v3620_v44 }
 0xcf4   :  { %v3623_v18 = vpop.f32.mrf.mxu3 }
 0xcf5   :  { %6650 = vmatmul.msk.f32.gmra.mxu0 %vm74_vm0, %v3623_v18 }
 0xcfc   :  { %v3626_v15 = vpop.f32.mrf.mxu3 }
 0xcfd   :  { %6651 = vmatmul.msk.f32.gmra.mxu0 %vm74_vm0, %v3626_v15 }
 0xd04   :  { %v3629_v51 = vpop.f32.mrf.mxu3 }
 0xd05   :  { %6652 = vmatmul.msk.f32.gmra.mxu0 %vm74_vm0, %v3629_v51 }
 0xd0c   :  { %v3632_v25 = vpop.f32.mrf.mxu3 }
 0xd0d   :  { %6653 = vmatmul.msk.f32.gmra.mxu0 %vm74_vm0, %v3632_v25 }
 0xd12   :  { %v3716_v20 = vpop.f32.mrf.mxu0 }
 0xd13   :  { %v9876_v22 = vadd.f32 %v7000_v27, %v3716_v20 }
 0xd15   :  { %3787 = vrot.lane.b32.xlu0 %v9876_v22, %s7475_s25  ;;  %v3769_v63 = vmul.f32 0.35355338, %v9876_v22 }
 0xd1a   :  { %v3719_v17 = vpop.f32.mrf.mxu0 }
 0xd1b   :  { %v9880_v39 = vadd.f32 %v7000_v27, %v3719_v17 }
 0xd1d   :  { %3789 = vrot.lane.b32.xlu1 %v9880_v39, %s7475_s25  ;;  %v3770_v47 = vmul.f32 0.35355338, %v9880_v39 }
 0xd22   :  { %v3722_v0 = vpop.f32.mrf.mxu0 }
 0xd23   :  { %v9884_v11 = vadd.f32 %v7000_v27, %v3722_v0 }
 0xd25   :  { %3826 = vrot.lane.b32.xlu0 %v9884_v11, %s7475_s25  ;;  %v3771_v57 = vmul.f32 0.35355338, %v9884_v11 }
 0xd2a   :  { %v3725_v23 = vpop.f32.mrf.mxu0 }
 0xd2b   :  { %v9888_v9 = vadd.f32 %v7000_v27, %v3725_v23 }
 0xd2d   :  { %3828 = vrot.lane.b32.xlu2 %v9888_v9, %s7475_s25  ;;  %v9954_v37 = vpack.i.bf16 %v9884_v11, %v9888_v9  ;;  %v9985_v48 = vmul.f32 0.35355338, %v9888_v9 }
 0xd2f   :  { %11418 = vst [vmem:[#allocation23_spill] sm:$0xff] %v9954_v37 }
 0xd32   :  { %v3728_v4 = vpop.f32.mrf.mxu0 }
 0xd33   :  { %v9892_v42 = vadd.f32 %v7000_v27, %v3728_v4 }
 0xd35   :  { %11414 = vst [vmem:[#allocation19_spill] sm:$0xff] %v9892_v42  ;;  %3865 = vrot.lane.b32.xlu2 %v9892_v42, %s7475_s25  ;;  %v6915_v10 = vpack.i.bf16 %v9892_v42, %v9876_v22  ;;  %v9998_v15 = vmul.f32 0.35355338, %v9892_v42 }
 0xd3a   :  { %v3731_v62 = vpop.f32.mrf.mxu0 }
 0xd3b   :  { %v9896_v53 = vadd.f32 %v7000_v27, %v3731_v62 }
 0xd3d   :  { %11415 = vst [vmem:[#allocation20_spill] sm:$0xff] %v9896_v53  ;;  %3867 = vrot.lane.b32.xlu1 %v9896_v53, %s7475_s25  ;;  %v6910_v30 = vpack.i.bf16 %v9896_v53, %v9880_v39  ;;  %v10008_v25 = vmul.f32 0.35355338, %v9896_v53 }
 0xd42   :  { %v3734_v21 = vpop.f32.mrf.mxu0 }
 0xd43   :  { %v9900_v61 = vadd.f32 %v7000_v27, %v3734_v21 }
 0xd45   :  { %3904 = vrot.lane.b32.xlu1 %v9900_v61, %s7475_s25  ;;  %v10017_v17 = vmul.f32 0.35355338, %v9900_v61 }
 0xd4a   :  { %v3737_v5 = vpop.f32.mrf.mxu0 }
 0xd4b   :  { %v9904_v60 = vadd.f32 %v7000_v27, %v3737_v5 }
 0xd4d   :  { %3906 = vrot.lane.b32.xlu0 %v9904_v60, %s7475_s25 }
 0xd52   :  { %v3740_v29 = vpop.f32.mrf.mxu0 }
 0xd53   :  { %v9920_v36 = vadd.f32 %v7000_v27, %v3740_v29 }
 0xd55   :  { %v10030_v4 = vmul.f32 0.35355338, %v9920_v36 }
 0xd5a   :  { %v3743_v6 = vpop.f32.mrf.mxu0 }
 0xd5b   :  { %v9908_v33 = vadd.f32 %v7000_v27, %v3743_v6 }
 0xd5d   :  { %3945 = vrot.lane.b32.xlu0 %v9908_v33, %s7475_s25  ;;  %v9939_v59 = vpack.i.bf16 %v9920_v36, %v9908_v33  ;;  %v10041_v5 = vmul.f32 0.35355338, %v9908_v33 }
 0xd5f   :  { %11416 = vst [vmem:[#allocation21_spill] sm:$0xff] %v9939_v59 }
 0xd62   :  { %v3746_v43 = vpop.f32.mrf.mxu0 }
 0xd63   :  { %v9912_v34 = vadd.f32 %v7000_v27, %v3746_v43 }
 0xd65   :  { %3982 = vrot.lane.b32.xlu1 %v9912_v34, %s7475_s25  ;;  %v6930_v7 = vpack.i.bf16 %v9912_v34, %v9900_v61  ;;  %v10036_v21 = vmul.f32 0.35355338, %v9912_v34 }
 0xd6a   :  { %v3749_v12 = vpop.f32.mrf.mxu0 }
 0xd6b   :  { %v9916_v24 = vadd.f32 %v7000_v27, %v3749_v12 }
 0xd6d   :  { %3984 = vrot.lane.b32.xlu2 %v9916_v24, %s7475_s25  ;;  %v6925_v32 = vpack.i.bf16 %v9916_v24, %v9904_v60  ;;  %v10046_v29 = vmul.f32 0.35355338, %v9916_v24 }
 0xd72   :  { %v3752_v28 = vpop.f32.mrf.mxu0 }
 0xd73   :  { %v9922_v2 = vadd.f32 %v7000_v27, %v3752_v28 }
 0xd75   :  { %3943 = vrot.lane.b32.xlu2 %v9920_v36, %s7475_s25  ;;  %4021 = vrot.lane.b32.xlu1 %v9922_v2, %s7475_s25 }
 0xd7a   :  { %v3755_v40 = vpop.f32.mrf.mxu0 }
 0xd7b   :  { %v9928_v52 = vadd.f32 %v7000_v27, %v3755_v40 }
 0xd7d   :  { %6911 = vrot.lane.b32.xlu1 %v6910_v30, %s7476_s27  ;;  %4023 = vrot.lane.b32.xlu0 %v9928_v52, %s7475_s25  ;;  %v9950_v58 = vpack.i.bf16 %v9922_v2, %v9928_v52 }
 0xd7f   :  { %11417 = vst [vmem:[#allocation22_spill] sm:$0xff] %v9950_v58 }
 0xd82   :  { %v3758_v1 = vpop.f32.mrf.mxu0 }
 0xd83   :  { %v9935_v8 = vadd.f32 %v7000_v27, %v3758_v1 }
 0xd85   :  { %6936 = vrot.lane.b32.xlu1 %v9939_v59, %s7476_s27  ;;  %4060 = vrot.lane.b32.xlu0 %v9935_v8, %s7475_s25 }
 0xd87   :  { %v3829_v41 = vpop.permute.xlu2 %3828  ;;  %v3788_v16 = vpop.permute.xlu0 %3787 }
 0xd88   :  { %6662 = vmatpush.xpose.msk.msrb.mxu2 %vm617_vm14, %v3829_v41  ;;  %v10054_v41 = vmul.f32 0.35355338, %v9922_v2 }
 0xd8a   :  { %v3761_v45 = vpop.f32.mrf.mxu0 }
 0xd8b   :  { %v9946_v35 = vadd.f32 %v7000_v27, %v3761_v45 }
 0xd8d   :  { %6941 = vrot.lane.b32.xlu1 %v9950_v58, %s7476_s27  ;;  %6921 = vrot.lane.b32.xlu0 %v9954_v37, %s7476_s27  ;;  %v10005_v51 = vpack.i.bf16 %v9935_v8, %v9946_v35 }
 0xd8e   :  { %4062 = vrot.lane.b32.xlu2 %v9946_v35, %s7475_s25 }
 0xd8f   :  { %v3790_v56 = vpop.permute.xlu1 %3789  ;;  %v3866_v18 = vpop.permute.xlu2 %3865  ;;  %11419 = vst [vmem:[#allocation24_spill] sm:$0xff] %v10005_v51 }
 0xd90   :  { %6658 = vmatpush.xpose.msk.msra.mxu1 %vm617_vm14, %v3790_v56  ;;  %v10060_v56 = vmul.f32 0.35355338, %v9935_v8 }
 0xd94   :  { %6659 = vmatpush.xpose.msk.msra.mxu1 %vm617_vm14, %v3788_v16 }
 0xd95   :  { %4612 = vrot.lane.b32.xlu1 %v9884_v11, %s7478_s30  ;;  %6926 = vrot.lane.b32.xlu0 %v6925_v32, %s7476_s27  ;;  %v10023_v11 = vmul.f32 0.35355338, %v9904_v60 }
 0xd96   :  { %6916 = vrot.lane.b32.xlu2 %v6915_v10, %s7476_s27  ;;  %v10065_v10 = vmul.f32 0.35355338, %v9928_v52 }
 0xd97   :  { %6660 = vmatmul.msk.f32.vlgmr.msra.gmra.mxu1 %vm617_vm14, %v3769_v63  ;;  %v3827_v3 = vpop.permute.xlu0 %3826 }
 0xd98   :  { %6663 = vmatpush.xpose.msk.msrb.mxu2 %vm617_vm14, %v3827_v3 }
 0xd9b   :  { %6664 = vmatmul.msk.f32.vlgmr.msrb.gmra.mxu2 %vm617_vm14, %v3771_v57 }
 0xd9d   :  { %4575 = vrot.lane.b32.xlu0 %v9880_v39, %s7478_s30 }
 0xd9e   :  { %6931 = vrot.lane.b32.xlu2 %v6930_v7, %s7476_s27  ;;  %v10070_v7 = vmul.f32 0.35355338, %v9946_v35 }
 0xd9f   :  { %6661 = vmatmul.msk.f32.gmra.mxu1 %vm617_vm14, %v3770_v47 }
 0xda3   :  { %6665 = vmatmul.msk.f32.gmra.mxu2 %vm617_vm14, %v9985_v48 }
 0xda5   :  { %4573 = vrot.lane.b32.xlu0 %v9876_v22, %s7478_s30 }
 0xda6   :  { %4569 = vrot.lane.b32.xlu2 %v3769_v63, %s7477_s28 }
 0xdad   :  { %4571 = vrot.lane.b32.xlu0 %v3770_v47, %s7477_s28 }
 0xdae   :  { %4614 = vrot.lane.b32.xlu2 %v9888_v9, %s7478_s30 }
 0xdaf   :  { %v3868_v44 = vpop.permute.xlu1 %3867 }
 0xdb0   :  { %6666 = vmatpush.xpose.msk.msrb.mxu1 %vm617_vm14, %v3868_v44 }
 0xdb4   :  { %6667 = vmatpush.xpose.msk.msrb.mxu1 %vm617_vm14, %v3866_v18 }
 0xdb6   :  { %4608 = vrot.lane.b32.xlu2 %v3771_v57, %s7477_s28 }
 0xdb7   :  { %6668 = vmatmul.msk.f32.vlgmr.msrb.gmra.mxu1 %vm617_vm14, %v9998_v15  ;;  %v3905_v20 = vpop.permute.xlu1 %3904 }
 0xdbe   :  { %6946 = vrot.lane.b32.xlu2 %v10005_v51, %s7476_s27 }
 0xdbf   :  { %6669 = vmatmul.msk.f32.gmra.mxu1 %vm617_vm14, %v10008_v25  ;;  %v3907_v27 = vpop.permute.xlu0 %3906 }
 0xdc0   :  { %6670 = vmatpush.xpose.msk.msra.mxu2 %vm617_vm14, %v3907_v27 }
 0xdc4   :  { %6671 = vmatpush.xpose.msk.msra.mxu2 %vm617_vm14, %v3905_v20 }
 0xdc7   :  { %6672 = vmatmul.msk.f32.vlgmr.msra.gmra.mxu2 %vm617_vm14, %v10017_v17  ;;  %v3985_v0 = vpop.permute.xlu2 %3984 }
 0xdc8   :  { %6678 = vmatpush.xpose.msk.msra.mxu1 %vm617_vm14, %v3985_v0 }
 0xdcf   :  { %6673 = vmatmul.msk.f32.gmra.mxu2 %vm617_vm14, %v10023_v11  ;;  %v3946_v23 = vpop.permute.xlu0 %3945  ;;  %v3944_v9 = vpop.permute.xlu2 %3943 }
 0xdd0   :  { %6674 = vmatpush.xpose.msk.msra.mxu3 %vm617_vm14, %v3946_v23 }
 0xdd4   :  { %6675 = vmatpush.xpose.msk.msra.mxu3 %vm617_vm14, %v3944_v9 }
 0xdd7   :  { %v3983_v62 = vpop.permute.xlu1 %3982  ;;  %6676 = vmatmul.msk.f32.vlgmr.msra.gmra.mxu3 %vm617_vm14, %v10030_v4 }
 0xdd8   :  { %6679 = vmatpush.xpose.msk.msra.mxu1 %vm617_vm14, %v3983_v62 }
 0xddb   :  { %6680 = vmatmul.msk.f32.vlgmr.msra.gmra.mxu1 %vm617_vm14, %v10036_v21 }
 0xddf   :  { %6677 = vmatmul.msk.f32.gmra.mxu3 %vm617_vm14, %v10041_v5 }
 0xde3   :  { %6681 = vmatmul.msk.f32.gmra.mxu1 %vm617_vm14, %v10046_v29 }
 0xde7   :  { %v4022_v6 = vpop.permute.xlu1 %4021 }
 0xde8   :  { %v4063_v43 = vpop.permute.xlu2 %4062 }
 0xde9   :  { %6686 = vmatpush.xpose.msk.msrb.mxu3 %vm617_vm14, %v4063_v43 }
 0xdef   :  { %v6912_v12 = vpop.permute.xlu1 %6911  ;;  %v4024_v28 = vpop.permute.xlu0 %4023 }
 0xdf0   :  { %v6913_v40 = vunpack.i.l.bf16 %v6912_v12  ;;  %v6917_v30 = vpop.permute.xlu2 %6916  ;;  %6682 = vmatpush.xpose.msk.msrb.mxu2 %vm617_vm14, %v4024_v28  ;;  %v6914_v45 = vunpack.i.h.bf16 %v6912_v12  ;;  %v10082_v12 = vld [vmem:[%s11318_s1] sm:$0xff] }
 0xdf1   :  { %v6918_v1 = vunpack.i.l.bf16 %v6917_v30  ;;  %v6919_v32 = vunpack.i.h.bf16 %v6917_v30 }
 0xdf2   :  { %4315 = vmatpush.msrb.mxu1 %v6913_v40 }
 0xdf4   :  { %6683 = vmatpush.xpose.msk.msrb.mxu2 %vm617_vm14, %v4022_v6  ;;  %4316 = vmatpush.msrb.mxu1 %v6918_v1  ;;  %v10077_v6 = vld [vmem:[%s11308_s8 + $0x20] sm:$0xff]  ;;  %v10093_v1 = vld [vmem:[%s11308_s8 + $0x28] sm:$0xff] }
 0xdf7   :  { %6684 = vmatmul.msk.f32.vlgmr.msrb.gmra.mxu2 %vm617_vm14, %v10054_v41  ;;  %v4061_v16 = vpop.permute.xlu0 %4060  ;;  %v6937_v3 = vpop.permute.xlu1 %6936 }
 0xdf8   :  { %6687 = vmatpush.xpose.msk.msrb.mxu3 %vm617_vm14, %v4061_v16  ;;  %v6938_v44 = vunpack.i.l.bf16 %v6937_v3  ;;  %v6939_v18 = vunpack.i.h.bf16 %v6937_v3  ;;  %v6932_v27 = vpop.permute.xlu2 %6931  ;;  %v10098_v16 = vld [vmem:[%s11318_s1 + $0x8] sm:$0xff]  ;;  %v10104_v3 = vld [vmem:[%s11318_s1 + $0x10] sm:$0xff] }
 0xdf9   :  { %v6934_v9 = vunpack.i.h.bf16 %v6932_v27  ;;  %v6933_v62 = vunpack.i.l.bf16 %v6932_v27  ;;  %11420 = vst [vmem:[#allocation25_spill] sm:$0xff] %v10104_v3 }
 0xdfb   :  { %6688 = vmatmul.msk.f32.vlgmr.msrb.gmra.mxu3 %vm617_vm14, %v10060_v56 }
 0xdfc   :  { %4385 = vmatpush.msra.mxu3 %v6914_v45 }
 0xdfe   :  { %4386 = vmatpush.msra.mxu3 %v6919_v32 }
 0xdff   :  { %6685 = vmatmul.msk.f32.gmra.mxu2 %vm617_vm14, %v10065_v10  ;;  %v6922_v63 = vpop.permute.xlu0 %6921  ;;  %v10198_v38 = vpop.permute.xlu1 %6941 }
 0xe00   :  { %v6923_v57 = vunpack.i.l.bf16 %v6922_v63  ;;  %v6924_v47 = vunpack.i.h.bf16 %v6922_v63  ;;  %v10207_v55 = vpop.permute.xlu2 %4569 }
 0xe02   :  { %4350 = vmatpush.msra.mxu2 %v6923_v57 }
 0xe03   :  { %6689 = vmatmul.msk.f32.gmra.mxu3 %vm617_vm14, %v10070_v7 }
 0xe04   :  { %4351 = vmatpush.msra.mxu2 %v6924_v47 }
 0xe06   :  { %4455 = vmatpush.msrb.mxu2 %v6938_v44 }
 0xe07   :  { %v6927_v20 = vpop.permute.xlu0 %6926 }
 0xe08   :  { %4456 = vmatpush.msrb.mxu2 %v6939_v18  ;;  %v6929_v0 = vunpack.i.h.bf16 %v6927_v20  ;;  %v6928_v23 = vunpack.i.l.bf16 %v6927_v20  ;;  %v10230_v37 = vpop.permute.xlu2 %4614 }
 0xe0a   :  { %4420 = vmatpush.msra.mxu1 %v6928_v23  ;;  %4490 = vmatpush.msrb.mxu3 %v6929_v0  ;;  %v10120_v0 = vld [vmem:[%s11318_s1 + $0x18] sm:$0xff] }
 0xe0b   :  { %11421 = vst [vmem:[#allocation26_spill] sm:$0xff] %v10120_v0 }
 0xe0c   :  { %4421 = vmatpush.msra.mxu1 %v6933_v62  ;;  %4491 = vmatpush.msrb.mxu3 %v6934_v9 }
 0xe14   :  { %v3818_v43 = vpop.f32.mrf.mxu1 }
 0xe15   :  { %v3819_v28 = vadd.f32 %v10077_v6, %v3818_v43 }
 0xe17   :  { %v10086_v40 = vadd.f32 %v3819_v28, %v10082_v12  ;;  %v10131_v28 = vld [vmem:[%s11318_s1 + $0x20] sm:$0xff] }
 0xe18   :  { %11422 = vst [vmem:[#allocation27_spill] sm:$0xff] %v10131_v28 }
 0xe19   :  { %v4113_v30 = vsel %vm74_vm0, %v10086_v40, -inf }
 0xe1a   :  { %4114 = vmax.xlane.f32.xlu1 %v4113_v30 }
 0xe1c   :  { %v3821_v45 = vpop.f32.mrf.mxu1 }
 0xe1d   :  { %v3822_v32 = vadd.f32 %v10093_v1, %v3821_v45 }
 0xe1e   :  { %v3857_v63 = vpop.f32.mrf.mxu2 }
 0xe1f   :  { %v3858_v57 = vadd.f32 %v10077_v6, %v3857_v63  ;;  %v10108_v47 = vadd.f32 %v3822_v32, %v10098_v16 }
 0xe21   :  { %v4116_v44 = vsel %vm74_vm0, %v10108_v47, -inf  ;;  %v10113_v18 = vadd.f32 %v3858_v57, %v10104_v3  ;;  %v10142_v57 = vld [vmem:[%s11318_s1 + $0x28] sm:$0xff] }
 0xe22   :  { %4117 = vmax.xlane.f32.xlu0 %v4116_v44  ;;  %11423 = vst [vmem:[#allocation28_spill] sm:$0xff] %v10142_v57 }
 0xe23   :  { %v4119_v27 = vsel %vm74_vm0, %v10113_v18, -inf }
 0xe24   :  { %4120 = vmax.xlane.f32.xlu2 %v4119_v27 }
 0xe26   :  { %v3860_v20 = vpop.f32.mrf.mxu2 }
 0xe27   :  { %v3861_v23 = vadd.f32 %v10093_v1, %v3860_v20 }
 0xe29   :  { %v10124_v9 = vadd.f32 %v3861_v23, %v10120_v0 }
 0xe2b   :  { %v4122_v62 = vsel %vm74_vm0, %v10124_v9, -inf }
 0xe2c   :  { %4123 = vmax.xlane.f32.xlu2 %v4122_v62  ;;  %v10153_v62 = vld [vmem:[%s11318_s1 + $0x30] sm:$0xff] }
 0xe2d   :  { %11424 = vst [vmem:[#allocation29_spill] sm:$0xff] %v10153_v62 }
 0xe34   :  { %v3896_v43 = vpop.f32.mrf.mxu1 }
 0xe35   :  { %v3897_v30 = vadd.f32 %v10077_v6, %v3896_v43 }
 0xe37   :  { %v10135_v45 = vadd.f32 %v3897_v30, %v10131_v28 }
 0xe39   :  { %v4125_v32 = vsel %vm74_vm0, %v10135_v45, -inf }
 0xe3a   :  { %4126 = vmax.xlane.f32.xlu2 %v4125_v32 }
 0xe3c   :  { %v3899_v63 = vpop.f32.mrf.mxu1 }
 0xe3d   :  { %v3900_v44 = vadd.f32 %v10093_v1, %v3899_v63 }
 0xe3f   :  { %v10146_v27 = vadd.f32 %v3900_v44, %v10142_v57  ;;  %v10164_v44 = vld [vmem:[%s11318_s1 + $0x38] sm:$0xff] }
 0xe40   :  { %11425 = vst [vmem:[#allocation30_spill] sm:$0xff] %v10164_v44 }
 0xe41   :  { %v4128_v20 = vsel %vm74_vm0, %v10146_v27, -inf }
 0xe42   :  { %4129 = vmax.xlane.f32.xlu1 %v4128_v20 }
 0xe4a   :  { %v3935_v23 = vpop.f32.mrf.mxu2 }
 0xe4b   :  { %v3936_v43 = vadd.f32 %v10077_v6, %v3935_v23 }
 0xe4d   :  { %v10157_v30 = vadd.f32 %v3936_v43, %v10153_v62 }
 0xe4f   :  { %v4131_v32 = vsel %vm74_vm0, %v10157_v30, -inf }
 0xe50   :  { %4132 = vmax.xlane.f32.xlu0 %v4131_v32 }
 0xe52   :  { %v3938_v63 = vpop.f32.mrf.mxu2 }
 0xe53   :  { %v3939_v20 = vadd.f32 %v10093_v1, %v3938_v63 }
 0xe55   :  { %v10168_v14 = vadd.f32 %v3939_v20, %v10164_v44 }
 0xe57   :  { %v4134_v23 = vsel %vm74_vm0, %v10168_v14, -inf }
 0xe58   :  { %4135 = vmax.xlane.f32.xlu0 %v4134_v23  ;;  %v4013_v26 = vpop.f32.mrf.mxu1 }
 0xe59   :  { %v4014_v19 = vadd.f32 %v10077_v6, %v4013_v26 }
 0xe5a   :  { %v3974_v43 = vpop.f32.mrf.mxu3 }
 0xe5b   :  { %v3975_v46 = vadd.f32 %v10077_v6, %v3974_v43 }
 0xe5d   :  { %v10174_v32 = vadd.f32 %v3975_v46, %v10082_v12  ;;  %v10186_v46 = vadd.f32 %v4014_v19, %v10104_v3 }
 0xe5f   :  { %v4137_v13 = vsel %vm74_vm0, %v10174_v32, -inf }
 0xe60   :  { %4138 = vmax.xlane.f32.xlu2 %v4137_v13  ;;  %v4016_v43 = vpop.f32.mrf.mxu1  ;;  %v4143_v13 = vsel %vm74_vm0, %v10186_v46, -inf }
 0xe61   :  { %v4017_v31 = vadd.f32 %v10093_v1, %v4016_v43 }
 0xe62   :  { %v3977_v54 = vpop.f32.mrf.mxu3 }
 0xe63   :  { %v3978_v63 = vadd.f32 %v10093_v1, %v3977_v54  ;;  %v10192_v54 = vadd.f32 %v4017_v31, %v10120_v0 }
 0xe65   :  { %v10180_v20 = vadd.f32 %v3978_v63, %v10098_v16  ;;  %v4146_v26 = vsel %vm74_vm0, %v10192_v54, -inf  ;;  %v10196_v63 = vpop.permute.xlu0 %4575 }
 0xe67   :  { %v4140_v23 = vsel %vm74_vm0, %v10180_v20, -inf }
 0xe68   :  { %4141 = vmax.xlane.f32.xlu1 %v4140_v23 }
 0xe6d   :  { %v10209_v49 = vpop.permute.xlu0 %4573 }
 0xe70   :  { %4144 = vmax.xlane.f32.xlu1 %v4143_v13 }
 0xe78   :  { %4147 = vmax.xlane.f32.xlu1 %v4146_v26 }
 0xe7a   :  { %v4052_v23 = vpop.f32.mrf.mxu2 }
 0xe7b   :  { %v4053_v19 = vadd.f32 %v10077_v6, %v4052_v23  ;;  %v10215_v23 = vpop.permute.xlu1 %4612 }
 0xe7d   :  { %v10202_v43 = vadd.f32 %v4053_v19, %v10131_v28 }
 0xe7e   :  { %v4091_v50 = vpop.f32.mrf.mxu3 }
 0xe7f   :  { %v4092_v13 = vadd.f32 %v10077_v6, %v4091_v50  ;;  %v4149_v31 = vsel %vm74_vm0, %v10202_v43, -inf }
 0xe80   :  { %4150 = vmax.xlane.f32.xlu0 %v4149_v31 }
 0xe81   :  { %v10213_v58 = vadd.f32 %v4092_v13, %v10153_v62 }
 0xe82   :  { %v4055_v26 = vpop.f32.mrf.mxu2 }
 0xe83   :  { %v4056_v51 = vadd.f32 %v10093_v1, %v4055_v26  ;;  %v4155_v59 = vsel %vm74_vm0, %v10213_v58, -inf }
 0xe85   :  { %v10218_v19 = vadd.f32 %v4056_v51, %v10142_v57  ;;  %v10232_v51 = vpop.permute.xlu0 %4571 }
 0xe86   :  { %v4094_v50 = vpop.f32.mrf.mxu3 }
 0xe87   :  { %v4095_v6 = vadd.f32 %v10093_v1, %v4094_v50  ;;  %v4152_v31 = vsel %vm74_vm0, %v10218_v19, -inf }
 0xe88   :  { %4153 = vmax.xlane.f32.xlu2 %v4152_v31  ;;  %4156 = vmax.xlane.f32.xlu0 %v4155_v59  ;;  %v10236_v59 = vpop.permute.xlu2 %4608 }
 0xe89   :  { %v10226_v26 = vadd.f32 %v4095_v6, %v10164_v44 }
 0xe8b   :  { %v4158_v13 = vsel %vm74_vm0, %v10226_v26, -inf }
 0xe8c   :  { %4159 = vmax.xlane.f32.xlu1 %v4158_v13 }
 0xe8d   :  { %v4115_v1 = vpop.xlane.xlu1 %4114 }
 0xe8e   :  { %v4161_v50 = vsub.f32 %v10086_v40, %v4115_v1 }
 0xe90   :  { %v4177_v57 = vmul.f32 1.442695, %v4161_v50  ;;  %v10244_v13 = vpop.permute.xlu2 %6946 }
 0xe92   :  { %7264 = vpow2.f32 %v4177_v57 }
 0xe95   :  { %v4118_v28 = vpop.xlane.xlu0 %4117 }
 0xe96   :  { %v4162_v31 = vsub.f32 %v10108_v47, %v4118_v28 }
 0xe98   :  { %v10238_v6 = vpop.eup %7264  ;;  %v4179_v44 = vmul.f32 1.442695, %v4162_v31  ;;  %v4121_v28 = vpop.xlane.xlu2 %4120 }
 0xe99   :  { %v4209_v0 = vsel %vm74_vm0, %v10238_v6, 0.0  ;;  %v4163_v1 = vsub.f32 %v10113_v18, %v4121_v28 }
 0xe9a   :  { %7266 = vpow2.f32 %v4179_v44  ;;  %4210 = vadd.xlane.f32.xlu2 %v4209_v0 }
 0xe9b   :  { %v4181_v50 = vmul.f32 1.442695, %v4163_v1 }
 0xe9c   :  { %4651 = vrot.lane.b32.xlu0 %v9892_v42, %s7478_s30 }
 0xe9d   :  { %7268 = vpow2.f32 %v4181_v50 }
 0xea0   :  { %v10246_v40 = vpop.eup %7266  ;;  %v4124_v57 = vpop.xlane.xlu2 %4123 }
 0xea1   :  { %v4212_v47 = vsel %vm74_vm0, %v10246_v40, 0.0 }
 0xea2   :  { %4213 = vadd.xlane.f32.xlu2 %v4212_v47 }
 0xea3   :  { %v10254_v62 = vpop.eup %7268 }
 0xea4   :  { %v4215_v47 = vsel %vm74_vm0, %v10254_v62, 0.0 }
 0xead   :  { %v4127_v31 = vpop.xlane.xlu2 %4126 }
 0xeae   :  { %v4165_v0 = vsub.f32 %v10135_v45, %v4127_v31 }
 0xeb0   :  { %v4185_v44 = vmul.f32 1.442695, %v4165_v0  ;;  %v4164_v0 = vsub.f32 %v10124_v9, %v4124_v57 }
 0xeb2   :  { %7270 = vpow2.f32 %v4185_v44 }
 0xeb5   :  { %v4130_v42 = vpop.xlane.xlu1 %4129 }
 0xeb6   :  { %v4166_v3 = vsub.f32 %v10146_v27, %v4130_v42 }
 0xeb8   :  { %v4187_v28 = vmul.f32 1.442695, %v4166_v3  ;;  %v10259_v1 = vpop.eup %7270 }
 0xeb9   :  { %v4221_v45 = vsel %vm74_vm0, %v10259_v1, 0.0 }
 0xeba   :  { %4653 = vrot.lane.b32.xlu2 %v9896_v53, %s7478_s30  ;;  %7272 = vpow2.f32 %v4187_v28  ;;  %v4183_v53 = vmul.f32 1.442695, %v4164_v0 }
 0xec0   :  { %v10265_v42 = vpop.eup %7272 }
 0xec3   :  { %v4133_v18 = vpop.xlane.xlu0 %4132 }
 0xec4   :  { %v4167_v50 = vsub.f32 %v10157_v30, %v4133_v18  ;;  %v4224_v30 = vsel %vm74_vm0, %v10265_v42, 0.0 }
 0xec6   :  { %4216 = vadd.xlane.f32.xlu0 %v4215_v47  ;;  %v4189_v31 = vmul.f32 1.442695, %v4167_v50 }
 0xec8   :  { %7274 = vpow2.f32 %v4189_v31 }
 0xecb   :  { %v4136_v44 = vpop.xlane.xlu0 %4135 }
 0xecc   :  { %v4168_v47 = vsub.f32 %v10168_v14, %v4136_v44 }
 0xece   :  { %4222 = vadd.xlane.f32.xlu0 %v4221_v45  ;;  %v4191_v28 = vmul.f32 1.442695, %v4168_v47  ;;  %v10271_v50 = vpop.eup %7274 }
 0xecf   :  { %v4227_v14 = vsel %vm74_vm0, %v10271_v50, 0.0 }
 0xed3   :  { %v4139_v27 = vpop.xlane.xlu2 %4138 }
 0xed4   :  { %v4169_v3 = vsub.f32 %v10174_v32, %v4139_v27 }
 0xed6   :  { %v4193_v18 = vmul.f32 1.442695, %v4169_v3  ;;  %4225 = vadd.xlane.f32.xlu0 %v4224_v30 }
 0xed8   :  { %7276 = vpow2.f32 %v4193_v18 }
 0xed9   :  { %7278 = vpow2.f32 %v4183_v53 }
 0xeda   :  { %7280 = vpow2.f32 %v4191_v28 }
 0xedb   :  { %v4142_v9 = vpop.xlane.xlu1 %4141 }
 0xedc   :  { %v4170_v57 = vsub.f32 %v10180_v20, %v4142_v9 }
 0xede   :  { %v10276_v45 = vpop.eup %7276  ;;  %v4195_v32 = vmul.f32 1.442695, %v4170_v57  ;;  %4228 = vadd.xlane.f32.xlu0 %v4227_v14 }
 0xedf   :  { %v10278_v31 = vpop.eup %7278  ;;  %v4233_v0 = vsel %vm74_vm0, %v10276_v45, 0.0 }
 0xee0   :  { %4234 = vadd.xlane.f32.xlu1 %v4233_v0  ;;  %7282 = vpow2.f32 %v4195_v32  ;;  %v10282_v53 = vpop.eup %7280  ;;  %v4218_v44 = vsel %vm74_vm0, %v10278_v31, 0.0 }
 0xee1   :  { %v4230_v47 = vsel %vm74_vm0, %v10282_v53, 0.0 }
 0xee3   :  { %v4145_v20 = vpop.xlane.xlu1 %4144  ;;  %4219 = vadd.xlane.f32.xlu2 %v4218_v44 }
 0xee4   :  { %v4171_v27 = vsub.f32 %v10186_v46, %v4145_v20 }
 0xee6   :  { %v4197_v3 = vmul.f32 1.442695, %v4171_v27  ;;  %4231 = vadd.xlane.f32.xlu0 %v4230_v47  ;;  %v10289_v30 = vpop.eup %7282 }
 0xee7   :  { %v4236_v18 = vsel %vm74_vm0, %v10289_v30, 0.0 }
 0xee8   :  { %7284 = vpow2.f32 %v4197_v3 }
 0xeeb   :  { %v4148_v28 = vpop.xlane.xlu1 %4147  ;;  %4237 = vadd.xlane.f32.xlu2 %v4236_v18 }
 0xeec   :  { %v4172_v9 = vsub.f32 %v10192_v54, %v4148_v28 }
 0xeee   :  { %v10294_v57 = vpop.eup %7284  ;;  %v4199_v14 = vmul.f32 1.442695, %v4172_v9 }
 0xeef   :  { %v4239_v46 = vsel %vm74_vm0, %v10294_v57, 0.0 }
 0xef0   :  { %7286 = vpow2.f32 %v4199_v14  ;;  %4240 = vadd.xlane.f32.xlu1 %v4239_v46 }
 0xef3   :  { %v4151_v32 = vpop.xlane.xlu0 %4150 }
 0xef4   :  { %v4173_v0 = vsub.f32 %v10202_v43, %v4151_v32 }
 0xef6   :  { %v10299_v44 = vpop.eup %7286  ;;  %v4201_v20 = vmul.f32 1.442695, %v4173_v0 }
 0xef7   :  { %v4242_v27 = vsel %vm74_vm0, %v10299_v44, 0.0 }
 0xef8   :  { %7288 = vpow2.f32 %v4201_v20  ;;  %4243 = vadd.xlane.f32.xlu1 %v4242_v27 }
 0xefb   :  { %v4157_v54 = vpop.xlane.xlu0 %4156  ;;  %v4154_v47 = vpop.xlane.xlu2 %4153 }
 0xefc   :  { %v4175_v3 = vsub.f32 %v10213_v58, %v4157_v54  ;;  %v4174_v18 = vsub.f32 %v10218_v19, %v4154_v47  ;;  %v6943_v54 = vunpack.i.l.bf16 %v10198_v38  ;;  %v6944_v47 = vunpack.i.h.bf16 %v10198_v38 }
 0xefe   :  { %v10305_v28 = vpop.eup %7288  ;;  %v4205_v9 = vmul.f32 1.442695, %v4175_v3  ;;  %v4203_v14 = vmul.f32 1.442695, %v4174_v18 }
 0xeff   :  { %v4245_v43 = vsel %vm74_vm0, %v10305_v28, 0.0 }
 0xf00   :  { %7290 = vpow2.f32 %v4205_v9  ;;  %4246 = vadd.xlane.f32.xlu1 %v4245_v43 }
 0xf01   :  { %7292 = vpow2.f32 %v4203_v14 }
 0xf03   :  { %4610 = vrot.lane.b32.xlu2 %v9985_v48, %s7477_s28 }
 0xf06   :  { %v10311_v46 = vpop.eup %7290 }
 0xf07   :  { %v10313_v32 = vpop.eup %7292  ;;  %v4251_v58 = vsel %vm74_vm0, %v10311_v46, 0.0 }
 0xf08   :  { %4252 = vadd.xlane.f32.xlu0 %v4251_v58  ;;  %v4248_v19 = vsel %vm74_vm0, %v10313_v32, 0.0 }
 0xf09   :  { %4249 = vadd.xlane.f32.xlu1 %v4248_v19 }
 0xf0b   :  { %4692 = vrot.lane.b32.xlu2 %v9904_v60, %s7478_s30 }
 0xf0d   :  { %v4211_v0 = vpop.xlane.xlu2 %4210 }
 0xf0e   :  { %7294 = vrcp.f32 %v4211_v0  ;;  %v10343_v38 = vpop.permute.xlu0 %4651 }
 0xf13   :  { %4688 = vrot.lane.b32.xlu2 %v10023_v11, %s7477_s28 }
 0xf14   :  { %v7295_v48 = vpop.eup %7294 }
 0xf15   :  { %v4273_v20 = vmul.f32 %v7295_v48, %v10238_v6  ;;  %v4214_v27 = vpop.xlane.xlu2 %4213 }
 0xf16   :  { %7296 = vrcp.f32 %v4214_v27 }
 0xf17   :  { %6690 = vmatmul.msk.f32.vlgmr.msrb.gmra.mxu1 %vm74_vm0, %v4273_v20 }
 0xf18   :  { %4525 = vmatpush.msrb.mxu1 %v6943_v54 }
 0xf1a   :  { %4526 = vmatpush.msrb.mxu1 %v6944_v47 }
 0xf1b   :  { %4770 = vrot.lane.b32.xlu2 %v9916_v24, %s7478_s30 }
 0xf1c   :  { %v7297_v3 = vpop.eup %7296  ;;  %4647 = vrot.lane.b32.xlu0 %v9998_v15, %s7477_s28  ;;  %v4160_v15 = vpop.xlane.xlu1 %4159 }
 0xf1d   :  { %v4274_v11 = vmul.f32 %v7297_v3, %v10246_v40  ;;  %v6948_v40 = vunpack.i.l.bf16 %v10244_v13 }
 0xf1f   :  { %6691 = vmatmul.msk.f32.gmra.mxu1 %vm74_vm0, %v4274_v11 }
 0xf22   :  { %4649 = vrot.lane.b32.xlu1 %v10008_v25, %s7477_s28  ;;  %v4176_v25 = vsub.f32 %v10226_v26, %v4160_v15 }
 0xf23   :  { %4764 = vrot.lane.b32.xlu2 %v10036_v21, %s7477_s28 }
 0xf24   :  { %4690 = vrot.lane.b32.xlu0 %v9900_v61, %s7478_s30 }
 0xf2b   :  { %4809 = vrot.lane.b32.xlu2 %v9928_v52, %s7478_s30 }
 0xf2c   :  { %4731 = vrot.lane.b32.xlu0 %v9908_v33, %s7478_s30  ;;  %v4207_v33 = vmul.f32 1.442695, %v4176_v25 }
 0xf33   :  { %4805 = vrot.lane.b32.xlu2 %v10065_v10, %s7477_s28 }
 0xf34   :  { %4725 = vrot.lane.b32.xlu0 %v10030_v4, %s7477_s28  ;;  %v6949_v4 = vunpack.i.h.bf16 %v10244_v13 }
 0xf39   :  { %v4217_v21 = vpop.xlane.xlu0 %4216 }
 0xf3a   :  { %7298 = vrcp.f32 %v4217_v21 }
 0xf3b   :  { %4842 = vrot.lane.b32.xlu2 %v10060_v56, %s7477_s28  ;;  %7300 = vpow2.f32 %v4207_v33 }
 0xf3c   :  { %4727 = vrot.lane.b32.xlu0 %v10041_v5, %s7477_s28 }
 0xf40   :  { %v7299_v52 = vpop.eup %7298 }
 0xf41   :  { %v4275_v6 = vmul.f32 %v7299_v52, %v10254_v62  ;;  %v4223_v10 = vpop.xlane.xlu0 %4222  ;;  %v10360_v56 = vpop.eup %7300 }
 0xf42   :  { %7302 = vrcp.f32 %v4223_v10  ;;  %v4254_v62 = vsel %vm74_vm0, %v10360_v56, 0.0 }
 0xf43   :  { %6692 = vmatmul.msk.f32.vlgmr.msra.gmra.mxu2 %vm74_vm0, %v4275_v6 }
 0xf44   :  { %4560 = vmatpush.msra.mxu2 %v6948_v40  ;;  %4807 = vrot.lane.b32.xlu0 %v9922_v2, %s7478_s30  ;;  %v4654_v2 = vpop.permute.xlu2 %4653 }
 0xf46   :  { %4561 = vmatpush.msra.mxu2 %v6949_v4 }
 0xf48   :  { %v7303_v5 = vpop.eup %7302 }
 0xf49   :  { %v4277_v26 = vmul.f32 %v7303_v5, %v10259_v1  ;;  %v4226_v18 = vpop.xlane.xlu0 %4225 }
 0xf4a   :  { %7304 = vrcp.f32 %v4226_v18 }
 0xf4b   :  { %6694 = vmatmul.msk.f32.vlgmr.msra.gmra.mxu3 %vm74_vm0, %v4277_v26 }
 0xf4c   :  { %6706 = vmatpush.xpose.msk.msra.mxu3 %vm617_vm14, %v10196_v63  ;;  %4255 = vadd.xlane.f32.xlu1 %v4254_v62 }
 0xf4d   :  { %4848 = vrot.lane.b32.xlu0 %v9946_v35, %s7478_s30 }
 0xf50   :  { %v7305_v13 = vpop.eup %7304  ;;  %6707 = vmatpush.xpose.msk.msra.mxu3 %vm617_vm14, %v10209_v49 }
 0xf51   :  { %v4229_v1 = vpop.xlane.xlu0 %4228  ;;  %v4278_v9 = vmul.f32 %v7305_v13, %v10265_v42 }
 0xf52   :  { %7306 = vrcp.f32 %v4229_v1 }
 0xf53   :  { %6695 = vmatmul.msk.f32.gmra.mxu3 %vm74_vm0, %v4278_v9  ;;  %v4235_v58 = vpop.xlane.xlu1 %4234 }
 0xf55   :  { %4844 = vrot.lane.b32.xlu0 %v10070_v7, %s7477_s28 }
 0xf56   :  { %v4220_v14 = vpop.xlane.xlu2 %4219 }
 0xf57   :  { %7308 = vrcp.f32 %v4220_v14 }
 0xf58   :  { %v7307_v63 = vpop.eup %7306 }
 0xf59   :  { %v4279_v43 = vmul.f32 %v7307_v63, %v10271_v50  ;;  %v4232_v35 = vpop.xlane.xlu0 %4231 }
 0xf5a   :  { %7310 = vrcp.f32 %v4232_v35 }
 0xf5b   :  { %6696 = vmatmul.msk.f32.vlgmr.msra.gmra.mxu1 %vm74_vm0, %v4279_v43  ;;  %7312 = vrcp.f32 %v4235_v58 }
 0xf5c   :  { %6710 = vmatpush.xpose.msk.msra.mxu1 %vm617_vm14, %v10230_v37 }
 0xf5d   :  { %v7309_v49 = vpop.eup %7308 }
 0xf5e   :  { %v4238_v42 = vpop.xlane.xlu2 %4237  ;;  %v4276_v19 = vmul.f32 %v7309_v49, %v10278_v31  ;;  %v10466_v49 = vld [vmem:[%s11308_s8 + $0x30] sm:$0xff] }
 0xf60   :  { %v7311_v0 = vpop.eup %7310  ;;  %6711 = vmatpush.xpose.msk.msra.mxu1 %vm617_vm14, %v10215_v23  ;;  %6693 = vmatmul.msk.f32.gmra.mxu2 %vm74_vm0, %v4276_v19 }
 0xf61   :  { %v4280_v7 = vmul.f32 %v7311_v0, %v10282_v53  ;;  %v7313_v50 = vpop.eup %7312 }
 0xf62   :  { %v4281_v37 = vmul.f32 %v7313_v50, %v10276_v45 }
 0xf63   :  { %6697 = vmatmul.msk.f32.gmra.mxu1 %vm74_vm0, %v4280_v7  ;;  %v4241_v48 = vpop.xlane.xlu1 %4240 }
 0xf64   :  { %7314 = vrcp.f32 %v4241_v48 }
 0xf65   :  { %7316 = vrcp.f32 %v4238_v42  ;;  %4686 = vrot.lane.b32.xlu1 %v10017_v17, %s7477_s28 }
 0xf66   :  { %v4611_v31 = vpop.permute.xlu2 %4610 }
 0xf68   :  { %6698 = vmatmul.msk.f32.vlgmr.msrb.gmra.mxu2 %vm74_vm0, %v4281_v37 }
 0xf69   :  { %6714 = vmatpush.xpose.msk.msrb.mxu2 %vm617_vm14, %v4654_v2 }
 0xf6a   :  { %v7315_v23 = vpop.eup %7314 }
 0xf6b   :  { %v7317_v20 = vpop.eup %7316  ;;  %v4283_v53 = vmul.f32 %v7315_v23, %v10294_v57  ;;  %v4244_v27 = vpop.xlane.xlu1 %4243 }
 0xf6c   :  { %7318 = vrcp.f32 %v4244_v27  ;;  %v4282_v45 = vmul.f32 %v7317_v20, %v10289_v30 }
 0xf6d   :  { %4729 = vrot.lane.b32.xlu1 %v9920_v36, %s7478_s30  ;;  %6715 = vmatpush.xpose.msk.msrb.mxu2 %vm617_vm14, %v10343_v38 }
 0xf6e   :  { %6700 = vmatmul.msk.f32.vlgmr.msrb.gmra.mxu3 %vm74_vm0, %v4283_v53  ;;  %v4693_v17 = vpop.permute.xlu2 %4692 }
 0xf6f   :  { %6718 = vmatpush.xpose.msk.msrb.mxu3 %vm617_vm14, %v4693_v17 }
 0xf70   :  { %6699 = vmatmul.msk.f32.gmra.mxu2 %vm74_vm0, %v4282_v45 }
 0xf72   :  { %v7319_v54 = vpop.eup %7318 }
 0xf73   :  { %v4247_v47 = vpop.xlane.xlu1 %4246  ;;  %v4284_v57 = vmul.f32 %v7319_v54, %v10299_v44 }
 0xf74   :  { %7320 = vrcp.f32 %v4247_v47 }
 0xf75   :  { %4768 = vrot.lane.b32.xlu1 %v9912_v34, %s7478_s30 }
 0xf76   :  { %6701 = vmatmul.msk.f32.gmra.mxu3 %vm74_vm0, %v4284_v57  ;;  %v4689_v36 = vpop.permute.xlu2 %4688  ;;  %v11426_v57 = vld [vmem:[#allocation25_spill] sm:$0xff] }
 0xf7a   :  { %v7321_v3 = vpop.eup %7320 }
 0xf7b   :  { %v4285_v11 = vmul.f32 %v7321_v3, %v10305_v28  ;;  %v4253_v38 = vpop.xlane.xlu0 %4252 }
 0xf7c   :  { %7322 = vrcp.f32 %v4253_v38  ;;  %v4250_v30 = vpop.xlane.xlu1 %4249 }
 0xf7d   :  { %7324 = vrcp.f32 %v4250_v30  ;;  %4766 = vrot.lane.b32.xlu1 %v10046_v29, %s7477_s28  ;;  %6702 = vmatmul.msk.f32.vlgmr.msrb.gmra.mxu1 %vm74_vm0, %v4285_v11 }
 0xf7e   :  { %6708 = vmatmul.msk.f32.vlgmr.msra.gmra.mxu3 %vm617_vm14, %v10207_v55  ;;  %v4771_v21 = vpop.permute.xlu2 %4770 }
 0xf82   :  { %v7323_v44 = vpop.eup %7322 }
 0xf83   :  { %v7325_v15 = vpop.eup %7324  ;;  %v4287_v25 = vmul.f32 %v7323_v44, %v10311_v46 }
 0xf84   :  { %v4286_v33 = vmul.f32 %v7325_v15, %v10313_v32 }
 0xf85   :  { %4803 = vrot.lane.b32.xlu1 %v10054_v41, %s7477_s28  ;;  %6704 = vmatmul.msk.f32.vlgmr.msra.gmra.mxu2 %vm74_vm0, %v4287_v25  ;;  %v6950_v41 = vpack.i.bf16 %v9876_v22, %v9880_v39 }
 0xf86   :  { %6703 = vmatmul.msk.f32.gmra.mxu1 %vm74_vm0, %v4286_v33  ;;  %6709 = vmatmul.msk.f32.gmra.mxu3 %vm617_vm14, %v10232_v51  ;;  %v4765_v55 = vpop.permute.xlu2 %4764 }
 0xf87   :  { %6726 = vmatpush.xpose.msk.msra.mxu2 %vm617_vm14, %v4771_v21 }
 0xf8d   :  { %4846 = vrot.lane.b32.xlu1 %v9935_v8, %s7478_s30 }
 0xf8e   :  { %6712 = vmatmul.msk.f32.vlgmr.msra.gmra.mxu1 %vm617_vm14, %v10236_v59  ;;  %v4648_v29 = vpop.permute.xlu0 %4647  ;;  %v4810_v46 = vpop.permute.xlu2 %4809 }
 0xf94   :  { %v4650_v52 = vpop.permute.xlu1 %4649  ;;  %v10435_v40 = vpop.f32.mrf.mxu1 }
 0xf95   :  { %6951 = vrot.lane.b32.xlu1 %v6950_v41, %s7479_s24 }
 0xf96   :  { %6713 = vmatmul.msk.f32.gmra.mxu1 %vm617_vm14, %v4611_v31  ;;  %v4691_v28 = vpop.permute.xlu0 %4690  ;;  %v4806_v63 = vpop.permute.xlu2 %4805  ;;  %v10482_v31 = vld [vmem:[%s11308_s8 + $0x38] sm:$0xff] }
 0xf97   :  { %6719 = vmatpush.xpose.msk.msrb.mxu3 %vm617_vm14, %v4691_v28  ;;  %v11427_v28 = vld [vmem:[#allocation29_spill] sm:$0xff] }
 0xf9b   :  { %6730 = vmatpush.xpose.msk.msra.mxu3 %vm617_vm14, %v4810_v46 }
 0xf9c   :  { %v10441_v18 = vpop.f32.mrf.mxu1 }
 0xf9e   :  { %v4732_v51 = vpop.permute.xlu0 %4731  ;;  %v4843_v19 = vpop.permute.xlu2 %4842 }
 0xf9f   :  { %6722 = vmatpush.xpose.msk.msrb.mxu1 %vm617_vm14, %v4732_v51 }
 0xfa6   :  { %v4726_v8 = vpop.permute.xlu0 %4725 }
 0xfae   :  { %v4728_v32 = vpop.permute.xlu0 %4727 }
 0xfb6   :  { %v4808_v59 = vpop.permute.xlu0 %4807 }
 0xfb7   :  { %6731 = vmatpush.xpose.msk.msra.mxu3 %vm617_vm14, %v4808_v59 }
 0xfbf   :  { %v4849_v22 = vpop.permute.xlu0 %4848  ;;  %v4256_v39 = vpop.xlane.xlu1 %4255 }
 0xfc0   :  { %7326 = vrcp.f32 %v4256_v39  ;;  %6734 = vmatpush.xpose.msk.msrb.mxu0 %vm617_vm14, %v4849_v22  ;;  %v11428_v39 = vld [vmem:[#allocation26_spill] sm:$0xff] }
 0xfc6   :  { %v7327_v6 = vpop.eup %7326  ;;  %v10491_v38 = vpop.f32.mrf.mxu2 }
 0xfc7   :  { %v4288_v10 = vmul.f32 %v7327_v6, %v10360_v56  ;;  %v4845_v53 = vpop.permute.xlu0 %4844 }
 0xfc9   :  { %6705 = vmatmul.msk.f32.gmra.mxu2 %vm74_vm0, %v4288_v10 }
 0xfce   :  { %v10439_v5 = vpop.f32.mrf.mxu3 }
 0xfd1   :  { %6716 = vmatmul.msk.f32.vlgmr.msrb.gmra.mxu2 %vm617_vm14, %v4648_v29 }
 0xfd6   :  { %v10449_v2 = vpop.f32.mrf.mxu3 }
 0xfd7   :  { %v4687_v4 = vpop.permute.xlu1 %4686 }
 0xfd8   :  { %6720 = vmatmul.msk.f32.vlgmr.msrb.gmra.mxu3 %vm617_vm14, %v4687_v4  ;;  %v10446_v62 = vpop.f32.mrf.mxu1 }
 0xfd9   :  { %6717 = vmatmul.msk.f32.gmra.mxu2 %vm617_vm14, %v4650_v52 }
 0xfdf   :  { %v4730_v26 = vpop.permute.xlu1 %4729 }
 0xfe0   :  { %6721 = vmatmul.msk.f32.gmra.mxu3 %vm617_vm14, %v4689_v36  ;;  %6723 = vmatpush.xpose.msk.msrb.mxu1 %vm617_vm14, %v4730_v26  ;;  %v10455_v9 = vpop.f32.mrf.mxu1 }
 0xfe3   :  { %6724 = vmatmul.msk.f32.vlgmr.msrb.gmra.mxu1 %vm617_vm14, %v4726_v8  ;;  %v10493_v30 = vpop.f32.mrf.mxu2 }
 0xfe7   :  { %v4769_v56 = vpop.permute.xlu1 %4768 }
 0xfe8   :  { %6727 = vmatpush.xpose.msk.msra.mxu2 %vm617_vm14, %v4769_v56 }
 0xfeb   :  { %6725 = vmatmul.msk.f32.gmra.mxu1 %vm617_vm14, %v4728_v32  ;;  %6728 = vmatmul.msk.f32.vlgmr.msra.gmra.mxu2 %vm617_vm14, %v4765_v55  ;;  %v10495_v44 = vpop.f32.mrf.mxu2 }
 0xfef   :  { %v4767_v13 = vpop.permute.xlu1 %4766 }
 0xff1   :  { %v10453_v1 = vpop.f32.mrf.mxu3 }
 0xff3   :  { %6729 = vmatmul.msk.f32.gmra.mxu2 %vm617_vm14, %v4767_v13  ;;  %v10497_v15 = vpop.f32.mrf.mxu2  ;;  %v11429_v13 = vld [vmem:[#allocation30_spill] sm:$0xff] }
 0xff7   :  { %v4804_v14 = vpop.permute.xlu1 %4803 }
 0xff8   :  { %6732 = vmatmul.msk.f32.vlgmr.msra.gmra.mxu3 %vm617_vm14, %v4804_v14 }
 0xff9   :  { %v10459_v43 = vpop.f32.mrf.mxu3 }
 0xffa   :  { %v10461_v35 = vpop.f32.mrf.mxu1 }
 0xfff   :  { %v4847_v58 = vpop.permute.xlu1 %4846 }
0x1000   :  { %6733 = vmatmul.msk.f32.gmra.mxu3 %vm617_vm14, %v4806_v63  ;;  %6735 = vmatpush.xpose.msk.msrb.mxu0 %vm617_vm14, %v4847_v58 }
0x1001   :  { %v4602_v42 = vpop.f32.mrf.mxu3 }
0x1002   :  { %v4603_v0 = vadd.f32 %v10466_v49, %v4602_v42 }
0x1003   :  { %v10471_v7 = vpop.f32.mrf.mxu1  ;;  %6736 = vmatmul.msk.f32.vlgmr.msrb.gmra.mxu0 %vm617_vm14, %v4843_v19  ;;  %v11430_v19 = vld [vmem:[#allocation27_spill] sm:$0xff] }
0x1004   :  { %v10475_v50 = vadd.f32 %v4603_v0, %v10082_v12 }
0x1006   :  { %v4897_v48 = vsel %vm74_vm0, %v10475_v50, -inf }
0x1007   :  { %4898 = vmax.xlane.f32.xlu1 %v4897_v48  ;;  %v6952_v37 = vpop.permute.xlu1 %6951 }
0x1008   :  { %v6953_v23 = vunpack.i.l.bf16 %v6952_v37  ;;  %v6954_v27 = vunpack.i.h.bf16 %v6952_v37  ;;  %v10499_v25 = vpop.f32.mrf.mxu2  ;;  %v11431_v37 = vld [vmem:[#allocation28_spill] sm:$0xff] }
0x1009   :  { %v4605_v20 = vpop.f32.mrf.mxu3 }
0x100a   :  { %v4606_v17 = vadd.f32 %v10482_v31, %v4605_v20  ;;  %5099 = vmatpush.msra.mxu1 %v6953_v23 }
0x100b   :  { %v4641_v45 = vpop.f32.mrf.mxu1  ;;  %6737 = vmatmul.msk.f32.gmra.mxu0 %vm617_vm14, %v4845_v53 }
0x100c   :  { %v4642_v54 = vadd.f32 %v10466_v49, %v4641_v45  ;;  %5100 = vmatpush.msra.mxu1 %v6954_v27  ;;  %v4882_v47 = vadd.f32 %v4606_v17, %v10098_v16 }
0x100e   :  { %v4883_v36 = vadd.f32 %v4642_v54, %v11426_v57  ;;  %v4900_v3 = vsel %vm74_vm0, %v4882_v47, -inf }
0x100f   :  { %4901 = vmax.xlane.f32.xlu2 %v4900_v3 }
0x1010   :  { %v4903_v11 = vsel %vm74_vm0, %v4883_v36, -inf }
0x1011   :  { %4904 = vmax.xlane.f32.xlu0 %v4903_v11 }
0x1013   :  { %v4644_v33 = vpop.f32.mrf.mxu1 }
0x1014   :  { %v4645_v51 = vadd.f32 %v10482_v31, %v4644_v33 }
0x1016   :  { %v10515_v6 = vadd.f32 %v4645_v51, %v11428_v39 }
0x1018   :  { %v4906_v42 = vsel %vm74_vm0, %v10515_v6, -inf }
0x104c   :  { %v10501_v21 = vpop.f32.mrf.mxu2 }
0x1054   :  { %v4680_v55 = vpop.f32.mrf.mxu2 }
0x1055   :  { %v4681_v4 = vadd.f32 %v10466_v49, %v4680_v55 }
0x1057   :  { %v4885_v0 = vadd.f32 %v4681_v4, %v11430_v19 }
0x1059   :  { %v4909_v53 = vsel %vm74_vm0, %v4885_v0, -inf }
0x105b   :  { %v4719_v29 = vpop.f32.mrf.mxu3 }
0x105c   :  { %v4720_v41 = vadd.f32 %v10466_v49, %v4719_v29  ;;  %v4683_v26 = vpop.f32.mrf.mxu2 }
0x105d   :  { %v4684_v63 = vadd.f32 %v10482_v31, %v4683_v26 }
0x105e   :  { %v10505_v46 = vadd.f32 %v4720_v41, %v11427_v28 }
0x105f   :  { %v4886_v23 = vadd.f32 %v4684_v63, %v11431_v37 }
0x1060   :  { %v4758_v8 = vpop.f32.mrf.mxu1  ;;  %v4915_v32 = vsel %vm74_vm0, %v10505_v46, -inf }
0x1061   :  { %v4759_v59 = vadd.f32 %v10466_v49, %v4758_v8  ;;  %4916 = vmax.xlane.f32.xlu1 %v4915_v32  ;;  %v4912_v27 = vsel %vm74_vm0, %v4886_v23, -inf }
0x1063   :  { %v10512_v52 = vadd.f32 %v4759_v59, %v10082_v12  ;;  %v4722_v22 = vpop.f32.mrf.mxu3 }
0x1064   :  { %v4723_v10 = vadd.f32 %v10482_v31, %v4722_v22 }
0x1065   :  { %v4921_v56 = vsel %vm74_vm0, %v10512_v52, -inf }
0x1066   :  { %v10522_v14 = vadd.f32 %v4723_v10, %v11429_v13  ;;  %4922 = vmax.xlane.f32.xlu2 %v4921_v56 }
0x1068   :  { %v4761_v12 = vpop.f32.mrf.mxu1  ;;  %v4918_v58 = vsel %vm74_vm0, %v10522_v14, -inf }
0x1069   :  { %v4762_v48 = vadd.f32 %v10482_v31, %v4761_v12  ;;  %4919 = vmax.xlane.f32.xlu0 %v4918_v58  ;;  %4907 = vmax.xlane.f32.xlu1 %v4906_v42 }
0x106b   :  { %v10533_v20 = vadd.f32 %v4762_v48, %v10098_v16 }
0x106d   :  { %v4924_v17 = vsel %vm74_vm0, %v10533_v20, -inf }
0x106e   :  { %4910 = vmax.xlane.f32.xlu2 %v4909_v53  ;;  %v4797_v10 = vpop.f32.mrf.mxu2 }
0x106f   :  { %v4798_v26 = vadd.f32 %v10466_v49, %v4797_v10 }
0x1071   :  { %4913 = vmax.xlane.f32.xlu0 %v4912_v27  ;;  %4925 = vmax.xlane.f32.xlu1 %v4924_v17  ;;  %v10562_v63 = vadd.f32 %v4798_v26, %v11426_v57  ;;  %v11432_v57 = vld [vmem:[#allocation23_spill] sm:$0xff] }
0x1073   :  { %v4927_v42 = vsel %vm74_vm0, %v10562_v63, -inf }
0x1076   :  { %v4800_v12 = vpop.f32.mrf.mxu2 }
0x1077   :  { %v4801_v58 = vadd.f32 %v10482_v31, %v4800_v12 }
0x1079   :  { %v10568_v19 = vadd.f32 %v4801_v58, %v11428_v39 }
0x107a   :  { %v4899_v45 = vpop.xlane.xlu1 %4898 }
0x107b   :  { %v4945_v54 = vsub.f32 %v10475_v50, %v4899_v45  ;;  %v10540_v3 = vpop.f32.mrf.mxu3  ;;  %v4930_v48 = vsel %vm74_vm0, %v10568_v19, -inf }
0x107d   :  { %v4961_v11 = vmul.f32 1.442695, %v4945_v54 }
0x107f   :  { %7328 = vpow2.f32 %v4961_v11 }
0x1082   :  { %v4902_v33 = vpop.xlane.xlu2 %4901 }
0x1083   :  { %v4946_v16 = vsub.f32 %v4882_v47, %v4902_v33  ;;  %v4839_v55 = vpop.f32.mrf.mxu3 }
0x1084   :  { %v4840_v29 = vadd.f32 %v10482_v31, %v4839_v55  ;;  %v4905_v41 = vpop.xlane.xlu0 %4904 }
0x1085   :  { %v10543_v51 = vpop.eup %7328  ;;  %v4963_v8 = vmul.f32 1.442695, %v4946_v16  ;;  %v4947_v32 = vsub.f32 %v4883_v36, %v4905_v41 }
0x1086   :  { %v10546_v59 = vadd.f32 %v4840_v29, %v11431_v37  ;;  %v4993_v50 = vsel %vm74_vm0, %v10543_v51, 0.0  ;;  %v6965_v37 = vpack.i.bf16 %v9900_v61, %v9904_v60 }
0x1087   :  { %7330 = vpow2.f32 %v4963_v8  ;;  %v4965_v22 = vmul.f32 1.442695, %v4947_v32  ;;  %4994 = vadd.xlane.f32.xlu2 %v4993_v50 }
0x1088   :  { %v4936_v47 = vsel %vm74_vm0, %v10546_v59, -inf }
0x1089   :  { %7332 = vpow2.f32 %v4965_v22  ;;  %4937 = vmax.xlane.f32.xlu1 %v4936_v47 }
0x108d   :  { %v10552_v4 = vpop.eup %7330 }
0x108e   :  { %v4996_v36 = vsel %vm74_vm0, %v10552_v4, 0.0 }
0x108f   :  { %v10557_v56 = vpop.eup %7332  ;;  %4997 = vadd.xlane.f32.xlu2 %v4996_v36 }
0x1090   :  { %v4999_v13 = vsel %vm74_vm0, %v10557_v56, 0.0 }
0x1091   :  { %5000 = vadd.xlane.f32.xlu0 %v4999_v13 }
0x1097   :  { %4928 = vmax.xlane.f32.xlu2 %v4927_v42 }
0x109f   :  { %4931 = vmax.xlane.f32.xlu2 %v4930_v48  ;;  %v11433_v48 = vld [vmem:[#allocation20_spill] sm:$0xff] }
0x10a2   :  { %6966 = vrot.lane.b32.xlu1 %v6965_v37, %s7479_s24  ;;  %v11434_v37 = vld [vmem:[#allocation19_spill] sm:$0xff] }
0x10a5   :  { %6956 = vrot.lane.b32.xlu0 %v11432_v57, %s7479_s24  ;;  %v6960_v57 = vpack.i.bf16 %v11434_v37, %v11433_v48  ;;  %v4837_v48 = vadd.f32 %v10466_v49, %v10540_v3  ;;  %v11437_v37 = vld [vmem:[#allocation24_spill] sm:$0xff] }
0x10d4   :  { %v4917_v53 = vpop.xlane.xlu1 %4916 }
0x10d5   :  { %v4951_v16 = vsub.f32 %v10505_v46, %v4917_v53 }
0x10d7   :  { %v4973_v8 = vmul.f32 1.442695, %v4951_v16 }
0x10d9   :  { %v4923_v27 = vpop.xlane.xlu2 %4922 }
0x10da   :  { %v4953_v13 = vsub.f32 %v10512_v52, %v4923_v27 }
0x10dc   :  { %v4920_v17 = vpop.xlane.xlu0 %4919  ;;  %v4908_v45 = vpop.xlane.xlu1 %4907  ;;  %v4977_v42 = vmul.f32 1.442695, %v4953_v13  ;;  %v11436_v13 = vld [vmem:[#allocation22_spill] sm:$0xff] }
0x10dd   :  { %v4948_v54 = vsub.f32 %v10515_v6, %v4908_v45 }
0x10df   :  { %v4967_v39 = vmul.f32 1.442695, %v4948_v54 }
0x10e1   :  { %v4911_v11 = vpop.xlane.xlu2 %4910  ;;  %7334 = vpow2.f32 %v4967_v39 }
0x10e2   :  { %v4949_v33 = vsub.f32 %v4885_v0, %v4911_v11  ;;  %v4952_v0 = vsub.f32 %v10522_v14, %v4920_v17  ;;  %v4875_v14 = vpop.f32.mrf.mxu0 }
0x10e3   :  { %v4876_v12 = vadd.f32 %v10466_v49, %v4875_v14 }
0x10e4   :  { %v4969_v55 = vmul.f32 1.442695, %v4949_v33  ;;  %v4914_v29 = vpop.xlane.xlu0 %4913  ;;  %v4975_v50 = vmul.f32 1.442695, %v4952_v0  ;;  %v4926_v52 = vpop.xlane.xlu1 %4925  ;;  %v6975_v0 = vpack.i.bf16 %v9912_v34, %v9916_v24 }
0x10e5   :  { %v4950_v61 = vsub.f32 %v4886_v23, %v4914_v29  ;;  %v10605_v17 = vadd.f32 %v4876_v12, %v11427_v28  ;;  %v11435_v28 = vld [vmem:[#allocation21_spill] sm:$0xff] }
0x10e6   :  { %7336 = vpow2.f32 %v4969_v55 }
0x10e7   :  { %v4971_v60 = vmul.f32 1.442695, %v4950_v61  ;;  %v10579_v41 = vpop.eup %7334  ;;  %v4939_v27 = vsel %vm74_vm0, %v10605_v17, -inf }
0x10e8   :  { %v5002_v32 = vsel %vm74_vm0, %v10579_v41, 0.0 }
0x10e9   :  { %7338 = vpow2.f32 %v4971_v60  ;;  %5003 = vadd.xlane.f32.xlu2 %v5002_v32 }
0x10ea   :  { %7340 = vpow2.f32 %v4973_v8  ;;  %v4878_v33 = vpop.f32.mrf.mxu0 }
0x10eb   :  { %7342 = vpow2.f32 %v4975_v50  ;;  %v4879_v61 = vadd.f32 %v10482_v31, %v4878_v33 }
0x10ec   :  { %v10583_v6 = vpop.eup %7336 }
0x10ed   :  { %v5005_v46 = vsel %vm74_vm0, %v10583_v6, 0.0 }
0x10ee   :  { %5006 = vadd.xlane.f32.xlu0 %v5005_v46 }
0x10ef   :  { %v10588_v23 = vpop.eup %7338 }
0x10f0   :  { %v5008_v22 = vsel %vm74_vm0, %v10588_v23, 0.0  ;;  %v10592_v47 = vpop.eup %7340 }
0x10f1   :  { %5009 = vadd.xlane.f32.xlu1 %v5008_v22  ;;  %v5011_v10 = vsel %vm74_vm0, %v10592_v47, 0.0  ;;  %v10596_v26 = vpop.eup %7342 }
0x10f2   :  { %v5014_v58 = vsel %vm74_vm0, %v10596_v26, 0.0 }
0x10f6   :  { %5012 = vadd.xlane.f32.xlu0 %v5011_v10 }
0x10fa   :  { %v4995_v36 = vpop.xlane.xlu2 %4994 }
0x10fb   :  { %7344 = vrcp.f32 %v4995_v36 }
0x10fc   :  { %v4938_v55 = vpop.xlane.xlu1 %4937 }
0x10fd   :  { %v4958_v3 = vsub.f32 %v10546_v59, %v4938_v55 }
0x10fe   :  { %5015 = vadd.xlane.f32.xlu0 %v5014_v58 }
0x1101   :  { %v7345_v53 = vpop.eup %7344  ;;  %6961 = vrot.lane.b32.xlu2 %v6960_v57, %s7479_s24 }
0x1102   :  { %v5057_v45 = vmul.f32 %v7345_v53, %v10543_v51  ;;  %v4998_v54 = vpop.xlane.xlu2 %4997 }
0x1103   :  { %7346 = vrcp.f32 %v4998_v54 }
0x1104   :  { %7348 = vpow2.f32 %v4977_v42  ;;  %6738 = vmatmul.msk.f32.vlgmr.msra.gmra.mxu1 %vm74_vm0, %v5057_v45  ;;  %v5001_v8 = vpop.xlane.xlu0 %5000  ;;  %v4954_v42 = vsub.f32 %v10533_v20, %v4926_v52 }
0x1105   :  { %7350 = vrcp.f32 %v5001_v8 }
0x1106   :  { %4940 = vmax.xlane.f32.xlu0 %v4939_v27  ;;  %v4979_v57 = vmul.f32 1.442695, %v4954_v42 }
0x1109   :  { %v7347_v39 = vpop.eup %7346 }
0x110a   :  { %v10612_v11 = vpop.eup %7348  ;;  %6971 = vrot.lane.b32.xlu1 %v11435_v28, %s7479_s24  ;;  %v4929_v51 = vpop.xlane.xlu2 %4928  ;;  %v5058_v16 = vmul.f32 %v7347_v39, %v10552_v4  ;;  %v7472_v4 = vld [vmem:[%s11318_s1 + $0x38] sm:$0xff]  ;;  %v4987_v39 = vmul.f32 1.442695, %v4958_v3 }
0x110b   :  { %v4955_v29 = vsub.f32 %v10562_v63, %v4929_v51  ;;  %v5017_v60 = vsel %vm74_vm0, %v10612_v11, 0.0  ;;  %v10627_v46 = vadd.f32 %v7472_v4, %v4879_v61  ;;  %v7351_v34 = vpop.eup %7350 }
0x110c   :  { %6739 = vmatmul.msk.f32.gmra.mxu1 %vm74_vm0, %v5058_v16  ;;  %v5059_v12 = vmul.f32 %v7351_v34, %v10557_v56  ;;  %v7473_v56 = vld [vmem:[%s11318_s1 + $0x20] sm:$0xff] }
0x110d   :  { %v4981_v32 = vmul.f32 1.442695, %v4955_v29  ;;  %v4942_v50 = vsel %vm74_vm0, %v10627_v46, -inf  ;;  %v10648_v53 = vadd.f32 %v7473_v56, %v4837_v48 }
0x110e   :  { %5018 = vadd.xlane.f32.xlu0 %v5017_v60 }
0x110f   :  { %7352 = vpow2.f32 %v4981_v32  ;;  %v4933_v20 = vsel %vm74_vm0, %v10648_v53, -inf }
0x1110   :  { %7354 = vpow2.f32 %v4979_v57 }
0x1112   :  { %6976 = vrot.lane.b32.xlu1 %v6975_v0, %s7479_s24  ;;  %v4932_v45 = vpop.xlane.xlu2 %4931 }
0x1113   :  { %v4956_v54 = vsub.f32 %v10568_v19, %v4932_v45 }
0x1114   :  { %v6967_v31 = vpop.permute.xlu1 %6966 }
0x1115   :  { %v6968_v63 = vunpack.i.l.bf16 %v6967_v31  ;;  %v6969_v22 = vunpack.i.h.bf16 %v6967_v31  ;;  %v10632_v14 = vpop.eup %7352  ;;  %v4983_v52 = vmul.f32 1.442695, %v4956_v54 }
0x1116   :  { %4943 = vmax.xlane.f32.xlu0 %v4942_v50  ;;  %v5023_v58 = vsel %vm74_vm0, %v10632_v14, 0.0  ;;  %v10653_v49 = vpop.eup %7354 }
0x1117   :  { %v6957_v10 = vpop.permute.xlu0 %6956  ;;  %5204 = vmatpush.msra.mxu0 %v6968_v63  ;;  %7356 = vpow2.f32 %v4983_v52  ;;  %v5020_v27 = vsel %vm74_vm0, %v10653_v49, 0.0 }
0x1118   :  { %v6958_v24 = vunpack.i.l.bf16 %v6957_v10  ;;  %v6959_v36 = vunpack.i.h.bf16 %v6957_v10  ;;  %7358 = vpow2.f32 %v4987_v39 }
0x1119   :  { %5205 = vmatpush.msra.mxu0 %v6969_v22 }
0x111a   :  { %5134 = vmatpush.msrb.mxu2 %v6958_v24  ;;  %6981 = vrot.lane.b32.xlu1 %v11436_v13, %s7479_s24 }
0x111c   :  { %5135 = vmatpush.msrb.mxu2 %v6959_v36 }
0x111d   :  { %6740 = vmatmul.msk.f32.vlgmr.msrb.gmra.mxu2 %vm74_vm0, %v5059_v12  ;;  %v10658_v33 = vpop.eup %7356 }
0x111e   :  { %5024 = vadd.xlane.f32.xlu0 %v5023_v58  ;;  %v5026_v19 = vsel %vm74_vm0, %v10658_v33, 0.0  ;;  %v10662_v28 = vpop.eup %7358 }
0x111f   :  { %v5032_v51 = vsel %vm74_vm0, %v10662_v28, 0.0 }
0x1122   :  { %6986 = vrot.lane.b32.xlu1 %v11437_v37, %s7479_s24 }
0x112a   :  { %4934 = vmax.xlane.f32.xlu2 %v4933_v20 }
0x1132   :  { %5021 = vadd.xlane.f32.xlu2 %v5020_v27 }
0x113a   :  { %5027 = vadd.xlane.f32.xlu2 %v5026_v19 }
0x1142   :  { %5033 = vadd.xlane.f32.xlu2 %v5032_v51 }
0x115c   :  { %v5004_v59 = vpop.xlane.xlu2 %5003 }
0x115d   :  { %7360 = vrcp.f32 %v5004_v59 }
0x1161   :  { %v5007_v16 = vpop.xlane.xlu0 %5006 }
0x1162   :  { %7362 = vrcp.f32 %v5007_v16 }
0x1163   :  { %v7361_v55 = vpop.eup %7360 }
0x1164   :  { %v6962_v29 = vpop.permute.xlu2 %6961  ;;  %v5010_v61 = vpop.xlane.xlu1 %5009  ;;  %v5060_v60 = vmul.f32 %v7361_v55, %v10579_v41 }
0x1165   :  { %v6963_v8 = vunpack.i.l.bf16 %v6962_v29  ;;  %v6964_v0 = vunpack.i.h.bf16 %v6962_v29  ;;  %7364 = vrcp.f32 %v5010_v61 }
0x1166   :  { %6741 = vmatmul.msk.f32.gmra.mxu2 %vm74_vm0, %v5060_v60 }
0x1167   :  { %5169 = vmatpush.msrb.mxu3 %v6963_v8 }
0x1168   :  { %v7363_v32 = vpop.eup %7362 }
0x1169   :  { %v5061_v4 = vmul.f32 %v7363_v32, %v10583_v6  ;;  %v5013_v31 = vpop.xlane.xlu0 %5012  ;;  %5170 = vmatpush.msrb.mxu3 %v6964_v0 }
0x116a   :  { %7366 = vrcp.f32 %v5013_v31 }
0x116b   :  { %6742 = vmatmul.msk.f32.vlgmr.msrb.gmra.mxu3 %vm74_vm0, %v5061_v4  ;;  %v7365_v63 = vpop.eup %7364 }
0x116c   :  { %v5062_v41 = vmul.f32 %v7365_v63, %v10588_v23 }
0x1170   :  { %v7367_v50 = vpop.eup %7366 }
0x1171   :  { %v5063_v22 = vmul.f32 %v7367_v50, %v10592_v47  ;;  %v5016_v10 = vpop.xlane.xlu0 %5015 }
0x1172   :  { %7368 = vrcp.f32 %v5016_v10 }
0x1173   :  { %6743 = vmatmul.msk.f32.gmra.mxu3 %vm74_vm0, %v5062_v41  ;;  %6744 = vmatmul.msk.f32.vlgmr.msra.gmra.mxu0 %vm74_vm0, %v5063_v22 }
0x1178   :  { %v7369_v34 = vpop.eup %7368 }
0x1179   :  { %v4941_v24 = vpop.xlane.xlu0 %4940  ;;  %v5064_v6 = vmul.f32 %v7369_v34, %v10596_v26 }
0x117a   :  { %v4959_v61 = vsub.f32 %v10605_v17, %v4941_v24 }
0x117b   :  { %6745 = vmatmul.msk.f32.gmra.mxu0 %vm74_vm0, %v5064_v6 }
0x117c   :  { %v6972_v36 = vpop.permute.xlu1 %6971  ;;  %v4989_v8 = vmul.f32 1.442695, %v4959_v61 }
0x117d   :  { %v6973_v13 = vunpack.i.l.bf16 %v6972_v36  ;;  %v6974_v12 = vunpack.i.h.bf16 %v6972_v36  ;;  %v6755_v36 = vld [vmem:[%s11309_s9 + $0x18] sm:$0xff] }
0x117f   :  { %5239 = vmatpush.msrb.mxu1 %v6973_v13  ;;  %v6754_v13 = vld [vmem:[%s11309_s9 + $0x10] sm:$0xff] }
0x1181   :  { %v5019_v58 = vpop.xlane.xlu0 %5018  ;;  %v5102_v47 = vpop.f32.mrf.mxu1  ;;  %5240 = vmatpush.msrb.mxu1 %v6974_v12 }
0x1182   :  { %7370 = vrcp.f32 %v5019_v58 }
0x1183   :  { %5503 = vmatpush.msra.mxu1 %v6755_v36 }
0x1184   :  { %v6977_v23 = vpop.permute.xlu1 %6976 }
0x1185   :  { %v6978_v42 = vunpack.i.l.bf16 %v6977_v23  ;;  %v6979_v48 = vunpack.i.h.bf16 %v6977_v23  ;;  %5504 = vmatpush.msra.mxu1 %v6754_v13 }
0x1187   :  { %5274 = vmatpush.msra.mxu2 %v6978_v42 }
0x1188   :  { %v7371_v37 = vpop.eup %7370 }
0x1189   :  { %v5065_v57 = vmul.f32 %v7371_v37, %v10612_v11  ;;  %v4944_v56 = vpop.xlane.xlu0 %4943  ;;  %v5105_v45 = vpop.f32.mrf.mxu1  ;;  %5275 = vmatpush.msra.mxu2 %v6979_v48 }
0x118a   :  { %v4960_v26 = vsub.f32 %v10627_v46, %v4944_v56  ;;  %5371 = vrot.lane.b32.xlu1 %v5105_v45, %s7480_s29 }
0x118b   :  { %6746 = vmatmul.msk.f32.vlgmr.msrb.gmra.mxu1 %vm74_vm0, %v5065_v57 }
0x118c   :  { %v4991_v54 = vmul.f32 1.442695, %v4960_v26  ;;  %v6982_v20 = vpop.permute.xlu1 %6981 }
0x118d   :  { %v6983_v52 = vunpack.i.l.bf16 %v6982_v20  ;;  %v6984_v3 = vunpack.i.h.bf16 %v6982_v20 }
0x118e   :  { %7372 = vpow2.f32 %v4991_v54 }
0x118f   :  { %5309 = vmatpush.msra.mxu3 %v6983_v52 }
0x1191   :  { %v5025_v27 = vpop.xlane.xlu0 %5024  ;;  %5310 = vmatpush.msra.mxu3 %v6984_v3 }
0x1192   :  { %7374 = vrcp.f32 %v5025_v27 }
0x1194   :  { %v10680_v39 = vpop.eup %7372  ;;  %v6987_v11 = vpop.permute.xlu1 %6986 }
0x1195   :  { %v6988_v19 = vunpack.i.l.bf16 %v6987_v11  ;;  %v5038_v46 = vsel %vm74_vm0, %v10680_v39, 0.0  ;;  %v6989_v51 = vunpack.i.h.bf16 %v6987_v11 }
0x1196   :  { %5039 = vadd.xlane.f32.xlu2 %v5038_v46 }
0x1197   :  { %5344 = vmatpush.msrb.mxu0 %v6988_v19 }
0x1198   :  { %v7375_v59 = vpop.eup %7374 }
0x1199   :  { %v5067_v16 = vmul.f32 %v7375_v59, %v10632_v14  ;;  %5345 = vmatpush.msrb.mxu0 %v6989_v51 }
0x119b   :  { %6748 = vmatmul.msk.f32.vlgmr.msra.gmra.mxu2 %vm74_vm0, %v5067_v16 }
0x119d   :  { %v4935_v55 = vpop.xlane.xlu2 %4934 }
0x119e   :  { %v4957_v29 = vsub.f32 %v10648_v53, %v4935_v55 }
0x11a0   :  { %v4985_v60 = vmul.f32 1.442695, %v4957_v29  ;;  %v5137_v14 = vpop.f32.mrf.mxu2 }
0x11a2   :  { %7376 = vpow2.f32 %v4985_v60 }
0x11a5   :  { %v5022_v32 = vpop.xlane.xlu2 %5021 }
0x11a6   :  { %7378 = vrcp.f32 %v5022_v32 }
0x11a7   :  { %7380 = vpow2.f32 %v4989_v8 }
0x11a8   :  { %v7377_v0 = vpop.eup %7376 }
0x11a9   :  { %v5029_v4 = vsel %vm74_vm0, %v7377_v0, 0.0 }
0x11aa   :  { %5030 = vadd.xlane.f32.xlu0 %v5029_v4 }
0x11ac   :  { %v7379_v31 = vpop.eup %7378 }
0x11ad   :  { %v5028_v63 = vpop.xlane.xlu2 %5027  ;;  %v5066_v50 = vmul.f32 %v7379_v31, %v10653_v49  ;;  %v7381_v53 = vpop.eup %7380 }
0x11ae   :  { %5373 = vrot.lane.b32.xlu2 %v5137_v14, %s7480_s29  ;;  %7382 = vrcp.f32 %v5028_v63  ;;  %v5035_v17 = vsel %vm74_vm0, %v7381_v53, 0.0 }
0x11af   :  { %6747 = vmatmul.msk.f32.gmra.mxu1 %vm74_vm0, %v5066_v50 }
0x11b2   :  { %5036 = vadd.xlane.f32.xlu0 %v5035_v17 }
0x11b4   :  { %v7383_v22 = vpop.eup %7382 }
0x11b5   :  { %v5068_v10 = vmul.f32 %v7383_v22, %v10658_v33 }
0x11b7   :  { %6749 = vmatmul.msk.f32.gmra.mxu2 %vm74_vm0, %v5068_v10 }
0x11c6   :  { %5369 = vrot.lane.b32.xlu0 %v5102_v47, %s7480_s29  ;;  %v5034_v47 = vpop.xlane.xlu2 %5033 }
0x11e9   :  { %v5140_v41 = vpop.f32.mrf.mxu2 }
0x11ea   :  { %5375 = vrot.lane.b32.xlu1 %v5140_v41, %s7480_s29 }
0x11ee   :  { %v5172_v34 = vpop.f32.mrf.mxu3 }
0x11f0   :  { %v5207_v24 = vpop.f32.mrf.mxu0 }
0x11f2   :  { %5377 = vrot.lane.b32.xlu1 %v5172_v34, %s7480_s29 }
0x11f6   :  { %v5175_v49 = vpop.f32.mrf.mxu3 }
0x11f7   :  { %5379 = vrot.lane.b32.xlu0 %v5175_v49, %s7480_s29 }
0x11f8   :  { %v5210_v6 = vpop.f32.mrf.mxu0 }
0x11f9   :  { %5383 = vrot.lane.b32.xlu2 %v5210_v6, %s7480_s29 }
0x11fa   :  { %5381 = vrot.lane.b32.xlu1 %v5207_v24, %s7480_s29 }
0x11fc   :  { %v5372_v19 = vpop.permute.xlu1 %5371 }
0x1208   :  { %v5242_v33 = vpop.f32.mrf.mxu1 }
0x1209   :  { %5385 = vrot.lane.b32.xlu0 %v5242_v33, %s7480_s29  ;;  %v5040_v37 = vpop.xlane.xlu2 %5039 }
0x1211   :  { %v5374_v46 = vpop.permute.xlu2 %5373 }
0x121d   :  { %v5031_v12 = vpop.xlane.xlu0 %5030 }
0x121e   :  { %v5277_v58 = vpop.f32.mrf.mxu2  ;;  %7384 = vrcp.f32 %v5031_v12 }
0x121f   :  { %5389 = vrot.lane.b32.xlu2 %v5277_v58, %s7480_s29  ;;  %7386 = vrcp.f32 %v5034_v47 }
0x1224   :  { %v7385_v23 = vpop.eup %7384 }
0x1225   :  { %v5069_v42 = vmul.f32 %v7385_v23, %v7377_v0  ;;  %v5037_v48 = vpop.xlane.xlu0 %5036  ;;  %v7387_v57 = vpop.eup %7386  ;;  %v7001_v23 = vld [vmem:[%s11310_s10 + $0x1] ss:$0 sm:$0xff] }
0x1226   :  { %7388 = vrcp.f32 %v5037_v48  ;;  %v5070_v54 = vmul.f32 %v7387_v57, %v10662_v28  ;;  %v5418_v28 = vsel %vm617_vm14, %v10441_v18, %v5372_v19 }
0x1227   :  { %6750 = vmatmul.msk.f32.vlgmr.msra.gmra.mxu3 %vm74_vm0, %v5069_v42  ;;  %7390 = vrcp.f32 %v5040_v37 }
0x122c   :  { %v7389_v56 = vpop.eup %7388  ;;  %v5245_v45 = vpop.f32.mrf.mxu1 }
0x122d   :  { %v5071_v26 = vmul.f32 %v7389_v56, %v7381_v53  ;;  %5387 = vrot.lane.b32.xlu1 %v5245_v45, %s7480_s29  ;;  %v7391_v20 = vpop.eup %7390 }
0x122e   :  { %v5072_v52 = vmul.f32 %v7391_v20, %v10680_v39  ;;  %v5419_v39 = vsel %vm617_vm14, %v10491_v38, %v5374_v46 }
0x122f   :  { %6751 = vmatmul.msk.f32.gmra.mxu3 %vm74_vm0, %v5070_v54  ;;  %6752 = vmatmul.msk.f32.vlgmr.msrb.gmra.mxu0 %vm74_vm0, %v5071_v26 }
0x1237   :  { %6753 = vmatmul.msk.f32.gmra.mxu0 %vm74_vm0, %v5072_v52 }
0x1238   :  { %v5370_v3 = vpop.permute.xlu0 %5369 }
0x1239   :  { %v5417_v27 = vsel %vm617_vm14, %v10435_v40, %v5370_v3 }
0x123a   :  { %v5280_v11 = vpop.f32.mrf.mxu2  ;;  %6757 = vmatmul.msk.f32.vlgmr.msra.gmra.mxu1 %vm74_vm0, %v5417_v27 }
0x123b   :  { %5391 = vrot.lane.b32.xlu0 %v5280_v11, %s7480_s29 }
0x1242   :  { %6758 = vmatmul.msk.f32.gmra.mxu1 %vm74_vm0, %v5418_v28 }
0x124a   :  { %6759 = vmatmul.msk.f32.gmra.mxu1 %vm74_vm0, %v5419_v39  ;;  %v5554_v39 = vld [vmem:[%s11319_s3] sm:$0xff] }
0x125c   :  { %v5376_v51 = vpop.permute.xlu1 %5375 }
0x125d   :  { %v5420_v40 = vsel %vm617_vm14, %v10493_v30, %v5376_v51  ;;  %v5384_v30 = vpop.permute.xlu2 %5383  ;;  %v5555_v51 = vld [vmem:[%s11319_s3 + $0x8] sm:$0xff] }
0x125e   :  { %6760 = vmatmul.msk.f32.gmra.mxu1 %vm74_vm0, %v5420_v40  ;;  %v5424_v61 = vsel %vm617_vm14, %v10455_v9, %v5384_v30  ;;  %v5556_v40 = vld [vmem:[%s11319_s3 + $0x10] sm:$0xff]  ;;  %v5563_v30 = vld [vmem:[%s11319_s3 + $0x48] sm:$0xff] }
0x1264   :  { %v5378_v59 = vpop.permute.xlu1 %5377 }
0x1265   :  { %v5421_v16 = vsel %vm617_vm14, %v10439_v5, %v5378_v59  ;;  %v5557_v59 = vld [vmem:[%s11319_s3 + $0x18] sm:$0xff] }
0x1266   :  { %6761 = vmatmul.msk.f32.gmra.mxu1 %vm74_vm0, %v5421_v16  ;;  %v5558_v16 = vld [vmem:[%s11319_s3 + $0x20] sm:$0xff] }
0x1269   :  { %v5380_v18 = vpop.permute.xlu0 %5379 }
0x126a   :  { %v5422_v55 = vsel %vm617_vm14, %v10449_v2, %v5380_v18  ;;  %v5559_v18 = vld [vmem:[%s11319_s3 + $0x28] sm:$0xff] }
0x126c   :  { %v5382_v38 = vpop.permute.xlu1 %5381 }
0x126d   :  { %v5423_v29 = vsel %vm617_vm14, %v10446_v62, %v5382_v38  ;;  %v5561_v38 = vld [vmem:[%s11319_s3 + $0x38] sm:$0xff] }
0x126e   :  { %6762 = vmatmul.msk.f32.gmra.mxu1 %vm74_vm0, %v5422_v55  ;;  %v5560_v55 = vld [vmem:[%s11319_s3 + $0x30] sm:$0xff] }
0x1276   :  { %6763 = vmatmul.msk.f32.gmra.mxu1 %vm74_vm0, %v5423_v29  ;;  %v5562_v29 = vld [vmem:[%s11319_s3 + $0x40] sm:$0xff] }
0x1279   :  { %v5390_v62 = vpop.permute.xlu2 %5389 }
0x127a   :  { %v5427_v32 = vsel %vm617_vm14, %v10453_v1, %v5390_v62  ;;  %v5569_v62 = vld [vmem:[%s11319_s3 + $0x78] sm:$0xff] }
0x127b   :  { %v5386_v5 = vpop.permute.xlu0 %5385 }
0x127c   :  { %v5425_v60 = vsel %vm617_vm14, %v10495_v44, %v5386_v5  ;;  %v5565_v5 = vld [vmem:[%s11319_s3 + $0x58] sm:$0xff] }
0x127e   :  { %6764 = vmatmul.msk.f32.gmra.mxu1 %vm74_vm0, %v5424_v61  ;;  %v5564_v61 = vld [vmem:[%s11319_s3 + $0x50] sm:$0xff] }
0x1286   :  { %6765 = vmatmul.msk.f32.gmra.mxu1 %vm74_vm0, %v5425_v60  ;;  %v5566_v60 = vld [vmem:[%s11319_s3 + $0x60] sm:$0xff] }
0x129f   :  { %v5388_v2 = vpop.permute.xlu1 %5387 }
0x12a0   :  { %v5426_v8 = vsel %vm617_vm14, %v10497_v15, %v5388_v2  ;;  %v5567_v2 = vld [vmem:[%s11319_s3 + $0x68] sm:$0xff] }
0x12a1   :  { %6766 = vmatmul.msk.f32.gmra.mxu1 %vm74_vm0, %v5426_v8  ;;  %v5568_v8 = vld [vmem:[%s11319_s3 + $0x70] sm:$0xff] }
0x12a9   :  { %6767 = vmatmul.msk.f32.gmra.mxu1 %vm74_vm0, %v5427_v32 }
0x12aa   :  { %v5312_v9 = vpop.f32.mrf.mxu3 }
0x12ab   :  { %5393 = vrot.lane.b32.xlu1 %v5312_v9, %s7480_s29  ;;  %v11438_v9 = vld [vmem:[#allocation18_spill] sm:$0xff] }
0x12ac   :  { %v5347_v0 = vpop.f32.mrf.mxu0 }
0x12ad   :  { %5397 = vrot.lane.b32.xlu0 %v5347_v0, %s7480_s29  ;;  %v5392_v44 = vpop.permute.xlu0 %5391 }
0x12ae   :  { %v5428_v4 = vsel %vm617_vm14, %v10459_v43, %v5392_v44 }
0x12b1   :  { %6768 = vmatmul.msk.f32.gmra.mxu1 %vm74_vm0, %v5428_v4 }
0x12b2   :  { %v5315_v15 = vpop.f32.mrf.mxu3 }
0x12b3   :  { %5395 = vrot.lane.b32.xlu2 %v5315_v15, %s7480_s29  ;;  %v11439_v15 = vld [vmem:[#allocation9_spill] sm:$0xff] }
0x12b4   :  { %v5350_v31 = vpop.f32.mrf.mxu0 }
0x12b5   :  { %5399 = vrot.lane.b32.xlu1 %v5350_v31, %s7480_s29 }
0x12b7   :  { %v5506_v43 = vpop.f32.mrf.mxu1 }
0x12b8   :  { %v5507_v46 = vadd.f32 %v7001_v23, %v5506_v43 }
0x12bf   :  { %v5509_v10 = vpop.f32.mrf.mxu1 }
0x12c0   :  { %v5510_v28 = vadd.f32 %v7001_v23, %v5509_v10 }
0x12c7   :  { %v5512_v41 = vpop.f32.mrf.mxu1 }
0x12c8   :  { %v5513_v19 = vadd.f32 %v7001_v23, %v5512_v41  ;;  %v11442_v41 = vld [vmem:[#allocation8_spill] sm:$0xff] }
0x12db   :  { %v5515_v34 = vpop.f32.mrf.mxu1 }
0x12dc   :  { %v5516_v11 = vadd.f32 %v7001_v23, %v5515_v34 }
0x12e3   :  { %v5518_v24 = vpop.f32.mrf.mxu1 }
0x12e4   :  { %v5519_v27 = vadd.f32 %v7001_v23, %v5518_v24 }
0x130d   :  { %v5396_v63 = vpop.permute.xlu2 %5395 }
0x130e   :  { %v5430_v50 = vsel %vm617_vm14, %v10471_v7, %v5396_v63  ;;  %v5521_v7 = vpop.f32.mrf.mxu1  ;;  %v11440_v63 = vld [vmem:[#allocation15_spill] sm:$0xff] }
0x130f   :  { %v5522_v3 = vadd.f32 %v7001_v23, %v5521_v7 }
0x1316   :  { %v5524_v49 = vpop.f32.mrf.mxu1 }
0x1317   :  { %v5525_v52 = vadd.f32 %v7001_v23, %v5524_v49  ;;  %v11443_v49 = vld [vmem:[#allocation13_spill] sm:$0xff] }
0x131d   :  { %v5394_v1 = vpop.permute.xlu1 %5393 }
0x131e   :  { %v5429_v14 = vsel %vm617_vm14, %v10461_v35, %v5394_v1  ;;  %v5527_v6 = vpop.f32.mrf.mxu1 }
0x131f   :  { %6769 = vmatmul.msk.f32.gmra.mxu1 %vm74_vm0, %v5429_v14  ;;  %v5398_v53 = vpop.permute.xlu0 %5397  ;;  %v5528_v20 = vadd.f32 %v7001_v23, %v5527_v6 }
0x1320   :  { %v5431_v17 = vsel %vm617_vm14, %v10499_v25, %v5398_v53 }
0x1326   :  { %v5530_v33 = vpop.f32.mrf.mxu1 }
0x1327   :  { %6770 = vmatmul.msk.f32.gmra.mxu1 %vm74_vm0, %v5430_v50  ;;  %v5400_v22 = vpop.permute.xlu1 %5399  ;;  %v5531_v54 = vadd.f32 %v7001_v23, %v5530_v33 }
0x1328   :  { %v5432_v35 = vsel %vm617_vm14, %v10501_v21, %v5400_v22 }
0x132e   :  { %v5533_v36 = vpop.f32.mrf.mxu1 }
0x132f   :  { %6771 = vmatmul.msk.f32.gmra.mxu1 %vm74_vm0, %v5431_v17  ;;  %v5534_v26 = vadd.f32 %v7001_v23, %v5533_v36  ;;  %v11441_v17 = vld [vmem:[#allocation17_spill] sm:$0xff] }
0x1336   :  { %v5536_v13 = vpop.f32.mrf.mxu1 }
0x1337   :  { %6772 = vmatmul.msk.f32.gmra.mxu1 %vm74_vm0, %v5432_v35  ;;  %v5537_v45 = vadd.f32 %v7001_v23, %v5536_v13  ;;  %v11444_v13 = vld [vmem:[#allocation16_spill] sm:$0xff] }
0x133e   :  { %v5539_v12 = vpop.f32.mrf.mxu1 }
0x133f   :  { %v5540_v56 = vadd.f32 %v7001_v23, %v5539_v12 }
0x139c   :  { %v5542_v25 = vpop.f32.mrf.mxu1 }
0x139d   :  { %v5543_v57 = vadd.f32 %v7001_v23, %v5542_v25 }
0x13a4   :  { %v5545_v58 = vpop.f32.mrf.mxu1 }
0x13a5   :  { %v5546_v37 = vadd.f32 %v7001_v23, %v5545_v58 }
0x13ac   :  { %v5548_v47 = vpop.f32.mrf.mxu1 }
0x13ad   :  { %v5549_v48 = vadd.f32 %v7001_v23, %v5548_v47 }
0x13b4   :  { %v5551_v21 = vpop.f32.mrf.mxu1 }
0x13b5   :  { %v5552_v42 = vadd.f32 %v7001_v23, %v5551_v21  ;;  %v11445_v23 = vld [vmem:[#allocation2_spill] sm:$0xff] }
0x13b7   :  { %5570 = vmatpush.msrb.mxu2 %v5552_v42 }
0x13b9   :  { %5571 = vmatpush.msrb.mxu2 %v5549_v48 }
0x13bb   :  { %5572 = vmatpush.msrb.mxu2 %v5546_v37 }
0x13bd   :  { %5573 = vmatpush.msrb.mxu2 %v5543_v57 }
0x13bf   :  { %5574 = vmatpush.msrb.mxu2 %v5540_v56 }
0x13c1   :  { %5575 = vmatpush.msrb.mxu2 %v5537_v45 }
0x13c3   :  { %5576 = vmatpush.msrb.mxu2 %v5534_v26  ;;  %v11446_v26 = vld [vmem:[#allocation7_spill] sm:$0xff] }
0x13c5   :  { %5577 = vmatpush.msrb.mxu2 %v5531_v54 }
0x13c7   :  { %5578 = vmatpush.msrb.mxu2 %v5528_v20 }
0x13c9   :  { %5579 = vmatpush.msrb.mxu2 %v5525_v52 }
0x13cb   :  { %5580 = vmatpush.msrb.mxu2 %v5522_v3 }
0x13cd   :  { %5581 = vmatpush.msrb.mxu2 %v5519_v27 }
0x13cf   :  { %5582 = vmatpush.msrb.mxu2 %v5516_v11 }
0x13d1   :  { %5583 = vmatpush.msrb.mxu2 %v5513_v19 }
0x13d3   :  { %5584 = vmatpush.msrb.mxu2 %v5510_v28 }
0x13d5   :  { %5585 = vmatpush.msrb.mxu2 %v5507_v46  ;;  %v11447_v46 = vld [vmem:[#allocation11_spill] sm:$0xff] }
0x13d6   :  { %5586 = vmatmul.f32.vlgmr.msrb.gmra.mxu2 %v5554_v39 }
0x13de   :  { %5589 = vmatmul.f32.gmra.mxu2 %v5555_v51 }
0x13e6   :  { %5592 = vmatmul.f32.gmra.mxu2 %v5556_v40 }
0x13ee   :  { %5595 = vmatmul.f32.gmra.mxu2 %v5557_v59 }
0x13f6   :  { %5598 = vmatmul.f32.gmra.mxu2 %v5558_v16 }
0x13fe   :  { %5601 = vmatmul.f32.gmra.mxu2 %v5559_v18 }
0x1406   :  { %5604 = vmatmul.f32.gmra.mxu2 %v5560_v55 }
0x140e   :  { %5607 = vmatmul.f32.gmra.mxu2 %v5561_v38 }
0x1416   :  { %5610 = vmatmul.f32.gmra.mxu2 %v5562_v29  ;;  %v11448_v29 = vld [vmem:[#allocation14_spill] sm:$0xff] }
0x141e   :  { %5613 = vmatmul.f32.gmra.mxu2 %v5563_v30 }
0x1426   :  { %5616 = vmatmul.f32.gmra.mxu2 %v5564_v61 }
0x142e   :  { %5619 = vmatmul.f32.gmra.mxu2 %v5565_v5 }
0x1436   :  { %5622 = vmatmul.f32.gmra.mxu2 %v5566_v60 }
0x143e   :  { %5625 = vmatmul.f32.gmra.mxu2 %v5567_v2 }
0x1446   :  { %5628 = vmatmul.f32.gmra.mxu2 %v5568_v8 }
0x144e   :  { %5631 = vmatmul.f32.gmra.mxu2 %v5569_v62 }
0x1459   :  { %v5587_v32 = vpop.f32.mrf.mxu2 }
0x145a   :  { %v10821_v0 = vadd.f32 %v5587_v32, %v11438_v9  ;;  %v11449_v32 = vld [vmem:[#allocation4_spill] sm:$0xff] }
0x145c   :  { %v5655_v44 = vsel %vm74_vm0, %v10821_v0, 0.0 }
0x145d   :  { %5656 = vadd.xlane.f32.xlu2 %v5655_v44 }
0x1461   :  { %v5590_v4 = vpop.f32.mrf.mxu2 }
0x1462   :  { %v10826_v31 = vadd.f32 %v5590_v4, %v11439_v15 }
0x1464   :  { %v5658_v1 = vsel %vm74_vm0, %v10826_v31, 0.0 }
0x1465   :  { %5659 = vadd.xlane.f32.xlu0 %v5658_v1 }
0x1469   :  { %v5593_v14 = vpop.f32.mrf.mxu2 }
0x146a   :  { %v10831_v50 = vadd.f32 %v5593_v14, %v11440_v63 }
0x146c   :  { %v5661_v43 = vsel %vm74_vm0, %v10831_v50, 0.0 }
0x146d   :  { %5662 = vadd.xlane.f32.xlu1 %v5661_v43 }
0x1471   :  { %v5596_v53 = vpop.f32.mrf.mxu2 }
0x1472   :  { %v10836_v22 = vadd.f32 %v5596_v53, %v11441_v17  ;;  %v11450_v53 = vld [vmem:[#allocation3_spill] sm:$0xff] }
0x1474   :  { %v5664_v10 = vsel %vm74_vm0, %v10836_v22, 0.0 }
0x1475   :  { %5665 = vadd.xlane.f32.xlu2 %v5664_v10 }
0x1479   :  { %v5599_v35 = vpop.f32.mrf.mxu2 }
0x147a   :  { %v10841_v34 = vadd.f32 %v5599_v35, %v11442_v41 }
0x147c   :  { %v5667_v24 = vsel %vm74_vm0, %v10841_v34, 0.0 }
0x147d   :  { %5668 = vadd.xlane.f32.xlu0 %v5667_v24 }
0x1481   :  { %v5602_v7 = vpop.f32.mrf.mxu2 }
0x1482   :  { %v10846_v6 = vadd.f32 %v5602_v7, %v11443_v49 }
0x1484   :  { %v5670_v33 = vsel %vm74_vm0, %v10846_v6, 0.0 }
0x1485   :  { %5671 = vadd.xlane.f32.xlu2 %v5670_v33 }
0x1489   :  { %v5605_v36 = vpop.f32.mrf.mxu2 }
0x148a   :  { %v10851_v12 = vadd.f32 %v5605_v36, %v11444_v13  ;;  %v11451_v36 = vld [vmem:[#allocation5_spill] sm:$0xff] }
0x148c   :  { %v5673_v25 = vsel %vm74_vm0, %v10851_v12, 0.0 }
0x148d   :  { %5674 = vadd.xlane.f32.xlu0 %v5673_v25 }
0x1491   :  { %v5608_v58 = vpop.f32.mrf.mxu2 }
0x1492   :  { %v10864_v54 = vadd.f32 %v5608_v58, %v11446_v26  ;;  %v6775_v26 = vld [vmem:[%s11313_s13 + $0x10] sm:$0xff] }
0x1494   :  { %v5676_v27 = vsel %vm74_vm0, %v10864_v54, 0.0 }
0x1499   :  { %v5611_v37 = vpop.f32.mrf.mxu2 }
0x149a   :  { %v10876_v39 = vadd.f32 %v5611_v37, %v11447_v46  ;;  %v11452_v37 = vld [vmem:[#allocation6_spill] sm:$0xff] }
0x149c   :  { %v5679_v16 = vsel %vm74_vm0, %v10876_v39, 0.0 }
0x14a1   :  { %v5614_v11 = vpop.f32.mrf.mxu2 }
0x14a2   :  { %v10888_v30 = vadd.f32 %v5614_v11, %v11448_v29 }
0x14a4   :  { %v5682_v2 = vsel %vm74_vm0, %v10888_v30, 0.0 }
0x14a9   :  { %v5617_v38 = vpop.f32.mrf.mxu2 }
0x14aa   :  { %v10900_v9 = vadd.f32 %v5617_v38, %v11449_v32 }
0x14ac   :  { %v5685_v14 = vsel %vm74_vm0, %v10900_v9, 0.0 }
0x14b1   :  { %v5620_v4 = vpop.f32.mrf.mxu2 }
0x14b2   :  { %v10912_v17 = vadd.f32 %v5620_v4, %v11450_v53 }
0x14b4   :  { %v5688_v7 = vsel %vm74_vm0, %v10912_v17, 0.0 }
0x14b9   :  { %v5623_v41 = vpop.f32.mrf.mxu2 }
0x14ba   :  { %v10924_v13 = vadd.f32 %v5623_v41, %v11451_v36  ;;  %v10965_v41 = vld [vmem:[%s11311_s11 + $0x1] ss:$0 sm:$0xff] }
0x14bb   :  { %v10972_v36 = vld [vmem:[%s11312_s12 + $0x1] ss:$0 sm:$0xff] }
0x14d0   :  { %v5657_v47 = vpop.xlane.xlu2 %5656 }
0x14d1   :  { %v5703_v21 = vmul.f32 %v5657_v47, %v11445_v23 }
0x14d3   :  { %v10857_v42 = vsub.f32 %v10821_v0, %v5703_v21  ;;  %v5691_v21 = vsel %vm74_vm0, %v10924_v13, 0.0 }
0x14d5   :  { %v5735_v48 = vmul.f32 %v10857_v42, %v10857_v42 }
0x14d7   :  { %v5751_v57 = vsel %vm74_vm0, %v5735_v48, 0.0  ;;  %v5626_v48 = vpop.f32.mrf.mxu2 }
0x14d8   :  { %v5660_v56 = vpop.xlane.xlu0 %5659  ;;  %5752 = vadd.xlane.f32.xlu1 %v5751_v57  ;;  %v10935_v57 = vadd.f32 %v5626_v48, %v11452_v37 }
0x14d9   :  { %v5704_v45 = vmul.f32 %v5660_v56, %v11445_v23 }
0x14da   :  { %v5694_v56 = vsel %vm74_vm0, %v10935_v57, 0.0 }
0x14db   :  { %v10867_v20 = vsub.f32 %v10826_v31, %v5704_v45  ;;  %v6776_v45 = vld [vmem:[%s11313_s13 + $0x18] sm:$0xff] }
0x14dc   :  { %6115 = vmatpush.msrb.mxu3 %v6776_v45 }
0x14dd   :  { %v5736_v52 = vmul.f32 %v10867_v20, %v10867_v20 }
0x14de   :  { %6116 = vmatpush.msrb.mxu3 %v6775_v26 }
0x14df   :  { %v5754_v3 = vsel %vm74_vm0, %v5736_v52, 0.0 }
0x14e0   :  { %v5663_v19 = vpop.xlane.xlu1 %5662  ;;  %5755 = vadd.xlane.f32.xlu2 %v5754_v3  ;;  %5677 = vadd.xlane.f32.xlu1 %v5676_v27 }
0x14e1   :  { %v5705_v28 = vmul.f32 %v5663_v19, %v11445_v23 }
0x14e3   :  { %v10879_v51 = vsub.f32 %v10831_v50, %v5705_v28 }
0x14e5   :  { %v5737_v40 = vmul.f32 %v10879_v51, %v10879_v51 }
0x14e7   :  { %v5757_v59 = vsel %vm74_vm0, %v5737_v40, 0.0 }
0x14e8   :  { %v5666_v18 = vpop.xlane.xlu2 %5665  ;;  %5758 = vadd.xlane.f32.xlu0 %v5757_v59  ;;  %5680 = vadd.xlane.f32.xlu2 %v5679_v16 }
0x14e9   :  { %v5706_v55 = vmul.f32 %v5666_v18, %v11445_v23 }
0x14eb   :  { %v10891_v61 = vsub.f32 %v10836_v22, %v5706_v55  ;;  %v5629_v55 = vpop.f32.mrf.mxu2 }
0x14ed   :  { %v5738_v5 = vmul.f32 %v10891_v61, %v10891_v61 }
0x14ef   :  { %v5760_v60 = vsel %vm74_vm0, %v5738_v5, 0.0 }
0x14f0   :  { %v5669_v8 = vpop.xlane.xlu0 %5668  ;;  %5761 = vadd.xlane.f32.xlu1 %v5760_v60  ;;  %5683 = vadd.xlane.f32.xlu0 %v5682_v2 }
0x14f1   :  { %v5707_v62 = vmul.f32 %v5669_v8, %v11445_v23 }
0x14f3   :  { %v10903_v44 = vsub.f32 %v10841_v34, %v5707_v62 }
0x14f5   :  { %v5739_v15 = vmul.f32 %v10903_v44, %v10903_v44 }
0x14f7   :  { %v5763_v1 = vsel %vm74_vm0, %v5739_v15, 0.0 }
0x14f8   :  { %v5672_v63 = vpop.xlane.xlu2 %5671  ;;  %5764 = vadd.xlane.f32.xlu2 %v5763_v1  ;;  %5686 = vadd.xlane.f32.xlu1 %v5685_v14  ;;  %v11453_v1 = vld [vmem:[#allocation10_spill] sm:$0xff] }
0x14f9   :  { %v5708_v43 = vmul.f32 %v5672_v63, %v11445_v23  ;;  %v10957_v14 = vadd.f32 %v5629_v55, %v11453_v1 }
0x14fb   :  { %v10915_v10 = vsub.f32 %v10846_v6, %v5708_v43 }
0x14fd   :  { %v5740_v35 = vmul.f32 %v10915_v10, %v10915_v10 }
0x14ff   :  { %v5766_v24 = vsel %vm74_vm0, %v5740_v35, 0.0 }
0x1500   :  { %v5675_v49 = vpop.xlane.xlu0 %5674  ;;  %5767 = vadd.xlane.f32.xlu0 %v5766_v24  ;;  %5689 = vadd.xlane.f32.xlu2 %v5688_v7 }
0x1501   :  { %v5709_v33 = vmul.f32 %v5675_v49, %v11445_v23 }
0x1503   :  { %v10927_v25 = vsub.f32 %v10851_v12, %v5709_v33  ;;  %v5632_v33 = vpop.f32.mrf.mxu2 }
0x1505   :  { %v5741_v58 = vmul.f32 %v10927_v25, %v10927_v25 }
0x1507   :  { %v5769_v47 = vsel %vm74_vm0, %v5741_v58, 0.0 }
0x1508   :  { %5770 = vadd.xlane.f32.xlu1 %v5769_v47  ;;  %5692 = vadd.xlane.f32.xlu0 %v5691_v21  ;;  %v5697_v21 = vsel %vm74_vm0, %v10957_v14, 0.0 }
0x1510   :  { %5695 = vadd.xlane.f32.xlu1 %v5694_v56 }
0x154b   :  { %v5753_v52 = vpop.xlane.xlu1 %5752 }
0x154c   :  { %v5799_v3 = vmul.f32 %v5753_v52, %v11445_v23 }
0x154e   :  { %v5815_v27 = vadd.f32 1e-05, %v5799_v3 }
0x1550   :  { %7392 = vrsqrt.f32 %v5815_v27  ;;  %vm5837_vm9 = vweird.f32 %v5815_v27 }
0x1553   :  { %v5756_v11 = vpop.xlane.xlu2 %5755  ;;  %v5678_v19 = vpop.xlane.xlu1 %5677 }
0x1554   :  { %v5800_v28 = vmul.f32 %v5756_v11, %v11445_v23  ;;  %v5710_v46 = vmul.f32 %v5678_v19, %v11445_v23 }
0x1556   :  { %v7393_v40 = vpop.eup %7392  ;;  %v5816_v59 = vadd.f32 1e-05, %v5800_v28  ;;  %v10949_v16 = vsub.f32 %v10864_v54, %v5710_v46 }
0x1557   :  { %v5832_v18 = vmul.f32 %v7393_v40, %v5815_v27  ;;  %vm5838_vm14 = vweird.f32 %v7393_v40 }
0x1558   :  { %7394 = vrsqrt.f32 %v5816_v59  ;;  %v5742_v38 = vmul.f32 %v10949_v16, %v10949_v16  ;;  %vm5839_vm10 = vmor %vm5837_vm9, %vm5838_vm14  ;;  %vm5847_vm13 = vweird.f32 %v5816_v59 }
0x1559   :  { %v5833_v29 = vmul.f32 %v7393_v40, %v5832_v18 }
0x155a   :  { %v5772_v5 = vsel %vm74_vm0, %v5742_v38, 0.0 }
0x155b   :  { %v5834_v60 = vmul.f32 0.5, %v5833_v29  ;;  %v5759_v2 = vpop.xlane.xlu0 %5758  ;;  %v5681_v8 = vpop.xlane.xlu2 %5680  ;;  %5773 = vadd.xlane.f32.xlu2 %v5772_v5 }
0x155c   :  { %v5801_v62 = vmul.f32 %v5759_v2, %v11445_v23  ;;  %v5711_v32 = vmul.f32 %v5681_v8, %v11445_v23 }
0x155d   :  { %v5835_v4 = vsub.f32 1.5, %v5834_v60 }
0x155e   :  { %v7395_v15 = vpop.eup %7394  ;;  %v5817_v63 = vadd.f32 1e-05, %v5801_v62  ;;  %v10960_v43 = vsub.f32 %v10876_v39, %v5711_v32 }
0x155f   :  { %v5836_v53 = vmul.f32 %v7393_v40, %v5835_v4  ;;  %v5842_v35 = vmul.f32 %v7395_v15, %v5816_v59  ;;  %vm5848_vm12 = vweird.f32 %v7395_v15 }
0x1560   :  { %7396 = vrsqrt.f32 %v5817_v63  ;;  %v5743_v24 = vmul.f32 %v10960_v43, %v10960_v43  ;;  %vm5849_vm15 = vmor %vm5847_vm13, %vm5848_vm12  ;;  %vm5857_vm2 = vweird.f32 %v5817_v63 }
0x1561   :  { %v5840_v7 = vsel %vm5839_vm10, %v7393_v40, %v5836_v53  ;;  %v5843_v49 = vmul.f32 %v7395_v15, %v5842_v35 }
0x1562   :  { %v5991_v58 = vmul.f32 %v5840_v7, %v10857_v42  ;;  %v5775_v47 = vsel %vm74_vm0, %v5743_v24, 0.0  ;;  %v11454_v42 = vld [vmem:[#allocation12_spill] sm:$0xff] }
0x1563   :  { %v5844_v48 = vmul.f32 0.5, %v5843_v49  ;;  %v5762_v37 = vpop.xlane.xlu1 %5761  ;;  %v5684_v56 = vpop.xlane.xlu0 %5683  ;;  %5776 = vadd.xlane.f32.xlu0 %v5775_v47  ;;  %5698 = vadd.xlane.f32.xlu2 %v5697_v21  ;;  %v10982_v11 = vadd.f32 %v5632_v33, %v11454_v42 }
0x1564   :  { %v6010_v45 = vmul.f32 %v10965_v41, %v5991_v58  ;;  %v5802_v26 = vmul.f32 %v5762_v37, %v11445_v23  ;;  %v5712_v52 = vmul.f32 %v5684_v56, %v11445_v23 }
0x1565   :  { %v5845_v3 = vsub.f32 1.5, %v5844_v48  ;;  %v5700_v2 = vsel %vm74_vm0, %v10982_v11, 0.0 }
0x1566   :  { %v7397_v27 = vpop.eup %7396  ;;  %v6029_v19 = vadd.f32 %v10972_v36, %v6010_v45  ;;  %v5818_v28 = vadd.f32 1e-05, %v5802_v26  ;;  %v10986_v46 = vsub.f32 %v10888_v30, %v5712_v52 }
0x1567   :  { %v5846_v40 = vmul.f32 %v7395_v15, %v5845_v3  ;;  %v5852_v18 = vmul.f32 %v7397_v27, %v5817_v63  ;;  %vm5858_vm1 = vweird.f32 %v7397_v27 }
0x1568   :  { %7398 = vrsqrt.f32 %v5818_v28  ;;  %6778 = vmatmul.msk.f32.vlgmr.msrb.gmra.mxu3 %vm74_vm0, %v6029_v19  ;;  %v5744_v55 = vmul.f32 %v10986_v46, %v10986_v46  ;;  %vm5859_vm3 = vmor %vm5857_vm2, %vm5858_vm1  ;;  %vm5867_vm5 = vweird.f32 %v5818_v28 }
0x1569   :  { %v5850_v38 = vsel %vm5849_vm15, %v7395_v15, %v5846_v40  ;;  %v5853_v29 = vmul.f32 %v7397_v27, %v5852_v18 }
0x156a   :  { %v5992_v5 = vmul.f32 %v5850_v38, %v10867_v20  ;;  %v5778_v60 = vsel %vm74_vm0, %v5744_v55, 0.0 }
0x156b   :  { %v5854_v8 = vmul.f32 0.5, %v5853_v29  ;;  %v5765_v62 = vpop.xlane.xlu2 %5764  ;;  %v5687_v59 = vpop.xlane.xlu1 %5686  ;;  %5779 = vadd.xlane.f32.xlu1 %v5778_v60  ;;  %5701 = vadd.xlane.f32.xlu0 %v5700_v2 }
0x156c   :  { %v5803_v32 = vmul.f32 %v5765_v62, %v11445_v23  ;;  %v5713_v4 = vmul.f32 %v5687_v59, %v11445_v23  ;;  %v6011_v1 = vmul.f32 %v10965_v41, %v5992_v5 }
0x156d   :  { %v5855_v15 = vsub.f32 1.5, %v5854_v8 }
0x156e   :  { %v7399_v53 = vpop.eup %7398  ;;  %v5819_v20 = vadd.f32 1e-05, %v5803_v32  ;;  %v10999_v35 = vsub.f32 %v10900_v9, %v5713_v4  ;;  %v6030_v24 = vadd.f32 %v10972_v36, %v6011_v1 }
0x156f   :  { %v5856_v7 = vmul.f32 %v7397_v27, %v5855_v15  ;;  %v5862_v49 = vmul.f32 %v7399_v53, %v5818_v28  ;;  %vm5868_vm4 = vweird.f32 %v7399_v53 }
0x1570   :  { %7400 = vrsqrt.f32 %v5819_v20  ;;  %6779 = vmatmul.msk.f32.gmra.mxu3 %vm74_vm0, %v6030_v24  ;;  %v5745_v33 = vmul.f32 %v10999_v35, %v10999_v35  ;;  %vm5869_vm6 = vmor %vm5867_vm5, %vm5868_vm4  ;;  %vm5877_vm8 = vweird.f32 %v5819_v20 }
0x1571   :  { %v5860_v58 = vsel %vm5859_vm3, %v7397_v27, %v5856_v7  ;;  %v5863_v47 = vmul.f32 %v7399_v53, %v5862_v49 }
0x1572   :  { %v5993_v21 = vmul.f32 %v5860_v58, %v10879_v51  ;;  %v5781_v48 = vsel %vm74_vm0, %v5745_v33, 0.0 }
0x1573   :  { %v5864_v37 = vmul.f32 0.5, %v5863_v47  ;;  %v5768_v56 = vpop.xlane.xlu0 %5767  ;;  %v5690_v45 = vpop.xlane.xlu2 %5689  ;;  %5782 = vadd.xlane.f32.xlu2 %v5781_v48 }
0x1574   :  { %v5804_v63 = vmul.f32 %v5768_v56, %v11445_v23  ;;  %v5714_v26 = vmul.f32 %v5690_v45, %v11445_v23  ;;  %v6012_v52 = vmul.f32 %v10965_v41, %v5993_v21 }
0x1575   :  { %v5865_v3 = vsub.f32 1.5, %v5864_v37 }
0x1576   :  { %v7401_v42 = vpop.eup %7400  ;;  %v5820_v19 = vadd.f32 1e-05, %v5804_v63  ;;  %v11011_v27 = vsub.f32 %v10912_v17, %v5714_v26  ;;  %v6031_v51 = vadd.f32 %v10972_v36, %v6012_v52 }
0x1577   :  { %v5866_v40 = vmul.f32 %v7399_v53, %v5865_v3  ;;  %v5872_v18 = vmul.f32 %v7401_v42, %v5819_v20  ;;  %vm5878_vm7 = vweird.f32 %v7401_v42 }
0x1578   :  { %7402 = vrsqrt.f32 %v5820_v19  ;;  %6780 = vmatmul.msk.f32.gmra.mxu3 %vm74_vm0, %v6031_v51  ;;  %v5746_v55 = vmul.f32 %v11011_v27, %v11011_v27  ;;  %vm5879_vm14 = vmor %vm5877_vm8, %vm5878_vm7  ;;  %vm5887_vm10 = vweird.f32 %v5820_v19 }
0x1579   :  { %v5870_v38 = vsel %vm5869_vm6, %v7399_v53, %v5866_v40  ;;  %v5873_v29 = vmul.f32 %v7401_v42, %v5872_v18 }
0x157a   :  { %v5994_v5 = vmul.f32 %v5870_v38, %v10891_v61  ;;  %v5784_v60 = vsel %vm74_vm0, %v5746_v55, 0.0 }
0x157b   :  { %v5874_v2 = vmul.f32 0.5, %v5873_v29  ;;  %v5771_v8 = vpop.xlane.xlu1 %5770  ;;  %v5693_v62 = vpop.xlane.xlu0 %5692  ;;  %5785 = vadd.xlane.f32.xlu1 %v5784_v60 }
0x157c   :  { %v5805_v28 = vmul.f32 %v5771_v8, %v11445_v23  ;;  %v5715_v59 = vmul.f32 %v5693_v62, %v11445_v23  ;;  %v6013_v32 = vmul.f32 %v10965_v41, %v5994_v5 }
0x157d   :  { %v5875_v4 = vsub.f32 1.5, %v5874_v2 }
0x157e   :  { %v7403_v1 = vpop.eup %7402  ;;  %v5821_v15 = vadd.f32 1e-05, %v5805_v28  ;;  %v11023_v53 = vsub.f32 %v10924_v13, %v5715_v59  ;;  %v6032_v61 = vadd.f32 %v10972_v36, %v6013_v32 }
0x157f   :  { %v5876_v24 = vmul.f32 %v7401_v42, %v5875_v4  ;;  %v5882_v7 = vmul.f32 %v7403_v1, %v5820_v19  ;;  %vm5888_vm9 = vweird.f32 %v7403_v1 }
0x1580   :  { %7404 = vrsqrt.f32 %v5821_v15  ;;  %6781 = vmatmul.msk.f32.gmra.mxu3 %vm74_vm0, %v6032_v61  ;;  %v5747_v49 = vmul.f32 %v11023_v53, %v11023_v53  ;;  %vm5889_vm12 = vmor %vm5887_vm10, %vm5888_vm9  ;;  %vm5897_vm15 = vweird.f32 %v5821_v15 }
0x1581   :  { %v5880_v33 = vsel %vm5879_vm14, %v7401_v42, %v5876_v24  ;;  %v5883_v58 = vmul.f32 %v7403_v1, %v5882_v7  ;;  %v6800_v24 = vld [vmem:[%s11315_s15 + $0x70] sm:$0xff] }
0x1582   :  { %v5995_v47 = vmul.f32 %v5880_v33, %v10903_v44  ;;  %v5787_v21 = vsel %vm74_vm0, %v5747_v49, 0.0 }
0x1583   :  { %v5884_v48 = vmul.f32 0.5, %v5883_v58  ;;  %v5696_v37 = vpop.xlane.xlu1 %5695  ;;  %5788 = vadd.xlane.f32.xlu0 %v5787_v21 }
0x1584   :  { %v5716_v56 = vmul.f32 %v5696_v37, %v11445_v23  ;;  %v6014_v20 = vmul.f32 %v10965_v41, %v5995_v47  ;;  %v6799_v47 = vld [vmem:[%s11315_s15 + $0x68] sm:$0xff]  ;;  %v6798_v37 = vld [vmem:[%s11315_s15 + $0x60] sm:$0xff] }
0x1585   :  { %v5885_v45 = vsub.f32 1.5, %v5884_v48 }
0x1586   :  { %v7405_v63 = vpop.eup %7404  ;;  %v11034_v26 = vsub.f32 %v10935_v57, %v5716_v56  ;;  %v6033_v52 = vadd.f32 %v10972_v36, %v6014_v20 }
0x1587   :  { %v5886_v3 = vmul.f32 %v7403_v1, %v5885_v45  ;;  %v5892_v44 = vmul.f32 %v7405_v63, %v5821_v15  ;;  %vm5898_vm13 = vweird.f32 %v7405_v63  ;;  %v6801_v15 = vld [vmem:[%s11315_s15 + $0x78] sm:$0xff] }
0x1588   :  { %6782 = vmatmul.msk.f32.gmra.mxu3 %vm74_vm0, %v6033_v52  ;;  %v5748_v42 = vmul.f32 %v11034_v26, %v11034_v26  ;;  %vm5899_vm1 = vmor %vm5897_vm15, %vm5898_vm13  ;;  %6380 = vmatpush.msra.mxu0 %v6801_v15  ;;  %v6797_v52 = vld [vmem:[%s11315_s15 + $0x58] sm:$0xff]  ;;  %v11096_v15 = vld [vmem:[%s11314_s14 + $0x1] ss:$0 sm:$0xff] }
0x1589   :  { %v5890_v51 = vsel %vm5889_vm12, %v7403_v1, %v5886_v3  ;;  %v5893_v40 = vmul.f32 %v7405_v63, %v5892_v44 }
0x158a   :  { %v5996_v18 = vmul.f32 %v5890_v51, %v10915_v10  ;;  %v5790_v55 = vsel %vm74_vm0, %v5748_v42, 0.0  ;;  %6381 = vmatpush.msra.mxu0 %v6800_v24  ;;  %v6796_v51 = vld [vmem:[%s11315_s15 + $0x50] sm:$0xff] }
0x158b   :  { %v5894_v38 = vmul.f32 0.5, %v5893_v40  ;;  %5791 = vadd.xlane.f32.xlu2 %v5790_v55 }
0x158c   :  { %v6015_v29 = vmul.f32 %v10965_v41, %v5996_v18  ;;  %6382 = vmatpush.msra.mxu0 %v6799_v47 }
0x158d   :  { %v5895_v5 = vsub.f32 1.5, %v5894_v38 }
0x158e   :  { %v6034_v19 = vadd.f32 %v10972_v36, %v6015_v29  ;;  %6383 = vmatpush.msra.mxu0 %v6798_v37 }
0x158f   :  { %v5896_v60 = vmul.f32 %v7405_v63, %v5895_v5  ;;  %v6795_v5 = vld [vmem:[%s11315_s15 + $0x48] sm:$0xff] }
0x1590   :  { %6783 = vmatmul.msk.f32.gmra.mxu3 %vm74_vm0, %v6034_v19  ;;  %6384 = vmatpush.msra.mxu0 %v6797_v52 }
0x1591   :  { %v5900_v2 = vsel %vm5899_vm1, %v7405_v63, %v5896_v60 }
0x1592   :  { %v5997_v8 = vmul.f32 %v5900_v2, %v10927_v25  ;;  %6385 = vmatpush.msra.mxu0 %v6796_v51 }
0x1594   :  { %v6016_v10 = vmul.f32 %v10965_v41, %v5997_v8  ;;  %6386 = vmatpush.msra.mxu0 %v6795_v5  ;;  %v6794_v8 = vld [vmem:[%s11315_s15 + $0x40] sm:$0xff] }
0x1596   :  { %v6035_v62 = vadd.f32 %v10972_v36, %v6016_v10  ;;  %6387 = vmatpush.msra.mxu0 %v6794_v8 }
0x1598   :  { %6784 = vmatmul.msk.f32.gmra.mxu3 %vm74_vm0, %v6035_v62 }
0x15ce   :  { %v5774_v28 = vpop.xlane.xlu2 %5773 }
0x15cf   :  { %v5806_v59 = vmul.f32 %v5774_v28, %v11445_v23 }
0x15d1   :  { %v5822_v32 = vadd.f32 1e-05, %v5806_v59 }
0x15d3   :  { %7406 = vrsqrt.f32 %v5822_v32  ;;  %vm5907_vm3 = vweird.f32 %v5822_v32 }
0x15d6   :  { %v5777_v4 = vpop.xlane.xlu0 %5776  ;;  %v5699_v1 = vpop.xlane.xlu2 %5698 }
0x15d7   :  { %v5807_v61 = vmul.f32 %v5777_v4, %v11445_v23  ;;  %v5717_v25 = vmul.f32 %v5699_v1, %v11445_v23 }
0x15d9   :  { %v7407_v7 = vpop.eup %7406  ;;  %v5823_v49 = vadd.f32 1e-05, %v5807_v61  ;;  %v11059_v33 = vsub.f32 %v10957_v14, %v5717_v25 }
0x15da   :  { %v5902_v58 = vmul.f32 %v7407_v7, %v5822_v32  ;;  %vm5908_vm2 = vweird.f32 %v7407_v7 }
0x15db   :  { %7408 = vrsqrt.f32 %v5823_v49  ;;  %v5749_v21 = vmul.f32 %v11059_v33, %v11059_v33  ;;  %vm5909_vm4 = vmor %vm5907_vm3, %vm5908_vm2  ;;  %vm5917_vm6 = vweird.f32 %v5823_v49 }
0x15dc   :  { %v5903_v48 = vmul.f32 %v7407_v7, %v5902_v58 }
0x15dd   :  { %v5793_v56 = vsel %vm74_vm0, %v5749_v21, 0.0 }
0x15de   :  { %v5904_v20 = vmul.f32 0.5, %v5903_v48  ;;  %v5780_v45 = vpop.xlane.xlu1 %5779  ;;  %5794 = vadd.xlane.f32.xlu1 %v5793_v56  ;;  %v5702_v63 = vpop.xlane.xlu0 %5701 }
0x15df   :  { %v5808_v3 = vmul.f32 %v5780_v45, %v11445_v23  ;;  %v5718_v44 = vmul.f32 %v5702_v63, %v11445_v23 }
0x15e0   :  { %v5905_v42 = vsub.f32 1.5, %v5904_v20 }
0x15e1   :  { %v7409_v40 = vpop.eup %7408  ;;  %v5824_v18 = vadd.f32 1e-05, %v5808_v3  ;;  %v11079_v55 = vsub.f32 %v10982_v11, %v5718_v44 }
0x15e2   :  { %v5906_v38 = vmul.f32 %v7407_v7, %v5905_v42  ;;  %v5912_v29 = vmul.f32 %v7409_v40, %v5823_v49  ;;  %vm5918_vm5 = vweird.f32 %v7409_v40 }
0x15e3   :  { %7410 = vrsqrt.f32 %v5824_v18  ;;  %v5750_v19 = vmul.f32 %v11079_v55, %v11079_v55  ;;  %vm5919_vm7 = vmor %vm5917_vm6, %vm5918_vm5  ;;  %vm5927_vm14 = vweird.f32 %v5824_v18 }
0x15e4   :  { %v5910_v60 = vsel %vm5909_vm4, %v7407_v7, %v5906_v38  ;;  %v5913_v2 = vmul.f32 %v7409_v40, %v5912_v29 }
0x15e5   :  { %v5998_v10 = vmul.f32 %v5910_v60, %v10949_v16  ;;  %v5796_v62 = vsel %vm74_vm0, %v5750_v19, 0.0 }
0x15e6   :  { %v5914_v28 = vmul.f32 0.5, %v5913_v2  ;;  %v5783_v59 = vpop.xlane.xlu2 %5782  ;;  %5797 = vadd.xlane.f32.xlu0 %v5796_v62 }
0x15e7   :  { %v5809_v32 = vmul.f32 %v5783_v59, %v11445_v23  ;;  %v6017_v4 = vmul.f32 %v10965_v41, %v5998_v10 }
0x15e8   :  { %v5915_v1 = vsub.f32 1.5, %v5914_v28 }
0x15e9   :  { %v7411_v61 = vpop.eup %7410  ;;  %v5825_v25 = vadd.f32 1e-05, %v5809_v32  ;;  %v6036_v16 = vadd.f32 %v10972_v36, %v6017_v4 }
0x15ea   :  { %v5916_v24 = vmul.f32 %v7409_v40, %v5915_v1  ;;  %v5922_v7 = vmul.f32 %v7411_v61, %v5824_v18  ;;  %vm5928_vm8 = vweird.f32 %v7411_v61 }
0x15eb   :  { %7412 = vrsqrt.f32 %v5825_v25  ;;  %v6118_v58 = vpop.f32.mrf.mxu3  ;;  %6785 = vmatmul.msk.f32.gmra.mxu3 %vm74_vm0, %v6036_v16  ;;  %vm5929_vm9 = vmor %vm5927_vm14, %vm5928_vm8  ;;  %vm5937_vm12 = vweird.f32 %v5825_v25 }
0x15ec   :  { %v5920_v47 = vsel %vm5919_vm7, %v7409_v40, %v5916_v24  ;;  %v5923_v21 = vmul.f32 %v7411_v61, %v5922_v7  ;;  %v11101_v48 = vadd.f32 %v11096_v15, %v6118_v58 }
0x15ed   :  { %v5999_v37 = vmul.f32 %v5920_v47, %v10960_v43 }
0x15ee   :  { %v5924_v56 = vmul.f32 0.5, %v5923_v21  ;;  %v6166_v20 = vmul.f32 %v11101_v48, %v11101_v48  ;;  %v5786_v45 = vpop.xlane.xlu1 %5785 }
0x15ef   :  { %v5810_v49 = vmul.f32 %v5786_v45, %v11445_v23  ;;  %v6018_v63 = vmul.f32 %v10965_v41, %v5999_v37 }
0x15f0   :  { %v5925_v52 = vsub.f32 1.5, %v5924_v56  ;;  %v6182_v3 = vmul.f32 %v6166_v20, %v11101_v48 }
0x15f1   :  { %v7413_v44 = vpop.eup %7412  ;;  %v5826_v42 = vadd.f32 1e-05, %v5810_v49  ;;  %v6037_v51 = vadd.f32 %v10972_v36, %v6018_v63 }
0x15f2   :  { %v5926_v40 = vmul.f32 %v7411_v61, %v5925_v52  ;;  %v5932_v43 = vmul.f32 %v7413_v44, %v5825_v25  ;;  %v6198_v38 = vmul.f32 0.044715, %v6182_v3  ;;  %vm5938_vm10 = vweird.f32 %v7413_v44 }
0x15f3   :  { %7414 = vrsqrt.f32 %v5826_v42  ;;  %v6121_v29 = vpop.f32.mrf.mxu3  ;;  %6786 = vmatmul.msk.f32.gmra.mxu3 %vm74_vm0, %v6037_v51  ;;  %vm5939_vm13 = vmor %vm5937_vm12, %vm5938_vm10  ;;  %vm5947_vm1 = vweird.f32 %v5826_v42 }
0x15f4   :  { %v5930_v5 = vsel %vm5929_vm9, %v7411_v61, %v5926_v40  ;;  %v5933_v19 = vmul.f32 %v7413_v44, %v5932_v43  ;;  %v6214_v60 = vadd.f32 %v6198_v38, %v11101_v48  ;;  %v11113_v2 = vadd.f32 %v11096_v15, %v6121_v29 }
0x15f5   :  { %v6000_v8 = vmul.f32 %v5930_v5, %v10986_v46 }
0x15f6   :  { %v5934_v10 = vmul.f32 0.5, %v5933_v19  ;;  %v6230_v62 = vmul.f32 0.7978846, %v6214_v60  ;;  %v6167_v18 = vmul.f32 %v11113_v2, %v11113_v2  ;;  %v5789_v28 = vpop.xlane.xlu0 %5788 }
0x15f7   :  { %v5811_v59 = vmul.f32 %v5789_v28, %v11445_v23  ;;  %v6019_v32 = vmul.f32 %v10965_v41, %v6000_v8 }
0x15f8   :  { %v5935_v4 = vsub.f32 1.5, %v5934_v10  ;;  %7416 = vtanh.f32 %v6230_v62  ;;  %v6183_v1 = vmul.f32 %v6167_v18, %v11113_v2 }
0x15f9   :  { %v7415_v61 = vpop.eup %7414  ;;  %v11121_v16 = vadd.f32 1e-05, %v5811_v59  ;;  %v6038_v46 = vadd.f32 %v10972_v36, %v6019_v32 }
0x15fa   :  { %v5936_v24 = vmul.f32 %v7413_v44, %v5935_v4  ;;  %v5942_v7 = vmul.f32 %v7415_v61, %v5826_v42  ;;  %v6199_v58 = vmul.f32 0.044715, %v6183_v1  ;;  %vm5948_vm15 = vweird.f32 %v7415_v61 }
0x15fb   :  { %7418 = vrsqrt.f32 %v11121_v16  ;;  %v6124_v47 = vpop.f32.mrf.mxu3  ;;  %6787 = vmatmul.msk.f32.gmra.mxu3 %vm74_vm0, %v6038_v46  ;;  %vm5949_vm2 = vmor %vm5947_vm1, %vm5948_vm15  ;;  %vm5957_vm4 = vweird.f32 %v11121_v16 }
0x15fc   :  { %v5940_v21 = vsel %vm5939_vm13, %v7413_v44, %v5936_v24  ;;  %v5943_v37 = vmul.f32 %v7415_v61, %v5942_v7  ;;  %v6215_v56 = vadd.f32 %v6199_v58, %v11113_v2  ;;  %v11128_v20 = vadd.f32 %v11096_v15, %v6124_v47 }
0x15fd   :  { %v6001_v45 = vmul.f32 %v5940_v21, %v10999_v35 }
0x15fe   :  { %v7417_v49 = vpop.eup %7416  ;;  %v5944_v63 = vmul.f32 0.5, %v5943_v37  ;;  %v6231_v25 = vmul.f32 0.7978846, %v6215_v56  ;;  %v6168_v52 = vmul.f32 %v11128_v20, %v11128_v20  ;;  %v5792_v3 = vpop.xlane.xlu2 %5791 }
0x15ff   :  { %v6262_v51 = vadd.f32 1.0, %v7417_v49  ;;  %v5812_v40 = vmul.f32 %v5792_v3, %v11445_v23  ;;  %v6020_v44 = vmul.f32 %v10965_v41, %v6001_v45 }
0x1600   :  { %v5945_v43 = vsub.f32 1.5, %v5944_v63  ;;  %7420 = vtanh.f32 %v6231_v25  ;;  %v6184_v38 = vmul.f32 %v6168_v52, %v11128_v20 }
0x1601   :  { %v7419_v29 = vpop.eup %7418  ;;  %v6278_v5 = vmul.f32 0.5, %v6262_v51  ;;  %v5828_v35 = vadd.f32 1e-05, %v5812_v40  ;;  %v6039_v19 = vadd.f32 %v10972_v36, %v6020_v44 }
0x1602   :  { %v5946_v60 = vmul.f32 %v7415_v61, %v5945_v43  ;;  %v5952_v8 = vmul.f32 %v7419_v29, %v11121_v16  ;;  %v6200_v10 = vmul.f32 0.044715, %v6184_v38  ;;  %vm5958_vm3 = vweird.f32 %v7419_v29 }
0x1603   :  { %v6294_v62 = vmul.f32 %v6278_v5, %v11101_v48  ;;  %7422 = vrsqrt.f32 %v5828_v35  ;;  %v6127_v18 = vpop.f32.mrf.mxu3  ;;  %6788 = vmatmul.msk.f32.gmra.mxu3 %vm74_vm0, %v6039_v19  ;;  %vm5959_vm5 = vmor %vm5957_vm4, %vm5958_vm3  ;;  %vm5967_vm7 = vweird.f32 %v5828_v35 }
0x1604   :  { %v5950_v28 = vsel %vm5949_vm2, %v7415_v61, %v5946_v60  ;;  %v5953_v59 = vmul.f32 %v7419_v29, %v5952_v8  ;;  %v6216_v32 = vadd.f32 %v6200_v10, %v11128_v20  ;;  %v11142_v4 = vadd.f32 %v11096_v15, %v6127_v18 }
0x1605   :  { %v6002_v1 = vmul.f32 %v5950_v28, %v11011_v27  ;;  %6803 = vmatmul.msk.f32.vlgmr.msra.gmra.mxu0 %vm3030_vm11, %v6294_v62 }
0x1606   :  { %v7421_v42 = vpop.eup %7420  ;;  %v5954_v46 = vmul.f32 0.5, %v5953_v59  ;;  %v6232_v24 = vmul.f32 0.7978846, %v6216_v32  ;;  %v6169_v48 = vmul.f32 %v11142_v4, %v11142_v4 }
0x1607   :  { %v6021_v7 = vmul.f32 %v10965_v41, %v6002_v1  ;;  %v6263_v58 = vadd.f32 1.0, %v7421_v42 }
0x1608   :  { %v5955_v61 = vsub.f32 1.5, %v5954_v46  ;;  %7424 = vtanh.f32 %v6232_v24  ;;  %v6185_v47 = vmul.f32 %v6169_v48, %v11142_v4 }
0x1609   :  { %v7423_v21 = vpop.eup %7422  ;;  %v6040_v37 = vadd.f32 %v10972_v36, %v6021_v7  ;;  %v6279_v27 = vmul.f32 0.5, %v6263_v58 }
0x160a   :  { %v5956_v56 = vmul.f32 %v7419_v29, %v5955_v61  ;;  %v5962_v45 = vmul.f32 %v7423_v21, %v5828_v35  ;;  %v6201_v49 = vmul.f32 0.044715, %v6185_v47  ;;  %vm5968_vm6 = vweird.f32 %v7423_v21 }
0x160b   :  { %v6130_v63 = vpop.f32.mrf.mxu3  ;;  %6789 = vmatmul.msk.f32.gmra.mxu3 %vm74_vm0, %v6040_v37  ;;  %v6295_v25 = vmul.f32 %v6279_v27, %v11113_v2  ;;  %vm5969_vm8 = vmor %vm5967_vm7, %vm5968_vm6 }
0x160c   :  { %v5960_v52 = vsel %vm5959_vm5, %v7419_v29, %v5956_v56  ;;  %v5963_v3 = vmul.f32 %v7423_v21, %v5962_v45  ;;  %v6217_v51 = vadd.f32 %v6201_v49, %v11142_v4  ;;  %v6131_v40 = vadd.f32 %v11096_v15, %v6130_v63 }
0x160d   :  { %v6003_v44 = vmul.f32 %v5960_v52, %v11023_v53  ;;  %6804 = vmatmul.msk.f32.gmra.mxu0 %vm3030_vm11, %v6295_v25 }
0x160e   :  { %v7425_v43 = vpop.eup %7424  ;;  %v5964_v16 = vmul.f32 0.5, %v5963_v3  ;;  %v6233_v38 = vmul.f32 0.7978846, %v6217_v51  ;;  %v6170_v5 = vmul.f32 %v6131_v40, %v6131_v40 }
0x160f   :  { %v6022_v19 = vmul.f32 %v10965_v41, %v6003_v44  ;;  %v6264_v60 = vadd.f32 1.0, %v7425_v43 }
0x1610   :  { %v5965_v8 = vsub.f32 1.5, %v5964_v16  ;;  %7426 = vtanh.f32 %v6233_v38  ;;  %v6186_v2 = vmul.f32 %v6170_v5, %v6131_v40 }
0x1611   :  { %v6041_v29 = vadd.f32 %v10972_v36, %v6022_v19  ;;  %v6280_v10 = vmul.f32 0.5, %v6264_v60 }
0x1612   :  { %v5966_v62 = vmul.f32 %v7423_v21, %v5965_v8  ;;  %v6202_v18 = vmul.f32 0.044715, %v6186_v2 }
0x1613   :  { %v6133_v53 = vpop.f32.mrf.mxu3  ;;  %6790 = vmatmul.msk.f32.gmra.mxu3 %vm74_vm0, %v6041_v29  ;;  %v6296_v28 = vmul.f32 %v6280_v10, %v11128_v20 }
0x1614   :  { %v5970_v59 = vsel %vm5969_vm8, %v7423_v21, %v5966_v62  ;;  %v6218_v32 = vadd.f32 %v6202_v18, %v6131_v40  ;;  %v6134_v1 = vadd.f32 %v11096_v15, %v6133_v53 }
0x1615   :  { %v6004_v42 = vmul.f32 %v5970_v59, %v11034_v26  ;;  %6805 = vmatmul.msk.f32.gmra.mxu0 %vm3030_vm11, %v6296_v28 }
0x1616   :  { %v7427_v46 = vpop.eup %7426  ;;  %v6234_v24 = vmul.f32 0.7978846, %v6218_v32  ;;  %v6171_v48 = vmul.f32 %v6134_v1, %v6134_v1 }
0x1617   :  { %v6023_v35 = vmul.f32 %v10965_v41, %v6004_v42  ;;  %v6265_v7 = vadd.f32 1.0, %v7427_v46 }
0x1618   :  { %7428 = vtanh.f32 %v6234_v24  ;;  %v6187_v58 = vmul.f32 %v6171_v48, %v6134_v1 }
0x1619   :  { %v6042_v61 = vadd.f32 %v10972_v36, %v6023_v35  ;;  %v6281_v47 = vmul.f32 0.5, %v6265_v7 }
0x161a   :  { %v6203_v20 = vmul.f32 0.044715, %v6187_v58 }
0x161b   :  { %v6136_v21 = vpop.f32.mrf.mxu3  ;;  %6791 = vmatmul.msk.f32.gmra.mxu3 %vm74_vm0, %v6042_v61  ;;  %v6297_v37 = vmul.f32 %v6281_v47, %v11142_v4 }
0x161c   :  { %v6219_v26 = vadd.f32 %v6203_v20, %v6134_v1  ;;  %v6137_v27 = vadd.f32 %v11096_v15, %v6136_v21 }
0x161d   :  { %6806 = vmatmul.msk.f32.gmra.mxu0 %vm3030_vm11, %v6297_v37 }
0x161e   :  { %v7429_v56 = vpop.eup %7428  ;;  %v6235_v45 = vmul.f32 0.7978846, %v6219_v26  ;;  %v6172_v49 = vmul.f32 %v6137_v27, %v6137_v27 }
0x161f   :  { %v6266_v63 = vadd.f32 1.0, %v7429_v56 }
0x1620   :  { %7430 = vtanh.f32 %v6235_v45  ;;  %v6188_v25 = vmul.f32 %v6172_v49, %v6137_v27 }
0x1621   :  { %v6282_v52 = vmul.f32 0.5, %v6266_v63 }
0x1622   :  { %v6204_v3 = vmul.f32 0.044715, %v6188_v25 }
0x1623   :  { %v6298_v51 = vmul.f32 %v6282_v52, %v6131_v40 }
0x1624   :  { %v6220_v44 = vadd.f32 %v6204_v3, %v6137_v27 }
0x1625   :  { %6807 = vmatmul.msk.f32.gmra.mxu0 %vm3030_vm11, %v6298_v51 }
0x1626   :  { %v7431_v43 = vpop.eup %7430  ;;  %v6236_v16 = vmul.f32 0.7978846, %v6220_v44 }
0x1627   :  { %v6267_v4 = vadd.f32 1.0, %v7431_v43 }
0x1628   :  { %7432 = vtanh.f32 %v6236_v16 }
0x1629   :  { %v6283_v38 = vmul.f32 0.5, %v6267_v4 }
0x162b   :  { %v6299_v5 = vmul.f32 %v6283_v38, %v6134_v1 }
0x162d   :  { %6808 = vmatmul.msk.f32.gmra.mxu0 %vm3030_vm11, %v6299_v5 }
0x162e   :  { %v7433_v19 = vpop.eup %7432 }
0x162f   :  { %v6268_v60 = vadd.f32 1.0, %v7433_v19 }
0x1631   :  { %v6284_v8 = vmul.f32 0.5, %v6268_v60 }
0x1633   :  { %v6300_v2 = vmul.f32 %v6284_v8, %v6137_v27 }
0x1635   :  { %6809 = vmatmul.msk.f32.gmra.mxu0 %vm3030_vm11, %v6300_v2 }
0x1651   :  { %v5795_v29 = vpop.xlane.xlu1 %5794 }
0x1652   :  { %v5813_v40 = vmul.f32 %v5795_v29, %v11445_v23 }
0x1654   :  { %v5829_v10 = vadd.f32 1e-05, %v5813_v40 }
0x1656   :  { %7434 = vrsqrt.f32 %v5829_v10  ;;  %vm5977_vm9 = vweird.f32 %v5829_v10 }
0x1659   :  { %v5798_v62 = vpop.xlane.xlu0 %5797 }
0x165a   :  { %v5814_v18 = vmul.f32 %v5798_v62, %v11445_v23 }
0x165c   :  { %v7435_v53 = vpop.eup %7434  ;;  %v5830_v28 = vadd.f32 1e-05, %v5814_v18 }
0x165d   :  { %v5972_v59 = vmul.f32 %v7435_v53, %v5829_v10  ;;  %vm5978_vm14 = vweird.f32 %v7435_v53 }
0x165e   :  { %7436 = vrsqrt.f32 %v5830_v28  ;;  %vm5979_vm10 = vmor %vm5977_vm9, %vm5978_vm14  ;;  %vm5987_vm13 = vweird.f32 %v5830_v28 }
0x165f   :  { %v5973_v32 = vmul.f32 %v7435_v53, %v5972_v59 }
0x1661   :  { %v5974_v1 = vmul.f32 0.5, %v5973_v32 }
0x1663   :  { %v5975_v42 = vsub.f32 1.5, %v5974_v1 }
0x1664   :  { %v7437_v46 = vpop.eup %7436 }
0x1665   :  { %v5976_v24 = vmul.f32 %v7435_v53, %v5975_v42  ;;  %v5982_v48 = vmul.f32 %v7437_v46, %v5830_v28  ;;  %vm5988_vm12 = vweird.f32 %v7437_v46 }
0x1666   :  { %vm5989_vm15 = vmor %vm5987_vm13, %vm5988_vm12 }
0x1667   :  { %v5980_v35 = vsel %vm5979_vm10, %v7435_v53, %v5976_v24  ;;  %v5983_v7 = vmul.f32 %v7437_v46, %v5982_v48 }
0x1668   :  { %v6005_v58 = vmul.f32 %v5980_v35, %v11059_v33 }
0x1669   :  { %v5984_v61 = vmul.f32 0.5, %v5983_v7 }
0x166a   :  { %v6024_v23 = vmul.f32 %v10965_v41, %v6005_v58 }
0x166b   :  { %v5985_v47 = vsub.f32 1.5, %v5984_v61 }
0x166c   :  { %v6043_v20 = vadd.f32 %v10972_v36, %v6024_v23 }
0x166d   :  { %v5986_v21 = vmul.f32 %v7437_v46, %v5985_v47 }
0x166e   :  { %v6139_v37 = vpop.f32.mrf.mxu3  ;;  %6792 = vmatmul.msk.f32.gmra.mxu3 %vm74_vm0, %v6043_v20 }
0x166f   :  { %v5990_v26 = vsel %vm5989_vm15, %v7437_v46, %v5986_v21  ;;  %v6140_v27 = vadd.f32 %v11096_v15, %v6139_v37 }
0x1670   :  { %v6006_v56 = vmul.f32 %v5990_v26, %v11079_v55 }
0x1671   :  { %v6173_v45 = vmul.f32 %v6140_v27, %v6140_v27 }
0x1672   :  { %v6025_v33 = vmul.f32 %v10965_v41, %v6006_v56  ;;  %v11190_v41 = vld [vmem:[%s11316_s16 + $0x1] ss:$0 sm:$0xff] }
0x1673   :  { %v6189_v49 = vmul.f32 %v6173_v45, %v6140_v27 }
0x1674   :  { %v6044_v63 = vadd.f32 %v10972_v36, %v6025_v33 }
0x1675   :  { %v6205_v25 = vmul.f32 0.044715, %v6189_v49 }
0x1676   :  { %v6142_v52 = vpop.f32.mrf.mxu3  ;;  %6793 = vmatmul.msk.f32.gmra.mxu3 %vm74_vm0, %v6044_v63 }
0x1677   :  { %v6221_v3 = vadd.f32 %v6205_v25, %v6140_v27  ;;  %v6143_v51 = vadd.f32 %v11096_v15, %v6142_v52 }
0x1679   :  { %v6237_v44 = vmul.f32 0.7978846, %v6221_v3  ;;  %v6174_v43 = vmul.f32 %v6143_v51, %v6143_v51 }
0x167b   :  { %7438 = vtanh.f32 %v6237_v44  ;;  %v6190_v16 = vmul.f32 %v6174_v43, %v6143_v51 }
0x167d   :  { %v6206_v4 = vmul.f32 0.044715, %v6190_v16 }
0x167e   :  { %v6145_v38 = vpop.f32.mrf.mxu3 }
0x167f   :  { %v6222_v55 = vadd.f32 %v6206_v4, %v6143_v51  ;;  %v6146_v5 = vadd.f32 %v11096_v15, %v6145_v38 }
0x1681   :  { %v7439_v36 = vpop.eup %7438  ;;  %v6238_v19 = vmul.f32 0.7978846, %v6222_v55  ;;  %v6175_v60 = vmul.f32 %v6146_v5, %v6146_v5 }
0x1682   :  { %v6389_v8 = vpop.f32.mrf.mxu0  ;;  %v6269_v2 = vadd.f32 1.0, %v7439_v36 }
0x1683   :  { %7440 = vtanh.f32 %v6238_v19  ;;  %v6191_v29 = vmul.f32 %v6175_v60, %v6146_v5  ;;  %v6390_v40 = vadd.f32 %v11190_v41, %v6389_v8 }
0x1684   :  { %v6285_v10 = vmul.f32 0.5, %v6269_v2 }
0x1685   :  { %v6207_v62 = vmul.f32 0.044715, %v6191_v29  ;;  %v6437_v18 = vadd.f32 %v6390_v40, %v10821_v0 }
0x1686   :  { %v6148_v53 = vpop.f32.mrf.mxu3  ;;  %v6301_v28 = vmul.f32 %v6285_v10, %v6140_v27 }
0x1687   :  { %v6223_v59 = vadd.f32 %v6207_v62, %v6146_v5  ;;  %6453 = vst.msk [vmem:[%s11320_s17] sm:$0xff] %vm74_vm0, %v6437_v18  ;;  %v6149_v32 = vadd.f32 %v11096_v15, %v6148_v53 }
0x1688   :  { %6810 = vmatmul.msk.f32.gmra.mxu0 %vm3030_vm11, %v6301_v28 }
0x1689   :  { %v7441_v1 = vpop.eup %7440  ;;  %v6239_v42 = vmul.f32 0.7978846, %v6223_v59  ;;  %v6176_v46 = vmul.f32 %v6149_v32, %v6149_v32 }
0x168a   :  { %v6392_v24 = vpop.f32.mrf.mxu0  ;;  %v6270_v48 = vadd.f32 1.0, %v7441_v1 }
0x168b   :  { %7442 = vtanh.f32 %v6239_v42  ;;  %v6192_v35 = vmul.f32 %v6176_v46, %v6149_v32  ;;  %v6393_v0 = vadd.f32 %v11190_v41, %v6392_v24 }
0x168c   :  { %v6286_v7 = vmul.f32 0.5, %v6270_v48 }
0x168d   :  { %v6208_v58 = vmul.f32 0.044715, %v6192_v35  ;;  %v6438_v61 = vadd.f32 %v6393_v0, %v10826_v31 }
0x168e   :  { %v6151_v23 = vpop.f32.mrf.mxu3  ;;  %v6302_v47 = vmul.f32 %v6286_v7, %v6143_v51 }
0x168f   :  { %v6224_v20 = vadd.f32 %v6208_v58, %v6149_v32  ;;  %6454 = vst.msk [vmem:[%s11320_s17 + $0x8] sm:$0xff] %vm74_vm0, %v6438_v61  ;;  %v6152_v21 = vadd.f32 %v11096_v15, %v6151_v23 }
0x1690   :  { %6811 = vmatmul.msk.f32.gmra.mxu0 %vm3030_vm11, %v6302_v47 }
0x1691   :  { %v7443_v37 = vpop.eup %7442  ;;  %v6240_v26 = vmul.f32 0.7978846, %v6224_v20  ;;  %v6177_v27 = vmul.f32 %v6152_v21, %v6152_v21 }
0x1692   :  { %v6395_v56 = vpop.f32.mrf.mxu0  ;;  %v6271_v45 = vadd.f32 1.0, %v7443_v37 }
0x1693   :  { %7444 = vtanh.f32 %v6240_v26  ;;  %v6193_v33 = vmul.f32 %v6177_v27, %v6152_v21  ;;  %v6396_v31 = vadd.f32 %v11190_v41, %v6395_v56 }
0x1694   :  { %v6287_v49 = vmul.f32 0.5, %v6271_v45 }
0x1695   :  { %v6209_v63 = vmul.f32 0.044715, %v6193_v33  ;;  %v6439_v25 = vadd.f32 %v6396_v31, %v10831_v50 }
0x1696   :  { %v6154_v52 = vpop.f32.mrf.mxu3  ;;  %v6303_v3 = vmul.f32 %v6287_v49, %v6146_v5 }
0x1697   :  { %v6225_v51 = vadd.f32 %v6209_v63, %v6152_v21  ;;  %6455 = vst.msk [vmem:[%s11320_s17 + $0x10] sm:$0xff] %vm74_vm0, %v6439_v25  ;;  %v6155_v44 = vadd.f32 %v11096_v15, %v6154_v52 }
0x1698   :  { %6812 = vmatmul.msk.f32.gmra.mxu0 %vm3030_vm11, %v6303_v3 }
0x1699   :  { %v7445_v43 = vpop.eup %7444  ;;  %v6241_v16 = vmul.f32 0.7978846, %v6225_v51  ;;  %v6178_v4 = vmul.f32 %v6155_v44, %v6155_v44 }
0x169a   :  { %v6398_v38 = vpop.f32.mrf.mxu0  ;;  %v6272_v55 = vadd.f32 1.0, %v7445_v43 }
0x169b   :  { %7446 = vtanh.f32 %v6241_v16  ;;  %v6194_v36 = vmul.f32 %v6178_v4, %v6155_v44  ;;  %v6399_v50 = vadd.f32 %v11190_v41, %v6398_v38 }
0x169c   :  { %v6288_v5 = vmul.f32 0.5, %v6272_v55 }
0x169d   :  { %v6210_v19 = vmul.f32 0.044715, %v6194_v36  ;;  %v6440_v60 = vadd.f32 %v6399_v50, %v10836_v22 }
0x169e   :  { %v6157_v8 = vpop.f32.mrf.mxu3  ;;  %v6304_v2 = vmul.f32 %v6288_v5, %v6149_v32 }
0x169f   :  { %v6226_v29 = vadd.f32 %v6210_v19, %v6155_v44  ;;  %6456 = vst.msk [vmem:[%s11320_s17 + $0x18] sm:$0xff] %vm74_vm0, %v6440_v60  ;;  %v6158_v40 = vadd.f32 %v11096_v15, %v6157_v8 }
0x16a0   :  { %6813 = vmatmul.msk.f32.gmra.mxu0 %vm3030_vm11, %v6304_v2 }
0x16a1   :  { %v7447_v10 = vpop.eup %7446  ;;  %v6242_v62 = vmul.f32 0.7978846, %v6226_v29  ;;  %v6179_v18 = vmul.f32 %v6158_v40, %v6158_v40 }
0x16a2   :  { %v6401_v53 = vpop.f32.mrf.mxu0  ;;  %v6273_v28 = vadd.f32 1.0, %v7447_v10 }
0x16a3   :  { %7448 = vtanh.f32 %v6242_v62  ;;  %v6195_v59 = vmul.f32 %v6179_v18, %v6158_v40  ;;  %v6402_v22 = vadd.f32 %v11190_v41, %v6401_v53 }
0x16a4   :  { %v6289_v32 = vmul.f32 0.5, %v6273_v28 }
0x16a5   :  { %v6211_v1 = vmul.f32 0.044715, %v6195_v59  ;;  %v6441_v42 = vadd.f32 %v6402_v22, %v10841_v34 }
0x16a6   :  { %v6305_v46 = vmul.f32 %v6289_v32, %v6152_v21 }
0x16a7   :  { %v6227_v24 = vadd.f32 %v6211_v1, %v6158_v40  ;;  %6457 = vst.msk [vmem:[%s11320_s17 + $0x20] sm:$0xff] %vm74_vm0, %v6441_v42 }
0x16a8   :  { %6814 = vmatmul.msk.f32.gmra.mxu0 %vm3030_vm11, %v6305_v46 }
0x16a9   :  { %v7449_v48 = vpop.eup %7448  ;;  %v6243_v35 = vmul.f32 0.7978846, %v6227_v24 }
0x16aa   :  { %v6404_v0 = vpop.f32.mrf.mxu0  ;;  %v6274_v7 = vadd.f32 1.0, %v7449_v48 }
0x16ab   :  { %7450 = vtanh.f32 %v6243_v35  ;;  %v6405_v58 = vadd.f32 %v11190_v41, %v6404_v0 }
0x16ac   :  { %v6290_v61 = vmul.f32 0.5, %v6274_v7 }
0x16ad   :  { %v6442_v23 = vadd.f32 %v6405_v58, %v10846_v6 }
0x16ae   :  { %v6306_v34 = vmul.f32 %v6290_v61, %v6155_v44 }
0x16af   :  { %6458 = vst.msk [vmem:[%s11320_s17 + $0x28] sm:$0xff] %vm74_vm0, %v6442_v23 }
0x16b0   :  { %6815 = vmatmul.msk.f32.gmra.mxu0 %vm3030_vm11, %v6306_v34 }
0x16b1   :  { %v7451_v47 = vpop.eup %7450 }
0x16b2   :  { %v6407_v20 = vpop.f32.mrf.mxu0  ;;  %v6275_v21 = vadd.f32 1.0, %v7451_v47 }
0x16b3   :  { %v6408_v37 = vadd.f32 %v11190_v41, %v6407_v20 }
0x16b4   :  { %v6291_v26 = vmul.f32 0.5, %v6275_v21 }
0x16b5   :  { %v6443_v27 = vadd.f32 %v6408_v37, %v10851_v12 }
0x16b6   :  { %v6307_v56 = vmul.f32 %v6291_v26, %v6158_v40 }
0x16b7   :  { %6459 = vst.msk [vmem:[%s11320_s17 + $0x30] sm:$0xff] %vm74_vm0, %v6443_v27 }
0x16b8   :  { %6816 = vmatmul.msk.f32.gmra.mxu0 %vm3030_vm11, %v6307_v56 }
0x16f1   :  { %v6160_v6 = vpop.f32.mrf.mxu3 }
0x16f2   :  { %v6161_v45 = vadd.f32 %v11096_v15, %v6160_v6 }
0x16f4   :  { %v6180_v33 = vmul.f32 %v6161_v45, %v6161_v45 }
0x16f6   :  { %v6196_v31 = vmul.f32 %v6180_v33, %v6161_v45 }
0x16f8   :  { %v6212_v49 = vmul.f32 0.044715, %v6196_v31 }
0x16f9   :  { %v6163_v63 = vpop.f32.mrf.mxu3 }
0x16fa   :  { %v6228_v25 = vadd.f32 %v6212_v49, %v6161_v45  ;;  %v6164_v52 = vadd.f32 %v11096_v15, %v6163_v63 }
0x16fc   :  { %v6244_v3 = vmul.f32 0.7978846, %v6228_v25  ;;  %v6181_v12 = vmul.f32 %v6164_v52, %v6164_v52 }
0x16fe   :  { %7452 = vtanh.f32 %v6244_v3  ;;  %v6197_v51 = vmul.f32 %v6181_v12, %v6164_v52 }
0x1700   :  { %v6213_v44 = vmul.f32 0.044715, %v6197_v51 }
0x1702   :  { %v6229_v43 = vadd.f32 %v6213_v44, %v6164_v52 }
0x1704   :  { %v7453_v16 = vpop.eup %7452  ;;  %v6245_v4 = vmul.f32 0.7978846, %v6229_v43 }
0x1705   :  { %v6410_v38 = vpop.f32.mrf.mxu0  ;;  %v6276_v55 = vadd.f32 1.0, %v7453_v16 }
0x1706   :  { %7454 = vtanh.f32 %v6245_v4  ;;  %v6411_v36 = vadd.f32 %v11190_v41, %v6410_v38 }
0x1707   :  { %v6292_v50 = vmul.f32 0.5, %v6276_v55 }
0x1708   :  { %v6444_v5 = vadd.f32 %v6411_v36, %v10864_v54 }
0x1709   :  { %v6308_v19 = vmul.f32 %v6292_v50, %v6161_v45 }
0x170a   :  { %6460 = vst.msk [vmem:[%s11320_s17 + $0x38] sm:$0xff] %vm74_vm0, %v6444_v5 }
0x170b   :  { %6817 = vmatmul.msk.f32.gmra.mxu0 %vm3030_vm11, %v6308_v19 }
0x170c   :  { %v7455_v15 = vpop.eup %7454 }
0x170d   :  { %v6413_v60 = vpop.f32.mrf.mxu0  ;;  %v6277_v8 = vadd.f32 1.0, %v7455_v15 }
0x170e   :  { %v6414_v2 = vadd.f32 %v11190_v41, %v6413_v60 }
0x170f   :  { %v6293_v29 = vmul.f32 0.5, %v6277_v8 }
0x1710   :  { %v6445_v40 = vadd.f32 %v6414_v2, %v10876_v39 }
0x1711   :  { %v6309_v10 = vmul.f32 %v6293_v29, %v6164_v52 }
0x1712   :  { %6461 = vst.msk [vmem:[%s11320_s17 + $0x40] sm:$0xff] %vm74_vm0, %v6445_v40 }
0x1713   :  { %6818 = vmatmul.msk.f32.gmra.mxu0 %vm3030_vm11, %v6309_v10 }
0x1715   :  { %v6416_v54 = vpop.f32.mrf.mxu0 }
0x1716   :  { %v6417_v62 = vadd.f32 %v11190_v41, %v6416_v54 }
0x1718   :  { %v6446_v18 = vadd.f32 %v6417_v62, %v10888_v30 }
0x171a   :  { %6462 = vst.msk [vmem:[%s11320_s17 + $0x48] sm:$0xff] %vm74_vm0, %v6446_v18 }
0x171d   :  { %v6419_v53 = vpop.f32.mrf.mxu0 }
0x171e   :  { %v6420_v39 = vadd.f32 %v11190_v41, %v6419_v53 }
0x1720   :  { %v6447_v28 = vadd.f32 %v6420_v39, %v10900_v9 }
0x1722   :  { %6463 = vst.msk [vmem:[%s11320_s17 + $0x50] sm:$0xff] %vm74_vm0, %v6447_v28 }
0x1725   :  { %v6422_v59 = vpop.f32.mrf.mxu0 }
0x1726   :  { %v6423_v22 = vadd.f32 %v11190_v41, %v6422_v59 }
0x1728   :  { %v6448_v30 = vadd.f32 %v6423_v22, %v10912_v17 }
0x172a   :  { %6464 = vst.msk [vmem:[%s11320_s17 + $0x58] sm:$0xff] %vm74_vm0, %v6448_v30 }
0x172d   :  { %v6425_v32 = vpop.f32.mrf.mxu0 }
0x172e   :  { %v6426_v1 = vadd.f32 %v11190_v41, %v6425_v32 }
0x1730   :  { %v6449_v9 = vadd.f32 %v6426_v1, %v10924_v13 }
0x1732   :  { %6465 = vst.msk [vmem:[%s11320_s17 + $0x60] sm:$0xff] %vm74_vm0, %v6449_v9 }
0x1735   :  { %v6428_v42 = vpop.f32.mrf.mxu0 }
0x1736   :  { %v6429_v46 = vadd.f32 %v11190_v41, %v6428_v42 }
0x1738   :  { %v6450_v17 = vadd.f32 %v6429_v46, %v10935_v57 }
0x173a   :  { %6466 = vst.msk [vmem:[%s11320_s17 + $0x68] sm:$0xff] %vm74_vm0, %v6450_v17 }
0x1788   :  { %v6431_v24 = vpop.f32.mrf.mxu0 }
0x1789   :  { %v6432_v48 = vadd.f32 %v11190_v41, %v6431_v24 }
0x178b   :  { %v6451_v13 = vadd.f32 %v6432_v48, %v10957_v14 }
0x178d   :  { %6467 = vst.msk [vmem:[%s11320_s17 + $0x70] sm:$0xff] %vm74_vm0, %v6451_v13 }
0x1790   :  { %v6434_v35 = vpop.f32.mrf.mxu0 }
0x1791   :  { %v6435_v0 = vadd.f32 %v11190_v41, %v6434_v35 }
0x1793   :  { %v6452_v57 = vadd.f32 %v6435_v0, %v10982_v11 }
0x1795   :  { %6468 = vst.msk [vmem:[%s11320_s17 + $0x78] sm:$0xff] %vm74_vm0, %v6452_v57 }

</bundles_post_ra>
